<compile_context>
chip_gen: v7x
topology: tpu7x:2x2x1
jax: 0.10.0
libtpu: 0.0.40
codegen_flags: <defaults>
</compile_context>

<pallas_src>
import functools

import numpy as np
import jax
import jax.numpy as jnp
from jax.experimental import pallas as pl
from jax.experimental.pallas import tpu as pltpu


_PH = 3    # H halo (both sides) for the 7x1 convs
_LW = 8    # left W halo (sublane-aligned interior writes)
_RW = 3    # right W halo for the 1x7 convs
_PLW = 8   # left W halo of the pool scratch (aligned interior writes)


# ----------------------------------------------------------------------------
# Pallas kernel: whole Inception_B block for one batch element (NHWC layout,
# channels on the TPU lane dim).
# ----------------------------------------------------------------------------

def _inception_b_kernel(x_ref, inv_ref,
                        w0_ref, b0_ref,
                        w11_ref, b11_ref, w12_ref, b12_ref,
                        w21_ref, b21_ref, w22_ref, b22_ref,
                        w23_ref, b23_ref, w24_ref, b24_ref,
                        w3_ref, b3_ref,
                        out_ref, halo_ref, pool_ref, *, C0, C1a):
    H = out_ref.shape[1]
    W = out_ref.shape[2]
    Cin = x_ref.shape[3]

    # Zero the scratches ONCE.  Invariant: every staging store below only
    # touches the interior [_PH:_PH+H, _LW:_LW+W] (resp. [1:1+H, _PLW:_PLW+W]),
    # so the borders stay zero across all grid iterations and provide the
    # 'same' zero padding for every conv and for the pool.
    @pl.when(pl.program_id(0) == 0)
    def _init():
        halo_ref[...] = jnp.zeros(halo_ref.shape, halo_ref.dtype)
        pool_ref[...] = jnp.zeros(pool_ref.shape, pool_ref.dtype)

    def store_out(val2d, off, cout):
        # Store a finished branch directly into its channel slice of the
        # output block (no in-register concat, nothing stays live).
        out_ref[:, :, :, off:off + cout] = (
            val2d.reshape(1, H, W, cout).astype(out_ref.dtype))

    def conv7(act2d, w_ref, b_ref, axis):
        # 'same' 7-tap conv along H (axis=0) or W (axis=1): 7 accumulating
        # MXU dots on shifted halo slices (bf16 staging, f32 accumulation).
        cin = w_ref.shape[0] // 7
        cout = w_ref.shape[1]
        halo_ref[_PH:_PH + H, _LW:_LW + W, :cin] = (
            act2d.reshape(H, W, cin).astype(halo_ref.dtype))
        acc = jnp.zeros((H * W, cout), jnp.float32)
        for t in range(7):
            if axis == 0:
                tap = halo_ref[t:t + H, _LW:_LW + W, :cin]
            else:
                tap = halo_ref[_PH:_PH + H, _LW - 3 + t:_LW - 3 + t + W, :cin]
            acc = acc + jnp.dot(tap.reshape(H * W, cin),
                                w_ref[t * cin:(t + 1) * cin, :],
                                preferred_element_type=jnp.float32)
        return jnp.maximum(acc + b_ref[...], 0.0)

    # Fused shared-input 1x1 convs: branch0 | branch1[0] | branch2[0].
    # Feed the MXU straight from the (already bf16) input block.
    x2d = x_ref[0].reshape(H * W, Cin)
    y = jnp.dot(x2d, w0_ref[...], preferred_element_type=jnp.float32)
    y = jnp.maximum(y + b0_ref[...], 0.0)
    x0 = y[:, :C0]
    a1 = y[:, C0:C0 + C1a]
    a2 = y[:, C0 + C1a:]

    C1 = w12_ref.shape[1]
    C2 = w24_ref.shape[1]
    C3 = w3_ref.shape[1]

    store_out(x0, 0, C0)                                   # branch0 done

    # branch1: 1x7 then 7x1.
    a1 = conv7(a1, w11_ref, b11_ref, axis=1)
    x1 = conv7(a1, w12_ref, b12_ref, axis=0)
    store_out(x1, C0, C1)

    # branch2: 7x1, 1x7, 7x1, 1x7.
    a2 = conv7(a2, w21_ref, b21_ref, axis=0)
    a2 = conv7(a2, w22_ref, b22_ref, axis=1)
    a2 = conv7(a2, w23_ref, b23_ref, axis=0)
    x2 = conv7(a2, w24_ref, b24_ref, axis=1)
    store_out(x2, C0 + C1, C2)

    # branch3: 3x3 avg-pool (count_include_pad=False) fused with its 1x1 conv.
    pool_ref[1:1 + H, _PLW:_PLW + W, :] = x_ref[0]          # bf16 staging
    # Separable 3x3 sum (2 + 2 adds); accumulate in f32.
    rows = (pool_ref[0:H, _PLW - 1:_PLW + W + 1, :].astype(jnp.float32)
            + pool_ref[1:1 + H, _PLW - 1:_PLW + W + 1, :].astype(jnp.float32)
            + pool_ref[2:2 + H, _PLW - 1:_PLW + W + 1, :].astype(jnp.float32))
    pooled = rows[:, 0:W, :] + rows[:, 1:1 + W, :] + rows[:, 2:2 + W, :]
    y3 = jnp.dot(pooled.reshape(H * W, Cin).astype(jnp.bfloat16), w3_ref[...],
                 preferred_element_type=jnp.float32)
    # The per-pixel pool reciprocal commutes through the 1x1 conv -> apply it
    # on the narrow output lanes instead of the Cin-wide pooled activation.
    x3 = jnp.maximum(y3 * inv_ref[0].reshape(H * W, 1) + b3_ref[...], 0.0)
    store_out(x3, C0 + C1 + C2, C3)


# ----------------------------------------------------------------------------
# Parameter init / BN folding (eval mode), matching BasicConv2d shapes.
# ----------------------------------------------------------------------------

def _fold_bn_conv(w_oihw, gamma, beta, r_mean, r_var, eps=1e-3):
    scale = gamma / jnp.sqrt(r_var + eps)
    bias = beta - r_mean * scale
    w_hwio = jnp.transpose(w_oihw, (2, 3, 1, 0)) * scale     # (KH, KW, Cin, Cout)
    return w_hwio.astype(jnp.bfloat16), bias.reshape(1, -1).astype(jnp.float32)


def init_basic_conv(key, cin, cout, kh, kw):
    k1, k2, k3, k4, k5 = jax.random.split(key, 5)
    w = jax.random.normal(k1, (cout, cin, kh, kw), jnp.float32) * 0.1   # PyTorch OIHW
    gamma = 1.0 + 0.1 * jax.random.normal(k2, (cout,), jnp.float32)
    beta = 0.1 * jax.random.normal(k3, (cout,), jnp.float32)
    r_mean = 0.1 * jax.random.normal(k4, (cout,), jnp.float32)
    r_var = 1.0 + 0.1 * jnp.abs(jax.random.normal(k5, (cout,), jnp.float32))
    w_hwio, bias = _fold_bn_conv(w, gamma, beta, r_mean, r_var)
    return dict(
        w=w_hwio.reshape(kh * kw * cin, cout),   # (K, Cout): tap-major packing
        w_hwio=w_hwio,                           # for the pure-JAX reference
        bias=bias,
        kh=kh, kw=kw, ph=(kh - 1) // 2, pw=(kw - 1) // 2,
    )


def init_inception_b(key, m, in_features):
    keys = iter(jax.random.split(key, 16))
    params = {
        "branch0": [init_basic_conv(next(keys), in_features, m(384), 1, 1)],
        "branch1": [
            init_basic_conv(next(keys), in_features, m(192), 1, 1),
            init_basic_conv(next(keys), m(192), m(224), 1, 7),
            init_basic_conv(next(keys), m(224), m(256), 7, 1),
        ],
        "branch2": [
            init_basic_conv(next(keys), in_features, m(192), 1, 1),
            init_basic_conv(next(keys), m(192), m(192), 7, 1),
            init_basic_conv(next(keys), m(192), m(224), 1, 7),
            init_basic_conv(next(keys), m(224), m(224), 7, 1),
            init_basic_conv(next(keys), m(224), m(256), 1, 7),
        ],
        "branch3": [init_basic_conv(next(keys), in_features, m(128), 1, 1)],
    }
    out_features = m(384) + m(256) + m(256) + m(128)
    return params, out_features


def _pool_inv(H, W):
    """Reciprocal of the count_include_pad=False divisor for a 3x3/s1/p1 pool."""
    ch = np.minimum(np.arange(H) + 1, H - 1) - np.maximum(np.arange(H) - 1, 0) + 1
    cw = np.minimum(np.arange(W) + 1, W - 1) - np.maximum(np.arange(W) - 1, 0) + 1
    return (1.0 / (ch[:, None] * cw[None, :])).astype(np.float32)


# ----------------------------------------------------------------------------
# Forward pass (mirrors Inception_B.forward) — one fused pallas_call.
# ----------------------------------------------------------------------------

def inception_b_forward(x_nchw, params):
    x = jnp.transpose(x_nchw, (0, 2, 3, 1)).astype(jnp.bfloat16)   # NHWC, bf16
    N, H, W, Cin = x.shape

    b0 = params["branch0"][0]
    b1 = params["branch1"]
    b2 = params["branch2"]
    b3 = params["branch3"][0]

    # Fuse the three 1x1 convs that read the raw input along Cout.
    w_fused = jnp.concatenate([b0["w"], b1[0]["w"], b2[0]["w"]], axis=1)
    bias_fused = jnp.concatenate([b0["bias"], b1[0]["bias"], b2[0]["bias"]], axis=1)
    C0 = b0["w"].shape[1]
    C1a = b1[0]["w"].shape[1]

    inv = jnp.asarray(_pool_inv(H, W)).reshape(1, H, W, 1)

    conv_args = [
        w_fused, bias_fused,
        b1[1]["w"], b1[1]["bias"], b1[2]["w"], b1[2]["bias"],
        b2[1]["w"], b2[1]["bias"], b2[2]["w"], b2[2]["bias"],
        b2[3]["w"], b2[3]["bias"], b2[4]["w"], b2[4]["bias"],
        b3["w"], b3["bias"],
    ]

    Cout_total = C0 + b1[2]["w"].shape[1] + b2[4]["w"].shape[1] + b3["w"].shape[1]
    # Halo scratch lane width: only conv7 activations are staged there.
    conv7_cins = [b1[1]["w"].shape[0] // 7, b1[2]["w"].shape[0] // 7,
                  b2[1]["w"].shape[0] // 7, b2[2]["w"].shape[0] // 7,
                  b2[3]["w"].shape[0] // 7, b2[4]["w"].shape[0] // 7]
    Cpad7 = max(conv7_cins)

    def const_spec(a):
        # Constant over the grid -> fetch once, single-buffered (saves VMEM).
        nd = a.ndim
        return pl.BlockSpec(a.shape, lambda n, _nd=nd: (0,) * _nd,
                            pipeline_mode=pl.Buffered(1))

    kernel = functools.partial(_inception_b_kernel, C0=C0, C1a=C1a)
    out = pl.pallas_call(
        kernel,
        out_shape=jax.ShapeDtypeStruct((N, H, W, Cout_total), jnp.bfloat16),
        grid=(N,),
        in_specs=[pl.BlockSpec((1, H, W, Cin), lambda n: (n, 0, 0, 0)),
                  const_spec(inv)] + [const_spec(a) for a in conv_args],
        out_specs=pl.BlockSpec((1, H, W, Cout_total), lambda n: (n, 0, 0, 0)),
        scratch_shapes=[
            pltpu.VMEM((H + 2 * _PH, _LW + W + _RW, Cpad7), jnp.bfloat16),
            pltpu.VMEM((H + 2, _PLW + W + 1, Cin), jnp.bfloat16),
        ],
        compiler_params=pltpu.CompilerParams(
            dimension_semantics=("parallel",),
            # TODO(synk): tune per generation (keep <= ~48-56 MB on v7x's 64 MiB).
            vmem_limit_bytes=64 * 1024 * 1024),
        # TODO(synk): for v7x (2 TensorCores) add a spatially-split "parallel"
        # grid axis (overlapping 3-row bands) so both TCs are busy when N == 1.
    )(x, inv, *conv_args)

    return jnp.transpose(out, (0, 3, 1, 2))                         # back to NCHW


# ----------------------------------------------------------------------------
# Pure-JAX reference (same bf16 rounding discipline) for correctness checking.
# ----------------------------------------------------------------------------

def _ref_conv_bn_relu(x_nhwc, p):
    xb = x_nhwc.astype(jnp.bfloat16).astype(jnp.float32)
    w = p["w_hwio"].astype(jnp.float32)
    y = jax.lax.conv_general_dilated(
        xb, w, window_strides=(1, 1),
        padding=((p["ph"], p["ph"]), (p["pw"], p["pw"])),
        dimension_numbers=("NHWC", "HWIO", "NHWC"),
        precision=jax.lax.Precision.HIGHEST)
    return jnp.maximum(y + p["bias"], 0.0)


def _ref_avgpool3(x_nhwc):
    N, H, W, C = x_nhwc.shape
    xb = x_nhwc.astype(jnp.bfloat16).astype(jnp.float32)
    xp = jnp.pad(xb, ((0, 0), (1, 1), (1, 1), (0, 0)))
    acc = jnp.zeros_like(xb)
    for i in range(3):
        for j in range(3):
            acc = acc + xp[:, i:i + H, j:j + W, :]
    return acc * jnp.asarray(_pool_inv(H, W))[None, :, :, None]


def inception_b_reference(x_nchw, params):
    x = jnp.transpose(x_nchw, (0, 2, 3, 1))
    x0 = _ref_conv_bn_relu(x, params["branch0"][0])
    x1 = x
    for p in params["branch1"]:
        x1 = _ref_conv_bn_relu(x1, p)
    x2 = x
    for p in params["branch2"]:
        x2 = _ref_conv_bn_relu(x2, p)
    x3 = _ref_conv_bn_relu(_ref_avgpool3(x), params["branch3"][0])
    out = jnp.concatenate([x0, x1, x2, x3], axis=-1)
    return jnp.transpose(out, (0, 3, 1, 2))


# ----------------------------------------------------------------------------
# Main
# ----------------------------------------------------------------------------

if __name__ == "__main__":
    # Small synthetic config: m scales channels down by 16.
    m = lambda c: c // 16           # 384->24, 192->12, 224->14, 256->16, 128->8
    in_features = 16
    N, H, W = 2, 8, 8

    key = jax.random.PRNGKey(0)
    kx, kp = jax.random.split(key)
    x = jax.random.normal(kx, (N, in_features, H, W), jnp.float32)  # NCHW like PyTorch

    params, out_features = init_inception_b(kp, m, in_features)

    fwd = jax.jit(lambda xx: inception_b_forward(xx, params))
    out = jax.block_until_ready(fwd(x))

    assert out.shape == (N, out_features, H, W), out.shape
    assert bool(jnp.all(jnp.isfinite(out)))
    assert bool(jnp.all(out >= 0.0))   # ReLU at the end of every branch

    # Check against a pure-JAX reference mirroring the bf16 rounding (the
    # kernel emits bf16 activations, so round the reference the same way).
    ref = jax.block_until_ready(
        jax.jit(lambda xx: inception_b_reference(xx, params))(x))
    ref_q = ref.astype(jnp.bfloat16).astype(jnp.float32)
    out_f32 = out.astype(jnp.float32)
    max_err = float(jnp.max(jnp.abs(out_f32 - ref_q)))
    assert jnp.allclose(out_f32, ref_q, atol=2e-2, rtol=2e-2), max_err

    print("KERNEL_OK")
</pallas_src>

<mosaic_0001>
module attributes {stable_mosaic.version = 11 : i64} {
  func.func @_inception_b_kernel(%arg0: i32, %arg1: memref<1x8x8x16xbf16, #tpu.memory_space<vmem>>, %arg2: memref<1x8x8x1xf32, #tpu.memory_space<vmem>>, %arg3: memref<16x48xbf16, #tpu.memory_space<vmem>>, %arg4: memref<1x48xf32, #tpu.memory_space<vmem>>, %arg5: memref<84x14xbf16, #tpu.memory_space<vmem>>, %arg6: memref<1x14xf32, #tpu.memory_space<vmem>>, %arg7: memref<98x16xbf16, #tpu.memory_space<vmem>>, %arg8: memref<1x16xf32, #tpu.memory_space<vmem>>, %arg9: memref<84x12xbf16, #tpu.memory_space<vmem>>, %arg10: memref<1x12xf32, #tpu.memory_space<vmem>>, %arg11: memref<84x14xbf16, #tpu.memory_space<vmem>>, %arg12: memref<1x14xf32, #tpu.memory_space<vmem>>, %arg13: memref<98x14xbf16, #tpu.memory_space<vmem>>, %arg14: memref<1x14xf32, #tpu.memory_space<vmem>>, %arg15: memref<98x16xbf16, #tpu.memory_space<vmem>>, %arg16: memref<1x16xf32, #tpu.memory_space<vmem>>, %arg17: memref<16x8xbf16, #tpu.memory_space<vmem>>, %arg18: memref<1x8xf32, #tpu.memory_space<vmem>>, %arg19: memref<1x8x8x64xbf16, #tpu.memory_space<vmem>>, %arg20: memref<14x19x14xbf16, #tpu.memory_space<vmem>>, %arg21: memref<10x17x16xbf16, #tpu.memory_space<vmem>>) attributes {dimension_semantics = [#tpu.dimension_semantics<parallel>], iteration_bounds = array<i64: 2>, scalar_prefetch = 0 : i64, scratch_operands = 2 : i64, tpu.core_type = #tpu.core_type<tc>, window_params = [{transform_indices = @transform_0, window_bounds = array<i64: 1, 8, 8, 16>}, {pipeline_mode = #tpu.pipeline_mode<synchronous>, transform_indices = @transform_1, window_bounds = array<i64: 1, 8, 8, 1>}, {pipeline_mode = #tpu.pipeline_mode<synchronous>, transform_indices = @transform_2, window_bounds = array<i64: 16, 48>}, {pipeline_mode = #tpu.pipeline_mode<synchronous>, transform_indices = @transform_3, window_bounds = array<i64: 1, 48>}, {pipeline_mode = #tpu.pipeline_mode<synchronous>, transform_indices = @transform_4, window_bounds = array<i64: 84, 14>}, {pipeline_mode = #tpu.pipeline_mode<synchronous>, transform_indices = @transform_5, window_bounds = array<i64: 1, 14>}, {pipeline_mode = #tpu.pipeline_mode<synchronous>, transform_indices = @transform_6, window_bounds = array<i64: 98, 16>}, {pipeline_mode = #tpu.pipeline_mode<synchronous>, transform_indices = @transform_7, window_bounds = array<i64: 1, 16>}, {pipeline_mode = #tpu.pipeline_mode<synchronous>, transform_indices = @transform_8, window_bounds = array<i64: 84, 12>}, {pipeline_mode = #tpu.pipeline_mode<synchronous>, transform_indices = @transform_9, window_bounds = array<i64: 1, 12>}, {pipeline_mode = #tpu.pipeline_mode<synchronous>, transform_indices = @transform_10, window_bounds = array<i64: 84, 14>}, {pipeline_mode = #tpu.pipeline_mode<synchronous>, transform_indices = @transform_11, window_bounds = array<i64: 1, 14>}, {pipeline_mode = #tpu.pipeline_mode<synchronous>, transform_indices = @transform_12, window_bounds = array<i64: 98, 14>}, {pipeline_mode = #tpu.pipeline_mode<synchronous>, transform_indices = @transform_13, window_bounds = array<i64: 1, 14>}, {pipeline_mode = #tpu.pipeline_mode<synchronous>, transform_indices = @transform_14, window_bounds = array<i64: 98, 16>}, {pipeline_mode = #tpu.pipeline_mode<synchronous>, transform_indices = @transform_15, window_bounds = array<i64: 1, 16>}, {pipeline_mode = #tpu.pipeline_mode<synchronous>, transform_indices = @transform_16, window_bounds = array<i64: 16, 8>}, {pipeline_mode = #tpu.pipeline_mode<synchronous>, transform_indices = @transform_17, window_bounds = array<i64: 1, 8>}, {transform_indices = @transform_18, window_bounds = array<i64: 1, 8, 8, 64>}]} {
    %c0_i32 = arith.constant 0 : i32
    %0 = arith.cmpi eq, %arg0, %c0_i32 : i32
    %1 = arith.extui %0 : i1 to i32
    %c0_i32_0 = arith.constant 0 : i32
    %2 = arith.cmpi ne, %1, %c0_i32_0 : i32
    scf.if %2 {
      %cst_321 = arith.constant 0.000000e+00 : bf16
      %322 = vector.broadcast %cst_321 : bf16 to vector<14x19x14xbf16>
      %c0_322 = arith.constant 0 : index
      %c0_323 = arith.constant 0 : index
      %c0_324 = arith.constant 0 : index
      %323 = vector.load %arg20[%c0_322, %c0_323, %c0_324] : memref<14x19x14xbf16, #tpu.memory_space<vmem>>, vector<14x19x14xbf16>
      tpu.vector_store %arg20[%c0_322, %c0_323, %c0_324], %322 {strides = array<i32>} : memref<14x19x14xbf16, #tpu.memory_space<vmem>>, vector<14x19x14xbf16>,
      %cst_325 = arith.constant 0.000000e+00 : bf16
      %324 = vector.broadcast %cst_325 : bf16 to vector<10x17x16xbf16>
      %c0_326 = arith.constant 0 : index
      %c0_327 = arith.constant 0 : index
      %c0_328 = arith.constant 0 : index
      %325 = vector.load %arg21[%c0_326, %c0_327, %c0_328] : memref<10x17x16xbf16, #tpu.memory_space<vmem>>, vector<10x17x16xbf16>
      tpu.vector_store %arg21[%c0_326, %c0_327, %c0_328], %324 {strides = array<i32>} : memref<10x17x16xbf16, #tpu.memory_space<vmem>>, vector<10x17x16xbf16>,
    } else {
    }
    %c0 = arith.constant 0 : index
    %c0_1 = arith.constant 0 : index
    %c0_2 = arith.constant 0 : index
    %c0_3 = arith.constant 0 : index
    %3 = vector.load %arg1[%c0, %c0_1, %c0_2, %c0_3] : memref<1x8x8x16xbf16, #tpu.memory_space<vmem>>, vector<1x8x8x16xbf16>
    %4 = vector.shape_cast %3 : vector<1x8x8x16xbf16> to vector<8x8x16xbf16>
    %5 = vector.shape_cast %4 : vector<8x8x16xbf16> to vector<64x16xbf16>
    %c0_4 = arith.constant 0 : index
    %c0_5 = arith.constant 0 : index
    %6 = vector.load %arg3[%c0_4, %c0_5] : memref<16x48xbf16, #tpu.memory_space<vmem>>, vector<16x48xbf16>
    %cst = arith.constant dense<0.000000e+00> : vector<64x48xf32>
    %7 = tpu.matmul %5, %6, %cst {dimension_numbers = #tpu.dot_dimension_numbers<[1], [0], [0], [1], [0, 0, 1, 1], [], []>} : vector<64x16xbf16>, vector<16x48xbf16>, vector<64x48xf32> -> vector<64x48xf32>
    %c0_6 = arith.constant 0 : index
    %c0_7 = arith.constant 0 : index
    %8 = vector.load %arg4[%c0_6, %c0_7] : memref<1x48xf32, #tpu.memory_space<vmem>>, vector<1x48xf32>
    %9 = vector.broadcast %8 : vector<1x48xf32> to vector<64x48xf32>
    %10 = arith.addf %7, %9 : vector<64x48xf32>
    %cst_8 = arith.constant 0.000000e+00 : f32
    %11 = vector.broadcast %cst_8 : f32 to vector<64x48xf32>
    %12 = arith.maximumf %10, %11 : vector<64x48xf32>
    %13 = vector.extract_strided_slice %12 {offsets = [0, 0], sizes = [64, 24], strides = [1, 1]} : vector<64x48xf32> to vector<64x24xf32>
    %14 = vector.extract_strided_slice %12 {offsets = [0, 24], sizes = [64, 12], strides = [1, 1]} : vector<64x48xf32> to vector<64x12xf32>
    %15 = vector.extract_strided_slice %12 {offsets = [0, 36], sizes = [64, 12], strides = [1, 1]} : vector<64x48xf32> to vector<64x12xf32>
    %16 = vector.shape_cast %13 : vector<64x24xf32> to vector<1x8x8x24xf32>
    %17 = arith.truncf %16 : vector<1x8x8x24xf32> to vector<1x8x8x24xbf16>
    %c0_9 = arith.constant 0 : index
    %c0_10 = arith.constant 0 : index
    %c0_11 = arith.constant 0 : index
    %c0_12 = arith.constant 0 : index
    %18 = vector.load %arg19[%c0_9, %c0_10, %c0_11, %c0_12] : memref<1x8x8x64xbf16, #tpu.memory_space<vmem>>, vector<1x8x8x24xbf16>
    tpu.vector_store %arg19[%c0_9, %c0_10, %c0_11, %c0_12], %17 {strides = array<i32>} : memref<1x8x8x64xbf16, #tpu.memory_space<vmem>>, vector<1x8x8x24xbf16>,
    %19 = vector.shape_cast %14 : vector<64x12xf32> to vector<8x8x12xf32>
    %20 = arith.truncf %19 : vector<8x8x12xf32> to vector<8x8x12xbf16>
    %c3 = arith.constant 3 : index
    %c8 = arith.constant 8 : index
    %c0_13 = arith.constant 0 : index
    %21 = vector.load %arg20[%c3, %c8, %c0_13] : memref<14x19x14xbf16, #tpu.memory_space<vmem>>, vector<8x8x12xbf16>
    tpu.vector_store %arg20[%c3, %c8, %c0_13], %20 {strides = array<i32>} : memref<14x19x14xbf16, #tpu.memory_space<vmem>>, vector<8x8x12xbf16>,
    %cst_14 = arith.constant 0.000000e+00 : f32
    %22 = vector.broadcast %cst_14 : f32 to vector<64x14xf32>
    %c3_15 = arith.constant 3 : index
    %c5 = arith.constant 5 : index
    %c0_16 = arith.constant 0 : index
    %23 = vector.load %arg20[%c3_15, %c5, %c0_16] : memref<14x19x14xbf16, #tpu.memory_space<vmem>>, vector<8x8x12xbf16>
    %24 = vector.shape_cast %23 : vector<8x8x12xbf16> to vector<64x12xbf16>
    %c0_17 = arith.constant 0 : index
    %c0_18 = arith.constant 0 : index
    %25 = vector.load %arg5[%c0_17, %c0_18] : memref<84x14xbf16, #tpu.memory_space<vmem>>, vector<12x14xbf16>
    %cst_19 = arith.constant dense<0.000000e+00> : vector<64x14xf32>
    %26 = tpu.matmul %24, %25, %cst_19 {dimension_numbers = #tpu.dot_dimension_numbers<[1], [0], [0], [1], [0, 0, 1, 1], [], []>} : vector<64x12xbf16>, vector<12x14xbf16>, vector<64x14xf32> -> vector<64x14xf32>
    %27 = arith.addf %22, %26 : vector<64x14xf32>
    %c3_20 = arith.constant 3 : index
    %c6 = arith.constant 6 : index
    %c0_21 = arith.constant 0 : index
    %28 = vector.load %arg20[%c3_20, %c6, %c0_21] : memref<14x19x14xbf16, #tpu.memory_space<vmem>>, vector<8x8x12xbf16>
    %29 = vector.shape_cast %28 : vector<8x8x12xbf16> to vector<64x12xbf16>
    %c12 = arith.constant 12 : index
    %c0_22 = arith.constant 0 : index
    %30 = vector.load %arg5[%c12, %c0_22] : memref<84x14xbf16, #tpu.memory_space<vmem>>, vector<12x14xbf16>
    %cst_23 = arith.constant dense<0.000000e+00> : vector<64x14xf32>
    %31 = tpu.matmul %29, %30, %cst_23 {dimension_numbers = #tpu.dot_dimension_numbers<[1], [0], [0], [1], [0, 0, 1, 1], [], []>} : vector<64x12xbf16>, vector<12x14xbf16>, vector<64x14xf32> -> vector<64x14xf32>
    %32 = arith.addf %27, %31 : vector<64x14xf32>
    %c3_24 = arith.constant 3 : index
    %c7 = arith.constant 7 : index
    %c0_25 = arith.constant 0 : index
    %33 = vector.load %arg20[%c3_24, %c7, %c0_25] : memref<14x19x14xbf16, #tpu.memory_space<vmem>>, vector<8x8x12xbf16>
    %34 = vector.shape_cast %33 : vector<8x8x12xbf16> to vector<64x12xbf16>
    %c24 = arith.constant 24 : index
    %c0_26 = arith.constant 0 : index
    %35 = vector.load %arg5[%c24, %c0_26] : memref<84x14xbf16, #tpu.memory_space<vmem>>, vector<12x14xbf16>
    %cst_27 = arith.constant dense<0.000000e+00> : vector<64x14xf32>
    %36 = tpu.matmul %34, %35, %cst_27 {dimension_numbers = #tpu.dot_dimension_numbers<[1], [0], [0], [1], [0, 0, 1, 1], [], []>} : vector<64x12xbf16>, vector<12x14xbf16>, vector<64x14xf32> -> vector<64x14xf32>
    %37 = arith.addf %32, %36 : vector<64x14xf32>
    %c3_28 = arith.constant 3 : index
    %c8_29 = arith.constant 8 : index
    %c0_30 = arith.constant 0 : index
    %38 = vector.load %arg20[%c3_28, %c8_29, %c0_30] : memref<14x19x14xbf16, #tpu.memory_space<vmem>>, vector<8x8x12xbf16>
    %39 = vector.shape_cast %38 : vector<8x8x12xbf16> to vector<64x12xbf16>
    %c36 = arith.constant 36 : index
    %c0_31 = arith.constant 0 : index
    %40 = vector.load %arg5[%c36, %c0_31] : memref<84x14xbf16, #tpu.memory_space<vmem>>, vector<12x14xbf16>
    %cst_32 = arith.constant dense<0.000000e+00> : vector<64x14xf32>
    %41 = tpu.matmul %39, %40, %cst_32 {dimension_numbers = #tpu.dot_dimension_numbers<[1], [0], [0], [1], [0, 0, 1, 1], [], []>} : vector<64x12xbf16>, vector<12x14xbf16>, vector<64x14xf32> -> vector<64x14xf32>
    %42 = arith.addf %37, %41 : vector<64x14xf32>
    %c3_33 = arith.constant 3 : index
    %c9 = arith.constant 9 : index
    %c0_34 = arith.constant 0 : index
    %43 = vector.load %arg20[%c3_33, %c9, %c0_34] : memref<14x19x14xbf16, #tpu.memory_space<vmem>>, vector<8x8x12xbf16>
    %44 = vector.shape_cast %43 : vector<8x8x12xbf16> to vector<64x12xbf16>
    %c48 = arith.constant 48 : index
    %c0_35 = arith.constant 0 : index
    %45 = vector.load %arg5[%c48, %c0_35] : memref<84x14xbf16, #tpu.memory_space<vmem>>, vector<12x14xbf16>
    %cst_36 = arith.constant dense<0.000000e+00> : vector<64x14xf32>
    %46 = tpu.matmul %44, %45, %cst_36 {dimension_numbers = #tpu.dot_dimension_numbers<[1], [0], [0], [1], [0, 0, 1, 1], [], []>} : vector<64x12xbf16>, vector<12x14xbf16>, vector<64x14xf32> -> vector<64x14xf32>
    %47 = arith.addf %42, %46 : vector<64x14xf32>
    %c3_37 = arith.constant 3 : index
    %c10 = arith.constant 10 : index
    %c0_38 = arith.constant 0 : index
    %48 = vector.load %arg20[%c3_37, %c10, %c0_38] : memref<14x19x14xbf16, #tpu.memory_space<vmem>>, vector<8x8x12xbf16>
    %49 = vector.shape_cast %48 : vector<8x8x12xbf16> to vector<64x12xbf16>
    %c60 = arith.constant 60 : index
    %c0_39 = arith.constant 0 : index
    %50 = vector.load %arg5[%c60, %c0_39] : memref<84x14xbf16, #tpu.memory_space<vmem>>, vector<12x14xbf16>
    %cst_40 = arith.constant dense<0.000000e+00> : vector<64x14xf32>
    %51 = tpu.matmul %49, %50, %cst_40 {dimension_numbers = #tpu.dot_dimension_numbers<[1], [0], [0], [1], [0, 0, 1, 1], [], []>} : vector<64x12xbf16>, vector<12x14xbf16>, vector<64x14xf32> -> vector<64x14xf32>
    %52 = arith.addf %47, %51 : vector<64x14xf32>
    %c3_41 = arith.constant 3 : index
    %c11 = arith.constant 11 : index
    %c0_42 = arith.constant 0 : index
    %53 = vector.load %arg20[%c3_41, %c11, %c0_42] : memref<14x19x14xbf16, #tpu.memory_space<vmem>>, vector<8x8x12xbf16>
    %54 = vector.shape_cast %53 : vector<8x8x12xbf16> to vector<64x12xbf16>
    %c72 = arith.constant 72 : index
    %c0_43 = arith.constant 0 : index
    %55 = vector.load %arg5[%c72, %c0_43] : memref<84x14xbf16, #tpu.memory_space<vmem>>, vector<12x14xbf16>
    %cst_44 = arith.constant dense<0.000000e+00> : vector<64x14xf32>
    %56 = tpu.matmul %54, %55, %cst_44 {dimension_numbers = #tpu.dot_dimension_numbers<[1], [0], [0], [1], [0, 0, 1, 1], [], []>} : vector<64x12xbf16>, vector<12x14xbf16>, vector<64x14xf32> -> vector<64x14xf32>
    %57 = arith.addf %52, %56 : vector<64x14xf32>
    %c0_45 = arith.constant 0 : index
    %c0_46 = arith.constant 0 : index
    %58 = vector.load %arg6[%c0_45, %c0_46] : memref<1x14xf32, #tpu.memory_space<vmem>>, vector<1x14xf32>
    %59 = vector.broadcast %58 : vector<1x14xf32> to vector<64x14xf32>
    %60 = arith.addf %57, %59 : vector<64x14xf32>
    %cst_47 = arith.constant 0.000000e+00 : f32
    %61 = vector.broadcast %cst_47 : f32 to vector<64x14xf32>
    %62 = arith.maximumf %60, %61 : vector<64x14xf32>
    %63 = vector.shape_cast %62 : vector<64x14xf32> to vector<8x8x14xf32>
    %64 = arith.truncf %63 : vector<8x8x14xf32> to vector<8x8x14xbf16>
    %c3_48 = arith.constant 3 : index
    %c8_49 = arith.constant 8 : index
    %c0_50 = arith.constant 0 : index
    %65 = vector.load %arg20[%c3_48, %c8_49, %c0_50] : memref<14x19x14xbf16, #tpu.memory_space<vmem>>, vector<8x8x14xbf16>
    tpu.vector_store %arg20[%c3_48, %c8_49, %c0_50], %64 {strides = array<i32>} : memref<14x19x14xbf16, #tpu.memory_space<vmem>>, vector<8x8x14xbf16>,
    %cst_51 = arith.constant 0.000000e+00 : f32
    %66 = vector.broadcast %cst_51 : f32 to vector<64x16xf32>
    %c0_52 = arith.constant 0 : index
    %c8_53 = arith.constant 8 : index
    %c0_54 = arith.constant 0 : index
    %67 = vector.load %arg20[%c0_52, %c8_53, %c0_54] : memref<14x19x14xbf16, #tpu.memory_space<vmem>>, vector<8x8x14xbf16>
    %68 = vector.shape_cast %67 : vector<8x8x14xbf16> to vector<64x14xbf16>
    %c0_55 = arith.constant 0 : index
    %c0_56 = arith.constant 0 : index
    %69 = vector.load %arg7[%c0_55, %c0_56] : memref<98x16xbf16, #tpu.memory_space<vmem>>, vector<14x16xbf16>
    %cst_57 = arith.constant dense<0.000000e+00> : vector<64x16xf32>
    %70 = tpu.matmul %68, %69, %cst_57 {dimension_numbers = #tpu.dot_dimension_numbers<[1], [0], [0], [1], [0, 0, 1, 1], [], []>} : vector<64x14xbf16>, vector<14x16xbf16>, vector<64x16xf32> -> vector<64x16xf32>
    %71 = arith.addf %66, %70 : vector<64x16xf32>
    %c1 = arith.constant 1 : index
    %c8_58 = arith.constant 8 : index
    %c0_59 = arith.constant 0 : index
    %72 = vector.load %arg20[%c1, %c8_58, %c0_59] : memref<14x19x14xbf16, #tpu.memory_space<vmem>>, vector<8x8x14xbf16>
    %73 = vector.shape_cast %72 : vector<8x8x14xbf16> to vector<64x14xbf16>
    %c14 = arith.constant 14 : index
    %c0_60 = arith.constant 0 : index
    %74 = vector.load %arg7[%c14, %c0_60] : memref<98x16xbf16, #tpu.memory_space<vmem>>, vector<14x16xbf16>
    %cst_61 = arith.constant dense<0.000000e+00> : vector<64x16xf32>
    %75 = tpu.matmul %73, %74, %cst_61 {dimension_numbers = #tpu.dot_dimension_numbers<[1], [0], [0], [1], [0, 0, 1, 1], [], []>} : vector<64x14xbf16>, vector<14x16xbf16>, vector<64x16xf32> -> vector<64x16xf32>
    %76 = arith.addf %71, %75 : vector<64x16xf32>
    %c2 = arith.constant 2 : index
    %c8_62 = arith.constant 8 : index
    %c0_63 = arith.constant 0 : index
    %77 = vector.load %arg20[%c2, %c8_62, %c0_63] : memref<14x19x14xbf16, #tpu.memory_space<vmem>>, vector<8x8x14xbf16>
    %78 = vector.shape_cast %77 : vector<8x8x14xbf16> to vector<64x14xbf16>
    %c28 = arith.constant 28 : index
    %c0_64 = arith.constant 0 : index
    %79 = vector.load %arg7[%c28, %c0_64] : memref<98x16xbf16, #tpu.memory_space<vmem>>, vector<14x16xbf16>
    %cst_65 = arith.constant dense<0.000000e+00> : vector<64x16xf32>
    %80 = tpu.matmul %78, %79, %cst_65 {dimension_numbers = #tpu.dot_dimension_numbers<[1], [0], [0], [1], [0, 0, 1, 1], [], []>} : vector<64x14xbf16>, vector<14x16xbf16>, vector<64x16xf32> -> vector<64x16xf32>
    %81 = arith.addf %76, %80 : vector<64x16xf32>
    %c3_66 = arith.constant 3 : index
    %c8_67 = arith.constant 8 : index
    %c0_68 = arith.constant 0 : index
    %82 = vector.load %arg20[%c3_66, %c8_67, %c0_68] : memref<14x19x14xbf16, #tpu.memory_space<vmem>>, vector<8x8x14xbf16>
    %83 = vector.shape_cast %82 : vector<8x8x14xbf16> to vector<64x14xbf16>
    %c42 = arith.constant 42 : index
    %c0_69 = arith.constant 0 : index
    %84 = vector.load %arg7[%c42, %c0_69] : memref<98x16xbf16, #tpu.memory_space<vmem>>, vector<14x16xbf16>
    %cst_70 = arith.constant dense<0.000000e+00> : vector<64x16xf32>
    %85 = tpu.matmul %83, %84, %cst_70 {dimension_numbers = #tpu.dot_dimension_numbers<[1], [0], [0], [1], [0, 0, 1, 1], [], []>} : vector<64x14xbf16>, vector<14x16xbf16>, vector<64x16xf32> -> vector<64x16xf32>
    %86 = arith.addf %81, %85 : vector<64x16xf32>
    %c4 = arith.constant 4 : index
    %c8_71 = arith.constant 8 : index
    %c0_72 = arith.constant 0 : index
    %87 = vector.load %arg20[%c4, %c8_71, %c0_72] : memref<14x19x14xbf16, #tpu.memory_space<vmem>>, vector<8x8x14xbf16>
    %88 = vector.shape_cast %87 : vector<8x8x14xbf16> to vector<64x14xbf16>
    %c56 = arith.constant 56 : index
    %c0_73 = arith.constant 0 : index
    %89 = vector.load %arg7[%c56, %c0_73] : memref<98x16xbf16, #tpu.memory_space<vmem>>, vector<14x16xbf16>
    %cst_74 = arith.constant dense<0.000000e+00> : vector<64x16xf32>
    %90 = tpu.matmul %88, %89, %cst_74 {dimension_numbers = #tpu.dot_dimension_numbers<[1], [0], [0], [1], [0, 0, 1, 1], [], []>} : vector<64x14xbf16>, vector<14x16xbf16>, vector<64x16xf32> -> vector<64x16xf32>
    %91 = arith.addf %86, %90 : vector<64x16xf32>
    %c5_75 = arith.constant 5 : index
    %c8_76 = arith.constant 8 : index
    %c0_77 = arith.constant 0 : index
    %92 = vector.load %arg20[%c5_75, %c8_76, %c0_77] : memref<14x19x14xbf16, #tpu.memory_space<vmem>>, vector<8x8x14xbf16>
    %93 = vector.shape_cast %92 : vector<8x8x14xbf16> to vector<64x14xbf16>
    %c70 = arith.constant 70 : index
    %c0_78 = arith.constant 0 : index
    %94 = vector.load %arg7[%c70, %c0_78] : memref<98x16xbf16, #tpu.memory_space<vmem>>, vector<14x16xbf16>
    %cst_79 = arith.constant dense<0.000000e+00> : vector<64x16xf32>
    %95 = tpu.matmul %93, %94, %cst_79 {dimension_numbers = #tpu.dot_dimension_numbers<[1], [0], [0], [1], [0, 0, 1, 1], [], []>} : vector<64x14xbf16>, vector<14x16xbf16>, vector<64x16xf32> -> vector<64x16xf32>
    %96 = arith.addf %91, %95 : vector<64x16xf32>
    %c6_80 = arith.constant 6 : index
    %c8_81 = arith.constant 8 : index
    %c0_82 = arith.constant 0 : index
    %97 = vector.load %arg20[%c6_80, %c8_81, %c0_82] : memref<14x19x14xbf16, #tpu.memory_space<vmem>>, vector<8x8x14xbf16>
    %98 = vector.shape_cast %97 : vector<8x8x14xbf16> to vector<64x14xbf16>
    %c84 = arith.constant 84 : index
    %c0_83 = arith.constant 0 : index
    %99 = vector.load %arg7[%c84, %c0_83] : memref<98x16xbf16, #tpu.memory_space<vmem>>, vector<14x16xbf16>
    %cst_84 = arith.constant dense<0.000000e+00> : vector<64x16xf32>
    %100 = tpu.matmul %98, %99, %cst_84 {dimension_numbers = #tpu.dot_dimension_numbers<[1], [0], [0], [1], [0, 0, 1, 1], [], []>} : vector<64x14xbf16>, vector<14x16xbf16>, vector<64x16xf32> -> vector<64x16xf32>
    %101 = arith.addf %96, %100 : vector<64x16xf32>
    %c0_85 = arith.constant 0 : index
    %c0_86 = arith.constant 0 : index
    %102 = vector.load %arg8[%c0_85, %c0_86] : memref<1x16xf32, #tpu.memory_space<vmem>>, vector<1x16xf32>
    %103 = vector.broadcast %102 : vector<1x16xf32> to vector<64x16xf32>
    %104 = arith.addf %101, %103 : vector<64x16xf32>
    %cst_87 = arith.constant 0.000000e+00 : f32
    %105 = vector.broadcast %cst_87 : f32 to vector<64x16xf32>
    %106 = arith.maximumf %104, %105 : vector<64x16xf32>
    %107 = vector.shape_cast %106 : vector<64x16xf32> to vector<1x8x8x16xf32>
    %108 = arith.truncf %107 : vector<1x8x8x16xf32> to vector<1x8x8x16xbf16>
    %c0_88 = arith.constant 0 : index
    %c0_89 = arith.constant 0 : index
    %c0_90 = arith.constant 0 : index
    %c24_91 = arith.constant 24 : index
    %109 = vector.load %arg19[%c0_88, %c0_89, %c0_90, %c24_91] : memref<1x8x8x64xbf16, #tpu.memory_space<vmem>>, vector<1x8x8x16xbf16>
    tpu.vector_store %arg19[%c0_88, %c0_89, %c0_90, %c24_91], %108 {strides = array<i32>} : memref<1x8x8x64xbf16, #tpu.memory_space<vmem>>, vector<1x8x8x16xbf16>,
    %110 = vector.shape_cast %15 : vector<64x12xf32> to vector<8x8x12xf32>
    %111 = arith.truncf %110 : vector<8x8x12xf32> to vector<8x8x12xbf16>
    %c3_92 = arith.constant 3 : index
    %c8_93 = arith.constant 8 : index
    %c0_94 = arith.constant 0 : index
    %112 = vector.load %arg20[%c3_92, %c8_93, %c0_94] : memref<14x19x14xbf16, #tpu.memory_space<vmem>>, vector<8x8x12xbf16>
    tpu.vector_store %arg20[%c3_92, %c8_93, %c0_94], %111 {strides = array<i32>} : memref<14x19x14xbf16, #tpu.memory_space<vmem>>, vector<8x8x12xbf16>,
    %cst_95 = arith.constant 0.000000e+00 : f32
    %113 = vector.broadcast %cst_95 : f32 to vector<64x12xf32>
    %c0_96 = arith.constant 0 : index
    %c8_97 = arith.constant 8 : index
    %c0_98 = arith.constant 0 : index
    %114 = vector.load %arg20[%c0_96, %c8_97, %c0_98] : memref<14x19x14xbf16, #tpu.memory_space<vmem>>, vector<8x8x12xbf16>
    %115 = vector.shape_cast %114 : vector<8x8x12xbf16> to vector<64x12xbf16>
    %c0_99 = arith.constant 0 : index
    %c0_100 = arith.constant 0 : index
    %116 = vector.load %arg9[%c0_99, %c0_100] : memref<84x12xbf16, #tpu.memory_space<vmem>>, vector<12x12xbf16>
    %cst_101 = arith.constant dense<0.000000e+00> : vector<64x12xf32>
    %117 = tpu.matmul %115, %116, %cst_101 {dimension_numbers = #tpu.dot_dimension_numbers<[1], [0], [0], [1], [0, 0, 1, 1], [], []>} : vector<64x12xbf16>, vector<12x12xbf16>, vector<64x12xf32> -> vector<64x12xf32>
    %118 = arith.addf %113, %117 : vector<64x12xf32>
    %c1_102 = arith.constant 1 : index
    %c8_103 = arith.constant 8 : index
    %c0_104 = arith.constant 0 : index
    %119 = vector.load %arg20[%c1_102, %c8_103, %c0_104] : memref<14x19x14xbf16, #tpu.memory_space<vmem>>, vector<8x8x12xbf16>
    %120 = vector.shape_cast %119 : vector<8x8x12xbf16> to vector<64x12xbf16>
    %c12_105 = arith.constant 12 : index
    %c0_106 = arith.constant 0 : index
    %121 = vector.load %arg9[%c12_105, %c0_106] : memref<84x12xbf16, #tpu.memory_space<vmem>>, vector<12x12xbf16>
    %cst_107 = arith.constant dense<0.000000e+00> : vector<64x12xf32>
    %122 = tpu.matmul %120, %121, %cst_107 {dimension_numbers = #tpu.dot_dimension_numbers<[1], [0], [0], [1], [0, 0, 1, 1], [], []>} : vector<64x12xbf16>, vector<12x12xbf16>, vector<64x12xf32> -> vector<64x12xf32>
    %123 = arith.addf %118, %122 : vector<64x12xf32>
    %c2_108 = arith.constant 2 : index
    %c8_109 = arith.constant 8 : index
    %c0_110 = arith.constant 0 : index
    %124 = vector.load %arg20[%c2_108, %c8_109, %c0_110] : memref<14x19x14xbf16, #tpu.memory_space<vmem>>, vector<8x8x12xbf16>
    %125 = vector.shape_cast %124 : vector<8x8x12xbf16> to vector<64x12xbf16>
    %c24_111 = arith.constant 24 : index
    %c0_112 = arith.constant 0 : index
    %126 = vector.load %arg9[%c24_111, %c0_112] : memref<84x12xbf16, #tpu.memory_space<vmem>>, vector<12x12xbf16>
    %cst_113 = arith.constant dense<0.000000e+00> : vector<64x12xf32>
    %127 = tpu.matmul %125, %126, %cst_113 {dimension_numbers = #tpu.dot_dimension_numbers<[1], [0], [0], [1], [0, 0, 1, 1], [], []>} : vector<64x12xbf16>, vector<12x12xbf16>, vector<64x12xf32> -> vector<64x12xf32>
    %128 = arith.addf %123, %127 : vector<64x12xf32>
    %c3_114 = arith.constant 3 : index
    %c8_115 = arith.constant 8 : index
    %c0_116 = arith.constant 0 : index
    %129 = vector.load %arg20[%c3_114, %c8_115, %c0_116] : memref<14x19x14xbf16, #tpu.memory_space<vmem>>, vector<8x8x12xbf16>
    %130 = vector.shape_cast %129 : vector<8x8x12xbf16> to vector<64x12xbf16>
    %c36_117 = arith.constant 36 : index
    %c0_118 = arith.constant 0 : index
    %131 = vector.load %arg9[%c36_117, %c0_118] : memref<84x12xbf16, #tpu.memory_space<vmem>>, vector<12x12xbf16>
    %cst_119 = arith.constant dense<0.000000e+00> : vector<64x12xf32>
    %132 = tpu.matmul %130, %131, %cst_119 {dimension_numbers = #tpu.dot_dimension_numbers<[1], [0], [0], [1], [0, 0, 1, 1], [], []>} : vector<64x12xbf16>, vector<12x12xbf16>, vector<64x12xf32> -> vector<64x12xf32>
    %133 = arith.addf %128, %132 : vector<64x12xf32>
    %c4_120 = arith.constant 4 : index
    %c8_121 = arith.constant 8 : index
    %c0_122 = arith.constant 0 : index
    %134 = vector.load %arg20[%c4_120, %c8_121, %c0_122] : memref<14x19x14xbf16, #tpu.memory_space<vmem>>, vector<8x8x12xbf16>
    %135 = vector.shape_cast %134 : vector<8x8x12xbf16> to vector<64x12xbf16>
    %c48_123 = arith.constant 48 : index
    %c0_124 = arith.constant 0 : index
    %136 = vector.load %arg9[%c48_123, %c0_124] : memref<84x12xbf16, #tpu.memory_space<vmem>>, vector<12x12xbf16>
    %cst_125 = arith.constant dense<0.000000e+00> : vector<64x12xf32>
    %137 = tpu.matmul %135, %136, %cst_125 {dimension_numbers = #tpu.dot_dimension_numbers<[1], [0], [0], [1], [0, 0, 1, 1], [], []>} : vector<64x12xbf16>, vector<12x12xbf16>, vector<64x12xf32> -> vector<64x12xf32>
    %138 = arith.addf %133, %137 : vector<64x12xf32>
    %c5_126 = arith.constant 5 : index
    %c8_127 = arith.constant 8 : index
    %c0_128 = arith.constant 0 : index
    %139 = vector.load %arg20[%c5_126, %c8_127, %c0_128] : memref<14x19x14xbf16, #tpu.memory_space<vmem>>, vector<8x8x12xbf16>
    %140 = vector.shape_cast %139 : vector<8x8x12xbf16> to vector<64x12xbf16>
    %c60_129 = arith.constant 60 : index
    %c0_130 = arith.constant 0 : index
    %141 = vector.load %arg9[%c60_129, %c0_130] : memref<84x12xbf16, #tpu.memory_space<vmem>>, vector<12x12xbf16>
    %cst_131 = arith.constant dense<0.000000e+00> : vector<64x12xf32>
    %142 = tpu.matmul %140, %141, %cst_131 {dimension_numbers = #tpu.dot_dimension_numbers<[1], [0], [0], [1], [0, 0, 1, 1], [], []>} : vector<64x12xbf16>, vector<12x12xbf16>, vector<64x12xf32> -> vector<64x12xf32>
    %143 = arith.addf %138, %142 : vector<64x12xf32>
    %c6_132 = arith.constant 6 : index
    %c8_133 = arith.constant 8 : index
    %c0_134 = arith.constant 0 : index
    %144 = vector.load %arg20[%c6_132, %c8_133, %c0_134] : memref<14x19x14xbf16, #tpu.memory_space<vmem>>, vector<8x8x12xbf16>
    %145 = vector.shape_cast %144 : vector<8x8x12xbf16> to vector<64x12xbf16>
    %c72_135 = arith.constant 72 : index
    %c0_136 = arith.constant 0 : index
    %146 = vector.load %arg9[%c72_135, %c0_136] : memref<84x12xbf16, #tpu.memory_space<vmem>>, vector<12x12xbf16>
    %cst_137 = arith.constant dense<0.000000e+00> : vector<64x12xf32>
    %147 = tpu.matmul %145, %146, %cst_137 {dimension_numbers = #tpu.dot_dimension_numbers<[1], [0], [0], [1], [0, 0, 1, 1], [], []>} : vector<64x12xbf16>, vector<12x12xbf16>, vector<64x12xf32> -> vector<64x12xf32>
    %148 = arith.addf %143, %147 : vector<64x12xf32>
    %c0_138 = arith.constant 0 : index
    %c0_139 = arith.constant 0 : index
    %149 = vector.load %arg10[%c0_138, %c0_139] : memref<1x12xf32, #tpu.memory_space<vmem>>, vector<1x12xf32>
    %150 = vector.broadcast %149 : vector<1x12xf32> to vector<64x12xf32>
    %151 = arith.addf %148, %150 : vector<64x12xf32>
    %cst_140 = arith.constant 0.000000e+00 : f32
    %152 = vector.broadcast %cst_140 : f32 to vector<64x12xf32>
    %153 = arith.maximumf %151, %152 : vector<64x12xf32>
    %154 = vector.shape_cast %153 : vector<64x12xf32> to vector<8x8x12xf32>
    %155 = arith.truncf %154 : vector<8x8x12xf32> to vector<8x8x12xbf16>
    %c3_141 = arith.constant 3 : index
    %c8_142 = arith.constant 8 : index
    %c0_143 = arith.constant 0 : index
    %156 = vector.load %arg20[%c3_141, %c8_142, %c0_143] : memref<14x19x14xbf16, #tpu.memory_space<vmem>>, vector<8x8x12xbf16>
    tpu.vector_store %arg20[%c3_141, %c8_142, %c0_143], %155 {strides = array<i32>} : memref<14x19x14xbf16, #tpu.memory_space<vmem>>, vector<8x8x12xbf16>,
    %cst_144 = arith.constant 0.000000e+00 : f32
    %157 = vector.broadcast %cst_144 : f32 to vector<64x14xf32>
    %c3_145 = arith.constant 3 : index
    %c5_146 = arith.constant 5 : index
    %c0_147 = arith.constant 0 : index
    %158 = vector.load %arg20[%c3_145, %c5_146, %c0_147] : memref<14x19x14xbf16, #tpu.memory_space<vmem>>, vector<8x8x12xbf16>
    %159 = vector.shape_cast %158 : vector<8x8x12xbf16> to vector<64x12xbf16>
    %c0_148 = arith.constant 0 : index
    %c0_149 = arith.constant 0 : index
    %160 = vector.load %arg11[%c0_148, %c0_149] : memref<84x14xbf16, #tpu.memory_space<vmem>>, vector<12x14xbf16>
    %cst_150 = arith.constant dense<0.000000e+00> : vector<64x14xf32>
    %161 = tpu.matmul %159, %160, %cst_150 {dimension_numbers = #tpu.dot_dimension_numbers<[1], [0], [0], [1], [0, 0, 1, 1], [], []>} : vector<64x12xbf16>, vector<12x14xbf16>, vector<64x14xf32> -> vector<64x14xf32>
    %162 = arith.addf %157, %161 : vector<64x14xf32>
    %c3_151 = arith.constant 3 : index
    %c6_152 = arith.constant 6 : index
    %c0_153 = arith.constant 0 : index
    %163 = vector.load %arg20[%c3_151, %c6_152, %c0_153] : memref<14x19x14xbf16, #tpu.memory_space<vmem>>, vector<8x8x12xbf16>
    %164 = vector.shape_cast %163 : vector<8x8x12xbf16> to vector<64x12xbf16>
    %c12_154 = arith.constant 12 : index
    %c0_155 = arith.constant 0 : index
    %165 = vector.load %arg11[%c12_154, %c0_155] : memref<84x14xbf16, #tpu.memory_space<vmem>>, vector<12x14xbf16>
    %cst_156 = arith.constant dense<0.000000e+00> : vector<64x14xf32>
    %166 = tpu.matmul %164, %165, %cst_156 {dimension_numbers = #tpu.dot_dimension_numbers<[1], [0], [0], [1], [0, 0, 1, 1], [], []>} : vector<64x12xbf16>, vector<12x14xbf16>, vector<64x14xf32> -> vector<64x14xf32>
    %167 = arith.addf %162, %166 : vector<64x14xf32>
    %c3_157 = arith.constant 3 : index
    %c7_158 = arith.constant 7 : index
    %c0_159 = arith.constant 0 : index
    %168 = vector.load %arg20[%c3_157, %c7_158, %c0_159] : memref<14x19x14xbf16, #tpu.memory_space<vmem>>, vector<8x8x12xbf16>
    %169 = vector.shape_cast %168 : vector<8x8x12xbf16> to vector<64x12xbf16>
    %c24_160 = arith.constant 24 : index
    %c0_161 = arith.constant 0 : index
    %170 = vector.load %arg11[%c24_160, %c0_161] : memref<84x14xbf16, #tpu.memory_space<vmem>>, vector<12x14xbf16>
    %cst_162 = arith.constant dense<0.000000e+00> : vector<64x14xf32>
    %171 = tpu.matmul %169, %170, %cst_162 {dimension_numbers = #tpu.dot_dimension_numbers<[1], [0], [0], [1], [0, 0, 1, 1], [], []>} : vector<64x12xbf16>, vector<12x14xbf16>, vector<64x14xf32> -> vector<64x14xf32>
    %172 = arith.addf %167, %171 : vector<64x14xf32>
    %c3_163 = arith.constant 3 : index
    %c8_164 = arith.constant 8 : index
    %c0_165 = arith.constant 0 : index
    %173 = vector.load %arg20[%c3_163, %c8_164, %c0_165] : memref<14x19x14xbf16, #tpu.memory_space<vmem>>, vector<8x8x12xbf16>
    %174 = vector.shape_cast %173 : vector<8x8x12xbf16> to vector<64x12xbf16>
    %c36_166 = arith.constant 36 : index
    %c0_167 = arith.constant 0 : index
    %175 = vector.load %arg11[%c36_166, %c0_167] : memref<84x14xbf16, #tpu.memory_space<vmem>>, vector<12x14xbf16>
    %cst_168 = arith.constant dense<0.000000e+00> : vector<64x14xf32>
    %176 = tpu.matmul %174, %175, %cst_168 {dimension_numbers = #tpu.dot_dimension_numbers<[1], [0], [0], [1], [0, 0, 1, 1], [], []>} : vector<64x12xbf16>, vector<12x14xbf16>, vector<64x14xf32> -> vector<64x14xf32>
    %177 = arith.addf %172, %176 : vector<64x14xf32>
    %c3_169 = arith.constant 3 : index
    %c9_170 = arith.constant 9 : index
    %c0_171 = arith.constant 0 : index
    %178 = vector.load %arg20[%c3_169, %c9_170, %c0_171] : memref<14x19x14xbf16, #tpu.memory_space<vmem>>, vector<8x8x12xbf16>
    %179 = vector.shape_cast %178 : vector<8x8x12xbf16> to vector<64x12xbf16>
    %c48_172 = arith.constant 48 : index
    %c0_173 = arith.constant 0 : index
    %180 = vector.load %arg11[%c48_172, %c0_173] : memref<84x14xbf16, #tpu.memory_space<vmem>>, vector<12x14xbf16>
    %cst_174 = arith.constant dense<0.000000e+00> : vector<64x14xf32>
    %181 = tpu.matmul %179, %180, %cst_174 {dimension_numbers = #tpu.dot_dimension_numbers<[1], [0], [0], [1], [0, 0, 1, 1], [], []>} : vector<64x12xbf16>, vector<12x14xbf16>, vector<64x14xf32> -> vector<64x14xf32>
    %182 = arith.addf %177, %181 : vector<64x14xf32>
    %c3_175 = arith.constant 3 : index
    %c10_176 = arith.constant 10 : index
    %c0_177 = arith.constant 0 : index
    %183 = vector.load %arg20[%c3_175, %c10_176, %c0_177] : memref<14x19x14xbf16, #tpu.memory_space<vmem>>, vector<8x8x12xbf16>
    %184 = vector.shape_cast %183 : vector<8x8x12xbf16> to vector<64x12xbf16>
    %c60_178 = arith.constant 60 : index
    %c0_179 = arith.constant 0 : index
    %185 = vector.load %arg11[%c60_178, %c0_179] : memref<84x14xbf16, #tpu.memory_space<vmem>>, vector<12x14xbf16>
    %cst_180 = arith.constant dense<0.000000e+00> : vector<64x14xf32>
    %186 = tpu.matmul %184, %185, %cst_180 {dimension_numbers = #tpu.dot_dimension_numbers<[1], [0], [0], [1], [0, 0, 1, 1], [], []>} : vector<64x12xbf16>, vector<12x14xbf16>, vector<64x14xf32> -> vector<64x14xf32>
    %187 = arith.addf %182, %186 : vector<64x14xf32>
    %c3_181 = arith.constant 3 : index
    %c11_182 = arith.constant 11 : index
    %c0_183 = arith.constant 0 : index
    %188 = vector.load %arg20[%c3_181, %c11_182, %c0_183] : memref<14x19x14xbf16, #tpu.memory_space<vmem>>, vector<8x8x12xbf16>
    %189 = vector.shape_cast %188 : vector<8x8x12xbf16> to vector<64x12xbf16>
    %c72_184 = arith.constant 72 : index
    %c0_185 = arith.constant 0 : index
    %190 = vector.load %arg11[%c72_184, %c0_185] : memref<84x14xbf16, #tpu.memory_space<vmem>>, vector<12x14xbf16>
    %cst_186 = arith.constant dense<0.000000e+00> : vector<64x14xf32>
    %191 = tpu.matmul %189, %190, %cst_186 {dimension_numbers = #tpu.dot_dimension_numbers<[1], [0], [0], [1], [0, 0, 1, 1], [], []>} : vector<64x12xbf16>, vector<12x14xbf16>, vector<64x14xf32> -> vector<64x14xf32>
    %192 = arith.addf %187, %191 : vector<64x14xf32>
    %c0_187 = arith.constant 0 : index
    %c0_188 = arith.constant 0 : index
    %193 = vector.load %arg12[%c0_187, %c0_188] : memref<1x14xf32, #tpu.memory_space<vmem>>, vector<1x14xf32>
    %194 = vector.broadcast %193 : vector<1x14xf32> to vector<64x14xf32>
    %195 = arith.addf %192, %194 : vector<64x14xf32>
    %cst_189 = arith.constant 0.000000e+00 : f32
    %196 = vector.broadcast %cst_189 : f32 to vector<64x14xf32>
    %197 = arith.maximumf %195, %196 : vector<64x14xf32>
    %198 = vector.shape_cast %197 : vector<64x14xf32> to vector<8x8x14xf32>
    %199 = arith.truncf %198 : vector<8x8x14xf32> to vector<8x8x14xbf16>
    %c3_190 = arith.constant 3 : index
    %c8_191 = arith.constant 8 : index
    %c0_192 = arith.constant 0 : index
    %200 = vector.load %arg20[%c3_190, %c8_191, %c0_192] : memref<14x19x14xbf16, #tpu.memory_space<vmem>>, vector<8x8x14xbf16>
    tpu.vector_store %arg20[%c3_190, %c8_191, %c0_192], %199 {strides = array<i32>} : memref<14x19x14xbf16, #tpu.memory_space<vmem>>, vector<8x8x14xbf16>,
    %cst_193 = arith.constant 0.000000e+00 : f32
    %201 = vector.broadcast %cst_193 : f32 to vector<64x14xf32>
    %c0_194 = arith.constant 0 : index
    %c8_195 = arith.constant 8 : index
    %c0_196 = arith.constant 0 : index
    %202 = vector.load %arg20[%c0_194, %c8_195, %c0_196] : memref<14x19x14xbf16, #tpu.memory_space<vmem>>, vector<8x8x14xbf16>
    %203 = vector.shape_cast %202 : vector<8x8x14xbf16> to vector<64x14xbf16>
    %c0_197 = arith.constant 0 : index
    %c0_198 = arith.constant 0 : index
    %204 = vector.load %arg13[%c0_197, %c0_198] : memref<98x14xbf16, #tpu.memory_space<vmem>>, vector<14x14xbf16>
    %cst_199 = arith.constant dense<0.000000e+00> : vector<64x14xf32>
    %205 = tpu.matmul %203, %204, %cst_199 {dimension_numbers = #tpu.dot_dimension_numbers<[1], [0], [0], [1], [0, 0, 1, 1], [], []>} : vector<64x14xbf16>, vector<14x14xbf16>, vector<64x14xf32> -> vector<64x14xf32>
    %206 = arith.addf %201, %205 : vector<64x14xf32>
    %c1_200 = arith.constant 1 : index
    %c8_201 = arith.constant 8 : index
    %c0_202 = arith.constant 0 : index
    %207 = vector.load %arg20[%c1_200, %c8_201, %c0_202] : memref<14x19x14xbf16, #tpu.memory_space<vmem>>, vector<8x8x14xbf16>
    %208 = vector.shape_cast %207 : vector<8x8x14xbf16> to vector<64x14xbf16>
    %c14_203 = arith.constant 14 : index
    %c0_204 = arith.constant 0 : index
    %209 = vector.load %arg13[%c14_203, %c0_204] : memref<98x14xbf16, #tpu.memory_space<vmem>>, vector<14x14xbf16>
    %cst_205 = arith.constant dense<0.000000e+00> : vector<64x14xf32>
    %210 = tpu.matmul %208, %209, %cst_205 {dimension_numbers = #tpu.dot_dimension_numbers<[1], [0], [0], [1], [0, 0, 1, 1], [], []>} : vector<64x14xbf16>, vector<14x14xbf16>, vector<64x14xf32> -> vector<64x14xf32>
    %211 = arith.addf %206, %210 : vector<64x14xf32>
    %c2_206 = arith.constant 2 : index
    %c8_207 = arith.constant 8 : index
    %c0_208 = arith.constant 0 : index
    %212 = vector.load %arg20[%c2_206, %c8_207, %c0_208] : memref<14x19x14xbf16, #tpu.memory_space<vmem>>, vector<8x8x14xbf16>
    %213 = vector.shape_cast %212 : vector<8x8x14xbf16> to vector<64x14xbf16>
    %c28_209 = arith.constant 28 : index
    %c0_210 = arith.constant 0 : index
    %214 = vector.load %arg13[%c28_209, %c0_210] : memref<98x14xbf16, #tpu.memory_space<vmem>>, vector<14x14xbf16>
    %cst_211 = arith.constant dense<0.000000e+00> : vector<64x14xf32>
    %215 = tpu.matmul %213, %214, %cst_211 {dimension_numbers = #tpu.dot_dimension_numbers<[1], [0], [0], [1], [0, 0, 1, 1], [], []>} : vector<64x14xbf16>, vector<14x14xbf16>, vector<64x14xf32> -> vector<64x14xf32>
    %216 = arith.addf %211, %215 : vector<64x14xf32>
    %c3_212 = arith.constant 3 : index
    %c8_213 = arith.constant 8 : index
    %c0_214 = arith.constant 0 : index
    %217 = vector.load %arg20[%c3_212, %c8_213, %c0_214] : memref<14x19x14xbf16, #tpu.memory_space<vmem>>, vector<8x8x14xbf16>
    %218 = vector.shape_cast %217 : vector<8x8x14xbf16> to vector<64x14xbf16>
    %c42_215 = arith.constant 42 : index
    %c0_216 = arith.constant 0 : index
    %219 = vector.load %arg13[%c42_215, %c0_216] : memref<98x14xbf16, #tpu.memory_space<vmem>>, vector<14x14xbf16>
    %cst_217 = arith.constant dense<0.000000e+00> : vector<64x14xf32>
    %220 = tpu.matmul %218, %219, %cst_217 {dimension_numbers = #tpu.dot_dimension_numbers<[1], [0], [0], [1], [0, 0, 1, 1], [], []>} : vector<64x14xbf16>, vector<14x14xbf16>, vector<64x14xf32> -> vector<64x14xf32>
    %221 = arith.addf %216, %220 : vector<64x14xf32>
    %c4_218 = arith.constant 4 : index
    %c8_219 = arith.constant 8 : index
    %c0_220 = arith.constant 0 : index
    %222 = vector.load %arg20[%c4_218, %c8_219, %c0_220] : memref<14x19x14xbf16, #tpu.memory_space<vmem>>, vector<8x8x14xbf16>
    %223 = vector.shape_cast %222 : vector<8x8x14xbf16> to vector<64x14xbf16>
    %c56_221 = arith.constant 56 : index
    %c0_222 = arith.constant 0 : index
    %224 = vector.load %arg13[%c56_221, %c0_222] : memref<98x14xbf16, #tpu.memory_space<vmem>>, vector<14x14xbf16>
    %cst_223 = arith.constant dense<0.000000e+00> : vector<64x14xf32>
    %225 = tpu.matmul %223, %224, %cst_223 {dimension_numbers = #tpu.dot_dimension_numbers<[1], [0], [0], [1], [0, 0, 1, 1], [], []>} : vector<64x14xbf16>, vector<14x14xbf16>, vector<64x14xf32> -> vector<64x14xf32>
    %226 = arith.addf %221, %225 : vector<64x14xf32>
    %c5_224 = arith.constant 5 : index
    %c8_225 = arith.constant 8 : index
    %c0_226 = arith.constant 0 : index
    %227 = vector.load %arg20[%c5_224, %c8_225, %c0_226] : memref<14x19x14xbf16, #tpu.memory_space<vmem>>, vector<8x8x14xbf16>
    %228 = vector.shape_cast %227 : vector<8x8x14xbf16> to vector<64x14xbf16>
    %c70_227 = arith.constant 70 : index
    %c0_228 = arith.constant 0 : index
    %229 = vector.load %arg13[%c70_227, %c0_228] : memref<98x14xbf16, #tpu.memory_space<vmem>>, vector<14x14xbf16>
    %cst_229 = arith.constant dense<0.000000e+00> : vector<64x14xf32>
    %230 = tpu.matmul %228, %229, %cst_229 {dimension_numbers = #tpu.dot_dimension_numbers<[1], [0], [0], [1], [0, 0, 1, 1], [], []>} : vector<64x14xbf16>, vector<14x14xbf16>, vector<64x14xf32> -> vector<64x14xf32>
    %231 = arith.addf %226, %230 : vector<64x14xf32>
    %c6_230 = arith.constant 6 : index
    %c8_231 = arith.constant 8 : index
    %c0_232 = arith.constant 0 : index
    %232 = vector.load %arg20[%c6_230, %c8_231, %c0_232] : memref<14x19x14xbf16, #tpu.memory_space<vmem>>, vector<8x8x14xbf16>
    %233 = vector.shape_cast %232 : vector<8x8x14xbf16> to vector<64x14xbf16>
    %c84_233 = arith.constant 84 : index
    %c0_234 = arith.constant 0 : index
    %234 = vector.load %arg13[%c84_233, %c0_234] : memref<98x14xbf16, #tpu.memory_space<vmem>>, vector<14x14xbf16>
    %cst_235 = arith.constant dense<0.000000e+00> : vector<64x14xf32>
    %235 = tpu.matmul %233, %234, %cst_235 {dimension_numbers = #tpu.dot_dimension_numbers<[1], [0], [0], [1], [0, 0, 1, 1], [], []>} : vector<64x14xbf16>, vector<14x14xbf16>, vector<64x14xf32> -> vector<64x14xf32>
    %236 = arith.addf %231, %235 : vector<64x14xf32>
    %c0_236 = arith.constant 0 : index
    %c0_237 = arith.constant 0 : index
    %237 = vector.load %arg14[%c0_236, %c0_237] : memref<1x14xf32, #tpu.memory_space<vmem>>, vector<1x14xf32>
    %238 = vector.broadcast %237 : vector<1x14xf32> to vector<64x14xf32>
    %239 = arith.addf %236, %238 : vector<64x14xf32>
    %cst_238 = arith.constant 0.000000e+00 : f32
    %240 = vector.broadcast %cst_238 : f32 to vector<64x14xf32>
    %241 = arith.maximumf %239, %240 : vector<64x14xf32>
    %242 = vector.shape_cast %241 : vector<64x14xf32> to vector<8x8x14xf32>
    %243 = arith.truncf %242 : vector<8x8x14xf32> to vector<8x8x14xbf16>
    %c3_239 = arith.constant 3 : index
    %c8_240 = arith.constant 8 : index
    %c0_241 = arith.constant 0 : index
    %244 = vector.load %arg20[%c3_239, %c8_240, %c0_241] : memref<14x19x14xbf16, #tpu.memory_space<vmem>>, vector<8x8x14xbf16>
    tpu.vector_store %arg20[%c3_239, %c8_240, %c0_241], %243 {strides = array<i32>} : memref<14x19x14xbf16, #tpu.memory_space<vmem>>, vector<8x8x14xbf16>,
    %cst_242 = arith.constant 0.000000e+00 : f32
    %245 = vector.broadcast %cst_242 : f32 to vector<64x16xf32>
    %c3_243 = arith.constant 3 : index
    %c5_244 = arith.constant 5 : index
    %c0_245 = arith.constant 0 : index
    %246 = vector.load %arg20[%c3_243, %c5_244, %c0_245] : memref<14x19x14xbf16, #tpu.memory_space<vmem>>, vector<8x8x14xbf16>
    %247 = vector.shape_cast %246 : vector<8x8x14xbf16> to vector<64x14xbf16>
    %c0_246 = arith.constant 0 : index
    %c0_247 = arith.constant 0 : index
    %248 = vector.load %arg15[%c0_246, %c0_247] : memref<98x16xbf16, #tpu.memory_space<vmem>>, vector<14x16xbf16>
    %cst_248 = arith.constant dense<0.000000e+00> : vector<64x16xf32>
    %249 = tpu.matmul %247, %248, %cst_248 {dimension_numbers = #tpu.dot_dimension_numbers<[1], [0], [0], [1], [0, 0, 1, 1], [], []>} : vector<64x14xbf16>, vector<14x16xbf16>, vector<64x16xf32> -> vector<64x16xf32>
    %250 = arith.addf %245, %249 : vector<64x16xf32>
    %c3_249 = arith.constant 3 : index
    %c6_250 = arith.constant 6 : index
    %c0_251 = arith.constant 0 : index
    %251 = vector.load %arg20[%c3_249, %c6_250, %c0_251] : memref<14x19x14xbf16, #tpu.memory_space<vmem>>, vector<8x8x14xbf16>
    %252 = vector.shape_cast %251 : vector<8x8x14xbf16> to vector<64x14xbf16>
    %c14_252 = arith.constant 14 : index
    %c0_253 = arith.constant 0 : index
    %253 = vector.load %arg15[%c14_252, %c0_253] : memref<98x16xbf16, #tpu.memory_space<vmem>>, vector<14x16xbf16>
    %cst_254 = arith.constant dense<0.000000e+00> : vector<64x16xf32>
    %254 = tpu.matmul %252, %253, %cst_254 {dimension_numbers = #tpu.dot_dimension_numbers<[1], [0], [0], [1], [0, 0, 1, 1], [], []>} : vector<64x14xbf16>, vector<14x16xbf16>, vector<64x16xf32> -> vector<64x16xf32>
    %255 = arith.addf %250, %254 : vector<64x16xf32>
    %c3_255 = arith.constant 3 : index
    %c7_256 = arith.constant 7 : index
    %c0_257 = arith.constant 0 : index
    %256 = vector.load %arg20[%c3_255, %c7_256, %c0_257] : memref<14x19x14xbf16, #tpu.memory_space<vmem>>, vector<8x8x14xbf16>
    %257 = vector.shape_cast %256 : vector<8x8x14xbf16> to vector<64x14xbf16>
    %c28_258 = arith.constant 28 : index
    %c0_259 = arith.constant 0 : index
    %258 = vector.load %arg15[%c28_258, %c0_259] : memref<98x16xbf16, #tpu.memory_space<vmem>>, vector<14x16xbf16>
    %cst_260 = arith.constant dense<0.000000e+00> : vector<64x16xf32>
    %259 = tpu.matmul %257, %258, %cst_260 {dimension_numbers = #tpu.dot_dimension_numbers<[1], [0], [0], [1], [0, 0, 1, 1], [], []>} : vector<64x14xbf16>, vector<14x16xbf16>, vector<64x16xf32> -> vector<64x16xf32>
    %260 = arith.addf %255, %259 : vector<64x16xf32>
    %c3_261 = arith.constant 3 : index
    %c8_262 = arith.constant 8 : index
    %c0_263 = arith.constant 0 : index
    %261 = vector.load %arg20[%c3_261, %c8_262, %c0_263] : memref<14x19x14xbf16, #tpu.memory_space<vmem>>, vector<8x8x14xbf16>
    %262 = vector.shape_cast %261 : vector<8x8x14xbf16> to vector<64x14xbf16>
    %c42_264 = arith.constant 42 : index
    %c0_265 = arith.constant 0 : index
    %263 = vector.load %arg15[%c42_264, %c0_265] : memref<98x16xbf16, #tpu.memory_space<vmem>>, vector<14x16xbf16>
    %cst_266 = arith.constant dense<0.000000e+00> : vector<64x16xf32>
    %264 = tpu.matmul %262, %263, %cst_266 {dimension_numbers = #tpu.dot_dimension_numbers<[1], [0], [0], [1], [0, 0, 1, 1], [], []>} : vector<64x14xbf16>, vector<14x16xbf16>, vector<64x16xf32> -> vector<64x16xf32>
    %265 = arith.addf %260, %264 : vector<64x16xf32>
    %c3_267 = arith.constant 3 : index
    %c9_268 = arith.constant 9 : index
    %c0_269 = arith.constant 0 : index
    %266 = vector.load %arg20[%c3_267, %c9_268, %c0_269] : memref<14x19x14xbf16, #tpu.memory_space<vmem>>, vector<8x8x14xbf16>
    %267 = vector.shape_cast %266 : vector<8x8x14xbf16> to vector<64x14xbf16>
    %c56_270 = arith.constant 56 : index
    %c0_271 = arith.constant 0 : index
    %268 = vector.load %arg15[%c56_270, %c0_271] : memref<98x16xbf16, #tpu.memory_space<vmem>>, vector<14x16xbf16>
    %cst_272 = arith.constant dense<0.000000e+00> : vector<64x16xf32>
    %269 = tpu.matmul %267, %268, %cst_272 {dimension_numbers = #tpu.dot_dimension_numbers<[1], [0], [0], [1], [0, 0, 1, 1], [], []>} : vector<64x14xbf16>, vector<14x16xbf16>, vector<64x16xf32> -> vector<64x16xf32>
    %270 = arith.addf %265, %269 : vector<64x16xf32>
    %c3_273 = arith.constant 3 : index
    %c10_274 = arith.constant 10 : index
    %c0_275 = arith.constant 0 : index
    %271 = vector.load %arg20[%c3_273, %c10_274, %c0_275] : memref<14x19x14xbf16, #tpu.memory_space<vmem>>, vector<8x8x14xbf16>
    %272 = vector.shape_cast %271 : vector<8x8x14xbf16> to vector<64x14xbf16>
    %c70_276 = arith.constant 70 : index
    %c0_277 = arith.constant 0 : index
    %273 = vector.load %arg15[%c70_276, %c0_277] : memref<98x16xbf16, #tpu.memory_space<vmem>>, vector<14x16xbf16>
    %cst_278 = arith.constant dense<0.000000e+00> : vector<64x16xf32>
    %274 = tpu.matmul %272, %273, %cst_278 {dimension_numbers = #tpu.dot_dimension_numbers<[1], [0], [0], [1], [0, 0, 1, 1], [], []>} : vector<64x14xbf16>, vector<14x16xbf16>, vector<64x16xf32> -> vector<64x16xf32>
    %275 = arith.addf %270, %274 : vector<64x16xf32>
    %c3_279 = arith.constant 3 : index
    %c11_280 = arith.constant 11 : index
    %c0_281 = arith.constant 0 : index
    %276 = vector.load %arg20[%c3_279, %c11_280, %c0_281] : memref<14x19x14xbf16, #tpu.memory_space<vmem>>, vector<8x8x14xbf16>
    %277 = vector.shape_cast %276 : vector<8x8x14xbf16> to vector<64x14xbf16>
    %c84_282 = arith.constant 84 : index
    %c0_283 = arith.constant 0 : index
    %278 = vector.load %arg15[%c84_282, %c0_283] : memref<98x16xbf16, #tpu.memory_space<vmem>>, vector<14x16xbf16>
    %cst_284 = arith.constant dense<0.000000e+00> : vector<64x16xf32>
    %279 = tpu.matmul %277, %278, %cst_284 {dimension_numbers = #tpu.dot_dimension_numbers<[1], [0], [0], [1], [0, 0, 1, 1], [], []>} : vector<64x14xbf16>, vector<14x16xbf16>, vector<64x16xf32> -> vector<64x16xf32>
    %280 = arith.addf %275, %279 : vector<64x16xf32>
    %c0_285 = arith.constant 0 : index
    %c0_286 = arith.constant 0 : index
    %281 = vector.load %arg16[%c0_285, %c0_286] : memref<1x16xf32, #tpu.memory_space<vmem>>, vector<1x16xf32>
    %282 = vector.broadcast %281 : vector<1x16xf32> to vector<64x16xf32>
    %283 = arith.addf %280, %282 : vector<64x16xf32>
    %cst_287 = arith.constant 0.000000e+00 : f32
    %284 = vector.broadcast %cst_287 : f32 to vector<64x16xf32>
    %285 = arith.maximumf %283, %284 : vector<64x16xf32>
    %286 = vector.shape_cast %285 : vector<64x16xf32> to vector<1x8x8x16xf32>
    %287 = arith.truncf %286 : vector<1x8x8x16xf32> to vector<1x8x8x16xbf16>
    %c0_288 = arith.constant 0 : index
    %c0_289 = arith.constant 0 : index
    %c0_290 = arith.constant 0 : index
    %c40 = arith.constant 40 : index
    %288 = vector.load %arg19[%c0_288, %c0_289, %c0_290, %c40] : memref<1x8x8x64xbf16, #tpu.memory_space<vmem>>, vector<1x8x8x16xbf16>
    tpu.vector_store %arg19[%c0_288, %c0_289, %c0_290, %c40], %287 {strides = array<i32>} : memref<1x8x8x64xbf16, #tpu.memory_space<vmem>>, vector<1x8x8x16xbf16>,
    %c0_291 = arith.constant 0 : index
    %c0_292 = arith.constant 0 : index
    %c0_293 = arith.constant 0 : index
    %c0_294 = arith.constant 0 : index
    %289 = vector.load %arg1[%c0_291, %c0_292, %c0_293, %c0_294] : memref<1x8x8x16xbf16, #tpu.memory_space<vmem>>, vector<1x8x8x16xbf16>
    %290 = vector.shape_cast %289 : vector<1x8x8x16xbf16> to vector<8x8x16xbf16>
    %c1_295 = arith.constant 1 : index
    %c8_296 = arith.constant 8 : index
    %c0_297 = arith.constant 0 : index
    %291 = vector.load %arg21[%c1_295, %c8_296, %c0_297] : memref<10x17x16xbf16, #tpu.memory_space<vmem>>, vector<8x8x16xbf16>
    tpu.vector_store %arg21[%c1_295, %c8_296, %c0_297], %290 {strides = array<i32>} : memref<10x17x16xbf16, #tpu.memory_space<vmem>>, vector<8x8x16xbf16>,
    %c0_298 = arith.constant 0 : index
    %c7_299 = arith.constant 7 : index
    %c0_300 = arith.constant 0 : index
    %292 = vector.load %arg21[%c0_298, %c7_299, %c0_300] : memref<10x17x16xbf16, #tpu.memory_space<vmem>>, vector<8x10x16xbf16>
    %293 = arith.extf %292 : vector<8x10x16xbf16> to vector<8x10x16xf32>
    %c1_301 = arith.constant 1 : index
    %c7_302 = arith.constant 7 : index
    %c0_303 = arith.constant 0 : index
    %294 = vector.load %arg21[%c1_301, %c7_302, %c0_303] : memref<10x17x16xbf16, #tpu.memory_space<vmem>>, vector<8x10x16xbf16>
    %295 = arith.extf %294 : vector<8x10x16xbf16> to vector<8x10x16xf32>
    %296 = arith.addf %293, %295 : vector<8x10x16xf32>
    %c2_304 = arith.constant 2 : index
    %c7_305 = arith.constant 7 : index
    %c0_306 = arith.constant 0 : index
    %297 = vector.load %arg21[%c2_304, %c7_305, %c0_306] : memref<10x17x16xbf16, #tpu.memory_space<vmem>>, vector<8x10x16xbf16>
    %298 = arith.extf %297 : vector<8x10x16xbf16> to vector<8x10x16xf32>
    %299 = arith.addf %296, %298 : vector<8x10x16xf32>
    %300 = vector.extract_strided_slice %299 {offsets = [0, 0, 0], sizes = [8, 8, 16], strides = [1, 1, 1]} : vector<8x10x16xf32> to vector<8x8x16xf32>
    %301 = vector.extract_strided_slice %299 {offsets = [0, 1, 0], sizes = [8, 8, 16], strides = [1, 1, 1]} : vector<8x10x16xf32> to vector<8x8x16xf32>
    %302 = arith.addf %300, %301 : vector<8x8x16xf32>
    %303 = vector.extract_strided_slice %299 {offsets = [0, 2, 0], sizes = [8, 8, 16], strides = [1, 1, 1]} : vector<8x10x16xf32> to vector<8x8x16xf32>
    %304 = arith.addf %302, %303 : vector<8x8x16xf32>
    %305 = vector.shape_cast %304 : vector<8x8x16xf32> to vector<64x16xf32>
    %306 = arith.truncf %305 : vector<64x16xf32> to vector<64x16xbf16>
    %c0_307 = arith.constant 0 : index
    %c0_308 = arith.constant 0 : index
    %307 = vector.load %arg17[%c0_307, %c0_308] : memref<16x8xbf16, #tpu.memory_space<vmem>>, vector<16x8xbf16>
    %cst_309 = arith.constant dense<0.000000e+00> : vector<64x8xf32>
    %308 = tpu.matmul %306, %307, %cst_309 {dimension_numbers = #tpu.dot_dimension_numbers<[1], [0], [0], [1], [0, 0, 1, 1], [], []>} : vector<64x16xbf16>, vector<16x8xbf16>, vector<64x8xf32> -> vector<64x8xf32>
    %c0_310 = arith.constant 0 : index
    %c0_311 = arith.constant 0 : index
    %c0_312 = arith.constant 0 : index
    %c0_313 = arith.constant 0 : index
    %309 = vector.load %arg2[%c0_310, %c0_311, %c0_312, %c0_313] : memref<1x8x8x1xf32, #tpu.memory_space<vmem>>, vector<1x8x8x1xf32>
    %310 = vector.shape_cast %309 : vector<1x8x8x1xf32> to vector<8x8x1xf32>
    %311 = vector.shape_cast %310 : vector<8x8x1xf32> to vector<64x1xf32>
    %312 = vector.broadcast %311 : vector<64x1xf32> to vector<64x8xf32>
    %313 = arith.mulf %308, %312 : vector<64x8xf32>
    %c0_314 = arith.constant 0 : index
    %c0_315 = arith.constant 0 : index
    %314 = vector.load %arg18[%c0_314, %c0_315] : memref<1x8xf32, #tpu.memory_space<vmem>>, vector<1x8xf32>
    %315 = vector.broadcast %314 : vector<1x8xf32> to vector<64x8xf32>
    %316 = arith.addf %313, %315 : vector<64x8xf32>
    %cst_316 = arith.constant 0.000000e+00 : f32
    %317 = vector.broadcast %cst_316 : f32 to vector<64x8xf32>
    %318 = arith.maximumf %316, %317 : vector<64x8xf32>
    %319 = vector.shape_cast %318 : vector<64x8xf32> to vector<1x8x8x8xf32>
    %320 = arith.truncf %319 : vector<1x8x8x8xf32> to vector<1x8x8x8xbf16>
    %c0_317 = arith.constant 0 : index
    %c0_318 = arith.constant 0 : index
    %c0_319 = arith.constant 0 : index
    %c56_320 = arith.constant 56 : index
    %321 = vector.load %arg19[%c0_317, %c0_318, %c0_319, %c56_320] : memref<1x8x8x64xbf16, #tpu.memory_space<vmem>>, vector<1x8x8x8xbf16>
    tpu.vector_store %arg19[%c0_317, %c0_318, %c0_319, %c56_320], %320 {strides = array<i32>} : memref<1x8x8x64xbf16, #tpu.memory_space<vmem>>, vector<1x8x8x8xbf16>,
    return
  }
  func.func @transform_0(%arg0: i32) -> (i32, i32, i32, i32) {
    %c0_i32 = arith.constant 0 : i32
    %c0_i32_0 = arith.constant 0 : i32
    %c0_i32_1 = arith.constant 0 : i32
    %c0_i32_2 = arith.constant 0 : i32
    return %arg0, %c0_i32, %c0_i32_0, %c0_i32_1 : i32, i32, i32, i32
  }
  func.func @transform_1(%arg0: i32) -> (i32, i32, i32, i32) {
    %c0_i32 = arith.constant 0 : i32
    %c0_i32_0 = arith.constant 0 : i32
    %c0_i32_1 = arith.constant 0 : i32
    %c0_i32_2 = arith.constant 0 : i32
    %c0_i32_3 = arith.constant 0 : i32
    return %c0_i32, %c0_i32_0, %c0_i32_1, %c0_i32_2 : i32, i32, i32, i32
  }
  func.func @transform_2(%arg0: i32) -> (i32, i32) {
    %c0_i32 = arith.constant 0 : i32
    %c0_i32_0 = arith.constant 0 : i32
    %c0_i32_1 = arith.constant 0 : i32
    return %c0_i32, %c0_i32_0 : i32, i32
  }
  func.func @transform_3(%arg0: i32) -> (i32, i32) {
    %c0_i32 = arith.constant 0 : i32
    %c0_i32_0 = arith.constant 0 : i32
    %c0_i32_1 = arith.constant 0 : i32
    return %c0_i32, %c0_i32_0 : i32, i32
  }
  func.func @transform_4(%arg0: i32) -> (i32, i32) {
    %c0_i32 = arith.constant 0 : i32
    %c0_i32_0 = arith.constant 0 : i32
    %c0_i32_1 = arith.constant 0 : i32
    return %c0_i32, %c0_i32_0 : i32, i32
  }
  func.func @transform_5(%arg0: i32) -> (i32, i32) {
    %c0_i32 = arith.constant 0 : i32
    %c0_i32_0 = arith.constant 0 : i32
    %c0_i32_1 = arith.constant 0 : i32
    return %c0_i32, %c0_i32_0 : i32, i32
  }
  func.func @transform_6(%arg0: i32) -> (i32, i32) {
    %c0_i32 = arith.constant 0 : i32
    %c0_i32_0 = arith.constant 0 : i32
    %c0_i32_1 = arith.constant 0 : i32
    return %c0_i32, %c0_i32_0 : i32, i32
  }
  func.func @transform_7(%arg0: i32) -> (i32, i32) {
    %c0_i32 = arith.constant 0 : i32
    %c0_i32_0 = arith.constant 0 : i32
    %c0_i32_1 = arith.constant 0 : i32
    return %c0_i32, %c0_i32_0 : i32, i32
  }
  func.func @transform_8(%arg0: i32) -> (i32, i32) {
    %c0_i32 = arith.constant 0 : i32
    %c0_i32_0 = arith.constant 0 : i32
    %c0_i32_1 = arith.constant 0 : i32
    return %c0_i32, %c0_i32_0 : i32, i32
  }
  func.func @transform_9(%arg0: i32) -> (i32, i32) {
    %c0_i32 = arith.constant 0 : i32
    %c0_i32_0 = arith.constant 0 : i32
    %c0_i32_1 = arith.constant 0 : i32
    return %c0_i32, %c0_i32_0 : i32, i32
  }
  func.func @transform_10(%arg0: i32) -> (i32, i32) {
    %c0_i32 = arith.constant 0 : i32
    %c0_i32_0 = arith.constant 0 : i32
    %c0_i32_1 = arith.constant 0 : i32
    return %c0_i32, %c0_i32_0 : i32, i32
  }
  func.func @transform_11(%arg0: i32) -> (i32, i32) {
    %c0_i32 = arith.constant 0 : i32
    %c0_i32_0 = arith.constant 0 : i32
    %c0_i32_1 = arith.constant 0 : i32
    return %c0_i32, %c0_i32_0 : i32, i32
  }
  func.func @transform_12(%arg0: i32) -> (i32, i32) {
    %c0_i32 = arith.constant 0 : i32
    %c0_i32_0 = arith.constant 0 : i32
    %c0_i32_1 = arith.constant 0 : i32
    return %c0_i32, %c0_i32_0 : i32, i32
  }
  func.func @transform_13(%arg0: i32) -> (i32, i32) {
    %c0_i32 = arith.constant 0 : i32
    %c0_i32_0 = arith.constant 0 : i32
    %c0_i32_1 = arith.constant 0 : i32
    return %c0_i32, %c0_i32_0 : i32, i32
  }
  func.func @transform_14(%arg0: i32) -> (i32, i32) {
    %c0_i32 = arith.constant 0 : i32
    %c0_i32_0 = arith.constant 0 : i32
    %c0_i32_1 = arith.constant 0 : i32
    return %c0_i32, %c0_i32_0 : i32, i32
  }
  func.func @transform_15(%arg0: i32) -> (i32, i32) {
    %c0_i32 = arith.constant 0 : i32
    %c0_i32_0 = arith.constant 0 : i32
    %c0_i32_1 = arith.constant 0 : i32
    return %c0_i32, %c0_i32_0 : i32, i32
  }
  func.func @transform_16(%arg0: i32) -> (i32, i32) {
    %c0_i32 = arith.constant 0 : i32
    %c0_i32_0 = arith.constant 0 : i32
    %c0_i32_1 = arith.constant 0 : i32
    return %c0_i32, %c0_i32_0 : i32, i32
  }
  func.func @transform_17(%arg0: i32) -> (i32, i32) {
    %c0_i32 = arith.constant 0 : i32
    %c0_i32_0 = arith.constant 0 : i32
    %c0_i32_1 = arith.constant 0 : i32
    return %c0_i32, %c0_i32_0 : i32, i32
  }
  func.func @transform_18(%arg0: i32) -> (i32, i32, i32, i32) {
    %c0_i32 = arith.constant 0 : i32
    %c0_i32_0 = arith.constant 0 : i32
    %c0_i32_1 = arith.constant 0 : i32
    %c0_i32_2 = arith.constant 0 : i32
    return %arg0, %c0_i32, %c0_i32_0, %c0_i32_1 : i32, i32, i32, i32
  }
}

</mosaic_0001>

<bundles_post_ra>
// kernel: _lambda_.1
= control target key start
LH: loop header
LB: loop body
LE: loop exit
PB: predicated region body
PF: predicated region fallthrough
CT: control target
= control target key end

     0   :  { %s14457_s0 = inlined_call_operand.hbm [shape: bf16[2,8,8,16], index: 0, kind: input, shape index: {}]   ;;  %s14458_s1 = inlined_call_operand.hbm [shape: f32[1,8,8,1], index: 1, kind: input, shape index: {}]   ;;  %s14459_s2 = inlined_call_operand.hbm [shape: bf16[16,48], index: 2, kind: input, shape index: {}]   ;;  %s14460_s3 = inlined_call_operand.hbm [shape: f32[1,48], index: 3, kind: input, shape index: {}]   ;;  %s14461_s4 = inlined_call_operand.hbm [shape: bf16[84,14], index: 4, kind: input, shape index: {}]   ;;  %s14462_s5 = inlined_call_operand.hbm [shape: f32[1,14], index: 5, kind: input, shape index: {}]   ;;  %s14463_s6 = inlined_call_operand.hbm [shape: bf16[98,16], index: 6, kind: input, shape index: {}]   ;;  %s14464_s7 = inlined_call_operand.hbm [shape: f32[1,16], index: 7, kind: input, shape index: {}]   ;;  %s14465_s8 = inlined_call_operand.hbm [shape: bf16[84,12], index: 8, kind: input, shape index: {}]   ;;  %s14466_s9 = inlined_call_operand.hbm [shape: f32[1,12], index: 9, kind: input, shape index: {}]   ;;  %s14467_s10 = inlined_call_operand.hbm [shape: bf16[84,14], index: 10, kind: input, shape index: {}]   ;;  %s14468_s11 = inlined_call_operand.hbm [shape: f32[1,14], index: 11, kind: input, shape index: {}]   ;;  %s14469_s12 = inlined_call_operand.hbm [shape: bf16[98,14], index: 12, kind: input, shape index: {}]   ;;  %s14470_s13 = inlined_call_operand.hbm [shape: f32[1,14], index: 13, kind: input, shape index: {}]   ;;  %s14471_s14 = inlined_call_operand.hbm [shape: bf16[98,16], index: 14, kind: input, shape index: {}]   ;;  %s14472_s15 = inlined_call_operand.hbm [shape: f32[1,16], index: 15, kind: input, shape index: {}]   ;;  %s14473_s16 = inlined_call_operand.hbm [shape: bf16[16,8], index: 16, kind: input, shape index: {}]   ;;  %s14474_s17 = inlined_call_operand.hbm [shape: f32[1,8], index: 17, kind: input, shape index: {}]   ;;  %s14475_s18 = inlined_call_operand.hbm [shape: bf16[2,8,8,64], index: 18, kind: output, shape index: {}]  }
   0x1   :  { %14497 = sst [smem:[#allocation60_spill]] %s14457_s0 }
   0x2   :  { %14498 = sst [smem:[#allocation61_spill]] %s14458_s1 }
   0x3   :  { %14499 = sst [smem:[#allocation62_spill]] %s14459_s2 }
   0x4   :  { %14500 = sst [smem:[#allocation63_spill]] %s14460_s3 }
   0x5   :  { %14501 = sst [smem:[#allocation64_spill]] %s14461_s4 }
   0x6   :  { %14502 = sst [smem:[#allocation65_spill]] %s14462_s5 }
   0x7   :  { %14503 = sst [smem:[#allocation66_spill]] %s14474_s17 }
   0x8   :  { %14504 = sst [smem:[#allocation67_spill]] %s14475_s18 }
   0x9   :  { %23 = vsyncpa [#allocation5], 0 }
   0xa   :  { %25 = vsyncpa [#allocation5 + $0x1], 0 }
   0xb   :  { %26 = vsyncpa [#allocation8], 0 }
   0xc   :  { %27 = vsyncpa [#allocation11], 0 }
   0xd   :  { %28 = vsyncpa [#allocation14], 0 }
   0xe   :  { %29 = vsyncpa [#allocation17], 0 }
   0xf   :  { %30 = vsyncpa [#allocation20], 0 }
  0x10   :  { %31 = vsyncpa [#allocation23], 0 }
  0x11   :  { %32 = vsyncpa [#allocation26], 0 }
  0x12   :  { %33 = vsyncpa [#allocation29], 0 }
  0x13   :  { %34 = vsyncpa [#allocation32], 0 }
  0x14   :  { %35 = vsyncpa [#allocation6], 0 }
  0x15   :  { %37 = vsyncpa [#allocation6 + $0x1], 0  ;;  %s11940_s27 = smov 0   ;;  %s11942_s28 = smov 0  }
  0x16   :  { %s11944_s29 = smov 0   ;;  %s11946_s30 = smov 0  }
  0x17 LB: > { %14505 = sst [smem:[#allocation45_spill]] %s11799_s27  ;;  %s11813_s0 = smov [#allocation7]   ;;  %s11811_s30 = sphi %s11946_s30, %s12341_s30   ;;  %s11807_s29 = sphi %s11944_s29, %s14608_s29   ;;  %s11803_s28 = sphi %s11942_s28, %s14607_s28   ;;  %s11799_s27 = sphi %s11940_s27, %s14606_s27  }
  0x18   : > { %14506 = sst [smem:[#allocation46_spill]] %s11803_s28  ;;  %s469_s19 = sshll.u32 %s11813_s0, 4  ;;  %s11967_s19 = int_to_ptr.vmem [resolvable:$true] %s469_s19 }
  0x19   : > { %14507 = sst [smem:[#allocation47_spill]] %s11807_s29  ;;  %s11961_s1 = sadd.s32 4294967295, %s11811_s30  }
  0x1a   : > { %14508 = sst [smem:[#allocation48_spill]] %s11811_s30  ;;  %p9249_p0 = scmp.ge.s32.totalorder %s11811_s30, 1 }
  0x1b   : > { %14509 = sst [smem:[#allocation49_spill]] %s11961_s1  ;;  %p14489_p1 = scmp.eq.s32.totalorder %s11961_s1, 0 }
  0x1c   : > { %p457_p2 = scmp.lt.s32.totalorder %s11811_s30, 3  ;;  %s11814_s21 = smov [#allocation10]  }
  0x1d   : > { %s496_s22 = sshll.u32 %s11814_s21, 4  ;;  %s11815_s23 = smov [#allocation13]   ;;  %s11982_s22 = int_to_ptr.vmem [resolvable:$true] %s496_s22 }
  0x1e   : > { %p11969_p4 = pnand %p9249_p0, %p457_p2  ;;  %s520_s24 = sshll.u32 %s11815_s23, 4  ;;  %s11984_s24 = int_to_ptr.vmem [resolvable:$true] %s520_s24 }
  0x1f   : > { %s14513_s0 = sld [smem:[#allocation61_spill]] }
  0x20   : > { %s14510_s20 = scalar_select %p11969_p4, 1, 0 }
  0x21   : > { %p10909_p6 = pneg %p11969_p4 }
  0x22   : > { %14511 = sst [smem:[#allocation50_spill]] %s14510_s20 }
  0x23   : > { %p11978_p7 = pnand %p10909_p6, %p14489_p1 }
  0x25   : > { %s11203_s18 = scalar_lea.hbm %s14513_s0, 1024  ;;  %p11994_p9 = pneg %p11978_p7 }
  0x26   : > { %p11204_p8 = scmp.ne.s32.totalorder %s14513_s0, %s11203_s18  ;;  %p11210_p12 = scmp.lt.u32.totalorder %s11203_s18, %s14513_s0 }
  0x28   : > { %p11206_p10 = pnand %p11994_p9, %p11204_p8 }
  0x2a   : > { %p11207_p11 = pneg %p11206_p10 }
  0x2c   : > { %p11212_p13 = pnand %p11210_p12, %p11207_p11 }
  0x2e   : > { %11215 = shalt.err (!%p11212_p13)
}
  0x2f   : > { %s11216_s27 = scalar_lea.vmem %s11967_s19, 1024  ;;  %p11224_p5 = scmp.lt.s32.totalorder %s11967_s19, %s11967_s19 }
  0x30   : > { %p11217_p0 = scmp.ne.s32.totalorder %s11967_s19, %s11216_s27  ;;  %p11225_p3 = scmp.lt.s32.totalorder %s11216_s27, %s11216_s27 }
  0x32   : > { %p11219_p2 = pnand %p11217_p0, %p11994_p9  ;;  %p11226_p8 = por %p11225_p3, %p11224_p5 }
  0x34   : > { %p11220_p6 = pneg %p11219_p2 }
  0x36   : > { %p11227_p10 = pnand %p11226_p8, %p11220_p6 }
  0x38   : > { %11230 = shalt.err (!%p11227_p10)
}
  0x39   : > { %s11816_s20 = smov 128   ;;  %s11817_s18 = smov 8  }
  0x3a   : > { %10912 = dma.hbm_to_vmem [thread:$0]  (!%p11978_p7), %s14513_s0, 1024, %s11967_s19, [#allocation8], %s11816_s20, %s11816_s20, %s11817_s18  }
  0x3b   : > { %s14515_s3 = sld [smem:[#allocation63_spill]] }
  0x41   : > { %s11231_s28 = scalar_lea.hbm %s14515_s3, 16 }
  0x42   : > { %p11232_p3 = scmp.ne.s32.totalorder %s14515_s3, %s11231_s28  ;;  %p11238_p12 = scmp.lt.u32.totalorder %s11231_s28, %s14515_s3 }
  0x44   : > { %p11234_p5 = pnand %p11232_p3, %p11994_p9 }
  0x46   : > { %p11235_p11 = pneg %p11234_p5 }
  0x48   : > { %p11240_p13 = pnand %p11238_p12, %p11235_p11 }
  0x4a   : > { %11243 = shalt.err (!%p11240_p13)
}
  0x4b   : > { %s11244_s19 = scalar_lea.vmem %s11982_s22, 16  ;;  %s11251_s29 = scalar_lea.vmem %s11982_s22, 32 }
  0x4c   : > { %p11245_p0 = scmp.ne.s32.totalorder %s11982_s22, %s11244_s19  ;;  %p11252_p8 = scmp.lt.s32.totalorder %s11982_s22, %s11982_s22 }
  0x4d   : > { %p11253_p10 = scmp.lt.s32.totalorder %s11251_s29, %s11244_s19 }
  0x4e   : > { %p11247_p2 = pnand %p11245_p0, %p11994_p9 }
  0x4f   : > { %p11254_p3 = por %p11253_p10, %p11252_p8 }
  0x50   : > { %p11248_p6 = pneg %p11247_p2 }
  0x52   : > { %p11255_p5 = pnand %p11254_p3, %p11248_p6 }
  0x54   : > { %11258 = shalt.err (!%p11255_p5)
}
  0x55   : > { %10918 = dma.hbm_to_vmem [thread:$0]  (!%p11978_p7), %s14515_s3, 16, %s11982_s22, [#allocation11]  }
  0x56   : > { %s14516_s5 = sld [smem:[#allocation65_spill]] }
  0x5c   : > { %s11259_s18 = scalar_lea.hbm %s14516_s5, 16 }
  0x5d   : > { %p11260_p11 = scmp.ne.s32.totalorder %s14516_s5, %s11259_s18  ;;  %p11266_p0 = scmp.lt.u32.totalorder %s11259_s18, %s14516_s5 }
  0x5f   : > { %p11262_p12 = pnand %p11260_p11, %p11994_p9 }
  0x61   : > { %p11263_p13 = pneg %p11262_p12 }
  0x63   : > { %p11268_p2 = pnand %p11266_p0, %p11263_p13 }
  0x65   : > { %11271 = shalt.err (!%p11268_p2)
}
  0x66   : > { %s11272_s22 = scalar_lea.vmem %s11984_s24, 16  ;;  %s11279_s27 = scalar_lea.vmem %s11984_s24, 32 }
  0x67   : > { %p11273_p6 = scmp.ne.s32.totalorder %s11984_s24, %s11272_s22  ;;  %p11280_p3 = scmp.lt.s32.totalorder %s11984_s24, %s11984_s24 }
  0x68   : > { %p11281_p5 = scmp.lt.s32.totalorder %s11279_s27, %s11272_s22 }
  0x69   : > { %p11275_p8 = pnand %p11273_p6, %p11994_p9 }
  0x6a   : > { %p11282_p11 = por %p11281_p5, %p11280_p3 }
  0x6b   : > { %p11276_p10 = pneg %p11275_p8 }
  0x6d   : > { %p11283_p12 = pnand %p11282_p11, %p11276_p10 }
  0x6f   : > { %11286 = shalt.err (!%p11283_p12)
}
  0x70   : > { %10924 = dma.hbm_to_vmem [thread:$0]  (!%p11978_p7), %s14516_s5, 16, %s11984_s24, [#allocation14]  }
  0x71   : > { %s11818_s17 = smov [#allocation16]   ;;  %s11819_s30 = smov [#allocation19]  }
  0x72   : > { %s544_s28 = sshll.u32 %s11818_s17, 4  ;;  %s568_s20 = sshll.u32 %s11819_s30, 4  ;;  %s545_s28 = int_to_ptr.vmem [resolvable:$true] %s544_s28  ;;  %s569_s20 = int_to_ptr.vmem [resolvable:$true] %s568_s20 }
  0x73   : > { %s11287_s25 = scalar_lea.hbm %s14464_s7, 16 }
  0x74   : > { %p11288_p13 = scmp.ne.s32.totalorder %s14464_s7, %s11287_s25  ;;  %p11294_p6 = scmp.lt.u32.totalorder %s11287_s25, %s14464_s7 }
  0x76   : > { %p11290_p0 = pnand %p11288_p13, %p11994_p9 }
  0x78   : > { %p11291_p2 = pneg %p11290_p0 }
  0x7a   : > { %p11296_p8 = pnand %p11294_p6, %p11291_p2 }
  0x7c   : > { %11299 = shalt.err (!%p11296_p8)
}
  0x7d   : > { %s11300_s24 = scalar_lea.vmem %s545_s28, 16  ;;  %s11307_s19 = scalar_lea.vmem %s545_s28, 32 }
  0x7e   : > { %p11301_p10 = scmp.ne.s32.totalorder %s545_s28, %s11300_s24  ;;  %p11308_p11 = scmp.lt.s32.totalorder %s545_s28, %s545_s28 }
  0x7f   : > { %p11309_p12 = scmp.lt.s32.totalorder %s11307_s19, %s11300_s24 }
  0x80   : > { %p11303_p3 = pnand %p11301_p10, %p11994_p9 }
  0x81   : > { %p11310_p1 = por %p11309_p12, %p11308_p11 }
  0x82   : > { %p11304_p5 = pneg %p11303_p3 }
  0x84   : > { %p11311_p4 = pnand %p11310_p1, %p11304_p5 }
  0x86   : > { %11314 = shalt.err (!%p11311_p4)
}
  0x87   : > { %10930 = dma.hbm_to_vmem [thread:$0]  (!%p11978_p7), %s14464_s7, 16, %s545_s28, [#allocation17]  }
  0x88   : > { %s11315_s1 = scalar_lea.hbm %s14466_s9, 16 }
  0x89   : > { %p11316_p13 = scmp.ne.s32.totalorder %s14466_s9, %s11315_s1  ;;  %p11322_p4 = scmp.lt.u32.totalorder %s11315_s1, %s14466_s9 }
  0x8b   : > { %p11318_p0 = pnand %p11316_p13, %p11994_p9 }
  0x8d   : > { %p11319_p1 = pneg %p11318_p0 }
  0x8f   : > { %p11324_p2 = pnand %p11322_p4, %p11319_p1 }
  0x91   : > { %11327 = shalt.err (!%p11324_p2)
}
  0x92   : > { %s11328_s27 = scalar_lea.vmem %s569_s20, 16  ;;  %s11335_s28 = scalar_lea.vmem %s569_s20, 32 }
  0x93   : > { %p11329_p6 = scmp.ne.s32.totalorder %s569_s20, %s11328_s27  ;;  %p11336_p3 = scmp.lt.s32.totalorder %s569_s20, %s569_s20 }
  0x94   : > { %p11337_p5 = scmp.lt.s32.totalorder %s11335_s28, %s11328_s27 }
  0x95   : > { %p11331_p8 = pnand %p11329_p6, %p11994_p9 }
  0x96   : > { %p11338_p11 = por %p11337_p5, %p11336_p3 }
  0x97   : > { %p11332_p10 = pneg %p11331_p8 }
  0x99   : > { %p11339_p12 = pnand %p11338_p11, %p11332_p10 }
  0x9b   : > { %11342 = shalt.err (!%p11339_p12)
}
  0x9c   : > { %10936 = dma.hbm_to_vmem [thread:$0]  (!%p11978_p7), %s14466_s9, 16, %s569_s20, [#allocation20]  }
  0x9d   : > { %s11820_s29 = smov [#allocation22]   ;;  %s11821_s30 = smov [#allocation25]  }
  0x9e   : > { %s592_s17 = sshll.u32 %s11820_s29, 4  ;;  %s616_s18 = sshll.u32 %s11821_s30, 4  ;;  %s593_s17 = int_to_ptr.vmem [resolvable:$true] %s592_s17  ;;  %s617_s18 = int_to_ptr.vmem [resolvable:$true] %s616_s18 }
  0x9f   : > { %s11343_s26 = scalar_lea.hbm %s14468_s11, 16 }
  0xa0   : > { %p11344_p13 = scmp.ne.s32.totalorder %s14468_s11, %s11343_s26  ;;  %p11350_p4 = scmp.lt.u32.totalorder %s11343_s26, %s14468_s11 }
  0xa2   : > { %p11346_p0 = pnand %p11344_p13, %p11994_p9 }
  0xa4   : > { %p11347_p1 = pneg %p11346_p0 }
  0xa6   : > { %p11352_p2 = pnand %p11350_p4, %p11347_p1 }
  0xa8   : > { %11355 = shalt.err (!%p11352_p2)
}
  0xa9   : > { %s11356_s20 = scalar_lea.vmem %s593_s17, 16  ;;  %s11363_s24 = scalar_lea.vmem %s593_s17, 32 }
  0xaa   : > { %p11357_p6 = scmp.ne.s32.totalorder %s593_s17, %s11356_s20  ;;  %p11364_p3 = scmp.lt.s32.totalorder %s593_s17, %s593_s17 }
  0xab   : > { %p11365_p5 = scmp.lt.s32.totalorder %s11363_s24, %s11356_s20 }
  0xac   : > { %p11359_p8 = pnand %p11357_p6, %p11994_p9 }
  0xad   : > { %p11366_p11 = por %p11365_p5, %p11364_p3 }
  0xae   : > { %p11360_p10 = pneg %p11359_p8 }
  0xb0   : > { %p11367_p12 = pnand %p11366_p11, %p11360_p10 }
  0xb2   : > { %11370 = shalt.err (!%p11367_p12)
}
  0xb3   : > { %10942 = dma.hbm_to_vmem [thread:$0]  (!%p11978_p7), %s14468_s11, 16, %s593_s17, [#allocation23]  }
  0xb4   : > { %s11371_s25 = scalar_lea.hbm %s14470_s13, 16 }
  0xb5   : > { %p11372_p13 = scmp.ne.s32.totalorder %s14470_s13, %s11371_s25  ;;  %p11378_p4 = scmp.lt.u32.totalorder %s11371_s25, %s14470_s13 }
  0xb7   : > { %p11374_p0 = pnand %p11372_p13, %p11994_p9 }
  0xb9   : > { %p11375_p1 = pneg %p11374_p0 }
  0xbb   : > { %p11380_p2 = pnand %p11378_p4, %p11375_p1 }
  0xbd   : > { %11383 = shalt.err (!%p11380_p2)
}
  0xbe   : > { %s11384_s28 = scalar_lea.vmem %s617_s18, 16  ;;  %s11391_s17 = scalar_lea.vmem %s617_s18, 32 }
  0xbf   : > { %p11385_p6 = scmp.ne.s32.totalorder %s617_s18, %s11384_s28  ;;  %p11392_p3 = scmp.lt.s32.totalorder %s617_s18, %s617_s18 }
  0xc0   : > { %p11393_p5 = scmp.lt.s32.totalorder %s11391_s17, %s11384_s28 }
  0xc1   : > { %p11387_p8 = pnand %p11385_p6, %p11994_p9 }
  0xc2   : > { %p11394_p11 = por %p11393_p5, %p11392_p3 }
  0xc3   : > { %p11388_p10 = pneg %p11387_p8 }
  0xc5   : > { %p11395_p12 = pnand %p11394_p11, %p11388_p10 }
  0xc7   : > { %11398 = shalt.err (!%p11395_p12)
}
  0xc8   : > { %10948 = dma.hbm_to_vmem [thread:$0]  (!%p11978_p7), %s14470_s13, 16, %s617_s18, [#allocation26]  }
  0xc9   : > { %s11822_s19 = smov [#allocation28]   ;;  %s11823_s30 = smov [#allocation9]  }
  0xca   : > { %s640_s29 = sshll.u32 %s11822_s19, 4  ;;  %s482_s1 = sshll.u32 %s11823_s30, 4  ;;  %s641_s29 = int_to_ptr.vmem [resolvable:$true] %s640_s29  ;;  %s483_s1 = int_to_ptr.vmem [resolvable:$true] %s482_s1 }
  0xcb   : > { %s11399_s23 = scalar_lea.hbm %s14472_s15, 16 }
  0xcc   : > { %p11400_p13 = scmp.ne.s32.totalorder %s14472_s15, %s11399_s23  ;;  %p11406_p4 = scmp.lt.u32.totalorder %s11399_s23, %s14472_s15 }
  0xce   : > { %p11402_p0 = pnand %p11400_p13, %p11994_p9 }
  0xd0   : > { %p11403_p1 = pneg %p11402_p0 }
  0xd2   : > { %p11408_p2 = pnand %p11406_p4, %p11403_p1 }
  0xd4   : > { %11411 = shalt.err (!%p11408_p2)
}
  0xd5   : > { %s11412_s18 = scalar_lea.vmem %s641_s29, 16  ;;  %s11419_s20 = scalar_lea.vmem %s641_s29, 32 }
  0xd6   : > { %p11413_p6 = scmp.ne.s32.totalorder %s641_s29, %s11412_s18  ;;  %p11420_p3 = scmp.lt.s32.totalorder %s641_s29, %s641_s29 }
  0xd7   : > { %p11421_p5 = scmp.lt.s32.totalorder %s11419_s20, %s11412_s18 }
  0xd8   : > { %p11415_p8 = pnand %p11413_p6, %p11994_p9 }
  0xd9   : > { %p11422_p11 = por %p11421_p5, %p11420_p3 }
  0xda   : > { %p11416_p10 = pneg %p11415_p8 }
  0xdc   : > { %p11423_p12 = pnand %p11422_p11, %p11416_p10 }
  0xde   : > { %11426 = shalt.err (!%p11423_p12)
}
  0xdf   : > { %10954 = dma.hbm_to_vmem [thread:$0]  (!%p11978_p7), %s14472_s15, 16, %s641_s29, [#allocation29]  }
  0xe0   : > { %s14517_s26 = sld [smem:[#allocation62_spill]] }
  0xe6   : > { %s11427_s23 = scalar_lea.hbm %s14517_s26, 128 }
  0xe7   : > { %p11428_p13 = scmp.ne.s32.totalorder %s14517_s26, %s11427_s23  ;;  %p11434_p4 = scmp.lt.u32.totalorder %s11427_s23, %s14517_s26 }
  0xe9   : > { %p11430_p0 = pnand %p11428_p13, %p11994_p9 }
  0xeb   : > { %p11431_p1 = pneg %p11430_p0 }
  0xed   : > { %p11436_p2 = pnand %p11434_p4, %p11431_p1 }
  0xef   : > { %11439 = shalt.err (!%p11436_p2)
}
  0xf0   : > { %s11440_s18 = scalar_lea.vmem %s483_s1, 128  ;;  %p11448_p3 = scmp.lt.s32.totalorder %s483_s1, %s483_s1 }
  0xf1   : > { %p11441_p6 = scmp.ne.s32.totalorder %s483_s1, %s11440_s18  ;;  %p11449_p5 = scmp.lt.s32.totalorder %s11440_s18, %s11440_s18 }
  0xf3   : > { %p11443_p8 = pnand %p11441_p6, %p11994_p9  ;;  %p11450_p11 = por %p11449_p5, %p11448_p3 }
  0xf5   : > { %p11444_p10 = pneg %p11443_p8 }
  0xf7   : > { %p11451_p12 = pnand %p11450_p11, %p11444_p10 }
  0xf9   : > { %11454 = shalt.err (!%p11451_p12)
}
  0xfa   : > { %s14492_s29 = smov 64   ;;  %s14493_s20 = smov 4  }
  0xfb   : > { %10915 = dma.hbm_to_vmem [thread:$0]  (!%p11978_p7), %s14517_s26, 128, %s483_s1, [#allocation8], %s14492_s29, %s14492_s29, %s14493_s20  }
  0xfc   : > { %s11826_s30 = smov [#allocation12]   ;;  %s11827_s23 = smov [#allocation15]  }
  0xfd   : > { %s506_s25 = sshll.u32 %s11826_s30, 4  ;;  %s530_s22 = sshll.u32 %s11827_s23, 4  ;;  %s507_s25 = int_to_ptr.vmem [resolvable:$true] %s506_s25  ;;  %s531_s22 = int_to_ptr.vmem [resolvable:$true] %s530_s22 }
  0xfe   : > { %s14518_s4 = sld [smem:[#allocation64_spill]] }
 0x104   : > { %s11455_s17 = scalar_lea.hbm %s14518_s4, 704 }
 0x105   : > { %p11456_p13 = scmp.ne.s32.totalorder %s14518_s4, %s11455_s17  ;;  %p11462_p4 = scmp.lt.u32.totalorder %s11455_s17, %s14518_s4 }
 0x107   : > { %p11458_p0 = pnand %p11456_p13, %p11994_p9 }
 0x109   : > { %p11459_p1 = pneg %p11458_p0 }
 0x10b   : > { %p11464_p2 = pnand %p11462_p4, %p11459_p1 }
 0x10d   : > { %11467 = shalt.err (!%p11464_p2)
}
 0x10e   : > { %s11468_s1 = scalar_lea.vmem %s507_s25, 704  ;;  %p11476_p3 = scmp.lt.s32.totalorder %s507_s25, %s507_s25 }
 0x10f   : > { %p11469_p6 = scmp.ne.s32.totalorder %s507_s25, %s11468_s1  ;;  %p11477_p5 = scmp.lt.s32.totalorder %s11468_s1, %s11468_s1 }
 0x111   : > { %p11471_p8 = pnand %p11469_p6, %p11994_p9  ;;  %p11478_p11 = por %p11477_p5, %p11476_p3 }
 0x113   : > { %p11472_p10 = pneg %p11471_p8 }
 0x115   : > { %p11479_p12 = pnand %p11478_p11, %p11472_p10 }
 0x117   : > { %11482 = shalt.err (!%p11479_p12)
}
 0x118   : > { %10921 = dma.hbm_to_vmem [thread:$0]  (!%p11978_p7), %s14518_s4, 704, %s507_s25, [#allocation11], %s14492_s29, %s14492_s29, %s14493_s20  }
 0x119   : > { %s11483_s19 = scalar_lea.hbm %s14463_s6, 832 }
 0x11a   : > { %p11484_p13 = scmp.ne.s32.totalorder %s14463_s6, %s11483_s19  ;;  %p11490_p4 = scmp.lt.u32.totalorder %s11483_s19, %s14463_s6 }
 0x11c   : > { %p11486_p0 = pnand %p11484_p13, %p11994_p9 }
 0x11e   : > { %p11487_p1 = pneg %p11486_p0 }
 0x120   : > { %p11492_p2 = pnand %p11490_p4, %p11487_p1 }
 0x122   : > { %11495 = shalt.err (!%p11492_p2)
}
 0x123   : > { %s11496_s17 = scalar_lea.vmem %s531_s22, 832  ;;  %p11504_p3 = scmp.lt.s32.totalorder %s531_s22, %s531_s22 }
 0x124   : > { %p11497_p6 = scmp.ne.s32.totalorder %s531_s22, %s11496_s17  ;;  %p11505_p5 = scmp.lt.s32.totalorder %s11496_s17, %s11496_s17 }
 0x126   : > { %p11499_p8 = pnand %p11497_p6, %p11994_p9  ;;  %p11506_p11 = por %p11505_p5, %p11504_p3 }
 0x128   : > { %p11500_p10 = pneg %p11499_p8 }
 0x12a   : > { %p11507_p12 = pnand %p11506_p11, %p11500_p10 }
 0x12c   : > { %11510 = shalt.err (!%p11507_p12)
}
 0x12d   : > { %10927 = dma.hbm_to_vmem [thread:$0]  (!%p11978_p7), %s14463_s6, 832, %s531_s22, [#allocation14], %s14492_s29, %s14492_s29, %s14493_s20  }
 0x12e   : > { %s11828_s1 = smov [#allocation18]   ;;  %s11829_s5 = smov [#allocation21]  }
 0x12f   : > { %s554_s3 = sshll.u32 %s11828_s1, 4  ;;  %s578_s0 = sshll.u32 %s11829_s5, 4  ;;  %s555_s3 = int_to_ptr.vmem [resolvable:$true] %s554_s3  ;;  %s579_s0 = int_to_ptr.vmem [resolvable:$true] %s578_s0 }
 0x130   : > { %s11511_s30 = scalar_lea.hbm %s14465_s8, 704 }
 0x131   : > { %p11512_p13 = scmp.ne.s32.totalorder %s14465_s8, %s11511_s30  ;;  %p11518_p4 = scmp.lt.u32.totalorder %s11511_s30, %s14465_s8 }
 0x133   : > { %p11514_p0 = pnand %p11512_p13, %p11994_p9 }
 0x135   : > { %p11515_p1 = pneg %p11514_p0 }
 0x137   : > { %p11520_p2 = pnand %p11518_p4, %p11515_p1 }
 0x139   : > { %11523 = shalt.err (!%p11520_p2)
}
 0x13a   : > { %s11524_s22 = scalar_lea.vmem %s555_s3, 704  ;;  %p11532_p3 = scmp.lt.s32.totalorder %s555_s3, %s555_s3 }
 0x13b   : > { %p11525_p6 = scmp.ne.s32.totalorder %s555_s3, %s11524_s22  ;;  %p11533_p5 = scmp.lt.s32.totalorder %s11524_s22, %s11524_s22 }
 0x13d   : > { %p11527_p8 = pnand %p11525_p6, %p11994_p9  ;;  %p11534_p11 = por %p11533_p5, %p11532_p3 }
 0x13f   : > { %p11528_p10 = pneg %p11527_p8 }
 0x141   : > { %p11535_p12 = pnand %p11534_p11, %p11528_p10 }
 0x143   : > { %11538 = shalt.err (!%p11535_p12)
}
 0x144   : > { %10933 = dma.hbm_to_vmem [thread:$0]  (!%p11978_p7), %s14465_s8, 704, %s555_s3, [#allocation17], %s14492_s29, %s14492_s29, %s14493_s20  }
 0x145   : > { %s11539_s24 = scalar_lea.hbm %s14467_s10, 704 }
 0x146   : > { %p11540_p13 = scmp.ne.s32.totalorder %s14467_s10, %s11539_s24  ;;  %p11546_p4 = scmp.lt.u32.totalorder %s11539_s24, %s14467_s10 }
 0x148   : > { %p11542_p0 = pnand %p11540_p13, %p11994_p9 }
 0x14a   : > { %p11543_p1 = pneg %p11542_p0 }
 0x14c   : > { %p11548_p2 = pnand %p11546_p4, %p11543_p1 }
 0x14e   : > { %11551 = shalt.err (!%p11548_p2)
}
 0x14f   : > { %s11552_s28 = scalar_lea.vmem %s579_s0, 704  ;;  %p11560_p3 = scmp.lt.s32.totalorder %s579_s0, %s579_s0 }
 0x150   : > { %p11553_p6 = scmp.ne.s32.totalorder %s579_s0, %s11552_s28  ;;  %p11561_p5 = scmp.lt.s32.totalorder %s11552_s28, %s11552_s28 }
 0x152   : > { %p11555_p8 = pnand %p11553_p6, %p11994_p9  ;;  %p11562_p11 = por %p11561_p5, %p11560_p3 }
 0x154   : > { %p11556_p10 = pneg %p11555_p8 }
 0x156   : > { %p11563_p12 = pnand %p11562_p11, %p11556_p10 }
 0x158   : > { %11566 = shalt.err (!%p11563_p12)
}
 0x159   : > { %10939 = dma.hbm_to_vmem [thread:$0]  (!%p11978_p7), %s14467_s10, 704, %s579_s0, [#allocation20], %s14492_s29, %s14492_s29, %s14493_s20  }
 0x15a   : > { %s11830_s22 = smov [#allocation24]   ;;  %s11831_s18 = smov [#allocation27]  }
 0x15b   : > { %s602_s25 = sshll.u32 %s11830_s22, 4  ;;  %s626_s1 = sshll.u32 %s11831_s18, 4  ;;  %s603_s25 = int_to_ptr.vmem [resolvable:$true] %s602_s25  ;;  %s627_s1 = int_to_ptr.vmem [resolvable:$true] %s626_s1 }
 0x15c   : > { %s11567_s19 = scalar_lea.hbm %s14469_s12, 832 }
 0x15d   : > { %p11568_p13 = scmp.ne.s32.totalorder %s14469_s12, %s11567_s19  ;;  %p11574_p4 = scmp.lt.u32.totalorder %s11567_s19, %s14469_s12 }
 0x15f   : > { %p11570_p0 = pnand %p11568_p13, %p11994_p9 }
 0x161   : > { %p11571_p1 = pneg %p11570_p0 }
 0x163   : > { %p11576_p2 = pnand %p11574_p4, %p11571_p1 }
 0x165   : > { %11579 = shalt.err (!%p11576_p2)
}
 0x166   : > { %s11580_s0 = scalar_lea.vmem %s603_s25, 832  ;;  %p11588_p3 = scmp.lt.s32.totalorder %s603_s25, %s603_s25 }
 0x167   : > { %p11581_p6 = scmp.ne.s32.totalorder %s603_s25, %s11580_s0  ;;  %p11589_p5 = scmp.lt.s32.totalorder %s11580_s0, %s11580_s0 }
 0x169   : > { %p11583_p8 = pnand %p11581_p6, %p11994_p9  ;;  %p11590_p11 = por %p11589_p5, %p11588_p3 }
 0x16b   : > { %p11584_p10 = pneg %p11583_p8 }
 0x16d   : > { %p11591_p12 = pnand %p11590_p11, %p11584_p10 }
 0x16f   : > { %11594 = shalt.err (!%p11591_p12)
}
 0x170   : > { %10945 = dma.hbm_to_vmem [thread:$0]  (!%p11978_p7), %s14469_s12, 832, %s603_s25, [#allocation23], %s14492_s29, %s14492_s29, %s14493_s20  }
 0x171   : > { %s11595_s5 = scalar_lea.hbm %s14471_s14, 832 }
 0x172   : > { %p11596_p13 = scmp.ne.s32.totalorder %s14471_s14, %s11595_s5  ;;  %p11602_p4 = scmp.lt.u32.totalorder %s11595_s5, %s14471_s14 }
 0x174   : > { %p11598_p0 = pnand %p11596_p13, %p11994_p9 }
 0x176   : > { %p11599_p1 = pneg %p11598_p0 }
 0x178   : > { %p11604_p2 = pnand %p11602_p4, %p11599_p1 }
 0x17a   : > { %11607 = shalt.err (!%p11604_p2)
}
 0x17b   : > { %s11608_s27 = scalar_lea.vmem %s627_s1, 832  ;;  %p11616_p3 = scmp.lt.s32.totalorder %s627_s1, %s627_s1 }
 0x17c   : > { %p11609_p6 = scmp.ne.s32.totalorder %s627_s1, %s11608_s27  ;;  %p11617_p5 = scmp.lt.s32.totalorder %s11608_s27, %s11608_s27 }
 0x17e   : > { %p11611_p8 = pnand %p11609_p6, %p11994_p9  ;;  %p11618_p11 = por %p11617_p5, %p11616_p3 }
 0x180   : > { %p11612_p10 = pneg %p11611_p8 }
 0x182   : > { %p11619_p12 = pnand %p11618_p11, %p11612_p10 }
 0x184   : > { %11622 = shalt.err (!%p11619_p12)
}
 0x185   : > { %10951 = dma.hbm_to_vmem [thread:$0]  (!%p11978_p7), %s14471_s14, 832, %s627_s1, [#allocation26], %s14492_s29, %s14492_s29, %s14493_s20  }
 0x186   : > { %s11832_s0 = smov [#allocation30]   ;;  %s11833_s17 = smov [#allocation31]  }
 0x187   : > { %s650_s3 = sshll.u32 %s11832_s0, 4  ;;  %s664_s22 = sshll.u32 %s11833_s17, 4  ;;  %s651_s3 = int_to_ptr.vmem [resolvable:$true] %s650_s3  ;;  %s665_s22 = int_to_ptr.vmem [resolvable:$true] %s664_s22 }
 0x188   : > { %s11623_s24 = scalar_lea.hbm %s14473_s16, 128 }
 0x189   : > { %p11624_p13 = scmp.ne.s32.totalorder %s14473_s16, %s11623_s24  ;;  %p11630_p4 = scmp.lt.u32.totalorder %s11623_s24, %s14473_s16 }
 0x18b   : > { %p11626_p0 = pnand %p11624_p13, %p11994_p9 }
 0x18d   : > { %p11627_p1 = pneg %p11626_p0 }
 0x18f   : > { %p11632_p2 = pnand %p11630_p4, %p11627_p1 }
 0x191   : > { %11635 = shalt.err (!%p11632_p2)
}
 0x192   : > { %s11636_s1 = scalar_lea.vmem %s651_s3, 128  ;;  %p11644_p3 = scmp.lt.s32.totalorder %s651_s3, %s651_s3 }
 0x193   : > { %p11637_p6 = scmp.ne.s32.totalorder %s651_s3, %s11636_s1  ;;  %p11645_p5 = scmp.lt.s32.totalorder %s11636_s1, %s11636_s1 }
 0x195   : > { %p11639_p8 = pnand %p11637_p6, %p11994_p9  ;;  %p11646_p11 = por %p11645_p5, %p11644_p3 }
 0x197   : > { %p11640_p10 = pneg %p11639_p8 }
 0x199   : > { %p11647_p12 = pnand %p11646_p11, %p11640_p10 }
 0x19b   : > { %11650 = shalt.err (!%p11647_p12)
}
 0x19c   : > { %10957 = dma.hbm_to_vmem [thread:$0]  (!%p11978_p7), %s14473_s16, 128, %s651_s3, [#allocation29], %s14492_s29, %s14492_s29, %s14493_s20  }
 0x19d   : > { %s14519_s18 = sld [smem:[#allocation66_spill]] }
 0x1a3   : > { %s11651_s5 = scalar_lea.hbm %s14519_s18, 16 }
 0x1a4   : > { %p11652_p13 = scmp.ne.s32.totalorder %s14519_s18, %s11651_s5  ;;  %p11658_p4 = scmp.lt.u32.totalorder %s11651_s5, %s14519_s18 }
 0x1a6   : > { %p11654_p0 = pnand %p11652_p13, %p11994_p9 }
 0x1a8   : > { %p11655_p1 = pneg %p11654_p0 }
 0x1aa   : > { %p11660_p2 = pnand %p11658_p4, %p11655_p1 }
 0x1ac   : > { %11663 = shalt.err (!%p11660_p2)
}
 0x1ad   : > { %s11664_s27 = scalar_lea.vmem %s665_s22, 16  ;;  %s11671_s3 = scalar_lea.vmem %s665_s22, 32 }
 0x1ae   : > { %p11665_p6 = scmp.ne.s32.totalorder %s665_s22, %s11664_s27  ;;  %p11672_p3 = scmp.lt.s32.totalorder %s665_s22, %s665_s22 }
 0x1af   : > { %p11673_p5 = scmp.lt.s32.totalorder %s11671_s3, %s11664_s27 }
 0x1b0   : > { %p11667_p8 = pnand %p11665_p6, %p11994_p9 }
 0x1b1   : > { %p11674_p11 = por %p11673_p5, %p11672_p3 }
 0x1b2   : > { %p11668_p10 = pneg %p11667_p8 }
 0x1b4   : > { %p11675_p12 = pnand %p11674_p11, %p11668_p10 }
 0x1b6   : > { %11678 = shalt.err (!%p11675_p12)
}
 0x1b7   : > { %s14520_s28 = sld [smem:[#allocation48_spill]]  ;;  %s14521_s0 = sld [smem:[#allocation47_spill]] }
 0x1b8   : > { %s14522_s17 = sld [smem:[#allocation46_spill]]  ;;  %s14523_s21 = sld [smem:[#allocation45_spill]] }
 0x1b9   : > { %s14524_s5 = sld [smem:[#allocation49_spill]] }
 0x1ba   : > { %10960 = dma.hbm_to_vmem [thread:$0]  (!%p11978_p7), %s14519_s18, 16, %s665_s22, [#allocation32]  }
 0x1bd   : > { %s9248_s24 = sadd.s32 4294967294, %s14520_s28   ;;  %s12341_s30 = sadd.s32 1, %s14520_s28  }
 0x1be   : > { %s50_s2 = sadd.s32 1, %s14521_s0  ;;  %s47_s19 = ssub.s32 %s14520_s28, %s12341_s30 }
 0x1bf   : > { %p57_p9 = scmp.ne.s32.totalorder %s14521_s0, %s14522_s17  ;;  %p48_p13 = scmp.eq.s32.totalorder %s47_s19, 0 }
 0x1c0   : > { %p58_p0 = scmp.eq.s32.totalorder %s14520_s28, 0  ;;  %p63_p1 = scmp.ne.s32.totalorder %s14522_s17, %s14523_s21 }
 0x1c1   : > { %p444_p4 = scmp.eq.s32.totalorder %s14524_s5, 1  ;;  %p14525_p6 = scmp.eq.s32.totalorder %s14524_s5, 0 }
 0x1c2   : > { %s12353_s23 = scalar_select %p48_p13, %s14521_s0, %s50_s2  }
 0x1c3   : > { %p59_p2 = por %p58_p0, %p57_p9  ;;  %p12357_p8 = por %p14525_p6, %p63_p1 }
 0x1c4   : > { %p12361_p7 = por %p444_p4, %p57_p9  ;;  %p450_p10 = scmp.eq.s32.totalorder %s9248_s24, 1 }
 0x1c5   : > { %p10986_p3 = scmp.lt.s32.totalorder %s14520_s28, 2  ;;  %s675_s3 = sand.u32 1, %s14521_s0  }
 0x1c6   : > { %s14527_s22 = scalar_select %p12361_p7, 1, 0 }
 0x1c7   : > { %p12367_p5 = por %p450_p10, %p63_p1  ;;  %s9268_s25 = sshll.u32 %s675_s3, 5 }
 0x1c8   : > { %s9813_s17 = sshll.u32 %s14520_s28, 9  ;;  %s14529_s5 = sld [smem:[#allocation60_spill]] }
 0x1c9   : > { %s14528_s1 = scalar_select %p12367_p5, 1, 0 }
 0x1ca   : > { %s679_s29 = scalar_lea.vmem [#allocation4], %s9268_s25  ;;  %p12377_p11 = pnand %p10986_p3, %p59_p2 }
 0x1cb   : > { %s686_s20 = sshll.u32 %s679_s29, 4  ;;  %s12383_s28 = scalar_lea.sflag [#allocation5], %s675_s3  ;;  %s12381_s20 = int_to_ptr.vmem [resolvable:$true] %s686_s20 }
 0x1cc   : > { %p11681_p9 = pneg %p12377_p11 }
 0x1ce   : > { %s12375_s19 = scalar_lea.hbm %s14529_s5, %s9813_s17  ;;  %s11684_s17 = scalar_lea.hbm %s14529_s5, 1024 }
 0x1cf   : > { %s11679_s0 = scalar_lea.hbm %s12375_s19, 512  ;;  %p11685_p1 = scmp.lt.u32.totalorder %s12375_s19, %s14529_s5 }
 0x1d0   : > { %p11680_p12 = scmp.ne.s32.totalorder %s12375_s19, %s11679_s0  ;;  %p11686_p4 = scmp.lt.u32.totalorder %s11684_s17, %s11679_s0 }
 0x1d1   : > { %p11688_p6 = scmp.lt.u32.totalorder %s11679_s0, %s12375_s19 }
 0x1d2   : > { %p11682_p13 = pnand %p11681_p9, %p11680_p12  ;;  %p11687_p2 = por %p11686_p4, %p11685_p1 }
 0x1d4   : > { %p11683_p0 = pneg %p11682_p13  ;;  %p11689_p10 = por %p11688_p6, %p11687_p2 }
 0x1d6   : > { %p11690_p3 = pnand %p11689_p10, %p11683_p0 }
 0x1d8   : > { %11693 = shalt.err (!%p11690_p3)
}
 0x1d9   : > { %s11694_s3 = scalar_lea.vmem %s12381_s20, 512  ;;  %s11834_s25 = smov [#allocation4]  }
 0x1da   : > { %p11695_p12 = scmp.ne.s32.totalorder %s12381_s20, %s11694_s3  ;;  %s11699_s29 = sshll.u32 %s11834_s25, 4  ;;  %s11700_s29 = int_to_ptr.vmem [resolvable:$false] %s11699_s29 }
 0x1db   : > { %s11701_s21 = scalar_lea.vmem %s11700_s29, 1024  ;;  %p11702_p7 = scmp.lt.s32.totalorder %s12381_s20, %s11700_s29 }
 0x1dc   : > { %p11697_p13 = pnand %p11695_p12, %p11681_p9  ;;  %p11703_p1 = scmp.lt.s32.totalorder %s11701_s21, %s11694_s3 }
 0x1de   : > { %p11698_p5 = pneg %p11697_p13  ;;  %p11704_p4 = por %p11703_p1, %p11702_p7 }
 0x1e0   : > { %p11705_p2 = pnand %p11704_p4, %p11698_p5 }
 0x1e2   : > { %11708 = shalt.err (!%p11705_p2)
}
 0x1e3   : > { %s14531_s0 = smov 4   ;;  %s14532_s17 = smov 64  }
 0x1e4   : > { %10964 = dma.hbm_to_vmem [thread:$0]  (!%p12377_p11), %s12375_s19, 512, %s12381_s20, %s12383_s28, %s14532_s17, %s14532_s17, %s14531_s0  }
 0x1e5   : > { %s14533_s2 = sld [smem:[#allocation50_spill]] }
 0x1eb   : > { %p14534_p9 = scmp.ne.s32.totalorder %s14533_s2, 0 }
 0x1ed   : > { %698 = sbr.rel (%p14534_p9) target bundleno = 2731 (0xaab), region = 92 }
 0x1f4   : > { %s14535_s25 = sld [smem:[#allocation46_spill]] }
 0x1fa   : > { %s12417_s4 = sand.u32 1, %s14535_s25  }
 0x1fb   : > { %s9272_s3 = sshll.u32 %s12417_s4, 5  ;;  %s701_s29 = scalar_lea.sflag [#allocation5], %s12417_s4 }
 0x1fc   : > { %s12421_s21 = scalar_lea.vmem [#allocation4], %s9272_s3 }
 0x1fd   : > { %11754 = dma.done.wait (%p12357_p8), %s701_s29, 512  }
 0x1fe   : > { %11756 = vsyncadd (%p12357_p8), %s701_s29, 4294966784  ;;  %s14536_s24 = sld [smem:[#allocation49_spill]] }
 0x204   : > { %p14537_p7 = scmp.eq.s32.totalorder %s14536_s24, 0 }
 0x206   : > { %11758 = dma.done.wait (%p14537_p7), [#allocation8], 1152   ;;  %p14538_p5 = pmov %p14537_p7 }
 0x208   : > { %11760 = vsyncadd (%p14538_p5), [#allocation8], 4294966144  ;;  %p14539_p11 = pmov %p14538_p5 }
 0x209   : > { %p14540_p0 = pmov %p14538_p5 }
 0x20a   : > { %11762 = dma.done.wait (%p14539_p11), [#allocation11], 720  }
 0x20b   : > { %11764 = vsyncadd (%p14540_p0), [#allocation11], 4294966576  ;;  %p14541_p6 = pmov %p14540_p0 }
 0x20c   : > { %p14542_p10 = pmov %p14540_p0 }
 0x20d   : > { %11766 = dma.done.wait (%p14541_p6), [#allocation14], 848  }
 0x20e   : > { %11768 = vsyncadd (%p14542_p10), [#allocation14], 4294966448  ;;  %p14543_p8 = pmov %p14540_p0 }
 0x20f   : > { %p14544_p3 = pmov %p14540_p0 }
 0x210   : > { %11770 = dma.done.wait (%p14543_p8), [#allocation17], 720  }
 0x211   : > { %11772 = vsyncadd (%p14544_p3), [#allocation17], 4294966576  ;;  %p14545_p12 = pmov %p14540_p0 }
 0x212   : > { %p14546_p13 = pmov %p14540_p0 }
 0x213   : > { %11774 = dma.done.wait (%p14545_p12), [#allocation20], 720  }
 0x214   : > { %11776 = vsyncadd (%p14546_p13), [#allocation20], 4294966576  ;;  %p14547_p1 = pmov %p14540_p0 }
 0x215   : > { %p14548_p4 = pmov %p14540_p0 }
 0x216   : > { %11778 = dma.done.wait (%p14547_p1), [#allocation23], 848  }
 0x217   : > { %11780 = vsyncadd (%p14548_p4), [#allocation23], 4294966448  ;;  %p14549_p2 = pmov %p14540_p0 }
 0x218   : > { %p14550_p9 = pmov %p14540_p0 }
 0x219   : > { %11782 = dma.done.wait (%p14549_p2), [#allocation26], 848  }
 0x21a   : > { %11784 = vsyncadd (%p14550_p9), [#allocation26], 4294966448  ;;  %p14551_p7 = pmov %p14540_p0 }
 0x21b   : > { %p14552_p5 = pmov %p14540_p0 }
 0x21c   : > { %11786 = dma.done.wait (%p14551_p7), [#allocation29], 144  }
 0x21d   : > { %11788 = vsyncadd (%p14552_p5), [#allocation29], 4294967152  ;;  %p14553_p11 = pmov %p14540_p0 }
 0x21f   : > { %11790 = dma.done.wait (%p14553_p11), [#allocation32], 16  }
 0x220   : > { %11792 = vsyncadd (%p14540_p0), [#allocation32], 4294967280  ;;  %s12463_s20 = scalar_lea.vmem [#allocation33], %s9272_s3  ;;  %p14554_p6 = scmp.ne.s32.totalorder %s14536_s24, 0 }
 0x221   : > { %vm830_vm0 = vcmask (!%p14554_p6), 109568   ;;  %vm833_vm1 = vcmask (!%p14554_p6), 107520   ;;  %vm834_vm2 = vsmask.f32 (!%p14554_p6), 1280  ;;  %v11835_v0 = vmov (!%p14554_p6), 0  }
 0x222   : > { %829 = sbr.rel (%p14554_p6) target bundleno = 582 (0x246), region = 168  ;;  %832 = vst.msk [vmem:[#allocation2 + $0x4] sm:$0xf] (!%p14554_p6), %vm830_vm0, %v11835_v0  ;;  %840 = vst.msk [vmem:[#allocation2 + $0x10] sm:$0xf] (!%p14554_p6), %vm830_vm0, %v11835_v0  ;;  %vm904_vm4 = vcmask (!%p14554_p6), 125952  }
 0x223   : > { %845 = vst.msk [vmem:[#allocation2 + $0x1c] sm:$0xf] (!%p14554_p6), %vm830_vm0, %v11835_v0  ;;  %849 = vst.msk [vmem:[#allocation2 + $0x24] sm:$0xf] (!%p14554_p6), %vm830_vm0, %v11835_v0  ;;  %v836_v2 = vld [vmem:[#allocation2 + $0x8] sm:$0x3] (!%p14554_p6) }
 0x224   : > { %850 = vst.msk [vmem:[#allocation2 + $0x28] sm:$0xf] (!%p14554_p6), %vm830_vm0, %v11835_v0  ;;  %854 = vst.msk [vmem:[#allocation2 + $0x30] sm:$0xf] (!%p14554_p6), %vm830_vm0, %v11835_v0  ;;  %v841_v3 = vld [vmem:[#allocation2 + $0x14] sm:$0x3] (!%p14554_p6) }
 0x225   : > { %855 = vst.msk [vmem:[#allocation2 + $0x34] sm:$0xf] (!%p14554_p6), %vm830_vm0, %v11835_v0  ;;  %859 = vst.msk [vmem:[#allocation2 + $0x3c] sm:$0xf] (!%p14554_p6), %vm830_vm0, %v11835_v0  ;;  %vm907_vm5 = vcmask (!%p14554_p6), 122880  }
 0x226   : > { %860 = vst.msk [vmem:[#allocation2 + $0x40] sm:$0xf] (!%p14554_p6), %vm830_vm0, %v11835_v0  ;;  %864 = vst.msk [vmem:[#allocation2 + $0x48] sm:$0xf] (!%p14554_p6), %vm830_vm0, %v11835_v0  ;;  %v846_v6 = vld [vmem:[#allocation2 + $0x20] sm:$0x3] (!%p14554_p6) }
 0x227   : > { %865 = vst.msk [vmem:[#allocation2 + $0x4c] sm:$0xf] (!%p14554_p6), %vm830_vm0, %v11835_v0  ;;  %869 = vst.msk [vmem:[#allocation2 + $0x54] sm:$0xf] (!%p14554_p6), %vm830_vm0, %v11835_v0  ;;  %v851_v7 = vld [vmem:[#allocation2 + $0x2c] sm:$0x3] (!%p14554_p6) }
 0x228   : > { %870 = vst.msk [vmem:[#allocation2 + $0x58] sm:$0xf] (!%p14554_p6), %vm830_vm0, %v11835_v0  ;;  %874 = vst.msk [vmem:[#allocation2 + $0x60] sm:$0xf] (!%p14554_p6), %vm830_vm0, %v11835_v0  ;;  %v856_v10 = vld [vmem:[#allocation2 + $0x38] sm:$0x3] (!%p14554_p6) }
 0x229   : > { %875 = vst.msk [vmem:[#allocation2 + $0x64] sm:$0xf] %vm830_vm0, %v11835_v0  ;;  %879 = vst.msk [vmem:[#allocation2 + $0x6c] sm:$0xf] %vm830_vm0, %v11835_v0  ;;  %v861_v11 = vld [vmem:[#allocation2 + $0x44] sm:$0x3] }
 0x22a   : > { %880 = vst.msk [vmem:[#allocation2 + $0x70] sm:$0xf] %vm830_vm0, %v11835_v0  ;;  %884 = vst.msk [vmem:[#allocation2 + $0x78] sm:$0xf] %vm830_vm0, %v11835_v0  ;;  %v866_v14 = vld [vmem:[#allocation2 + $0x50] sm:$0x3] }
 0x22b   : > { %885 = vst.msk [vmem:[#allocation2 + $0x7c] sm:$0xf] %vm830_vm0, %v11835_v0  ;;  %890 = vst.msk [vmem:[#allocation2 + $0x88] sm:$0xf] %vm830_vm0, %v11835_v0  ;;  %v871_v15 = vld [vmem:[#allocation2 + $0x5c] sm:$0x3] }
 0x22c   : > { %895 = vst.msk [vmem:[#allocation2 + $0x94] sm:$0xf] %vm830_vm0, %v11835_v0  ;;  %900 = vst.msk [vmem:[#allocation2 + $0xa0] sm:$0xf] %vm830_vm0, %v11835_v0  ;;  %v876_v18 = vld [vmem:[#allocation2 + $0x68] sm:$0x3] }
 0x22d   : > { %vm12491_vm3 = vmand %vm833_vm1, %vm834_vm2  ;;  %905 = vst.msk [vmem:[#allocation3] sm:$0xf] %vm904_vm4, %v11835_v0  ;;  %v881_v19 = vld [vmem:[#allocation2 + $0x74] sm:$0x3]  ;;  %v886_v22 = vld [vmem:[#allocation2 + $0x80] sm:$0x3] }
 0x22e   : > { %v837_v4 = vsel %vm12491_vm3, 0, %v836_v2  ;;  %v842_v5 = vsel %vm12491_vm3, 0, %v841_v3  ;;  %906 = vst.msk [vmem:[#allocation3 + $0x4] sm:$0xf] %vm904_vm4, %v11835_v0  ;;  %913 = vst.msk [vmem:[#allocation3 + $0xc] sm:$0xf] %vm904_vm4, %v11835_v0 }
 0x22f   : > { %914 = vst.msk [vmem:[#allocation3 + $0x10] sm:$0xf] %vm904_vm4, %v11835_v0  ;;  %918 = vst.msk [vmem:[#allocation3 + $0x18] sm:$0xf] %vm904_vm4, %v11835_v0  ;;  %v847_v8 = vsel %vm12491_vm3, 0, %v846_v6  ;;  %v852_v9 = vsel %vm12491_vm3, 0, %v851_v7 }
 0x230   : > { %919 = vst.msk [vmem:[#allocation3 + $0x1c] sm:$0xf] %vm904_vm4, %v11835_v0  ;;  %923 = vst.msk [vmem:[#allocation3 + $0x24] sm:$0xf] %vm904_vm4, %v11835_v0  ;;  %v857_v12 = vsel %vm12491_vm3, 0, %v856_v10  ;;  %v862_v13 = vsel %vm12491_vm3, 0, %v861_v11 }
 0x231   : > { %924 = vst.msk [vmem:[#allocation3 + $0x28] sm:$0xf] %vm904_vm4, %v11835_v0  ;;  %928 = vst.msk [vmem:[#allocation3 + $0x30] sm:$0xf] %vm904_vm4, %v11835_v0  ;;  %v867_v16 = vsel %vm12491_vm3, 0, %v866_v14  ;;  %v872_v17 = vsel %vm12491_vm3, 0, %v871_v15 }
 0x232   : > { %929 = vst.msk [vmem:[#allocation3 + $0x34] sm:$0xf] %vm904_vm4, %v11835_v0  ;;  %933 = vst.msk [vmem:[#allocation3 + $0x3c] sm:$0xf] %vm904_vm4, %v11835_v0  ;;  %v877_v20 = vsel %vm12491_vm3, 0, %v876_v18  ;;  %v882_v21 = vsel %vm12491_vm3, 0, %v881_v19 }
 0x233   : > { %934 = vst.msk [vmem:[#allocation3 + $0x40] sm:$0xf] %vm904_vm4, %v11835_v0  ;;  %938 = vst.msk [vmem:[#allocation3 + $0x48] sm:$0xf] %vm904_vm4, %v11835_v0  ;;  %v891_v23 = vld [vmem:[#allocation2 + $0x8c] sm:$0x3] }
 0x234   : > { %939 = vst.msk [vmem:[#allocation3 + $0x4c] sm:$0xf] %vm904_vm4, %v11835_v0  ;;  %943 = vst.msk [vmem:[#allocation3 + $0x54] sm:$0xf] %vm904_vm4, %v11835_v0  ;;  %v887_v24 = vsel %vm12491_vm3, 0, %v886_v22  ;;  %v892_v25 = vsel %vm12491_vm3, 0, %v891_v23 }
 0x235   : > { %944 = vst.msk [vmem:[#allocation3 + $0x58] sm:$0xf] %vm904_vm4, %v11835_v0  ;;  %948 = vst.msk [vmem:[#allocation3 + $0x60] sm:$0xf] %vm904_vm4, %v11835_v0  ;;  %v896_v26 = vld [vmem:[#allocation2 + $0x98] sm:$0x3] }
 0x236   : > { %949 = vst.msk [vmem:[#allocation3 + $0x64] sm:$0xf] %vm904_vm4, %v11835_v0  ;;  %953 = vst.msk [vmem:[#allocation3 + $0x6c] sm:$0xf] %vm904_vm4, %v11835_v0  ;;  %v901_v27 = vld [vmem:[#allocation2 + $0xa4] sm:$0x3] }
 0x237   : > { %954 = vst.msk [vmem:[#allocation3 + $0x70] sm:$0xf] %vm904_vm4, %v11835_v0  ;;  %838 = vst [vmem:[#allocation2 + $0x8] sm:$0x3] %v837_v4  ;;  %v897_v28 = vsel %vm12491_vm3, 0, %v896_v26  ;;  %v902_v29 = vsel %vm12491_vm3, 0, %v901_v27 }
 0x238   : > { %843 = vst [vmem:[#allocation2 + $0x14] sm:$0x3] %v842_v5  ;;  %848 = vst [vmem:[#allocation2 + $0x20] sm:$0x3] %v847_v8  ;;  %vm908_vm6 = vsmask.f32 256 }
 0x239   : > { %853 = vst [vmem:[#allocation2 + $0x2c] sm:$0x3] %v852_v9  ;;  %858 = vst [vmem:[#allocation2 + $0x38] sm:$0x3] %v857_v12  ;;  %v910_v30 = vld [vmem:[#allocation3 + $0x8] sm:$0x1] }
 0x23a   : > { %863 = vst [vmem:[#allocation2 + $0x44] sm:$0x3] %v862_v13  ;;  %868 = vst [vmem:[#allocation2 + $0x50] sm:$0x3] %v867_v16  ;;  %v915_v32 = vld [vmem:[#allocation3 + $0x14] sm:$0x1] }
 0x23b   : > { %873 = vst [vmem:[#allocation2 + $0x5c] sm:$0x3] %v872_v17  ;;  %878 = vst [vmem:[#allocation2 + $0x68] sm:$0x3] %v877_v20  ;;  %v920_v33 = vld [vmem:[#allocation3 + $0x20] sm:$0x1] }
 0x23c   : > { %883 = vst [vmem:[#allocation2 + $0x74] sm:$0x3] %v882_v21  ;;  %888 = vst [vmem:[#allocation2 + $0x80] sm:$0x3] %v887_v24  ;;  %v925_v37 = vld [vmem:[#allocation3 + $0x2c] sm:$0x1] }
 0x23d   : > { %893 = vst [vmem:[#allocation2 + $0x8c] sm:$0x3] %v892_v25  ;;  %898 = vst [vmem:[#allocation2 + $0x98] sm:$0x3] %v897_v28  ;;  %v930_v39 = vld [vmem:[#allocation3 + $0x38] sm:$0x1] }
 0x23e   : > { %903 = vst [vmem:[#allocation2 + $0xa4] sm:$0x3] %v902_v29  ;;  %vm12544_vm7 = vmand %vm907_vm5, %vm908_vm6  ;;  %v935_v40 = vld [vmem:[#allocation3 + $0x44] sm:$0x1]  ;;  %v940_v43 = vld [vmem:[#allocation3 + $0x50] sm:$0x1] }
 0x23f   : > { %v911_v34 = vsel %vm12544_vm7, 0, %v910_v30  ;;  %v916_v35 = vsel %vm12544_vm7, 0, %v915_v32  ;;  %v921_v36 = vsel %vm12544_vm7, 0, %v920_v33  ;;  %v926_v38 = vsel %vm12544_vm7, 0, %v925_v37  ;;  %v945_v44 = vld [vmem:[#allocation3 + $0x5c] sm:$0x1] }
 0x240   : > { %912 = vst [vmem:[#allocation3 + $0x8] sm:$0x1] %v911_v34  ;;  %917 = vst [vmem:[#allocation3 + $0x14] sm:$0x1] %v916_v35  ;;  %v931_v41 = vsel %vm12544_vm7, 0, %v930_v39  ;;  %v936_v42 = vsel %vm12544_vm7, 0, %v935_v40 }
 0x241   : > { %922 = vst [vmem:[#allocation3 + $0x20] sm:$0x1] %v921_v36  ;;  %927 = vst [vmem:[#allocation3 + $0x2c] sm:$0x1] %v926_v38  ;;  %v941_v45 = vsel %vm12544_vm7, 0, %v940_v43  ;;  %v946_v46 = vsel %vm12544_vm7, 0, %v945_v44 }
 0x242   : > { %932 = vst [vmem:[#allocation3 + $0x38] sm:$0x1] %v931_v41  ;;  %937 = vst [vmem:[#allocation3 + $0x44] sm:$0x1] %v936_v42  ;;  %v950_v47 = vld [vmem:[#allocation3 + $0x68] sm:$0x1] }
 0x243   : > { %v955_v48 = vld [vmem:[#allocation3 + $0x74] sm:$0x1]  ;;  %942 = vst [vmem:[#allocation3 + $0x50] sm:$0x1] %v941_v45  ;;  %947 = vst [vmem:[#allocation3 + $0x5c] sm:$0x1] %v946_v46 }
 0x244   : > { %v951_v49 = vsel %vm12544_vm7, 0, %v950_v47  ;;  %v956_v50 = vsel %vm12544_vm7, 0, %v955_v48 }
 0x245   : > { %952 = vst [vmem:[#allocation3 + $0x68] sm:$0x1] %v951_v49  ;;  %957 = vst [vmem:[#allocation3 + $0x74] sm:$0x1] %v956_v50 }
 0x246 PF: > { %v11069_v51 = vld [vmem:[#allocation9] sm:$0xff]   ;;  %vm1001_vm8 = vcmask 130048   ;;  %v11071_v53 = vld [vmem:[%s12421_s21 + $0x8] sm:$0xff]   ;;  %v11072_v54 = vld [vmem:[%s12421_s21 + $0x10] sm:$0xff]   ;;  %vm1095_vm9 = vcmask 191488   ;;  %s11836_s27 = smov 104  }
 0x247   : > { %v11070_v52 = vld [vmem:[%s12421_s21] sm:$0xff]   ;;  %10067 = vmatprep.subr.bf16.mxu0 %v11069_v51  ;;  %v11073_v55 = vld [vmem:[%s12421_s21 + $0x18] sm:$0xff]   ;;  %v9292_v56 = vld [vmem:[#allocation10] ss:$0 sm:$0xff]  ;;  %vm1419_vm10 = vcmask 1045504   ;;  %s11837_s19 = smov 92  }
 0x248   : > { %10068 = vmatpush3.bf16.msra.mxu0 %v11069_v51  ;;  %10069 = vmatprep.mubr.msk.bf16.mxu0 %vm1001_vm8, %v11070_v52  ;;  %v11074_v5 = vld [vmem:[#allocation12 + $0x4] sm:$0xfc]   ;;  %v12590_v24 = vld [vmem:[#allocation12] sm:$0x3f]   ;;  %v1162_v29 = vld [vmem:[#allocation2 + $0x24] sm:$0xc] }
 0x249   : > { %v1405_v9 = vrot.slane %v11074_v5, 2  ;;  %v1182_v30 = vshrl.u32 %v1162_v29, 16  ;;  %v1185_v31 = vshll.u32 %v1162_v29, 16  ;;  %v1164_v32 = vld [vmem:[#allocation2 + $0x30] sm:$0xc]  ;;  %vm1153_vm11 = vcmask 93184  }
 0x24a   : > { %v1166_v33 = vld [vmem:[#allocation2 + $0x3c] sm:$0xc]  ;;  %v1200_v37 = vshrl.u32 %v1164_v32, 16  ;;  %v1203_v38 = vshll.u32 %v1164_v32, 16  ;;  %v12607_v40 = vld [vmem:[#allocation2 + $0x24] sm:$0x8] }
 0x24b   : > { %10070 = vmatmul.mubr.msk.bf16.vlgmr.msra.gmra.mrb[0].mxu0 %vm1001_vm8, %v11071_v53  ;;  %10795 = vmatprep.subr.msk.bf16.mxu1 %vm1419_vm10, %v1405_v9  ;;  %v1421_v14 = vsel %vm1419_vm10, %v1405_v9, 0  ;;  %v1184_v35 = vrot.slane %v1182_v30, 6  ;;  %v1187_v36 = vrot.slane %v1185_v31, 7  ;;  %v1218_v41 = vshrl.u32 %v1166_v33, 16  ;;  %v12610_v42 = vld [vmem:[#allocation2 + $0x30] sm:$0x8] }
 0x24c   : > { %10073 = vmatprep.mubr.msk.bf16.mxu0 %vm1001_vm8, %v11072_v54  ;;  %10078 = vmatpush3.bf16.msra.mxu1 %v1421_v14  ;;  %v12612_v43 = vld [vmem:[#allocation2 + $0x3c] sm:$0x8]  ;;  %v1168_v44 = vld [vmem:[#allocation2 + $0x48] sm:$0xc]  ;;  %vm1351_vm12 = vcmask 1040384   ;;  %vm1352_vm13 = vcmask 1044484  }
 0x24d   : > { %10796 = vmatprep.subr.msk.bf16.mxu1 %vm1419_vm10, %v12590_v24  ;;  %v1610_v45 = vshrl.u32 %v12610_v42, 16  ;;  %v12615_v46 = vld [vmem:[#allocation2 + $0x48] sm:$0x8]  ;;  %v1221_v47 = vshll.u32 %v1166_v33, 16  ;;  %v12617_v49 = vld [vmem:[#allocation2 + $0x54] sm:$0x8]  ;;  %v1188_v50 = vor.u32 %v1187_v36, %v1184_v35  ;;  %vm12667_vm15 = vmor %vm1351_vm12, %vm1352_vm13 }
 0x24e   : > { %v1202_v51 = vrot.slane %v1200_v37, 6  ;;  %v1205_v52 = vrot.slane %v1203_v38, 7  ;;  %v1170_v53 = vld [vmem:[#allocation2 + $0x54] sm:$0xc]  ;;  %vm1406_vm14 = vcmask 97280   ;;  %vm2185_vm13 = vcmask 1042432  }
 0x24f   : > { %v12634_v5 = vld [vmem:[#allocation2 + $0x6c] sm:$0x8]  ;;  %vm1178_vm0 = vsmask.f32 1280  ;;  %vm1179_vm1 = vsmask.f32 5392 }
 0x250   : > { %vm12726_vm2 = vmor %vm1178_vm0, %vm1179_vm1  ;;  %vm1593_vm3 = vsmask.f32 256  ;;  %vm1594_vm4 = vsmask.f32 4368  ;;  %vm1939_vm6 = vsmask.f32 3328 }
 0x251   : > { %vm12804_vm5 = vmor %vm1593_vm3, %vm1594_vm4  ;;  %vm1940_vm7 = vsmask.f32 7440  ;;  %vm2186_vm0 = vcmask 1046532   ;;  %vm2336_vm3 = vsmask.f32 2304  ;;  %s11839_s28 = smov 24  }
 0x252   : > { %vm12939_vm1 = vmor %vm2185_vm13, %vm2186_vm0  ;;  %vm2337_vm4 = vsmask.f32 6416  ;;  %vm2684_vm13 = vcmask 113664   ;;  %vm2697_vm0 = vcmask 1046528   ;;  %s11840_s0 = smov 56   ;;  %s11841_s17 = smov 40  }
 0x253   : > { %10074 = vmatmul.mubr.msk.bf16.gmra.mrb[4].mxu0 %vm1001_vm8, %v11073_v55  ;;  %v9310_v55 = vrot.slane %v12607_v40, 11  ;;  %s14599_s2 = sld [smem:[#allocation49_spill]]  ;;  %s9013_s3 = sshll.u32 %s12463_s20, 4  ;;  %s14409_s3 = int_to_ptr.vmem [resolvable:$true] %s9013_s3 }
 0x254   : > { %s14600_s24 = sld [smem:[#allocation67_spill]]  ;;  %p14601_p8 = scmp.ne.s32.totalorder %s14527_s22, 0 }
 0x259   : > { %s9846_s25 = sshll.u32 %s14599_s2, 9 }
 0x31e   : > { %v10071_v57 = vpop.f32.mrb[0].mxu0 }
 0x31f   : > { %v1057_v58 = vadd.f32 %v10071_v57, %v9292_v56  ;;  %v1048_v59 = vpop.f32.mrb[1].mxu0  ;;  %v1236_v57 = vshrl.u32 %v1168_v44, 16 }
 0x320   : > { %v1049_v60 = vadd.f32 %v9292_v56, %v1048_v59  ;;  %v10072_v61 = vpop.f32.mrb[2].mxu0  ;;  %v12622_v59 = vld [vmem:[#allocation2 + $0x60] sm:$0xc] }
 0x321   : > { %v1081_v62 = vmax.f32 %v1057_v58, 0.0  ;;  %v1060_v63 = vadd.f32 %v10072_v61, %v9292_v56  ;;  %v1051_v0 = vpop.f32.mrb[3].mxu0  ;;  %v1239_v58 = vshll.u32 %v1168_v44, 16  ;;  %v1597_v61 = vshrl.u32 %v12607_v40, 16 }
 0x322   : > { %v1079_v1 = vmax.f32 %v1049_v60, 0.0  ;;  %v1052_v2 = vadd.f32 %v9292_v56, %v1051_v0  ;;  %v9311_v60 = vrot.slane %v12610_v42, 11  ;;  %v12629_v0 = vrot.slane %v1610_v45, 11 }
 0x323   : > { %v1089_v3 = vpack.c.bf16 %v1081_v62, %v1081_v62  ;;  %v1082_v4 = vmax.f32 %v1060_v63, 0.0  ;;  %v9313_v62 = vrot.slane %v12615_v46, 11  ;;  %v1636_v63 = vshrl.u32 %v12615_v46, 16 }
 0x324   : > { %v1087_v6 = vpack.c.bf16 %v1079_v1, %v1079_v1  ;;  %v1080_v7 = vmax.f32 %v1052_v2, 0.0  ;;  %v12631_v1 = vld [vmem:[#allocation2 + $0x60] sm:$0x8]  ;;  %v9314_v2 = vrot.slane %v12617_v49, 11  ;;  %v1272_v9 = vshrl.u32 %v12622_v59, 16 }
 0x325   : > { %v1090_v8 = vpack.c.bf16 %v1082_v4, %v1082_v4  ;;  %1132 = vrot.lane.b32.xlu1 %v1089_v3, %s11836_s27  ;;  %1098 = vst.msk [vmem:[%s12463_s20 + $0x8] sm:$0xf] %vm1095_vm9, %v1089_v3  ;;  %v1257_v4 = vshll.u32 %v1170_v53, 16  ;;  %v1238_v14 = vrot.slane %v1236_v57, 6 }
 0x326   : > { %v1088_v10 = vpack.c.bf16 %v1080_v7, %v1080_v7  ;;  %v10075_v11 = vpop.f32.mrb[4].mxu0  ;;  %1128 = vrot.lane.b32.xlu0 %v1087_v6, %s11836_s27  ;;  %1096 = vst.msk [vmem:[%s12463_s20] sm:$0xf] %vm1095_vm9, %v1087_v6  ;;  %v12638_v7 = vrot.slane %v1188_v50, 4 }
 0x327   : > { %v1073_v12 = vadd.f32 %v10075_v11, %v9292_v56  ;;  %v1064_v13 = vpop.f32.mrb[5].mxu0  ;;  %1099 = vst.msk [vmem:[%s12463_s20 + $0xc] sm:$0xf] %vm1095_vm9, %v1090_v8 }
 0x328   : > { %v1065_v15 = vadd.f32 %v9292_v56, %v1064_v13  ;;  %v10076_v16 = vpop.f32.mrb[6].mxu0  ;;  %1097 = vst.msk [vmem:[%s12463_s20 + $0x4] sm:$0xf] %vm1095_vm9, %v1088_v10  ;;  %v12643_v13 = vrot.slane %v1221_v47, 7 }
 0x329   : > { %v1085_v17 = vmax.f32 %v1073_v12, 0.0  ;;  %v1076_v18 = vadd.f32 %v10076_v16, %v9292_v56  ;;  %1134 = vrot.lane.b32.xlu1 %v1090_v8, %s11836_s27  ;;  %v1067_v19 = vpop.f32.mrb[7].mxu0  ;;  %v12641_v12 = vrot.slane %v1218_v41, 6 }
 0x32a   : > { %v1083_v20 = vmax.f32 %v1065_v15, 0.0  ;;  %v1068_v21 = vadd.f32 %v9292_v56, %v1067_v19  ;;  %1130 = vrot.lane.b32.xlu0 %v1088_v10, %s11836_s27  ;;  %v9312_v56 = vrot.slane %v12612_v43, 11  ;;  %v1241_v15 = vrot.slane %v1239_v58, 7  ;;  %v12651_v19 = vld [vmem:[#allocation2 + $0x6c] sm:$0xc] }
 0x32b   : > { %v1093_v22 = vpack.c.bf16 %v1085_v17, %v1085_v17  ;;  %v1086_v23 = vmax.f32 %v1076_v18, 0.0  ;;  %v1518_v17 = vsel %vm1419_vm10, %v12590_v24, 0  ;;  %v9315_v18 = vrot.slane %v12631_v1, 11 }
 0x32c   : > { %v1091_v25 = vpack.c.bf16 %v1083_v20, %v1083_v20  ;;  %v1084_v26 = vmax.f32 %v1068_v21, 0.0  ;;  %v9316_v21 = vrot.slane %v12634_v5, 11  ;;  %v1275_v24 = vshll.u32 %v12622_v59, 16 }
 0x32d   : > { %v1094_v27 = vpack.c.bf16 %v1086_v23, %v1086_v23  ;;  %1102 = vst.msk [vmem:[%s12463_s20 + $0x18] sm:$0xf] %vm1095_vm9, %v1093_v22  ;;  %v1242_v35 = vor.u32 %v1241_v15, %v1238_v14  ;;  %v1290_v36 = vshrl.u32 %v12651_v19, 16  ;;  %v1293_v50 = vshll.u32 %v12651_v19, 16 }
 0x32e   : > { %v1092_v28 = vpack.c.bf16 %v1084_v26, %v1084_v26  ;;  %1136 = vrot.lane.b32.xlu0 %v1091_v25, %s11836_s27  ;;  %1100 = vst.msk [vmem:[%s12463_s20 + $0x10] sm:$0xf] %vm1095_vm9, %v1091_v25 }
 0x32f   : > { %1103 = vst.msk [vmem:[%s12463_s20 + $0x1c] sm:$0xf] %vm1095_vm9, %v1094_v27  ;;  %v12700_v15 = vrot.slane %v1242_v35, 4 }
 0x330   : > { %1138 = vrot.lane.b32.xlu1 %v1092_v28, %s11836_s27  ;;  %1101 = vst.msk [vmem:[%s12463_s20 + $0x14] sm:$0xf] %vm1095_vm9, %v1092_v28  ;;  %vm12884_vm9 = vmor %vm1939_vm6, %vm1940_vm7  ;;  %vm2680_vm7 = vcmask 1044480  }
 0x331   : > { %vm13009_vm6 = vmor %vm2336_vm3, %vm2337_vm4  ;;  %vm2621_vm3 = vcmask 109568  }
 0x332   : > { %1140 = vrot.lane.b32.xlu0 %v1093_v22, %s11836_s27 }
 0x334   : > { %1142 = vrot.lane.b32.xlu1 %v1094_v27, %s11836_s27  ;;  %s14407_s27 = scalar_lea.hbm %s14600_s24, %s9846_s25 }
 0x336   : > { %3601 = vrot.lane.b32.xlu0 %v1087_v6, %s11837_s19  ;;  %v12636_v6 = vld [vmem:[#allocation2 + $0x78] sm:$0x8] }
 0x338   : > { %3603 = vrot.lane.b32.xlu1 %v1088_v10, %s11837_s19 }
 0x33a   : > { %3605 = vrot.lane.b32.xlu0 %v1089_v3, %s11837_s19  ;;  %v1254_v3 = vshrl.u32 %v1170_v53, 16 }
 0x33c   : > { %3607 = vrot.lane.b32.xlu1 %v1090_v8, %s11837_s19  ;;  %v1206_v8 = vor.u32 %v1205_v52, %v1202_v51  ;;  %v12655_v23 = vrot.slane %v1254_v3, 6 }
 0x33e   : > { %3609 = vrot.lane.b32.xlu0 %v1091_v25, %s11837_s19  ;;  %v12657_v25 = vrot.slane %v1257_v4, 7 }
 0x340   : > { %3611 = vrot.lane.b32.xlu1 %v1092_v28, %s11837_s19  ;;  %v12662_v28 = vrot.slane %v1272_v9, 6  ;;  %v1260_v47 = vor.u32 %v12657_v25, %v12655_v23 }
 0x342   : > { %3613 = vrot.lane.b32.xlu0 %v1093_v22, %s11837_s19  ;;  %v9317_v22 = vrot.slane %v12636_v6, 11  ;;  %v1261_v19 = vrot.slane %v1260_v47, 4 }
 0x344   : > { %3615 = vrot.lane.b32.xlu1 %v1094_v27, %s11837_s19  ;;  %v12660_v27 = vrot.slane %v1206_v8, 4  ;;  %s9000_s19 = scalar_lea.sflag [#allocation6], %s12417_s4 }
 0x397   : > { %v1133_v34 = vpop.permute.xlu1 %1132 }
 0x398   : > { %1156 = vst.msk [vmem:[#allocation2 + $0x40] sm:$0xf] %vm1153_vm11, %v1133_v34  ;;  %v1129_v39 = vpop.permute.xlu0 %1128  ;;  %v1224_v34 = vor.u32 %v12643_v13, %v12641_v12 }
 0x399   : > { %1154 = vst.msk [vmem:[#allocation2 + $0x28] sm:$0xf] %vm1153_vm11, %v1129_v39 }
 0x39b   : > { %v1135_v48 = vpop.permute.xlu1 %1134 }
 0x39c   : > { %1157 = vst.msk [vmem:[#allocation2 + $0x4c] sm:$0xf] %vm1153_vm11, %v1135_v48  ;;  %v1131_v54 = vpop.permute.xlu0 %1130  ;;  %v1176_v48 = vld [vmem:[#allocation2 + $0x78] sm:$0xc] }
 0x39d   : > { %1155 = vst.msk [vmem:[#allocation2 + $0x34] sm:$0xf] %vm1153_vm11, %v1131_v54  ;;  %v12691_v54 = vrot.slane %v1275_v24, 7 }
 0x39f   : > { %v12646_v16 = vld [vmem:[#allocation2 + $0x40] sm:$0x7] }
 0x3a0   : > { %v1137_v10 = vpop.permute.xlu0 %1136  ;;  %v1163_v11 = vld [vmem:[#allocation2 + $0x28] sm:$0x7]  ;;  %v1364_v33 = vrot.slane %v12646_v16, 7  ;;  %v1230_v35 = vshll.u32 %v12646_v16, 16 }
 0x3a1   : > { %1158 = vst.msk [vmem:[#allocation2 + $0x58] sm:$0xf] %vm1153_vm11, %v1137_v10  ;;  %v1356_v26 = vrot.slane %v1163_v11, 7  ;;  %v1191_v44 = vshrl.u32 %v1163_v11, 16  ;;  %v1194_v45 = vshll.u32 %v1163_v11, 16  ;;  %v1308_v10 = vshrl.u32 %v1176_v48, 16 }
 0x3a2   : > { %v1139_v20 = vpop.permute.xlu1 %1138  ;;  %v1365_v58 = vsel %vm12667_vm15, %v9312_v56, %v1364_v33 }
 0x3a3   : > { %1159 = vst.msk [vmem:[#allocation2 + $0x64] sm:$0xf] %vm1153_vm11, %v1139_v20  ;;  %v12671_v32 = vld [vmem:[#allocation2 + $0x4c] sm:$0x7]  ;;  %v1357_v51 = vsel %vm12667_vm15, %v9310_v55, %v1356_v26  ;;  %v12697_v55 = vld [vmem:[#allocation12 + $0xc] sm:$0x3f]  }
 0x3a4   : > { %v1141_v29 = vpop.permute.xlu0 %1140  ;;  %v1165_v30 = vld [vmem:[#allocation2 + $0x34] sm:$0x7]  ;;  %v1368_v38 = vrot.slane %v12671_v32, 7  ;;  %v1193_v11 = vrot.slane %v1191_v44, 6  ;;  %v1196_v14 = vrot.slane %v1194_v45, 7  ;;  %v12702_v20 = vrot.slane %v1290_v36, 6 }
 0x3a5   : > { %1160 = vst.msk [vmem:[#allocation2 + $0x70] sm:$0xf] %vm1153_vm11, %v1141_v29  ;;  %v1360_v37 = vrot.slane %v1165_v30, 7  ;;  %v1209_v39 = vshrl.u32 %v1165_v30, 16  ;;  %v1212_v41 = vshll.u32 %v1165_v30, 16  ;;  %v1245_v26 = vshrl.u32 %v12671_v32, 16 }
 0x3a6   : > { %v1143_v42 = vpop.permute.xlu1 %1142  ;;  %v1369_v53 = vsel %vm12667_vm15, %v9313_v62, %v1368_v38  ;;  %v1248_v24 = vshll.u32 %v12671_v32, 16  ;;  %v1278_v29 = vor.u32 %v12691_v54, %v12662_v28 }
 0x3a7   : > { %1161 = vst.msk [vmem:[#allocation2 + $0x7c] sm:$0xf] %vm1153_vm11, %v1143_v42  ;;  %v1361_v52 = vsel %vm12667_vm15, %v9311_v60, %v1360_v37  ;;  %v1211_v3 = vrot.slane %v1209_v39, 6  ;;  %v1214_v4 = vrot.slane %v1212_v41, 7  ;;  %v9319_v8 = vcombine.low %v1365_v58, %v1369_v53 }
 0x3a8   : > { %v9318_v57 = vcombine.low %v1357_v51, %v1361_v52  ;;  %v1171_v59 = vld [vmem:[#allocation2 + $0x58] sm:$0x7]  ;;  %v1311_v60 = vshll.u32 %v1176_v48, 16  ;;  %v1227_v37 = vshrl.u32 %v12646_v16, 16  ;;  %v1197_v16 = vor.u32 %v1196_v14, %v1193_v11 }
 0x3a9   : > { %v1372_v9 = vrot.slane %v1171_v59, 7  ;;  %v1215_v33 = vor.u32 %v1214_v4, %v1211_v3  ;;  %v1263_v42 = vshrl.u32 %v1171_v59, 16  ;;  %v1266_v44 = vshll.u32 %v1171_v59, 16 }
 0x3aa   : > { %10079 = vmatprep.mubr.msk.bf16.mxu1 %vm1406_vm14, %v9318_v57  ;;  %v1173_v62 = vld [vmem:[#allocation2 + $0x64] sm:$0x7]  ;;  %v1247_v48 = vrot.slane %v1245_v26, 6  ;;  %v1310_v51 = vrot.slane %v1308_v10, 6  ;;  %v1313_v57 = vrot.slane %v1311_v60, 7  ;;  %v1229_v3 = vrot.slane %v1227_v37, 6 }
 0x3ab   : > { %10080 = vmatmul.mubr.msk.bf16.vlgmr.msra.gmra.mrb[0].mxu1 %vm1406_vm14, %v9319_v8  ;;  %v1376_v56 = vrot.slane %v1173_v62, 7  ;;  %v1281_v36 = vshrl.u32 %v1173_v62, 16  ;;  %v1373_v38 = vsel %vm12667_vm15, %v9314_v2, %v1372_v9  ;;  %v1284_v28 = vshll.u32 %v1173_v62, 16  ;;  %v12742_v8 = vld [vmem:[#allocation2 + $0x34] sm:$0xf] }
 0x3ac   : > { %10088 = vmatpush3.bf16.msra.mxu1 %v1518_v17  ;;  %v12709_v30 = vld [vmem:[#allocation2 + $0x70] sm:$0x7]  ;;  %v1216_v52 = vsel %vm12726_vm2, %v12660_v27, %v1215_v33  ;;  %v1232_v4 = vrot.slane %v1230_v35, 7  ;;  %v1198_v27 = vsel %vm12726_vm2, %v12638_v7, %v1197_v16  ;;  %v1265_v10 = vrot.slane %v1263_v42, 6  ;;  %v12778_v16 = vld [vmem:[#allocation2 + $0x64] sm:$0xf] }
 0x3ad   : > { %v1377_v32 = vsel %vm12667_vm15, %v9315_v18, %v1376_v56  ;;  %v1380_v17 = vrot.slane %v12709_v30, 7  ;;  %10797 = vmatprep.subr.msk.bf16.mxu1 %vm1419_vm10, %v12697_v55  ;;  %v1250_v18 = vrot.slane %v1248_v24, 7  ;;  %v1283_v53 = vrot.slane %v1281_v36, 6  ;;  %v12747_v56 = vld [vmem:[#allocation2 + $0x28] sm:$0xf] }
 0x3ae   : > { %v9320_v39 = vcombine.low %v1373_v38, %v1377_v32  ;;  %v1177_v41 = vld [vmem:[#allocation2 + $0x7c] sm:$0x7]  ;;  %v1286_v54 = vrot.slane %v1284_v28, 7  ;;  %v1268_v60 = vrot.slane %v1266_v44, 7  ;;  %v9327_v62 = vcombine.low %v1198_v27, %v1216_v52  ;;  %v12780_v42 = vld [vmem:[#allocation2 + $0x40] sm:$0xf] }
 0x3af   : > { %v1384_v45 = vrot.slane %v1177_v41, 7  ;;  %v1381_v58 = vsel %vm12667_vm15, %v9316_v21, %v1380_v17  ;;  %v1251_v11 = vor.u32 %v1250_v18, %v1247_v48  ;;  %v1317_v14 = vshrl.u32 %v1177_v41, 16  ;;  %v12759_v38 = vld [vmem:[#allocation12 + $0x10] sm:$0xfc]   ;;  %v12768_v17 = vld [vmem:[#allocation2 + $0x4c] sm:$0xf] }
 0x3b0   : > { %10083 = vmatprep.mubr.msk.bf16.mxu1 %vm1406_vm14, %v9320_v39  ;;  %v1320_v21 = vshll.u32 %v1177_v41, 16  ;;  %v1287_v26 = vor.u32 %v1286_v54, %v1283_v53  ;;  %v1295_v24 = vrot.slane %v1293_v50, 7  ;;  %v1615_v33 = vshrl.u32 %v12742_v8, 16  ;;  %v12786_v53 = vld [vmem:[#allocation2 + $0x58] sm:$0xf] }
 0x3b1   : > { %v1385_v59 = vsel %vm12667_vm15, %v9317_v22, %v1384_v45  ;;  %v1279_v22 = vrot.slane %v1278_v29, 4  ;;  %v1225_v7 = vrot.slane %v1224_v34, 4  ;;  %v1233_v37 = vor.u32 %v1232_v4, %v1229_v3 }
 0x3b2   : > { %v9321_v9 = vcombine.low %v1381_v58, %v1385_v59  ;;  %v1299_v35 = vshrl.u32 %v12709_v30, 16  ;;  %v1302_v36 = vshll.u32 %v12709_v30, 16  ;;  %v1269_v50 = vor.u32 %v1268_v60, %v1265_v10 }
 0x3b3   : > { %v1602_v29 = vshrl.u32 %v12747_v56, 16  ;;  %v1252_v12 = vsel %vm12726_vm2, %v12700_v15, %v1251_v11  ;;  %v1314_v13 = vor.u32 %v1313_v57, %v1310_v51  ;;  %v1319_v34 = vrot.slane %v1317_v14, 6 }
 0x3b4   : > { %10084 = vmatmul.mubr.msk.bf16.gmra.mrb[4].mxu1 %vm1406_vm14, %v9321_v9  ;;  %v1322_v32 = vrot.slane %v1320_v21, 7  ;;  %v1732_v30 = vsel %vm1419_vm10, %v12697_v55, 0  ;;  %v1288_v23 = vsel %vm12726_vm2, %v1279_v22, %v1287_v26  ;;  %v1296_v25 = vor.u32 %v1295_v24, %v12702_v20  ;;  %v12814_v22 = vld [vmem:[#allocation2 + $0x7c] sm:$0xf] }
 0x3b5   : > { %10089 = vmatprep.mubr.msk.bf16.mxu1 %vm1406_vm14, %v9327_v62  ;;  %v1617_v47 = vrot.slane %v1615_v33, 7  ;;  %v1234_v28 = vsel %vm12726_vm2, %v1225_v7, %v1233_v37  ;;  %v1301_v39 = vrot.slane %v1299_v35, 6  ;;  %v1304_v41 = vrot.slane %v1302_v36, 7  ;;  %v12823_v35 = vld [vmem:[#allocation2 + $0x70] sm:$0xf] }
 0x3b6   : > { %v1834_v15 = vrot.slane %v12759_v38, 2  ;;  %v9328_v44 = vcombine.low %v1234_v28, %v1252_v12  ;;  %v1270_v55 = vsel %vm12726_vm2, %v1261_v19, %v1269_v50  ;;  %v1604_v45 = vrot.slane %v1602_v29, 7 }
 0x3b7   : > { %v1618_v48 = vshll.u32 %v12742_v8, 16  ;;  %v9329_v20 = vcombine.low %v1270_v55, %v1288_v23  ;;  %v1315_v18 = vrot.slane %v1314_v13, 4  ;;  %v1323_v51 = vor.u32 %v1322_v32, %v1319_v34 }
 0x3b8   : > { %v1641_v52 = vshrl.u32 %v12768_v17, 16  ;;  %v1605_v54 = vshll.u32 %v12747_v56, 16  ;;  %v1667_v58 = vshrl.u32 %v12778_v16, 16  ;;  %v1297_v59 = vrot.slane %v1296_v25, 4 }
 0x3b9   : > { %v1620_v57 = vor.u32 %v1618_v48, %v1617_v47  ;;  %v1305_v3 = vor.u32 %v1304_v41, %v1301_v39  ;;  %v1628_v4 = vshrl.u32 %v12780_v42, 16  ;;  %v9336_v9 = vrot.slane %v1597_v61, 11 }
 0x3ba   : > { %v1607_v27 = vor.u32 %v1605_v54, %v1604_v45  ;;  %v1654_v10 = vshrl.u32 %v12786_v53, 16  ;;  %v1623_v60 = vshrl.u32 %v12612_v43, 16  ;;  %v1324_v62 = vsel %vm12726_vm2, %v1315_v18, %v1323_v51  ;;  %v11079_v18 = vld [vmem:[#allocation12 + $0x18] sm:$0x3f]  }
 0x3bb   : > { %v1643_v40 = vrot.slane %v1641_v52, 7  ;;  %v9339_v61 = vrot.slane %v1636_v63, 11  ;;  %v1621_v14 = vsel %vm12804_vm5, %v12629_v0, %v1620_v57  ;;  %v1662_v21 = vshrl.u32 %v12631_v1, 16 }
 0x3bc   : > { %10090 = vmatmul.mubr.msk.bf16.vlgmr.msra.gmra.mrb[0].mxu1 %vm1406_vm14, %v9328_v44  ;;  %v1669_v43 = vrot.slane %v1667_v58, 7  ;;  %v1306_v26 = vsel %vm12726_vm2, %v1297_v59, %v1305_v3  ;;  %v1630_v24 = vrot.slane %v1628_v4, 7  ;;  %v1644_v33 = vshll.u32 %v12768_v17, 16  ;;  %v1925_v59 = vld [vmem:[#allocation2 + $0x34] sm:$0xf] }
 0x3bd   : > { %10098 = vmatpush3.bf16.msra.mxu1 %v1732_v30  ;;  %10093 = vmatprep.mubr.msk.bf16.mxu1 %vm1406_vm14, %v9329_v20  ;;  %v1649_v7 = vshrl.u32 %v12617_v49, 16  ;;  %v9330_v37 = vcombine.low %v1306_v26, %v1324_v62  ;;  %v1608_v46 = vsel %vm12804_vm5, %v9336_v9, %v1607_v27  ;;  %v1656_v63 = vrot.slane %v1654_v10, 7  ;;  %v12861_v26 = vld [vmem:[#allocation12 + $0x1c] sm:$0xfc]  }
 0x3be   : > { %10798 = vmatprep.subr.msk.bf16.mxu1 %vm1419_vm10, %v1834_v15  ;;  %v1670_v0 = vshll.u32 %v12778_v16, 16  ;;  %v9344_v1 = vcombine.low %v1608_v46, %v1621_v14  ;;  %v1631_v36 = vshll.u32 %v12780_v42, 16  ;;  %v1646_v19 = vor.u32 %v1644_v33, %v1643_v40  ;;  %v1929_v40 = vld [vmem:[#allocation2 + $0x4c] sm:$0xf]  ;;  %v1927_v33 = vld [vmem:[#allocation2 + $0x40] sm:$0xf] }
 0x3bf   : > { %v1693_v50 = vshrl.u32 %v12814_v22, 16  ;;  %v1657_v29 = vshll.u32 %v12786_v53, 16  ;;  %v9341_v49 = vrot.slane %v1662_v21, 11  ;;  %v9338_v13 = vrot.slane %v1623_v60, 11 }
 0x3c0   : > { %v1672_v12 = vor.u32 %v1670_v0, %v1669_v43  ;;  %v1633_v34 = vor.u32 %v1631_v36, %v1630_v24  ;;  %v1680_v32 = vshrl.u32 %v12823_v35, 16  ;;  %v9340_v30 = vrot.slane %v1649_v7, 11  ;;  %v12859_v43 = vld [vmem:[#allocation2 + $0x38] sm:$0x1]  ;;  %v1933_v24 = vld [vmem:[#allocation2 + $0x64] sm:$0xf] }
 0x3c1   : > { %v1659_v23 = vor.u32 %v1657_v29, %v1656_v63  ;;  %v1647_v25 = vsel %vm12804_vm5, %v9339_v61, %v1646_v19  ;;  %v1688_v47 = vshrl.u32 %v12636_v6, 16  ;;  %v1695_v28 = vrot.slane %v1693_v50, 7  ;;  %v12856_v61 = vld [vmem:[#allocation2 + $0x2c] sm:$0x1]  ;;  %v1931_v63 = vld [vmem:[#allocation2 + $0x58] sm:$0xf] }
 0x3c2   : > { %v1673_v39 = vsel %vm12804_vm5, %v9341_v49, %v1672_v12  ;;  %v1634_v41 = vsel %vm12804_vm5, %v9338_v13, %v1633_v34  ;;  %v1675_v44 = vshrl.u32 %v12634_v5, 16  ;;  %v1682_v55 = vrot.slane %v1680_v32, 7  ;;  %v12869_v32 = vld [vmem:[#allocation2 + $0x44] sm:$0x1] }
 0x3c3   : > { %v1696_v45 = vshll.u32 %v12814_v22, 16  ;;  %v9345_v48 = vcombine.low %v1634_v41, %v1647_v25  ;;  %v1848_v20 = vsel %vm1419_vm10, %v1834_v15, 0  ;;  %v1660_v6 = vsel %vm12804_vm5, %v9340_v30, %v1659_v23  ;;  %v1923_v15 = vld [vmem:[#allocation2 + $0x28] sm:$0xf] }
 0x3c4   : > { %10094 = vmatmul.mubr.msk.bf16.gmra.mrb[4].mxu1 %vm1406_vm14, %v9330_v37  ;;  %v9346_v51 = vcombine.low %v1660_v6, %v1673_v39  ;;  %v1683_v52 = vshll.u32 %v12823_v35, 16  ;;  %v9343_v54 = vrot.slane %v1688_v47, 11  ;;  %v9342_v5 = vrot.slane %v1675_v44, 11  ;;  %v12873_v47 = vld [vmem:[#allocation2 + $0x50] sm:$0x1] }
 0x3c5   : > { %10099 = vmatprep.mubr.msk.bf16.mxu1 %vm1406_vm14, %v9344_v1  ;;  %v1698_v57 = vor.u32 %v1696_v45, %v1695_v28  ;;  %v1957_v3 = vshrl.u32 %v1925_v59, 16  ;;  %v1960_v4 = vshll.u32 %v1925_v59, 16  ;;  %v1943_v10 = vshrl.u32 %v1923_v15, 16 }
 0x3c6   : > { %v1685_v58 = vor.u32 %v1683_v52, %v1682_v55  ;;  %v1946_v60 = vshll.u32 %v1923_v15, 16  ;;  %v9353_v62 = vcombine.low %v12747_v56, %v12742_v8  ;;  %v1952_v8 = vshll.u32 %v12856_v61, 16  ;;  %v1935_v52 = vld [vmem:[#allocation2 + $0x70] sm:$0xf] }
 0x3c7   : > { %v1699_v38 = vsel %vm12804_vm5, %v9343_v54, %v1698_v57  ;;  %v1959_v14 = vrot.slane %v1957_v3, 4  ;;  %v1962_v21 = vrot.slane %v1960_v4, 5  ;;  %v1945_v7 = vrot.slane %v1943_v10, 4  ;;  %v12892_v3 = vld [vmem:[#allocation2 + $0x5c] sm:$0x1] }
 0x3c8   : > { %v1686_v9 = vsel %vm12804_vm5, %v9342_v5, %v1685_v58  ;;  %v1948_v37 = vrot.slane %v1946_v60, 5  ;;  %v1985_v56 = vshrl.u32 %v1929_v40, 16  ;;  %v1988_v46 = vshll.u32 %v1929_v40, 16  ;;  %v12888_v5 = vld [vmem:[#allocation2 + $0x68] sm:$0x1] }
 0x3c9   : > { %v9347_v27 = vcombine.low %v1686_v9, %v1699_v38  ;;  %v1963_v0 = vor.u32 %v1962_v21, %v1959_v14  ;;  %v1966_v1 = vshll.u32 %v12859_v43, 16  ;;  %v2013_v36 = vshrl.u32 %v1933_v24, 16  ;;  %v2328_v40 = vld [vmem:[#allocation2 + $0x2c] sm:$0x3] }
 0x3ca   : > { %v2016_v19 = vshll.u32 %v1933_v24, 16  ;;  %v2086_v50 = vsel %vm1419_vm10, %v11079_v18, 0  ;;  %v2239_v29 = vrot.slane %v12861_v26, 2  ;;  %v1971_v49 = vshrl.u32 %v1927_v33, 16 }
 0x3cb   : > { %v1974_v12 = vshll.u32 %v1927_v33, 16  ;;  %v9354_v13 = vcombine.low %v12780_v42, %v12768_v17  ;;  %v1949_v34 = vor.u32 %v1948_v37, %v1945_v7  ;;  %v1999_v30 = vshrl.u32 %v1931_v63, 16  ;;  %v1937_v42 = vld [vmem:[#allocation2 + $0x7c] sm:$0xf] }
 0x3cc   : > { %10100 = vmatmul.mubr.msk.bf16.vlgmr.msra.gmra.mrb[0].mxu1 %vm1406_vm14, %v9345_v48  ;;  %v2002_v23 = vshll.u32 %v1931_v63, 16  ;;  %v9355_v25 = vcombine.low %v12786_v53, %v12778_v16  ;;  %v1980_v28 = vshll.u32 %v12869_v32, 16  ;;  %v1987_v39 = vrot.slane %v1985_v56, 4 }
 0x3cd   : > { %10108 = vmatpush3.bf16.msra.mxu1 %v1848_v20  ;;  %10103 = vmatprep.mubr.msk.bf16.mxu1 %vm1406_vm14, %v9346_v51  ;;  %v1990_v41 = vrot.slane %v1988_v46, 5  ;;  %v1964_v44 = vrot.slane %v1963_v0, 4  ;;  %v1968_v55 = vrot.slane %v1966_v1, 5  ;;  %v2015_v45 = vrot.slane %v2013_v36, 4 }
 0x3ce   : > { %10799 = vmatprep.subr.msk.bf16.mxu1 %vm1419_vm10, %v11079_v18  ;;  %v2018_v17 = vrot.slane %v2016_v19, 5  ;;  %v1973_v48 = vrot.slane %v1971_v49, 4  ;;  %v1976_v20 = vrot.slane %v1974_v12, 5  ;;  %v1994_v16 = vshll.u32 %v12873_v47, 16 }
 0x3cf   : > { %v1950_v53 = vrot.slane %v1949_v34, 4  ;;  %v1954_v6 = vrot.slane %v1952_v8, 5  ;;  %v2001_v18 = vrot.slane %v1999_v30, 4  ;;  %v2004_v51 = vrot.slane %v2002_v23, 5  ;;  %v12900_v8 = vld [vmem:[#allocation2 + $0x80] sm:$0x1] }
 0x3d0   : > { %v1991_v57 = vor.u32 %v1990_v41, %v1987_v39  ;;  %v2041_v58 = vshrl.u32 %v1937_v42, 16  ;;  %v2044_v59 = vshll.u32 %v1937_v42, 16  ;;  %v1969_v38 = vsel %vm12884_vm9, %v1964_v44, %v1968_v55  ;;  %v12907_v34 = vld [vmem:[#allocation2 + $0x74] sm:$0x1]  ;;  %v2329_v55 = vld [vmem:[#allocation2 + $0x38] sm:$0x3] }
 0x3d1   : > { %v1982_v15 = vrot.slane %v1980_v28, 5  ;;  %v2019_v4 = vor.u32 %v2018_v17, %v2015_v45  ;;  %v2022_v9 = vshll.u32 %v12888_v5, 16  ;;  %v1996_v10 = vrot.slane %v1994_v16, 5  ;;  %v2162_v42 = vld [vmem:[#allocation2 + $0x34] sm:$0xe] }
 0x3d2   : > { %v2027_v60 = vshrl.u32 %v1935_v52, 16  ;;  %v9356_v14 = vcombine.low %v12823_v35, %v12814_v22  ;;  %v1955_v21 = vsel %vm12884_vm9, %v1950_v53, %v1954_v6  ;;  %v2005_v24 = vor.u32 %v2004_v51, %v2001_v18  ;;  %v12927_v18 = vld [vmem:[#allocation2 + $0x28] sm:$0xe]  ;;  %v12929_v51 = vld [vmem:[#allocation12 + $0x24] sm:$0x3f]  }
 0x3d3   : > { %v2008_v33 = vshll.u32 %v12892_v3, 16  ;;  %v9362_v7 = vcombine.low %v1955_v21, %v1969_v38  ;;  %v1992_v37 = vrot.slane %v1991_v57, 4  ;;  %v2043_v56 = vrot.slane %v2041_v58, 4  ;;  %v12950_v21 = vld [vmem:[#allocation2 + $0x5c] sm:$0x3] }
 0x3d4   : > { %10104 = vmatmul.mubr.msk.bf16.gmra.mrb[4].mxu1 %vm1406_vm14, %v9347_v27  ;;  %v1977_v27 = vor.u32 %v1976_v20, %v1973_v48  ;;  %v2046_v46 = vrot.slane %v2044_v59, 5  ;;  %v2020_v63 = vrot.slane %v2019_v4, 4  ;;  %v2024_v0 = vrot.slane %v2022_v9, 5 }
 0x3d5   : > { %10109 = vmatprep.mubr.msk.bf16.mxu1 %vm1406_vm14, %v9353_v62  ;;  %v2030_v62 = vshll.u32 %v1935_v52, 16  ;;  %v2050_v1 = vshll.u32 %v12900_v8, 16  ;;  %v2349_v36 = vshrl.u32 %v2328_v40, 16  ;;  %v2029_v35 = vrot.slane %v2027_v60, 4 }
 0x3d6   : > { %v1978_v22 = vrot.slane %v1977_v27, 4  ;;  %v2006_v49 = vrot.slane %v2005_v24, 4  ;;  %v2010_v12 = vrot.slane %v2008_v33, 5  ;;  %v2047_v30 = vor.u32 %v2046_v46, %v2043_v56  ;;  %v2164_v24 = vld [vmem:[#allocation2 + $0x4c] sm:$0xe] }
 0x3d7   : > { %v2032_v19 = vrot.slane %v2030_v62, 5  ;;  %v2190_v23 = vrot.slane %v12856_v61, 5  ;;  %v2025_v28 = vsel %vm12884_vm9, %v2020_v63, %v2024_v0  ;;  %v2036_v39 = vshll.u32 %v12907_v34, 16  ;;  %v2331_v61 = vld [vmem:[#allocation2 + $0x50] sm:$0x3] }
 0x3d8   : > { %v2052_v41 = vrot.slane %v2050_v1, 5  ;;  %v2198_v44 = vrot.slane %v12869_v32, 5  ;;  %v1983_v45 = vsel %vm12884_vm9, %v1978_v22, %v1982_v15  ;;  %v12918_v48 = vrot.slane %v2349_v36, 5  ;;  %v2166_v22 = vld [vmem:[#allocation2 + $0x64] sm:$0xe] }
 0x3d9   : > { %v2033_v17 = vor.u32 %v2032_v19, %v2029_v35  ;;  %v2253_v53 = vsel %vm1419_vm10, %v2239_v29, 0  ;;  %v2011_v6 = vsel %vm12884_vm9, %v2006_v49, %v2010_v12  ;;  %v2048_v58 = vrot.slane %v2047_v30, 4 }
 0x3da   : > { %v9364_v57 = vcombine.low %v2011_v6, %v2025_v28  ;;  %v2367_v59 = vshrl.u32 %v2329_v55, 16  ;;  %v2370_v38 = vshll.u32 %v2329_v55, 16  ;;  %v9372_v15 = vrot.slane %v2162_v42, 9  ;;  %v2165_v28 = vld [vmem:[#allocation2 + $0x58] sm:$0xe] }
 0x3db   : > { %v2194_v26 = vrot.slane %v12859_v43, 5  ;;  %v2403_v4 = vshrl.u32 %v2331_v61, 16  ;;  %v2034_v9 = vrot.slane %v2033_v17, 4  ;;  %v2038_v27 = vrot.slane %v2036_v39, 5 }
 0x3dc   : > { %10110 = vmatmul.mubr.msk.bf16.vlgmr.msra.gmra.mrb[0].mxu1 %vm1406_vm14, %v9354_v13  ;;  %v1997_v13 = vsel %vm12884_vm9, %v1992_v37, %v1996_v10  ;;  %v9371_v10 = vrot.slane %v12927_v18, 9  ;;  %v2406_v60 = vshll.u32 %v2331_v61, 16  ;;  %v2206_v43 = vrot.slane %v12892_v3, 5  ;;  %v12960_v3 = vld [vmem:[#allocation2 + $0x40] sm:$0xe] }
 0x3dd   : > { %10118 = vmatpush3.bf16.msra.mxu1 %v2086_v50  ;;  %10113 = vmatprep.mubr.msk.bf16.mxu1 %vm1406_vm14, %v9355_v25  ;;  %v2352_v50 = vshll.u32 %v2328_v40, 16  ;;  %v12910_v25 = vld [vmem:[#allocation2 + $0x44] sm:$0x3]  ;;  %v9363_v16 = vcombine.low %v1983_v45, %v1997_v13  ;;  %v2053_v33 = vsel %vm12884_vm9, %v2048_v58, %v2052_v41  ;;  %v12956_v37 = vrot.slane %v2370_v38, 6 }
 0x3de   : > { %10800 = vmatprep.subr.msk.bf16.mxu1 %vm1419_vm10, %v2239_v29  ;;  %v2385_v52 = vshrl.u32 %v12910_v25, 16  ;;  %v2202_v29 = vrot.slane %v12873_v47, 5  ;;  %v2210_v47 = vrot.slane %v12888_v5, 5  ;;  %v2195_v5 = vsel %vm12939_vm1, %v9372_v15, %v2194_v26 }
 0x3df   : > { %v12920_v20 = vrot.slane %v2352_v50, 6  ;;  %v2358_v46 = vshrl.u32 %v2162_v42, 16  ;;  %v2361_v63 = vshll.u32 %v2162_v42, 16  ;;  %v12964_v0 = vrot.slane %v2403_v4, 5  ;;  %v2333_v42 = vld [vmem:[#allocation2 + $0x68] sm:$0x3] }
 0x3e0   : > { %v12958_v56 = vrot.slane %v2385_v52, 5  ;;  %v2039_v1 = vsel %vm12884_vm9, %v2034_v9, %v2038_v27  ;;  %v2191_v36 = vsel %vm12939_vm1, %v9371_v10, %v2190_v23  ;;  %v12970_v35 = vrot.slane %v2406_v60, 6  ;;  %v2168_v4 = vld [vmem:[#allocation2 + $0x7c] sm:$0xe] }
 0x3e1   : > { %v2355_v40 = vor.u32 %v12920_v20, %v12918_v48  ;;  %v2421_v19 = vshrl.u32 %v12950_v21, 16  ;;  %v9365_v50 = vcombine.low %v2039_v1, %v2053_v33  ;;  %v9374_v49 = vrot.slane %v2164_v24, 9 }
 0x3e2   : > { %v2340_v12 = vshrl.u32 %v12927_v18, 16  ;;  %v2343_v13 = vshll.u32 %v12927_v18, 16  ;;  %v9379_v30 = vcombine.low %v2191_v36, %v2195_v5  ;;  %v2214_v39 = vrot.slane %v12907_v34, 5 }
 0x3e3   : > { %v9376_v23 = vrot.slane %v2166_v22, 9  ;;  %v2218_v55 = vrot.slane %v12900_v8, 5  ;;  %v2360_v45 = vrot.slane %v2358_v46, 5  ;;  %v2363_v17 = vrot.slane %v2361_v63, 6 }
 0x3e4   : > { %10114 = vmatmul.mubr.msk.bf16.gmra.mrb[4].mxu1 %vm1406_vm14, %v9356_v14  ;;  %v2388_v14 = vshll.u32 %v12910_v25, 16  ;;  %v9373_v25 = vrot.slane %v12960_v3, 9  ;;  %v2424_v6 = vshll.u32 %v12950_v21, 16  ;;  %v2203_v8 = vsel %vm12939_vm1, %v9374_v49, %v2202_v29  ;;  %v2167_v21 = vld [vmem:[#allocation2 + $0x70] sm:$0xe] }
 0x3e5   : > { %10119 = vmatprep.mubr.msk.bf16.mxu1 %vm1406_vm14, %v9362_v7  ;;  %v12954_v7 = vrot.slane %v2367_v59, 5  ;;  %v9375_v18 = vrot.slane %v2165_v28, 9  ;;  %v2342_v52 = vrot.slane %v2340_v12, 5  ;;  %v2394_v59 = vshrl.u32 %v2164_v24, 16 }
 0x3e6   : > { %v12977_v41 = vrot.slane %v2388_v14, 6  ;;  %v2199_v58 = vsel %vm12939_vm1, %v9373_v25, %v2198_v44  ;;  %v2397_v38 = vshll.u32 %v2164_v24, 16  ;;  %v2439_v15 = vshrl.u32 %v2333_v42, 16 }
 0x3e7   : > { %v2373_v61 = vor.u32 %v12956_v37, %v12954_v7  ;;  %v2211_v26 = vsel %vm12939_vm1, %v9376_v23, %v2210_v47  ;;  %v2364_v9 = vor.u32 %v2363_v17, %v2360_v45  ;;  %v2430_v27 = vshrl.u32 %v2166_v22, 16 }
 0x3e8   : > { %v2433_v10 = vshll.u32 %v2166_v22, 16  ;;  %v9380_v60 = vcombine.low %v2199_v58, %v2203_v8  ;;  %v2515_v29 = vsel %vm1419_vm10, %v12929_v51, 0  ;;  %v2376_v14 = vshrl.u32 %v12960_v3, 16 }
 0x3e9   : > { %v2379_v32 = vshll.u32 %v12960_v3, 16  ;;  %v2207_v44 = vsel %vm12939_vm1, %v9375_v18, %v2206_v43  ;;  %v2412_v33 = vshrl.u32 %v2165_v28, 16  ;;  %v2415_v7 = vshll.u32 %v2165_v28, 16 }
 0x3ea   : > { %v9381_v47 = vcombine.low %v2207_v44, %v2211_v26  ;;  %v9378_v37 = vrot.slane %v2168_v4, 9  ;;  %v2396_v5 = vrot.slane %v2394_v59, 5  ;;  %v2399_v46 = vrot.slane %v2397_v38, 6 }
 0x3eb   : > { %v2365_v63 = vrot.slane %v2364_v9, 4  ;;  %v2432_v1 = vrot.slane %v2430_v27, 5  ;;  %v2442_v36 = vshll.u32 %v2333_v42, 16  ;;  %v9377_v3 = vrot.slane %v2167_v21, 9 }
 0x3ec   : > { %10120 = vmatmul.mubr.msk.bf16.vlgmr.msra.gmra.mrb[0].mxu1 %vm1406_vm14, %v9363_v16  ;;  %v2409_v16 = vor.u32 %v12970_v35, %v12964_v0  ;;  %v2378_v22 = vrot.slane %v2376_v14, 5  ;;  %v2381_v43 = vrot.slane %v2379_v32, 6  ;;  %v2414_v12 = vrot.slane %v2412_v33, 5 }
 0x3ed   : > { %10128 = vmatpush3.bf16.msra.mxu1 %v2253_v53  ;;  %10123 = vmatprep.mubr.msk.bf16.mxu1 %vm1406_vm14, %v9364_v57  ;;  %v12986_v53 = vrot.slane %v2421_v19, 5  ;;  %v2345_v57 = vrot.slane %v2343_v13, 6  ;;  %v2426_v19 = vrot.slane %v2424_v6, 6  ;;  %v2417_v13 = vrot.slane %v2415_v7, 6 }
 0x3ee   : > { %10801 = vmatprep.subr.msk.bf16.mxu1 %vm1419_vm10, %v12929_v51  ;;  %v2435_v51 = vrot.slane %v2433_v10, 6  ;;  %v2219_v25 = vsel %vm12939_vm1, %v9378_v37, %v2218_v55  ;;  %v14569_v28 = vmov 0  ;;  %v2400_v23 = vor.u32 %v2399_v46, %v2396_v5 }
 0x3ef   : > { %v2346_v24 = vor.u32 %v2345_v57, %v2342_v52  ;;  %v14570_v28 = vsel %vm13009_vm6, 4294967295, %v14569_v28  ;;  %v2466_v45 = vshrl.u32 %v2168_v4, 16  ;;  %v2469_v17 = vshll.u32 %v2168_v4, 16  ;;  %v2334_v57 = vld [vmem:[#allocation2 + $0x74] sm:$0x3] }
 0x3f0   : > { %14571 = vst [vmem:[#allocation51_spill] sm:$0xff] %v14570_v28  ;;  %v2374_v42 = vsel %vm13009_vm6, %v2365_v63, %v2373_v61  ;;  %v2436_v6 = vor.u32 %v2435_v51, %v2432_v1  ;;  %v2444_v8 = vrot.slane %v2442_v36, 6  ;;  %v2215_v55 = vsel %vm12939_vm1, %v9377_v3, %v2214_v39 }
 0x3f1   : > { %v2347_v49 = vrot.slane %v2346_v24, 4  ;;  %v2382_v52 = vor.u32 %v2381_v43, %v2378_v22  ;;  %v2448_v58 = vshrl.u32 %v2167_v21, 16  ;;  %v2451_v59 = vshll.u32 %v2167_v21, 16  ;;  %v11084_v22 = vld [vmem:[#allocation18 + $0x4] sm:$0xfc]  }
 0x3f2   : > { %v9382_v38 = vcombine.low %v2215_v55, %v2219_v25  ;;  %v2418_v61 = vor.u32 %v2417_v13, %v2414_v12  ;;  %v2401_v9 = vrot.slane %v2400_v23, 4  ;;  %v2468_v27 = vrot.slane %v2466_v45, 5  ;;  %v11085_v43 = vld [vmem:[#allocation15 + $0x4] sm:$0xf8]   ;;  %v11095_v45 = vld [vmem:[#allocation15] sm:$0x7f]  }
 0x3f3   : > { %v2471_v34 = vrot.slane %v2469_v17, 6  ;;  %v2391_v39 = vor.u32 %v12977_v41, %v12958_v56  ;;  %v2437_v10 = vrot.slane %v2436_v6, 4  ;;  %v2383_v48 = vrot.slane %v2382_v52, 4  ;;  %v11090_v13 = vld [vmem:[#allocation2 + $0x10] ss:$12 sps:$4 sm:$0xff]  }
 0x3f4   : > { %10124 = vmatmul.mubr.msk.bf16.gmra.mrb[4].mxu1 %vm1406_vm14, %v9365_v50  ;;  %v2335_v50 = vld [vmem:[#allocation2 + $0x80] sm:$0x3]  ;;  %v2450_v20 = vrot.slane %v2448_v58, 5  ;;  %v2453_v14 = vrot.slane %v2451_v59, 6  ;;  %v2419_v32 = vrot.slane %v2418_v61, 4  ;;  %v2427_v44 = vor.u32 %v2426_v19, %v12986_v53 }
 0x3f5   : > { %10129 = vmatprep.mubr.msk.bf16.mxu1 %vm1406_vm14, %v9379_v30  ;;  %v2441_v30 = vrot.slane %v2439_v15, 5  ;;  %v2475_v18 = vshrl.u32 %v2335_v50, 16  ;;  %v2356_v15 = vsel %vm13009_vm6, %v2347_v49, %v2355_v40  ;;  %v2478_v26 = vshll.u32 %v2335_v50, 16  ;;  %v11086_v19 = vld [vmem:[#allocation15 + $0xc] ss:$0 sps:$4 sm:$0x33]  }
 0x3f6   : > { %v9388_v4 = vcombine.low %v2356_v15, %v2374_v42  ;;  %v2460_v40 = vshll.u32 %v2334_v57, 16  ;;  %v2410_v21 = vsel %vm13009_vm6, %v2401_v9, %v2409_v16  ;;  %v2472_v24 = vor.u32 %v2471_v34, %v2468_v27  ;;  %v11087_v50 = vld [vmem:[#allocation2 + $0x10] ss:$12 sps:$4 sm:$0xff]   ;;  %v9397_v6 = vld [vmem:[#allocation13] ss:$0 sm:$0xff] }
 0x3f7   : > { %v2477_v56 = vrot.slane %v2475_v18, 5  ;;  %v2480_v41 = vrot.slane %v2478_v26, 6  ;;  %v2392_v7 = vsel %vm13009_vm6, %v2383_v48, %v2391_v39  ;;  %v2428_v53 = vsel %vm13009_vm6, %v2419_v32, %v2427_v44  ;;  %10149 = vmatprep.mubr.msk.bf16.mxu0 %vm2684_vm13, %v11087_v50  ;;  %v3602_v39 = vpop.permute.xlu0 %3601 }
 0x3f8   : > { %v2462_v5 = vrot.slane %v2460_v40, 6  ;;  %v9389_v46 = vcombine.low %v2392_v7, %v2410_v21  ;;  %v2473_v35 = vrot.slane %v2472_v24, 4  ;;  %v3678_v49 = vrot.slane %v11084_v22, 2  ;;  %v8856_v24 = vld [vmem:[#allocation7 + $0x8] sm:$0xff] }
 0x3f9   : > { %v2481_v63 = vor.u32 %v2480_v41, %v2477_v56  ;;  %v2681_v12 = vrot.slane %v11085_v43, 3  ;;  %v2682_v25 = vrot.slane %v11086_v19, 3  ;;  %v8855_v56 = vld [vmem:[#allocation7] sm:$0xff]  ;;  %v8860_v19 = vld [vmem:[#allocation7 + $0x28] sm:$0xff] }
 0x3fa   : > { %v3692_v23 = vsel %vm1419_vm10, %v3678_v49, 0  ;;  %v8859_v43 = vld [vmem:[#allocation7 + $0x20] sm:$0xff] }
 0x3fb   : > { %v2482_v51 = vsel %vm13009_vm6, %v2473_v35, %v2481_v63  ;;  %v2683_v17 = vsel %vm2680_vm7, %v2681_v12, %v2682_v25  ;;  %v3606_v35 = vpop.permute.xlu0 %3605 }
 0x3fc   : > { %10130 = vmatmul.mubr.msk.bf16.vlgmr.msra.gmra.mrb[0].mxu1 %vm1406_vm14, %v9380_v60  ;;  %v2445_v60 = vor.u32 %v2444_v8, %v2441_v30  ;;  %v13047_v30 = vld [vmem:[#allocation18] sm:$0x3f]   ;;  %10802 = vmatprep.subr.msk.bf16.mxu0 %vm2697_vm0, %v2683_v17  ;;  %v2699_v42 = vsel %vm2697_vm0, %v2683_v17, 0 }
 0x3fd   : > { %10138 = vmatpush3.bf16.msra.mxu1 %v2515_v29  ;;  %10133 = vmatprep.mubr.msk.bf16.mxu1 %vm1406_vm14, %v9381_v47  ;;  %v2457_v29 = vshrl.u32 %v2334_v57, 16  ;;  %v2454_v47 = vor.u32 %v2453_v14, %v2450_v20  ;;  %v8861_v17 = vld [vmem:[#allocation7 + $0x30] sm:$0xff] }
 0x3fe   : > { %v2446_v33 = vsel %vm13009_vm6, %v2437_v10, %v2445_v60  ;;  %10809 = vmatprep.subr.msk.bf16.mxu1 %vm1419_vm10, %v3678_v49  ;;  %10148 = vmatpush3.bf16.msra.mxu0 %v2699_v42 }
 0x3ff   : > { %v2459_v37 = vrot.slane %v2457_v29, 5  ;;  %v9390_v0 = vcombine.low %v2428_v53, %v2446_v33  ;;  %v2455_v16 = vrot.slane %v2454_v47, 4  ;;  %10803 = vmatprep.subr.msk.bf16.mxu0 %vm2697_vm0, %v11095_v45  ;;  %v3604_v29 = vpop.permute.xlu1 %3603  ;;  %v11838_v33 = vmov 0   ;;  %v8857_v53 = vld [vmem:[#allocation7 + $0x10] sm:$0xff]  ;;  %v13081_v42 = vpop.permute.xlu0 %3609 }
 0x400   : > { %11068 = vset.pattern.permute.xlu1 %v11838_v33  ;;  %11067 = vset.pattern.permute.xlu0 %v11838_v33 }
 0x401   : > { %v2463_v1 = vor.u32 %v2462_v5, %v2459_v37  ;;  %v11102_v37 = vld [vmem:[#allocation15 + $0xc] sm:$0xfc]   ;;  %8870 = vperm.xlu1 %11068, %v8856_v24   ;;  %8865 = vperm.xlu0 %11067, %v8855_v56   ;;  %v3797_v56 = vsel %vm1419_vm10, %v13047_v30, 0 }
 0x403   : > { %v2464_v36 = vsel %vm13009_vm6, %v2455_v16, %v2463_v1  ;;  %v3608_v63 = vpop.permute.xlu1 %3607 }
 0x404   : > { %10134 = vmatmul.mubr.msk.bf16.gmra.mrb[4].mxu1 %vm1406_vm14, %v9382_v38  ;;  %v9391_v3 = vcombine.low %v2464_v36, %v2482_v51  ;;  %v2804_v51 = vsel %vm2697_vm0, %v11095_v45, 0 }
 0x405   : > { %10139 = vmatprep.mubr.msk.bf16.mxu1 %vm1406_vm14, %v9388_v4  ;;  %8875 = vperm.xlu1 %11068, %v8857_v53  }
 0x409   : > { %8885 = vperm.xlu1 %11068, %v8859_v43   ;;  %v11109_v43 = vld [vmem:[#allocation15 + $0x14] sm:$0xfe]  }
 0x40c   : > { %10140 = vmatmul.mubr.msk.bf16.vlgmr.msra.gmra.mrb[0].mxu1 %vm1406_vm14, %v9389_v46  ;;  %v11103_v46 = vld [vmem:[#allocation15 + $0x14] ss:$0 sps:$4 sm:$0x11]  }
 0x40d   : > { %10143 = vmatprep.mubr.msk.bf16.mxu1 %vm1406_vm14, %v9390_v0  ;;  %10218 = vmatpush3.bf16.msra.mxu1 %v3692_v23  ;;  %v8858_v0 = vld [vmem:[#allocation7 + $0x18] sm:$0xff]  ;;  %v2913_v22 = vrot.slane %v11103_v46, 2 }
 0x40e   : > { %10810 = vmatprep.subr.msk.bf16.mxu1 %vm1419_vm10, %v13047_v30  ;;  %8880 = vperm.xlu0 %11067, %v8858_v0  }
 0x40f   : > { %8895 = vperm.xlu1 %11068, %v8861_v17  }
 0x412   : > { %8890 = vperm.xlu0 %11067, %v8860_v19   ;;  %v11098_v19 = vld [vmem:[#allocation2 + $0x4] ss:$12 sps:$4 sm:$0xff]  }
 0x414   : > { %10144 = vmatmul.mubr.msk.bf16.gmra.mrb[4].mxu1 %vm1406_vm14, %v9391_v3  ;;  %v2912_v3 = vrot.slane %v11102_v37, 2 }
 0x415   : > { %10219 = vmatprep.mubr.msk.bf16.mxu1 %vm1406_vm14, %v11090_v13 }
 0x4df   : > { %v10141_v8 = vpop.f32.mrb[0].mxu1 }
 0x4e0   : > { %v2599_v18 = vadd.f32 %v10141_v8, %v9397_v6  ;;  %v2551_v55 = vpop.f32.mrb[1].mxu1 }
 0x4e1   : > { %v2597_v52 = vadd.f32 %v9397_v6, %v2551_v55  ;;  %v10142_v57 = vpop.f32.mrb[2].mxu1 }
 0x4e2   : > { %v2607_v58 = vmax.f32 %v2599_v18, 0.0  ;;  %v2600_v59 = vadd.f32 %v10142_v57, %v9397_v6  ;;  %v2554_v38 = vpop.f32.mrb[3].mxu1  ;;  %v8862_v18 = vld [vmem:[#allocation7 + $0x38] sm:$0xff] }
 0x4e3   : > { %v2605_v15 = vmax.f32 %v2597_v52, 0.0  ;;  %v2598_v61 = vadd.f32 %v9397_v6, %v2554_v38  ;;  %8900 = vperm.xlu0 %11067, %v8862_v18   ;;  %v11106_v18 = vld [vmem:[#allocation18 + $0x10] sm:$0xfc]  }
 0x4e4   : > { %v2615_v26 = vpack.c.bf16 %v2607_v58, %v2607_v58  ;;  %v2608_v4 = vmax.f32 %v2600_v59, 0.0  ;;  %v13094_v59 = vsel %vm1419_vm10, %v2912_v3, %v2913_v22  ;;  %v2632_v22 = vld [vmem:[#allocation2 + $0x1c] sm:$0xf] }
 0x4e5   : > { %v2613_v9 = vpack.c.bf16 %v2605_v15, %v2605_v15  ;;  %v2606_v27 = vmax.f32 %v2598_v61, 0.0 }
 0x4e6   : > { %2624 = vst.msk [vmem:[#allocation2 + $0x40] sm:$0xf] %vm2621_vm3, %v2615_v26  ;;  %v2616_v34 = vpack.c.bf16 %v2608_v4, %v2608_v4 }
 0x4e7   : > { %2622 = vst.msk [vmem:[#allocation2 + $0x28] sm:$0xf] %vm2621_vm3, %v2613_v9  ;;  %v2614_v10 = vpack.c.bf16 %v2606_v27, %v2606_v27  ;;  %v10145_v60 = vpop.f32.mrb[4].mxu1 }
 0x4e8   : > { %2625 = vst.msk [vmem:[#allocation2 + $0x4c] sm:$0xf] %vm2621_vm3, %v2616_v34  ;;  %v2603_v48 = vadd.f32 %v10145_v60, %v9397_v6  ;;  %v2567_v20 = vpop.f32.mrb[5].mxu1 }
 0x4e9   : > { %2623 = vst.msk [vmem:[#allocation2 + $0x34] sm:$0xf] %vm2621_vm3, %v2614_v10  ;;  %v2601_v14 = vadd.f32 %v9397_v6, %v2567_v20  ;;  %v10146_v40 = vpop.f32.mrb[6].mxu1 }
 0x4ea   : > { %v2611_v32 = vmax.f32 %v2603_v48, 0.0  ;;  %v2604_v44 = vadd.f32 %v10146_v40, %v9397_v6  ;;  %v2570_v21 = vpop.f32.mrb[7].mxu1 }
 0x4eb   : > { %v2609_v41 = vmax.f32 %v2601_v14, 0.0  ;;  %v2602_v1 = vadd.f32 %v9397_v6, %v2570_v21  ;;  %v13083_v6 = vpop.permute.xlu1 %3611 }
 0x4ec   : > { %v2619_v7 = vpack.c.bf16 %v2611_v32, %v2611_v32  ;;  %v2612_v47 = vmax.f32 %v2604_v44, 0.0  ;;  %v3614_v32 = vpop.permute.xlu0 %3613 }
 0x4ed   : > { %v2617_v5 = vpack.c.bf16 %v2609_v41, %v2609_v41  ;;  %v2610_v45 = vmax.f32 %v2602_v1, 0.0  ;;  %v13103_v26 = vld [vmem:[#allocation2 + $0x40] sm:$0xf]  ;;  %v11099_v41 = vld [vmem:[#allocation18 + $0xc] sm:$0x3f]  }
 0x4ee   : > { %2628 = vst.msk [vmem:[#allocation2 + $0x70] sm:$0xf] %vm2621_vm3, %v2619_v7  ;;  %v2620_v16 = vpack.c.bf16 %v2612_v47, %v2612_v47  ;;  %v13069_v50 = vld [vmem:[#allocation2 + $0x28] sm:$0xf]  ;;  %v13105_v4 = vld [vmem:[#allocation2 + $0x40] sm:$0xf] }
 0x4ef   : > { %2626 = vst.msk [vmem:[#allocation2 + $0x58] sm:$0xf] %vm2621_vm3, %v2617_v5  ;;  %v13071_v49 = vld [vmem:[#allocation2 + $0x28] sm:$0xf]  ;;  %v13085_v55 = vld [vmem:[#allocation2 + $0x4c] sm:$0xf]  ;;  %v2618_v58 = vpack.c.bf16 %v2610_v45, %v2610_v45  ;;  %v3616_v44 = vpop.permute.xlu1 %3615  ;;  %v9409_v45 = vcombine.low %v2632_v22, %v13069_v50 }
 0x4f0   : > { %2629 = vst.msk [vmem:[#allocation2 + $0x7c] sm:$0xf] %vm2621_vm3, %v2620_v16  ;;  %v13067_v36 = vld [vmem:[#allocation2 + $0x34] sm:$0xf]  ;;  %v13073_v12 = vld [vmem:[#allocation2 + $0x28] sm:$0xf] }
 0x4f1   : > { %v13075_v13 = vld [vmem:[#allocation2 + $0x34] sm:$0xf]  ;;  %v13087_v52 = vld [vmem:[#allocation2 + $0x4c] sm:$0xf]  ;;  %v13107_v9 = vld [vmem:[#allocation2 + $0x40] sm:$0xf] }
 0x4f2   : > { %v13077_v25 = vld [vmem:[#allocation2 + $0x34] sm:$0xf]  ;;  %v13089_v57 = vld [vmem:[#allocation2 + $0x4c] sm:$0xf]  ;;  %v13109_v27 = vld [vmem:[#allocation2 + $0x40] sm:$0xf] }
 0x4f3   : > { %v13079_v23 = vld [vmem:[#allocation2 + $0x34] sm:$0xf]  ;;  %v13096_v38 = vld [vmem:[#allocation2 + $0x4c] sm:$0xf]  ;;  %v13111_v34 = vld [vmem:[#allocation2 + $0x40] sm:$0xf]  ;;  %v9428_v22 = vcombine.low %v13107_v9, %v13089_v57 }
 0x4f4   : > { %v11088_v8 = vld [vmem:[#allocation2 + $0x28] ss:$12 sps:$4 sm:$0xff]   ;;  %v13098_v15 = vld [vmem:[#allocation2 + $0x4c] sm:$0xf]  ;;  %2627 = vst.msk [vmem:[#allocation2 + $0x64] sm:$0xf] %vm2621_vm3, %v2618_v58 }
 0x4f5   : > { %3625 = vst.msk [vmem:[#allocation2 + $0x28] sm:$0xf] %vm1153_vm11, %v3602_v39  ;;  %3626 = vst.msk [vmem:[#allocation2 + $0x34] sm:$0xf] %vm1153_vm11, %v3604_v29  ;;  %v13100_v61 = vld [vmem:[#allocation2 + $0x4c] sm:$0xf]  ;;  %10150 = vmatmul.mubr.msk.bf16.vlgmr.msra.gmra.mrb[8].mxu0 %vm2684_vm13, %v11088_v8  ;;  %v9410_v8 = vcombine.low %v13067_v36, %v13103_v26 }
 0x4f6   : > { %v13113_v39 = vld [vmem:[#allocation2 + $0x70] sm:$0xf]  ;;  %10158 = vmatpush3.bf16.msra.mxu0 %v2804_v51  ;;  %v11089_v40 = vld [vmem:[#allocation2 + $0x40] ss:$12 sps:$4 sm:$0xff]   ;;  %v2637_v47 = vld [vmem:[#allocation2 + $0x58] sm:$0xf] }
 0x4f7   : > { %v13115_v10 = vld [vmem:[#allocation2 + $0x70] sm:$0xf]  ;;  %v13122_v48 = vld [vmem:[#allocation2 + $0x7c] sm:$0xf]  ;;  %10804 = vmatprep.subr.msk.bf16.mxu0 %vm2697_vm0, %v13094_v59  ;;  %3627 = vst.msk [vmem:[#allocation2 + $0x40] sm:$0xf] %vm1153_vm11, %v3606_v35  ;;  %10153 = vmatprep.mubr.msk.bf16.mxu0 %vm2684_vm13, %v11089_v40  ;;  %v9411_v26 = vcombine.low %v13085_v55, %v2637_v47  ;;  %v9427_v47 = vcombine.low %v13073_v12, %v13077_v25 }
 0x4f8   : > { %v13117_v60 = vld [vmem:[#allocation2 + $0x70] sm:$0xf]  ;;  %v13124_v20 = vld [vmem:[#allocation2 + $0x7c] sm:$0xf]  ;;  %3628 = vst.msk [vmem:[#allocation2 + $0x4c] sm:$0xf] %vm1153_vm11, %v3608_v63 }
 0x4f9   : > { %v13120_v29 = vld [vmem:[#allocation2 + $0x70] sm:$0xf]  ;;  %v13128_v14 = vld [vmem:[#allocation2 + $0x7c] sm:$0xf]  ;;  %v2877_v37 = vld [vmem:[#allocation2 + $0x58] sm:$0xf] }
 0x4fa   : > { %v13132_v21 = vld [vmem:[#allocation2 + $0x70] sm:$0xf]  ;;  %v13134_v24 = vld [vmem:[#allocation2 + $0x7c] sm:$0xf]  ;;  %v13141_v5 = vld [vmem:[#allocation2 + $0x58] sm:$0xf]  ;;  %v9419_v55 = vcombine.low %v13087_v52, %v2877_v37 }
 0x4fb   : > { %3631 = vst.msk [vmem:[#allocation2 + $0x70] sm:$0xf] %vm1153_vm11, %v3614_v32  ;;  %3632 = vst.msk [vmem:[#allocation2 + $0x7c] sm:$0xf] %vm1153_vm11, %v3616_v44  ;;  %v11096_v7 = vld [vmem:[#allocation2 + $0x4] ss:$12 sps:$4 sm:$0xff]   ;;  %v9418_v44 = vcombine.low %v13075_v13, %v13105_v4  ;;  %v9430_v57 = vcombine.low %v13113_v39, %v13134_v24 }
 0x4fc   : > { %v11093_v33 = vld [vmem:[#allocation2 + $0x28] ss:$12 sps:$4 sm:$0xff]   ;;  %v13143_v46 = vld [vmem:[#allocation2 + $0x58] sm:$0xf]  ;;  %v13147_v0 = vld [vmem:[#allocation2 + $0x64] sm:$0xf] }
 0x4fd   : > { %v13145_v53 = vld [vmem:[#allocation2 + $0x58] sm:$0xf]  ;;  %v13149_v35 = vld [vmem:[#allocation2 + $0x64] sm:$0xf]  ;;  %10220 = vmatmul.mubr.msk.bf16.vlgmr.msra.gmra.mrb[8].mxu1 %vm1406_vm14, %v11093_v33  ;;  %v2872_v50 = vld [vmem:[#allocation2 + $0x1c] sm:$0xf]  ;;  %v9420_v13 = vcombine.low %v13147_v0, %v13132_v21 }
 0x4fe   : > { %v13151_v30 = vld [vmem:[#allocation2 + $0x64] sm:$0xf]  ;;  %10228 = vmatpush3.bf16.msra.mxu1 %v3797_v56  ;;  %v13158_v1 = vld [vmem:[#allocation2 + $0x58] sm:$0xf]  ;;  %v3912_v58 = vsel %vm1419_vm10, %v11099_v41, 0  ;;  %v4022_v36 = vrot.slane %v11106_v18, 2  ;;  %v9417_v40 = vcombine.low %v2872_v50, %v13071_v49  ;;  %v9429_v25 = vcombine.low %v13141_v5, %v13149_v35 }
 0x4ff   : > { %v13154_v63 = vld [vmem:[#allocation2 + $0x64] sm:$0xf]  ;;  %10811 = vmatprep.subr.msk.bf16.mxu1 %vm1419_vm10, %v11099_v41  ;;  %v11094_v3 = vld [vmem:[#allocation2 + $0x40] ss:$12 sps:$4 sm:$0xff]   ;;  %v11105_v41 = vld [vmem:[#allocation2 + $0x1c] ss:$12 sps:$4 sm:$0xff]   ;;  %v9437_v50 = vcombine.low %v13096_v38, %v13143_v46 }
 0x500   : > { %v13156_v16 = vld [vmem:[#allocation2 + $0x64] sm:$0xf]  ;;  %10223 = vmatprep.mubr.msk.bf16.mxu1 %vm1406_vm14, %v11094_v3  ;;  %v11101_v32 = vld [vmem:[#allocation2 + $0x34] ss:$12 sps:$4 sm:$0xff]   ;;  %v4036_v52 = vsel %vm1419_vm10, %v4022_v36, 0 }
 0x501   : > { %v11092_v51 = vld [vmem:[#allocation2 + $0x58] ss:$12 sps:$4 sm:$0xff]   ;;  %v11107_v4 = vld [vmem:[#allocation2 + $0x34] ss:$12 sps:$4 sm:$0xff]  }
 0x502   : > { %3629 = vst.msk [vmem:[#allocation2 + $0x58] sm:$0xf] %vm1153_vm11, %v13081_v42  ;;  %3630 = vst.msk [vmem:[#allocation2 + $0x64] sm:$0xf] %vm1153_vm11, %v13083_v6  ;;  %10154 = vmatmul.mubr.msk.bf16.gmra.mrb[12].mxu0 %vm2684_vm13, %v11092_v51  ;;  %v2928_v42 = vsel %vm2697_vm0, %v13094_v59, 0  ;;  %v3038_v6 = vrot.slane %v11109_v43, 1 }
 0x503   : > { %10159 = vmatprep.mubr.msk.bf16.mxu0 %vm2684_vm13, %v11096_v7  ;;  %v11100_v59 = vld [vmem:[#allocation2 + $0x1c] ss:$12 sps:$4 sm:$0xff]   ;;  %v11115_v33 = vld [vmem:[#allocation15 + $0x1c] sm:$0x7f]   ;;  %v11113_v9 = vld [vmem:[#allocation2 + $0x40] ss:$12 sps:$4 sm:$0xff]  }
 0x504   : > { %v3052_v49 = vsel %vm2697_vm0, %v3038_v6, 0  ;;  %v11112_v7 = vld [vmem:[#allocation18 + $0x18] sm:$0x3f]   ;;  %v11121_v37 = vld [vmem:[#allocation15 + $0x20] sm:$0xf8]  }
 0x505   : > { %v11122_v3 = vld [vmem:[#allocation15 + $0x28] ss:$0 sps:$4 sm:$0x33]   ;;  %v3291_v21 = vrot.slane %v11121_v37, 3  ;;  %v11111_v43 = vld [vmem:[#allocation2 + $0x28] ss:$12 sps:$4 sm:$0xff]  }
 0x506   : > { %v3292_v0 = vrot.slane %v11122_v3, 3  ;;  %v4159_v5 = vsel %vm1419_vm10, %v11112_v7, 0  ;;  %v11130_v18 = vld [vmem:[#allocation15 + $0x30] ss:$0 sps:$4 sm:$0x11]  }
 0x507   : > { %v3423_v24 = vrot.slane %v11130_v18, 2  ;;  %v13276_v37 = vld [vmem:[#allocation16] ss:$0 sm:$0xff] }
 0x509   : > { %v11097_v17 = vld [vmem:[#allocation2 + $0x58] ss:$12 sps:$4 sm:$0xff]  }
 0x50a   : > { %10160 = vmatmul.mubr.msk.bf16.vlgmr.msra.gmra.mrb[8].mxu0 %vm2684_vm13, %v9409_v45  ;;  %10224 = vmatmul.mubr.msk.bf16.gmra.mrb[12].mxu1 %vm1406_vm14, %v11097_v17  ;;  %v11104_v56 = vld [vmem:[#allocation2 + $0x4c] ss:$12 sps:$4 sm:$0xff]   ;;  %v11110_v12 = vld [vmem:[#allocation2 + $0x64] ss:$12 sps:$4 sm:$0xff]   ;;  %v3293_v45 = vsel %vm2680_vm7, %v3291_v21, %v3292_v0 }
 0x50b   : > { %10163 = vmatprep.mubr.msk.bf16.mxu0 %vm2684_vm13, %v9410_v8  ;;  %10229 = vmatprep.mubr.msk.bf16.mxu1 %vm1406_vm14, %v11098_v19  ;;  %v11108_v51 = vld [vmem:[#allocation2 + $0x4c] ss:$12 sps:$4 sm:$0xff]   ;;  %v3176_v19 = vsel %vm2697_vm0, %v11115_v33, 0  ;;  %v9436_v8 = vcombine.low %v13079_v23, %v13109_v27  ;;  %v11116_v23 = vld [vmem:[#allocation2 + $0x70] ss:$12 sps:$4 sm:$0xff]   ;;  %v9438_v27 = vcombine.low %v13151_v30, %v13115_v10 }
 0x50c   : > { %10168 = vmatpush3.bf16.msra.mxu0 %v2928_v42  ;;  %v11118_v17 = vld [vmem:[#allocation18 + $0x1c] sm:$0xfc]   ;;  %v11129_v42 = vld [vmem:[#allocation15 + $0x28] sm:$0xfc]   ;;  %v11125_v30 = vld [vmem:[#allocation18 + $0x24] sm:$0x3f]  }
 0x50d   : > { %10805 = vmatprep.subr.msk.bf16.mxu0 %vm2697_vm0, %v3038_v6  ;;  %v4269_v35 = vrot.slane %v11118_v17, 2  ;;  %v11114_v6 = vld [vmem:[#allocation2 + $0x58] ss:$12 sps:$4 sm:$0xff]   ;;  %v3422_v39 = vrot.slane %v11129_v42, 2  ;;  %v13285_v17 = vld [vmem:[#allocation2 + $0x3c] sm:$0x8] }
 0x50e   : > { %v11119_v10 = vld [vmem:[#allocation2 + $0x4c] ss:$12 sps:$4 sm:$0xff]   ;;  %v4520_v21 = vld [vmem:[#allocation2 + $0x24] sm:$0xc] }
 0x50f   : > { %v4283_v46 = vsel %vm1419_vm10, %v4269_v35, 0  ;;  %v4537_v42 = vshrl.u32 %v4520_v21, 16 }
 0x512   : > { %10164 = vmatmul.mubr.msk.bf16.gmra.mrb[12].mxu0 %vm2684_vm13, %v9411_v26  ;;  %10230 = vmatmul.mubr.msk.bf16.vlgmr.msra.gmra.mrb[8].mxu1 %vm1406_vm14, %v11100_v59  ;;  %v3424_v26 = vsel %vm1419_vm10, %v3422_v39, %v3423_v24  ;;  %v3135_v59 = vld [vmem:[#allocation2 + $0x88] sm:$0xf] }
 0x513   : > { %10238 = vmatpush3.bf16.msra.mxu1 %v3912_v58  ;;  %10169 = vmatprep.mubr.msk.bf16.mxu0 %vm2684_vm13, %v9417_v40  ;;  %v11117_v58 = vld [vmem:[#allocation2 + $0x34] ss:$12 sps:$4 sm:$0xff]   ;;  %v9439_v38 = vcombine.low %v13122_v48, %v3135_v59  ;;  %v9445_v40 = vcombine.low %v13111_v34, %v13098_v15  ;;  %v9446_v48 = vcombine.low %v13145_v53, %v13154_v63  ;;  %v3438_v34 = vsel %vm2697_vm0, %v3424_v26, 0 }
 0x514   : > { %10233 = vmatprep.mubr.msk.bf16.mxu1 %vm1406_vm14, %v11101_v32  ;;  %10812 = vmatprep.subr.msk.bf16.mxu1 %vm1419_vm10, %v4022_v36  ;;  %v3307_v36 = vsel %vm2697_vm0, %v3293_v45, 0  ;;  %v11120_v32 = vld [vmem:[#allocation2 + $0x64] ss:$12 sps:$4 sm:$0xff]   ;;  %v11124_v15 = vld [vmem:[#allocation2 + $0x40] ss:$12 sps:$4 sm:$0xff]   ;;  %v4406_v53 = vsel %vm1419_vm10, %v11125_v30, 0  ;;  %v9455_v63 = vcombine.low %v13100_v61, %v13158_v1 }
 0x515   : > { %v11133_v61 = vld [vmem:[#allocation2 + $0x94] ss:$12 sps:$4 sm:$0xff]   ;;  %v11134_v1 = vld [vmem:[#allocation2 + $0x64] ss:$12 sps:$4 sm:$0xff]  }
 0x51a   : > { %10170 = vmatmul.mubr.msk.bf16.vlgmr.msra.gmra.mrb[8].mxu0 %vm2684_vm13, %v9418_v44  ;;  %10234 = vmatmul.mubr.msk.bf16.gmra.mrb[12].mxu1 %vm1406_vm14, %v11104_v56  ;;  %v11123_v44 = vld [vmem:[#allocation2 + $0x7c] ss:$12 sps:$4 sm:$0xff]   ;;  %v9447_v56 = vcombine.low %v13117_v60, %v13124_v20 }
 0x51b   : > { %10173 = vmatprep.mubr.msk.bf16.mxu0 %vm2684_vm13, %v9419_v55  ;;  %10239 = vmatprep.mubr.msk.bf16.mxu1 %vm1406_vm14, %v11105_v41  ;;  %v11126_v55 = vld [vmem:[#allocation2 + $0x88] ss:$12 sps:$4 sm:$0xff]   ;;  %v11127_v41 = vld [vmem:[#allocation2 + $0x58] ss:$12 sps:$4 sm:$0xff]   ;;  %v11128_v60 = vld [vmem:[#allocation2 + $0x70] ss:$12 sps:$4 sm:$0xff]  }
 0x51c   : > { %10178 = vmatpush3.bf16.msra.mxu0 %v3052_v49  ;;  %v11131_v20 = vld [vmem:[#allocation2 + $0x88] ss:$12 sps:$4 sm:$0xff]  }
 0x51d   : > { %10806 = vmatprep.subr.msk.bf16.mxu0 %vm2697_vm0, %v11115_v33  ;;  %v3388_v49 = vld [vmem:[#allocation2 + $0x88] sm:$0xf]  ;;  %v9456_v33 = vcombine.low %v13156_v16, %v13120_v29  ;;  %v11136_v29 = vld [vmem:[#allocation2 + $0x94] ss:$12 sps:$4 sm:$0xff]  }
 0x522   : > { %10174 = vmatmul.mubr.msk.bf16.gmra.mrb[12].mxu0 %vm2684_vm13, %v9420_v13  ;;  %10240 = vmatmul.mubr.msk.bf16.vlgmr.msra.gmra.mrb[8].mxu1 %vm1406_vm14, %v11107_v4  ;;  %v9457_v13 = vcombine.low %v13128_v14, %v3388_v49  ;;  %v11132_v4 = vld [vmem:[#allocation2 + $0x4c] ss:$12 sps:$4 sm:$0xff]   ;;  %v11137_v14 = vld [vmem:[#allocation21 + $0x4] sm:$0xfc]  }
 0x523   : > { %10248 = vmatpush3.bf16.msra.mxu1 %v4036_v52  ;;  %10179 = vmatprep.mubr.msk.bf16.mxu0 %vm2684_vm13, %v9427_v47  ;;  %v11135_v52 = vld [vmem:[#allocation2 + $0x7c] ss:$12 sps:$4 sm:$0xff]   ;;  %v4757_v16 = vrot.slane %v11137_v14, 2 }
 0x524   : > { %10243 = vmatprep.mubr.msk.bf16.mxu1 %vm1406_vm14, %v11108_v51  ;;  %10813 = vmatprep.subr.msk.bf16.mxu1 %vm1419_vm10, %v11112_v7  ;;  %v11138_v47 = vld [vmem:[#allocation21] sm:$0x3f]   ;;  %v13278_v51 = vld [vmem:[#allocation2 + $0x24] sm:$0x8] }
 0x525   : > { %v4771_v7 = vsel %vm1419_vm10, %v4757_v16, 0 }
 0x52a   : > { %10180 = vmatmul.mubr.msk.bf16.vlgmr.msra.gmra.mrb[8].mxu0 %vm2684_vm13, %v9428_v22  ;;  %10244 = vmatmul.mubr.msk.bf16.gmra.mrb[12].mxu1 %vm1406_vm14, %v11110_v12  ;;  %v13281_v12 = vld [vmem:[#allocation2 + $0x30] sm:$0x8] }
 0x52b   : > { %10183 = vmatprep.mubr.msk.bf16.mxu0 %vm2684_vm13, %v9429_v25  ;;  %10249 = vmatprep.mubr.msk.bf16.mxu1 %vm1406_vm14, %v11111_v43  ;;  %v4522_v25 = vld [vmem:[#allocation2 + $0x30] sm:$0xc]  ;;  %v9539_v39 = vrot.slane %v13281_v12, 11 }
 0x52c   : > { %10188 = vmatpush3.bf16.msra.mxu0 %v3176_v19  ;;  %v4555_v24 = vshrl.u32 %v4522_v25, 16 }
 0x52d   : > { %10807 = vmatprep.subr.msk.bf16.mxu0 %vm2697_vm0, %v3293_v45  ;;  %v9538_v45 = vrot.slane %v13278_v51, 11 }
 0x532   : > { %10184 = vmatmul.mubr.msk.bf16.gmra.mrb[12].mxu0 %vm2684_vm13, %v9430_v57  ;;  %10250 = vmatmul.mubr.msk.bf16.vlgmr.msra.gmra.mrb[8].mxu1 %vm1406_vm14, %v11113_v9  ;;  %v4526_v57 = vld [vmem:[#allocation2 + $0x48] sm:$0xc] }
 0x533   : > { %10258 = vmatpush3.bf16.msra.mxu1 %v4159_v5  ;;  %10189 = vmatprep.mubr.msk.bf16.mxu0 %vm2684_vm13, %v9436_v8  ;;  %v13288_v8 = vld [vmem:[#allocation2 + $0x48] sm:$0x8] }
 0x534   : > { %10253 = vmatprep.mubr.msk.bf16.mxu1 %vm1406_vm14, %v11114_v6  ;;  %10814 = vmatprep.subr.msk.bf16.mxu1 %vm1419_vm10, %v4269_v35  ;;  %v4540_v6 = vshll.u32 %v4520_v21, 16 }
 0x53a   : > { %10190 = vmatmul.mubr.msk.bf16.vlgmr.msra.gmra.mrb[8].mxu0 %vm2684_vm13, %v9437_v50  ;;  %10254 = vmatmul.mubr.msk.bf16.gmra.mrb[12].mxu1 %vm1406_vm14, %v11116_v23  ;;  %v4558_v50 = vshll.u32 %v4522_v25, 16 }
 0x53b   : > { %10193 = vmatprep.mubr.msk.bf16.mxu0 %vm2684_vm13, %v9438_v27  ;;  %10259 = vmatprep.mubr.msk.bf16.mxu1 %vm1406_vm14, %v11117_v58 }
 0x53c   : > { %10198 = vmatpush3.bf16.msra.mxu0 %v3307_v36  ;;  %v13292_v36 = vld [vmem:[#allocation2 + $0x3c] sm:$0xc] }
 0x53d   : > { %10808 = vmatprep.subr.msk.bf16.mxu0 %vm2697_vm0, %v3424_v26  ;;  %v4591_v26 = vshrl.u32 %v4526_v57, 16 }
 0x542   : > { %10194 = vmatmul.mubr.msk.bf16.gmra.mrb[12].mxu0 %vm2684_vm13, %v9439_v38  ;;  %10260 = vmatmul.mubr.msk.bf16.vlgmr.msra.gmra.mrb[8].mxu1 %vm1406_vm14, %v11119_v10  ;;  %v13294_v38 = vld [vmem:[#allocation19] ss:$0 sm:$0xff]  ;;  %v9540_v10 = vrot.slane %v13285_v17, 11 }
 0x543   : > { %10268 = vmatpush3.bf16.msra.mxu1 %v4283_v46  ;;  %10199 = vmatprep.mubr.msk.bf16.mxu0 %vm2684_vm13, %v9445_v40  ;;  %v9541_v46 = vrot.slane %v13288_v8, 11 }
 0x544   : > { %10263 = vmatprep.mubr.msk.bf16.mxu1 %vm1406_vm14, %v11120_v32  ;;  %10815 = vmatprep.subr.msk.bf16.mxu1 %vm1419_vm10, %v11125_v30  ;;  %v4594_v30 = vshll.u32 %v4526_v57, 16  ;;  %v13300_v32 = vsel %vm1419_vm10, %v11138_v47, 0  ;;  %v13326_v57 = vld [vmem:[#allocation2 + $0x54] sm:$0x8] }
 0x546   : > { %v13319_v14 = vrot.slane %v4594_v30, 7  ;;  %v13342_v30 = vld [vmem:[#allocation21 + $0xc] sm:$0x3f]  }
 0x54a   : > { %10200 = vmatmul.mubr.msk.bf16.vlgmr.msra.gmra.mrb[8].mxu0 %vm2684_vm13, %v9446_v48  ;;  %10264 = vmatmul.mubr.msk.bf16.gmra.mrb[12].mxu1 %vm1406_vm14, %v11123_v44  ;;  %v13302_v48 = vrot.slane %v4537_v42, 6  ;;  %v13304_v44 = vrot.slane %v4540_v6, 7  ;;  %v13329_v6 = vld [vmem:[#allocation2 + $0x60] sm:$0x8] }
 0x54b   : > { %10203 = vmatprep.mubr.msk.bf16.mxu0 %vm2684_vm13, %v9447_v56  ;;  %10269 = vmatprep.mubr.msk.bf16.mxu1 %vm1406_vm14, %v11124_v15 }
 0x54c   : > { %10208 = vmatpush3.bf16.msra.mxu0 %v3438_v34  ;;  %v13306_v34 = vrot.slane %v4555_v24, 6 }
 0x54d   : > { %10816 = vmatprep.subr.msk.bf16.mxu0 %vm1419_vm10, %v4757_v16 }
 0x552   : > { %10204 = vmatmul.mubr.msk.bf16.gmra.mrb[12].mxu0 %vm2684_vm13, %v11126_v55  ;;  %10270 = vmatmul.mubr.msk.bf16.vlgmr.msra.gmra.mrb[8].mxu1 %vm1406_vm14, %v11127_v41  ;;  %v13308_v55 = vrot.slane %v4558_v50, 7  ;;  %v4573_v41 = vshrl.u32 %v13292_v36, 16  ;;  %v13331_v50 = vld [vmem:[#allocation2 + $0x6c] sm:$0x8] }
 0x553   : > { %10278 = vmatpush3.bf16.msra.mxu1 %v4406_v53  ;;  %10209 = vmatprep.mubr.msk.bf16.mxu0 %vm2684_vm13, %v9455_v63  ;;  %v4576_v53 = vshll.u32 %v13292_v36, 16 }
 0x554   : > { %10273 = vmatprep.mubr.msk.bf16.mxu1 %vm1406_vm14, %v11128_v60 }
 0x55a   : > { %10210 = vmatmul.mubr.msk.bf16.vlgmr.msra.gmra.mrb[8].mxu0 %vm2684_vm13, %v9456_v33  ;;  %10274 = vmatmul.mubr.msk.bf16.gmra.mrb[12].mxu1 %vm1406_vm14, %v11131_v20 }
 0x55b   : > { %10213 = vmatprep.mubr.msk.bf16.mxu0 %vm2684_vm13, %v9457_v13  ;;  %10279 = vmatprep.mubr.msk.bf16.mxu1 %vm1406_vm14, %v11132_v4  ;;  %v13315_v13 = vrot.slane %v4591_v26, 6  ;;  %v9542_v26 = vrot.slane %v13326_v57, 11 }
 0x55c   : > { %10288 = vmatpush3.bf16.msra.mxu0 %v4771_v7 }
 0x55d   : > { %10817 = vmatprep.subr.msk.bf16.mxu0 %vm1419_vm10, %v11138_v47 }
 0x562   : > { %10214 = vmatmul.mubr.msk.bf16.gmra.mrb[12].mxu0 %vm2684_vm13, %v11133_v61  ;;  %10280 = vmatmul.mubr.msk.bf16.vlgmr.msra.gmra.mrb[8].mxu1 %vm1406_vm14, %v11134_v1 }
 0x563   : > { %10283 = vmatprep.mubr.msk.bf16.mxu1 %vm1406_vm14, %v11135_v52 }
 0x56a   : > { %10284 = vmatmul.mubr.msk.bf16.gmra.mrb[12].mxu1 %vm1406_vm14, %v11136_v29 }
 0x62d   : > { %v10211_v3 = vpop.f32.mrb[8].mxu0 }
 0x62e   : > { %v3522_v0 = vadd.f32 %v10211_v3, %v13276_v37  ;;  %v3474_v22 = vpop.f32.mrb[9].mxu0 }
 0x62f   : > { %v3520_v43 = vadd.f32 %v13276_v37, %v3474_v22  ;;  %v10212_v19 = vpop.f32.mrb[10].mxu0 }
 0x630   : > { %v3530_v9 = vmax.f32 %v3522_v0, 0.0  ;;  %v3523_v5 = vadd.f32 %v10212_v19, %v13276_v37  ;;  %v3477_v35 = vpop.f32.mrb[11].mxu0 }
 0x631   : > { %v3521_v18 = vadd.f32 %v13276_v37, %v3477_v35  ;;  %v3528_v27 = vmax.f32 %v3520_v43, 0.0 }
 0x632   : > { %v9824_v23 = vpack.c.bf16 %v3530_v9, %v3530_v9  ;;  %v3531_v58 = vmax.f32 %v3523_v5, 0.0 }
 0x633   : > { %v3529_v59 = vmax.f32 %v3521_v18, 0.0  ;;  %v9822_v63 = vpack.c.bf16 %v3528_v27, %v3528_v27 }
 0x634   : > { %v9825_v40 = vpack.c.bf16 %v3531_v58, %v3531_v58  ;;  %3572 = vrot.lane.b32.xlu1 %v9824_v23, %s11839_s28  ;;  %v4543_v23 = vor.u32 %v13304_v44, %v13302_v48  ;;  %v9543_v44 = vrot.slane %v13329_v6, 11 }
 0x635   : > { %v10215_v56 = vpop.f32.mrb[12].mxu0  ;;  %v10281_v15 = vpop.f32.mrb[8].mxu1  ;;  %v9823_v4 = vpack.c.bf16 %v3529_v59, %v3529_v59  ;;  %v13340_v59 = vld [vmem:[#allocation2 + $0x78] sm:$0x8] }
 0x636   : > { %v3526_v60 = vadd.f32 %v10215_v56, %v13276_v37  ;;  %v4490_v20 = vadd.f32 %v10281_v15, %v13294_v38  ;;  %3574 = vrot.lane.b32.xlu0 %v9825_v40, %s11839_s28  ;;  %v3490_v49 = vpop.f32.mrb[13].mxu0  ;;  %v4442_v33 = vpop.f32.mrb[9].mxu1  ;;  %v13346_v56 = vrot.slane %v4573_v41, 6  ;;  %v13348_v15 = vrot.slane %v4576_v53, 7 }
 0x637   : > { %v3524_v61 = vadd.f32 %v13276_v37, %v3490_v49  ;;  %v4488_v1 = vadd.f32 %v13294_v38, %v4442_v33  ;;  %v10216_v52 = vpop.f32.mrb[14].mxu0  ;;  %v10282_v29 = vpop.f32.mrb[10].mxu1  ;;  %v4597_v49 = vor.u32 %v13319_v14, %v13315_v13  ;;  %v9545_v33 = vrot.slane %v13340_v59, 11 }
 0x638   : > { %v3534_v16 = vmax.f32 %v3526_v60, 0.0  ;;  %v4498_v7 = vmax.f32 %v4490_v20, 0.0  ;;  %v3527_v47 = vadd.f32 %v10216_v52, %v13276_v37  ;;  %v4491_v3 = vadd.f32 %v10282_v29, %v13294_v38  ;;  %3568 = vrot.lane.b32.xlu1 %v9822_v63, %s11839_s28  ;;  %v3493_v21 = vpop.f32.mrb[15].mxu0  ;;  %v4445_v0 = vpop.f32.mrb[11].mxu1 }
 0x639   : > { %v3532_v22 = vmax.f32 %v3524_v61, 0.0  ;;  %v4496_v25 = vmax.f32 %v4488_v1, 0.0  ;;  %v3525_v43 = vadd.f32 %v13276_v37, %v3493_v21  ;;  %v4489_v19 = vadd.f32 %v13294_v38, %v4445_v0  ;;  %v4532_v0 = vld [vmem:[#allocation2 + $0x6c] sm:$0xc] }
 0x63a   : > { %v9828_v9 = vpack.c.bf16 %v3534_v16, %v3534_v16  ;;  %v4506_v5 = vpack.c.bf16 %v4498_v7, %v4498_v7  ;;  %v3535_v35 = vmax.f32 %v3527_v47, 0.0  ;;  %v4499_v42 = vmax.f32 %v4491_v3, 0.0  ;;  %3570 = vrot.lane.b32.xlu0 %v9823_v4, %s11839_s28  ;;  %v4530_v7 = vld [vmem:[#allocation2 + $0x60] sm:$0xc] }
 0x63b   : > { %v4504_v18 = vpack.c.bf16 %v4496_v25, %v4496_v25  ;;  %v4497_v24 = vmax.f32 %v4489_v19, 0.0  ;;  %v4561_v37 = vor.u32 %v13308_v55, %v13306_v34  ;;  %v3533_v36 = vmax.f32 %v3525_v43, 0.0  ;;  %v4528_v34 = vld [vmem:[#allocation2 + $0x54] sm:$0xc] }
 0x63c   : > { %4514 = vst.msk [vmem:[#allocation2 + $0x40] sm:$0xf] %vm1153_vm11, %v4506_v5  ;;  %v9829_v27 = vpack.c.bf16 %v3535_v35, %v3535_v35  ;;  %v4507_v58 = vpack.c.bf16 %v4499_v42, %v4499_v42  ;;  %3580 = vrot.lane.b32.xlu1 %v9828_v9, %s11839_s28  ;;  %v9826_v55 = vpack.c.bf16 %v3532_v22, %v3532_v22  ;;  %v9544_v20 = vrot.slane %v13331_v50, 11  ;;  %v4534_v9 = vld [vmem:[#allocation2 + $0x78] sm:$0xc] }
 0x63d   : > { %4512 = vst.msk [vmem:[#allocation2 + $0x28] sm:$0xf] %vm1153_vm11, %v4504_v18  ;;  %v4505_v40 = vpack.c.bf16 %v4497_v24, %v4497_v24  ;;  %v10285_v48 = vpop.f32.mrb[12].mxu1  ;;  %v13359_v4 = vrot.slane %v4543_v23, 4  ;;  %v13361_v61 = vrot.slane %v4561_v37, 4  ;;  %v9827_v1 = vpack.c.bf16 %v3533_v36, %v3533_v36 }
 0x63e   : > { %4515 = vst.msk [vmem:[#allocation2 + $0x4c] sm:$0xf] %vm1153_vm11, %v4507_v58  ;;  %v4494_v63 = vadd.f32 %v10285_v48, %v13294_v38  ;;  %3582 = vrot.lane.b32.xlu0 %v9829_v27, %s11839_s28  ;;  %v4458_v60 = vpop.f32.mrb[13].mxu1  ;;  %v4609_v13 = vshrl.u32 %v4528_v34, 16  ;;  %v4579_v3 = vor.u32 %v13348_v15, %v13346_v56  ;;  %v13370_v21 = vsel %vm1419_vm10, %v13342_v30, 0 }
 0x63f   : > { %4513 = vst.msk [vmem:[#allocation2 + $0x34] sm:$0xf] %vm1153_vm11, %v4505_v40  ;;  %v4492_v41 = vadd.f32 %v13294_v38, %v4458_v60  ;;  %v10286_v53 = vpop.f32.mrb[14].mxu1  ;;  %v13373_v43 = vrot.slane %v4597_v49, 4  ;;  %v4612_v19 = vshll.u32 %v4528_v34, 16  ;;  %v4630_v18 = vshll.u32 %v4530_v7, 16 }
 0x640   : > { %v4502_v52 = vmax.f32 %v4494_v63, 0.0  ;;  %v4495_v29 = vadd.f32 %v10286_v53, %v13294_v38  ;;  %3576 = vrot.lane.b32.xlu1 %v9826_v55, %s11839_s28  ;;  %v4461_v16 = vpop.f32.mrb[15].mxu1  ;;  %v13378_v37 = vrot.slane %v4609_v13, 6  ;;  %v4645_v27 = vshrl.u32 %v4532_v0, 16 }
 0x641   : > { %v4500_v14 = vmax.f32 %v4492_v41, 0.0  ;;  %v4493_v47 = vadd.f32 %v13294_v38, %v4461_v16  ;;  %v4627_v38 = vshrl.u32 %v4530_v7, 16  ;;  %v4648_v58 = vshll.u32 %v4532_v0, 16 }
 0x642   : > { %v4510_v22 = vpack.c.bf16 %v4502_v52, %v4502_v52  ;;  %v4503_v25 = vmax.f32 %v4495_v29, 0.0  ;;  %3578 = vrot.lane.b32.xlu0 %v9827_v1, %s11839_s28  ;;  %v13383_v41 = vrot.slane %v4612_v19, 7  ;;  %v4663_v53 = vshrl.u32 %v4534_v9, 16  ;;  %s11709_s28 = scalar_lea.vmem %s14409_s3, 512 }
 0x643   : > { %v4508_v5 = vpack.c.bf16 %v4500_v14, %v4500_v14  ;;  %v4501_v35 = vmax.f32 %v4493_v47, 0.0  ;;  %v13375_v42 = vld [vmem:[#allocation2 + $0x40] sm:$0x7]  ;;  %v13386_v52 = vrot.slane %v4627_v38, 6  ;;  %v13388_v29 = vrot.slane %v4630_v18, 7  ;;  %p11710_p10 = scmp.ne.s32.totalorder %s14409_s3, %s11709_s28 }
 0x644   : > { %4518 = vst.msk [vmem:[#allocation2 + $0x70] sm:$0xf] %vm1153_vm11, %v4510_v22  ;;  %v4511_v24 = vpack.c.bf16 %v4503_v25, %v4503_v25  ;;  %v4521_v23 = vld [vmem:[#allocation2 + $0x28] sm:$0x7]  ;;  %v4716_v34 = vrot.slane %v13375_v42, 7  ;;  %v4666_v16 = vshll.u32 %v4534_v9, 16 }
 0x645   : > { %4516 = vst.msk [vmem:[#allocation2 + $0x58] sm:$0xf] %vm1153_vm11, %v4508_v5  ;;  %v4509_v36 = vpack.c.bf16 %v4501_v35, %v4501_v35  ;;  %v4708_v40 = vrot.slane %v4521_v23, 7  ;;  %v4527_v48 = vld [vmem:[#allocation2 + $0x4c] sm:$0x7]  ;;  %v4546_v55 = vshrl.u32 %v4521_v23, 16  ;;  %p11711_p3 = pnand %p11710_p10, %p14601_p8 }
 0x646   : > { %4519 = vst.msk [vmem:[#allocation2 + $0x7c] sm:$0xf] %vm1153_vm11, %v4511_v24  ;;  %v4523_v63 = vld [vmem:[#allocation2 + $0x34] sm:$0x7]  ;;  %v4720_v60 = vrot.slane %v4527_v48, 7  ;;  %v4549_v49 = vshll.u32 %v4521_v23, 16  ;;  %v4717_v25 = vsel %vm12667_vm15, %v9540_v10, %v4716_v34  ;;  %v4615_v10 = vor.u32 %v13383_v41, %v13378_v37 }
 0x647   : > { %4517 = vst.msk [vmem:[#allocation2 + $0x64] sm:$0xf] %vm1153_vm11, %v4509_v36  ;;  %v4712_v1 = vrot.slane %v4523_v63, 7  ;;  %v4564_v13 = vshrl.u32 %v4523_v63, 16  ;;  %v4567_v14 = vshll.u32 %v4523_v63, 16  ;;  %v4582_v47 = vshrl.u32 %v13375_v42, 16  ;;  %p11712_p12 = pneg %p11711_p3 }
 0x648   : > { %v4721_v7 = vsel %vm12667_vm15, %v9541_v46, %v4720_v60  ;;  %v4709_v0 = vsel %vm12667_vm15, %v9538_v45, %v4708_v40  ;;  %v4548_v46 = vrot.slane %v4546_v55, 6  ;;  %v4551_v9 = vrot.slane %v4549_v49, 7 }
 0x649   : > { %v4713_v22 = vsel %vm12667_vm15, %v9539_v39, %v4712_v1  ;;  %v4566_v5 = vrot.slane %v4564_v13, 6  ;;  %v4569_v35 = vrot.slane %v4567_v14, 7  ;;  %v9547_v38 = vcombine.low %v4717_v25, %v4721_v7 }
 0x64a   : > { %v9546_v19 = vcombine.low %v4709_v0, %v4713_v22  ;;  %v4585_v45 = vshll.u32 %v13375_v42, 16  ;;  %v13410_v24 = vrot.slane %v4645_v27, 6  ;;  %v13412_v23 = vrot.slane %v4648_v58, 7 }
 0x64b   : > { %v13407_v18 = vld [vmem:[#allocation2 + $0x70] sm:$0x7]  ;;  %v4600_v36 = vshrl.u32 %v4527_v48, 16  ;;  %v4603_v40 = vshll.u32 %v4527_v48, 16  ;;  %v13417_v34 = vrot.slane %v4663_v53, 6  ;;  %v4570_v60 = vor.u32 %v4569_v35, %v4566_v5 }
 0x64c   : > { %10289 = vmatprep.mubr.msk.bf16.mxu0 %vm1406_vm14, %v9546_v19  ;;  %v4529_v39 = vld [vmem:[#allocation2 + $0x58] sm:$0x7]  ;;  %v4633_v42 = vor.u32 %v13388_v29, %v13386_v52  ;;  %v13422_v27 = vrot.slane %v4666_v16, 7  ;;  %v4732_v48 = vrot.slane %v13407_v18, 7  ;;  %v4552_v1 = vor.u32 %v4551_v9, %v4548_v46  ;;  %v13450_v46 = vld [vmem:[#allocation2 + $0x34] sm:$0xf] }
 0x64d   : > { %10290 = vmatmul.mubr.msk.bf16.vlgmr.msra.gmra.mrb[16].mxu0 %vm1406_vm14, %v9547_v38  ;;  %v4724_v55 = vrot.slane %v4529_v39, 7  ;;  %v4535_v63 = vld [vmem:[#allocation2 + $0x7c] sm:$0x7]  ;;  %v4584_v37 = vrot.slane %v4582_v47, 6  ;;  %v4587_v53 = vrot.slane %v4585_v45, 7  ;;  %v4618_v7 = vshrl.u32 %v4529_v39, 16 }
 0x64e   : > { %10298 = vmatpush3.bf16.msra.mxu0 %v13300_v32  ;;  %v4531_v58 = vld [vmem:[#allocation2 + $0x64] sm:$0x7]  ;;  %v4736_v49 = vrot.slane %v4535_v63, 7  ;;  %v4621_v13 = vshll.u32 %v4529_v39, 16  ;;  %v4602_v29 = vrot.slane %v4600_v36, 6  ;;  %v4605_v32 = vrot.slane %v4603_v40, 7 }
 0x64f   : > { %v4728_v41 = vrot.slane %v4531_v58, 7  ;;  %10818 = vmatprep.subr.msk.bf16.mxu0 %vm1419_vm10, %v13342_v30  ;;  %v4636_v16 = vshrl.u32 %v4531_v58, 16  ;;  %v4725_v14 = vsel %vm12667_vm15, %v9542_v26, %v4724_v55  ;;  %v4571_v47 = vsel %vm12726_vm2, %v13361_v61, %v4570_v60  ;;  %v13453_v39 = vld [vmem:[#allocation2 + $0x28] sm:$0xf] }
 0x650   : > { %v4737_v52 = vsel %vm12667_vm15, %v9545_v33, %v4736_v49  ;;  %v4639_v0 = vshll.u32 %v4531_v58, 16  ;;  %v4733_v33 = vsel %vm12667_vm15, %v9544_v20, %v4732_v48  ;;  %v4553_v26 = vsel %vm12726_vm2, %v13359_v4, %v4552_v1  ;;  %v13465_v48 = vld [vmem:[#allocation21 + $0x10] sm:$0xfc]  }
 0x651   : > { %v4729_v30 = vsel %vm12667_vm15, %v9543_v44, %v4728_v41  ;;  %v4638_v25 = vrot.slane %v4636_v16, 6  ;;  %v9549_v19 = vcombine.low %v4733_v33, %v4737_v52  ;;  %v4620_v44 = vrot.slane %v4618_v7, 6  ;;  %v13477_v41 = vld [vmem:[#allocation2 + $0x4c] sm:$0xf] }
 0x652   : > { %v9548_v22 = vcombine.low %v4725_v14, %v4729_v30  ;;  %v4623_v9 = vrot.slane %v4621_v13, 7  ;;  %v4641_v5 = vrot.slane %v4639_v0, 7  ;;  %v9555_v61 = vcombine.low %v4553_v26, %v4571_v47  ;;  %v13483_v13 = vld [vmem:[#allocation2 + $0x64] sm:$0xf]  ;;  %v13491_v47 = vld [vmem:[#allocation2 + $0x58] sm:$0xf] }
 0x653   : > { %v4606_v35 = vor.u32 %v4605_v32, %v4602_v29  ;;  %v4672_v38 = vshrl.u32 %v4535_v63, 16  ;;  %v4675_v45 = vshll.u32 %v4535_v63, 16  ;;  %v4580_v20 = vrot.slane %v4579_v3, 4  ;;  %v13488_v32 = vld [vmem:[#allocation2 + $0x40] sm:$0xf] }
 0x654   : > { %10293 = vmatprep.mubr.msk.bf16.mxu0 %vm1406_vm14, %v9548_v22  ;;  %v4634_v4 = vrot.slane %v4633_v42, 4  ;;  %v4642_v36 = vor.u32 %v4641_v5, %v4638_v25  ;;  %v4962_v40 = vshrl.u32 %v13450_v46, 16  ;;  %v4588_v55 = vor.u32 %v4587_v53, %v4584_v37 }
 0x655   : > { %10294 = vmatmul.mubr.msk.bf16.gmra.mrb[20].mxu0 %vm1406_vm14, %v9549_v19  ;;  %v4651_v60 = vor.u32 %v13412_v23, %v13410_v24  ;;  %v4654_v63 = vshrl.u32 %v13407_v18, 16  ;;  %v4657_v58 = vshll.u32 %v13407_v18, 16  ;;  %v4616_v49 = vrot.slane %v4615_v10, 4 }
 0x656   : > { %10299 = vmatprep.mubr.msk.bf16.mxu0 %vm1406_vm14, %v9555_v61  ;;  %v4624_v1 = vor.u32 %v4623_v9, %v4620_v44  ;;  %v4669_v56 = vor.u32 %v13422_v27, %v13417_v34  ;;  %v4949_v15 = vshrl.u32 %v13453_v39, 16  ;;  %v4607_v3 = vsel %vm12726_vm2, %v13373_v43, %v4606_v35 }
 0x657   : > { %v4674_v42 = vrot.slane %v4672_v38, 6  ;;  %v4677_v37 = vrot.slane %v4675_v45, 7  ;;  %v4944_v24 = vshrl.u32 %v13278_v51, 16  ;;  %v4643_v18 = vsel %vm12726_vm2, %v4634_v4, %v4642_v36 }
 0x658   : > { %v4957_v23 = vshrl.u32 %v13281_v12, 16  ;;  %v4964_v10 = vrot.slane %v4962_v40, 7  ;;  %v4983_v34 = vshrl.u32 %v13288_v8, 16  ;;  %v4589_v27 = vsel %vm12726_vm2, %v4580_v20, %v4588_v55  ;;  %v13509_v40 = vld [vmem:[#allocation2 + $0x7c] sm:$0xf] }
 0x659   : > { %v4656_v53 = vrot.slane %v4654_v63, 6  ;;  %v4659_v7 = vrot.slane %v4657_v58, 7  ;;  %v5181_v43 = vrot.slane %v13465_v48, 2  ;;  %v9556_v51 = vcombine.low %v4589_v27, %v4607_v3 }
 0x65a   : > { %v4625_v52 = vsel %vm12726_vm2, %v4616_v49, %v4624_v1  ;;  %v4951_v29 = vrot.slane %v4949_v15, 7  ;;  %v4965_v12 = vshll.u32 %v13450_v46, 16  ;;  %v4670_v8 = vrot.slane %v4669_v56, 4  ;;  %v13518_v15 = vld [vmem:[#allocation2 + $0x70] sm:$0xf] }
 0x65b   : > { %v9557_v16 = vcombine.low %v4625_v52, %v4643_v18  ;;  %v4678_v14 = vor.u32 %v4677_v37, %v4674_v42  ;;  %v4988_v30 = vshrl.u32 %v13477_v41, 16  ;;  %v4952_v0 = vshll.u32 %v13453_v39, 16 }
 0x65c   : > { %v9565_v22 = vrot.slane %v4957_v23, 11  ;;  %v4967_v33 = vor.u32 %v4965_v12, %v4964_v10  ;;  %v5014_v26 = vshrl.u32 %v13483_v13, 16  ;;  %v4652_v25 = vrot.slane %v4651_v60, 4 }
 0x65d   : > { %10300 = vmatmul.mubr.msk.bf16.vlgmr.msra.gmra.mrb[16].mxu0 %vm1406_vm14, %v9556_v51  ;;  %v4660_v19 = vor.u32 %v4659_v7, %v4656_v53  ;;  %v4975_v44 = vshrl.u32 %v13488_v32, 16  ;;  %v9564_v9 = vrot.slane %v4944_v24, 11  ;;  %v4954_v5 = vor.u32 %v4952_v0, %v4951_v29 }
 0x65e   : > { %10308 = vmatpush3.bf16.msra.mxu0 %v13370_v21  ;;  %10303 = vmatprep.mubr.msk.bf16.mxu0 %vm1406_vm14, %v9557_v16  ;;  %v5001_v61 = vshrl.u32 %v13491_v47, 16  ;;  %v4679_v35 = vsel %vm12726_vm2, %v4670_v8, %v4678_v14  ;;  %v4970_v38 = vshrl.u32 %v13285_v17, 16  ;;  %v4990_v21 = vrot.slane %v4988_v30, 7 }
 0x65f   : > { %10819 = vmatprep.subr.msk.bf16.mxu0 %vm1419_vm10, %v5181_v43  ;;  %v4968_v45 = vsel %vm12804_vm5, %v9565_v22, %v4967_v33  ;;  %v9567_v20 = vrot.slane %v4983_v34, 11  ;;  %v5009_v4 = vshrl.u32 %v13329_v6, 16  ;;  %v5016_v36 = vrot.slane %v5014_v26, 7  ;;  %v11142_v22 = vld [vmem:[#allocation21 + $0x18] sm:$0x3f]  }
 0x660   : > { %v4661_v55 = vsel %vm12726_vm2, %v4652_v25, %v4660_v19  ;;  %v4977_v60 = vrot.slane %v4975_v44, 7  ;;  %v4991_v63 = vshll.u32 %v13477_v41, 16  ;;  %v4996_v58 = vshrl.u32 %v13326_v57, 16 }
 0x661   : > { %v9558_v49 = vcombine.low %v4661_v55, %v4679_v35  ;;  %v4955_v17 = vsel %vm12804_vm5, %v9564_v9, %v4954_v5  ;;  %v5003_v1 = vrot.slane %v5001_v61, 7  ;;  %v5017_v56 = vshll.u32 %v13483_v13, 16  ;;  %v5272_v9 = vld [vmem:[#allocation2 + $0x34] sm:$0xf]  ;;  %v5276_v55 = vld [vmem:[#allocation2 + $0x4c] sm:$0xf] }
 0x662   : > { %v9572_v6 = vcombine.low %v4955_v17, %v4968_v45  ;;  %v4978_v3 = vshll.u32 %v13488_v32, 16  ;;  %v4993_v42 = vor.u32 %v4991_v63, %v4990_v21  ;;  %v5040_v37 = vshrl.u32 %v13509_v40, 16  ;;  %v13554_v63 = vld [vmem:[#allocation21 + $0x1c] sm:$0xfc]  }
 0x663   : > { %v5004_v24 = vshll.u32 %v13491_v47, 16  ;;  %v9569_v57 = vrot.slane %v5009_v4, 11  ;;  %v5019_v18 = vor.u32 %v5017_v56, %v5016_v36  ;;  %v9566_v23 = vrot.slane %v4970_v38, 11  ;;  %v5274_v56 = vld [vmem:[#allocation2 + $0x40] sm:$0xf] }
 0x664   : > { %v4980_v10 = vor.u32 %v4978_v3, %v4977_v60  ;;  %v5027_v34 = vshrl.u32 %v13518_v15, 16  ;;  %v9568_v27 = vrot.slane %v4996_v58, 11  ;;  %v4994_v7 = vsel %vm12804_vm5, %v9567_v20, %v4993_v42  ;;  %v13552_v60 = vld [vmem:[#allocation2 + $0x2c] sm:$0x1]  ;;  %v5280_v58 = vld [vmem:[#allocation2 + $0x64] sm:$0xf] }
 0x665   : > { %10304 = vmatmul.mubr.msk.bf16.gmra.mrb[20].mxu0 %vm1406_vm14, %v9558_v49  ;;  %v5006_v53 = vor.u32 %v5004_v24, %v5003_v1  ;;  %v5035_v51 = vshrl.u32 %v13340_v59, 16  ;;  %v5042_v52 = vrot.slane %v5040_v37, 7  ;;  %v5020_v29 = vsel %vm12804_vm5, %v9569_v57, %v5019_v18  ;;  %v13556_v49 = vld [vmem:[#allocation2 + $0x38] sm:$0x1] }
 0x666   : > { %10309 = vmatprep.mubr.msk.bf16.mxu0 %vm1406_vm14, %v9572_v6  ;;  %v4981_v12 = vsel %vm12804_vm5, %v9566_v23, %v4980_v10  ;;  %v5022_v16 = vshrl.u32 %v13331_v50, 16  ;;  %v5029_v8 = vrot.slane %v5027_v34, 7  ;;  %v5043_v14 = vshll.u32 %v13509_v40, 16  ;;  %v5278_v3 = vld [vmem:[#allocation2 + $0x58] sm:$0xf] }
 0x667   : > { %v9573_v30 = vcombine.low %v4981_v12, %v4994_v7  ;;  %v5195_v0 = vsel %vm1419_vm10, %v5181_v43, 0  ;;  %v5007_v59 = vsel %vm12804_vm5, %v9568_v27, %v5006_v53  ;;  %v5030_v26 = vshll.u32 %v13518_v15, 16  ;;  %v5270_v43 = vld [vmem:[#allocation2 + $0x28] sm:$0xf]  ;;  %v13564_v7 = vld [vmem:[#allocation2 + $0x44] sm:$0x1] }
 0x668   : > { %v9574_v33 = vcombine.low %v5007_v59, %v5020_v29  ;;  %v9571_v25 = vrot.slane %v5035_v51, 11  ;;  %v5045_v19 = vor.u32 %v5043_v14, %v5042_v52  ;;  %v9570_v50 = vrot.slane %v5022_v16, 11  ;;  %v13568_v12 = vld [vmem:[#allocation2 + $0x50] sm:$0x1] }
 0x669   : > { %v5032_v44 = vor.u32 %v5030_v26, %v5029_v8  ;;  %v5301_v5 = vshrl.u32 %v5272_v9, 16  ;;  %v5304_v61 = vshll.u32 %v5272_v9, 16  ;;  %v5287_v21 = vshrl.u32 %v5270_v43, 16  ;;  %v13577_v9 = vld [vmem:[#allocation2 + $0x68] sm:$0x1] }
 0x66a   : > { %v5046_v48 = vsel %vm12804_vm5, %v9571_v25, %v5045_v19  ;;  %v5290_v45 = vshll.u32 %v5270_v43, 16  ;;  %v9581_v20 = vcombine.low %v13453_v39, %v13450_v46  ;;  %v5296_v6 = vshll.u32 %v13552_v60, 16 }
 0x66b   : > { %v5033_v35 = vsel %vm12804_vm5, %v9570_v50, %v5032_v44  ;;  %v5303_v4 = vrot.slane %v5301_v5, 4  ;;  %v5306_v36 = vrot.slane %v5304_v61, 5  ;;  %v5289_v17 = vrot.slane %v5287_v21, 4  ;;  %v5282_v50 = vld [vmem:[#allocation2 + $0x70] sm:$0xf] }
 0x66c   : > { %v9575_v38 = vcombine.low %v5033_v35, %v5046_v48  ;;  %v5292_v1 = vrot.slane %v5290_v45, 5  ;;  %v5329_v46 = vshrl.u32 %v5276_v55, 16  ;;  %v5332_v39 = vshll.u32 %v5276_v55, 16  ;;  %v5669_v45 = vld [vmem:[#allocation2 + $0x2c] sm:$0x3] }
 0x66d   : > { %10310 = vmatmul.mubr.msk.bf16.vlgmr.msra.gmra.mrb[16].mxu0 %vm1406_vm14, %v9573_v30  ;;  %v5307_v42 = vor.u32 %v5306_v36, %v5303_v4  ;;  %v5310_v37 = vshll.u32 %v13556_v49, 16  ;;  %v5357_v24 = vshrl.u32 %v5280_v58, 16  ;;  %v5360_v57 = vshll.u32 %v5280_v58, 16  ;;  %v13584_v36 = vld [vmem:[#allocation2 + $0x5c] sm:$0x1] }
 0x66e   : > { %10318 = vmatpush3.bf16.msra.mxu0 %v5195_v0  ;;  %10313 = vmatprep.mubr.msk.bf16.mxu0 %vm1406_vm14, %v9574_v33  ;;  %v5430_v18 = vsel %vm1419_vm10, %v11142_v22, 0  ;;  %v5580_v23 = vrot.slane %v13554_v63, 2  ;;  %v5315_v10 = vshrl.u32 %v5274_v56, 16  ;;  %v5318_v34 = vshll.u32 %v5274_v56, 16 }
 0x66f   : > { %10820 = vmatprep.subr.msk.bf16.mxu0 %vm1419_vm10, %v11142_v22  ;;  %v9582_v27 = vcombine.low %v13488_v32, %v13477_v41  ;;  %v5293_v53 = vor.u32 %v5292_v1, %v5289_v17  ;;  %v5343_v51 = vshrl.u32 %v5278_v3, 16  ;;  %v5346_v52 = vshll.u32 %v5278_v3, 16  ;;  %v5284_v22 = vld [vmem:[#allocation2 + $0x7c] sm:$0xf] }
 0x670   : > { %v9583_v29 = vcombine.low %v13491_v47, %v13483_v13  ;;  %v5331_v16 = vrot.slane %v5329_v46, 4  ;;  %v5334_v8 = vrot.slane %v5332_v39, 5  ;;  %v5308_v14 = vrot.slane %v5307_v42, 4 }
 0x671   : > { %v5312_v30 = vrot.slane %v5310_v37, 5  ;;  %v5359_v0 = vrot.slane %v5357_v24, 4  ;;  %v5362_v59 = vrot.slane %v5360_v57, 5  ;;  %v5317_v41 = vrot.slane %v5315_v10, 4 }
 0x672   : > { %v5320_v32 = vrot.slane %v5318_v34, 5  ;;  %v5338_v33 = vshll.u32 %v13568_v12, 16  ;;  %v5539_v13 = vrot.slane %v13564_v7, 5  ;;  %v5294_v47 = vrot.slane %v5293_v53, 4 }
 0x673   : > { %v5298_v26 = vrot.slane %v5296_v6, 5  ;;  %v5345_v25 = vrot.slane %v5343_v51, 4  ;;  %v5348_v19 = vrot.slane %v5346_v52, 5  ;;  %v5335_v44 = vor.u32 %v5334_v8, %v5331_v16  ;;  %v13593_v51 = vld [vmem:[#allocation2 + $0x80] sm:$0x1] }
 0x674   : > { %v5385_v48 = vshrl.u32 %v5284_v22, 16  ;;  %v5388_v43 = vshll.u32 %v5284_v22, 16  ;;  %v5531_v5 = vrot.slane %v13552_v60, 5  ;;  %v5313_v61 = vsel %vm12884_vm9, %v5308_v14, %v5312_v30  ;;  %v5670_v52 = vld [vmem:[#allocation2 + $0x38] sm:$0x3] }
 0x675   : > { %10314 = vmatmul.mubr.msk.bf16.gmra.mrb[20].mxu0 %vm1406_vm14, %v9575_v38  ;;  %v5324_v35 = vshll.u32 %v13564_v7, 16  ;;  %v5363_v38 = vor.u32 %v5362_v59, %v5359_v0  ;;  %v5366_v21 = vshll.u32 %v13577_v9, 16  ;;  %v5340_v4 = vrot.slane %v5338_v33, 5  ;;  %v13601_v0 = vld [vmem:[#allocation2 + $0x74] sm:$0x1] }
 0x676   : > { %10319 = vmatprep.mubr.msk.bf16.mxu0 %vm1406_vm14, %v9581_v20  ;;  %v5321_v20 = vor.u32 %v5320_v32, %v5317_v41  ;;  %v5371_v55 = vshrl.u32 %v5282_v50, 16  ;;  %v5374_v58 = vshll.u32 %v5282_v50, 16  ;;  %v9584_v17 = vcombine.low %v13518_v15, %v13509_v40  ;;  %v5672_v41 = vld [vmem:[#allocation2 + $0x50] sm:$0x3] }
 0x677   : > { %v5299_v1 = vsel %vm12884_vm9, %v5294_v47, %v5298_v26  ;;  %v5349_v56 = vor.u32 %v5348_v19, %v5345_v25  ;;  %v5352_v6 = vshll.u32 %v13584_v36, 16  ;;  %v5336_v39 = vrot.slane %v5335_v44, 4  ;;  %v5506_v26 = vld [vmem:[#allocation2 + $0x34] sm:$0xe]  ;;  %v5671_v19 = vld [vmem:[#allocation2 + $0x44] sm:$0x3] }
 0x678   : > { %v9590_v46 = vcombine.low %v5299_v1, %v5313_v61  ;;  %v5387_v3 = vrot.slane %v5385_v48, 4  ;;  %v5390_v42 = vrot.slane %v5388_v43, 5  ;;  %v5364_v37 = vrot.slane %v5363_v38, 4  ;;  %v13615_v43 = vld [vmem:[#allocation2 + $0x28] sm:$0xe]  ;;  %v13623_v1 = vpop.permute.xlu1 %8870 }
 0x679   : > { %v5368_v24 = vrot.slane %v5366_v21, 5  ;;  %v5687_v57 = vshrl.u32 %v5669_v45, 16  ;;  %v5322_v10 = vrot.slane %v5321_v20, 4  ;;  %v5326_v40 = vrot.slane %v5324_v35, 5  ;;  %v13617_v61 = vld [vmem:[#allocation21 + $0x24] sm:$0x3f]  }
 0x67a   : > { %v5373_v15 = vrot.slane %v5371_v55, 4  ;;  %v5376_v34 = vrot.slane %v5374_v58, 5  ;;  %v5354_v53 = vrot.slane %v5352_v6, 5  ;;  %v5391_v16 = vor.u32 %v5390_v42, %v5387_v3  ;;  %14572 = vst [vmem:[#allocation52_spill] sm:$0xff] %v13623_v1 }
 0x67b   : > { %v5394_v8 = vshll.u32 %v13593_v51, 16  ;;  %v5543_v14 = vrot.slane %v13568_v12, 5  ;;  %v5369_v30 = vsel %vm12884_vm9, %v5364_v37, %v5368_v24  ;;  %v13603_v59 = vrot.slane %v5687_v57, 5  ;;  %v13634_v37 = vpop.permute.xlu0 %8865  ;;  %v13636_v24 = vld [vmem:[#allocation2 + $0x4c] sm:$0xe] }
 0x67c   : > { %v5327_v32 = vsel %vm12884_vm9, %v5322_v10, %v5326_v40  ;;  %v5377_v33 = vor.u32 %v5376_v34, %v5373_v15  ;;  %v5380_v47 = vshll.u32 %v13601_v0, 16  ;;  %v5705_v25 = vshrl.u32 %v5670_v52, 16  ;;  %14573 = vst [vmem:[#allocation53_spill] sm:$0xff] %v13634_v37  ;;  %v13646_v15 = vld [vmem:[#allocation2 + $0x40] sm:$0xe] }
 0x67d   : > { %10320 = vmatmul.mubr.msk.bf16.vlgmr.msra.gmra.mrb[16].mxu0 %vm1406_vm14, %v9582_v27  ;;  %v5350_v27 = vrot.slane %v5349_v56, 4  ;;  %v5594_v44 = vsel %vm1419_vm10, %v5580_v23, 0  ;;  %v5708_v35 = vshll.u32 %v5670_v52, 16  ;;  %v5392_v21 = vrot.slane %v5391_v16, 4  ;;  %v5510_v16 = vld [vmem:[#allocation2 + $0x64] sm:$0xe] }
 0x67e   : > { %10328 = vmatpush3.bf16.msra.mxu0 %v5430_v18  ;;  %10323 = vmatprep.mubr.msk.bf16.mxu0 %vm1406_vm14, %v9583_v29  ;;  %v5690_v18 = vshll.u32 %v5669_v45, 16  ;;  %v5341_v29 = vsel %vm12884_vm9, %v5336_v39, %v5340_v4  ;;  %v5396_v45 = vrot.slane %v5394_v8, 5  ;;  %v5741_v20 = vshrl.u32 %v5672_v41, 16  ;;  %v5512_v12 = vld [vmem:[#allocation2 + $0x7c] sm:$0xe] }
 0x67f   : > { %10821 = vmatprep.subr.msk.bf16.mxu0 %vm1419_vm10, %v5580_v23  ;;  %v9591_v50 = vcombine.low %v5327_v32, %v5341_v29  ;;  %v5355_v48 = vsel %vm12884_vm9, %v5350_v27, %v5354_v53  ;;  %v9600_v4 = vrot.slane %v5506_v26, 9  ;;  %v5535_v55 = vrot.slane %v13556_v49, 5 }
 0x680   : > { %v13605_v22 = vrot.slane %v5690_v18, 6  ;;  %v9592_v38 = vcombine.low %v5355_v48, %v5369_v30  ;;  %v5555_v63 = vrot.slane %v13601_v0, 5  ;;  %v5744_v23 = vshll.u32 %v5672_v41, 16  ;;  %v13659_v41 = vld [vmem:[#allocation2 + $0x5c] sm:$0x3] }
 0x681   : > { %v5378_v58 = vrot.slane %v5377_v33, 4  ;;  %v9599_v56 = vrot.slane %v13615_v43, 9  ;;  %v5723_v6 = vshrl.u32 %v5671_v19, 16  ;;  %v5559_v49 = vrot.slane %v13593_v51, 5 }
 0x682   : > { %v5693_v39 = vor.u32 %v13605_v22, %v13603_v59  ;;  %v5726_v3 = vshll.u32 %v5671_v19, 16  ;;  %v5397_v42 = vsel %vm12884_vm9, %v5392_v21, %v5396_v45  ;;  %v13638_v57 = vrot.slane %v5705_v25, 5  ;;  %v13664_v25 = vld [vmem:[#allocation2 + $0x80] sm:$0x3]  ;;  %v13666_v19 = vpop.permute.xlu1 %8875  ;;  %v5674_v21 = vld [vmem:[#allocation2 + $0x68] sm:$0x3]  ;;  %v13677_v45 = vpop.permute.xlu0 %8880 }
 0x683   : > { %v13640_v18 = vrot.slane %v5708_v35, 6  ;;  %v13642_v10 = vrot.slane %v5741_v20, 5  ;;  %v5536_v40 = vsel %vm12939_vm1, %v9600_v4, %v5535_v55  ;;  %v5696_v34 = vshrl.u32 %v5506_v26, 16  ;;  %14574 = vst [vmem:[#allocation54_spill] sm:$0xff] %v13666_v19  ;;  %14575 = vst [vmem:[#allocation55_spill] sm:$0xff] %v13677_v45 }
 0x684   : > { %v5699_v27 = vshll.u32 %v5506_v26, 16  ;;  %v13648_v53 = vrot.slane %v5744_v23, 6  ;;  %v5532_v29 = vsel %vm12939_vm1, %v9599_v56, %v5531_v5  ;;  %v5551_v8 = vrot.slane %v13577_v9, 5 }
 0x685   : > { %10324 = vmatmul.mubr.msk.bf16.gmra.mrb[20].mxu0 %vm1406_vm14, %v9584_v17  ;;  %v5382_v17 = vrot.slane %v5380_v47, 5  ;;  %v13657_v30 = vrot.slane %v5723_v6, 5  ;;  %v9602_v33 = vrot.slane %v13636_v24, 9  ;;  %v5678_v47 = vshrl.u32 %v13615_v43, 16 }
 0x686   : > { %10329 = vmatprep.mubr.msk.bf16.mxu0 %vm1406_vm14, %v9590_v46  ;;  %v5547_v46 = vrot.slane %v13584_v36, 5  ;;  %v5681_v26 = vshll.u32 %v13615_v43, 16  ;;  %v9607_v60 = vcombine.low %v5532_v29, %v5536_v40  ;;  %v9601_v5 = vrot.slane %v13646_v15, 9  ;;  %v13697_v7 = vpop.permute.xlu1 %8885 }
 0x687   : > { %v5383_v52 = vsel %vm12884_vm9, %v5378_v58, %v5382_v17  ;;  %v5711_v9 = vor.u32 %v13640_v18, %v13638_v57  ;;  %v9604_v48 = vrot.slane %v5510_v16, 9  ;;  %v5698_v35 = vrot.slane %v5696_v34, 5  ;;  %14576 = vst [vmem:[#allocation56_spill] sm:$0xff] %v13697_v7 }
 0x688   : > { %v9593_v32 = vcombine.low %v5383_v52, %v5397_v42  ;;  %v5747_v43 = vor.u32 %v13648_v53, %v13642_v10  ;;  %v5759_v20 = vshrl.u32 %v13659_v41, 16  ;;  %v5762_v4 = vshll.u32 %v13659_v41, 16 }
 0x689   : > { %v5813_v55 = vshrl.u32 %v13664_v25, 16  ;;  %v5544_v58 = vsel %vm12939_vm1, %v9602_v33, %v5543_v14  ;;  %v5680_v56 = vrot.slane %v5678_v47, 5  ;;  %v5683_v6 = vrot.slane %v5681_v26, 6 }
 0x68a   : > { %v5732_v42 = vshrl.u32 %v13636_v24, 16  ;;  %v5735_v40 = vshll.u32 %v13636_v24, 16  ;;  %v5777_v34 = vshrl.u32 %v5674_v21, 16  ;;  %v5768_v29 = vshrl.u32 %v5510_v16, 16  ;;  %v13709_v23 = vpop.permute.xlu1 %8895 }
 0x68b   : > { %v5771_v14 = vshll.u32 %v5510_v16, 16  ;;  %v5717_v33 = vshll.u32 %v13646_v15, 16  ;;  %v5684_v47 = vor.u32 %v5683_v6, %v5680_v56  ;;  %v5761_v56 = vrot.slane %v5759_v20, 5  ;;  %14578 = vst [vmem:[#allocation58_spill] sm:$0xff] %v13709_v23 }
 0x68c   : > { %vm3592_vm11 = vcmask 322752  }
 0x68d   : > { %10330 = vmatmul.mubr.msk.bf16.vlgmr.msra.gmra.mrb[16].mxu0 %vm1406_vm14, %v9591_v50  ;;  %v5509_v50 = vld [vmem:[#allocation2 + $0x58] sm:$0xe] }
 0x68e   : > { %10338 = vmatpush3.bf16.msra.mxu0 %v5594_v44  ;;  %10333 = vmatprep.mubr.msk.bf16.mxu0 %vm1406_vm14, %v9592_v38  ;;  %v13671_v44 = vrot.slane %v5726_v3, 6  ;;  %v5701_v38 = vrot.slane %v5699_v27, 6  ;;  %v9603_v17 = vrot.slane %v5509_v50, 9  ;;  %v5540_v3 = vsel %vm12939_vm1, %v9601_v5, %v5539_v13  ;;  %v13705_v5 = vpop.permute.xlu0 %8890 }
 0x68f   : > { %10822 = vmatprep.subr.msk.bf16.mxu0 %vm1419_vm10, %v13617_v61  ;;  %v5552_v27 = vsel %vm12939_vm1, %v9604_v48, %v5551_v8  ;;  %v9608_v41 = vcombine.low %v5540_v3, %v5544_v58  ;;  %v5714_v13 = vshrl.u32 %v13646_v15, 16  ;;  %v5511_v8 = vld [vmem:[#allocation2 + $0x70] sm:$0xe]  ;;  %v5750_v26 = vshrl.u32 %v5509_v50, 16  ;;  %14577 = vst [vmem:[#allocation57_spill] sm:$0xff] %v13705_v5 }
 0x690   : > { %v5702_v52 = vor.u32 %v5701_v38, %v5698_v35  ;;  %v5548_v24 = vsel %vm12939_vm1, %v9603_v17, %v5547_v46  ;;  %v9606_v48 = vrot.slane %v5512_v12, 9  ;;  %v5737_v35 = vrot.slane %v5735_v40, 6 }
 0x691   : > { %v9609_v16 = vcombine.low %v5548_v24, %v5552_v27  ;;  %v5770_v58 = vrot.slane %v5768_v29, 5  ;;  %v5773_v15 = vrot.slane %v5771_v14, 6  ;;  %v5780_v3 = vshll.u32 %v5674_v21, 16 }
 0x692   : > { %v5703_v38 = vrot.slane %v5702_v52, 4  ;;  %v9605_v36 = vrot.slane %v5511_v8, 9  ;;  %v5716_v46 = vrot.slane %v5714_v13, 5  ;;  %v5719_v17 = vrot.slane %v5717_v33, 6 }
 0x693   : > { %v5752_v6 = vrot.slane %v5750_v26, 5  ;;  %v5764_v24 = vrot.slane %v5762_v4, 6  ;;  %v5804_v21 = vshrl.u32 %v5512_v12, 16  ;;  %v5807_v52 = vshll.u32 %v5512_v12, 16  ;;  %v13720_v4 = vpop.permute.xlu0 %8900 }
 0x694   : > { %v5712_v20 = vsel %vm13009_vm6, %v5703_v38, %v5711_v9  ;;  %v5774_v29 = vor.u32 %v5773_v15, %v5770_v58  ;;  %v5779_v14 = vrot.slane %v5777_v34, 5  ;;  %14579 = vst [vmem:[#allocation59_spill] sm:$0xff] %v13720_v4  ;;  %v5556_v51 = vsel %vm12939_vm1, %v9605_v36, %v5555_v63 }
 0x695   : > { %10334 = vmatmul.mubr.msk.bf16.gmra.mrb[20].mxu0 %vm1406_vm14, %v9593_v32  ;;  %v5853_v32 = vsel %vm1419_vm10, %v13617_v61, 0  ;;  %v5734_v61 = vrot.slane %v5732_v42, 5  ;;  %v5560_v42 = vsel %vm12939_vm1, %v9606_v48, %v5559_v49  ;;  %v5720_v49 = vor.u32 %v5719_v17, %v5716_v46 }
 0x696   : > { %10339 = vmatprep.mubr.msk.bf16.mxu0 %vm1406_vm14, %v9607_v60  ;;  %v5753_v60 = vshll.u32 %v5509_v50, 16  ;;  %v5685_v50 = vrot.slane %v5684_v47, 4  ;;  %v5786_v13 = vshrl.u32 %v5511_v8, 16  ;;  %v5789_v12 = vshll.u32 %v5511_v8, 16 }
 0x697   : > { %v5738_v40 = vor.u32 %v5737_v35, %v5734_v61  ;;  %v9610_v33 = vcombine.low %v5556_v51, %v5560_v42  ;;  %v5806_v0 = vrot.slane %v5804_v21, 5  ;;  %v5809_v47 = vrot.slane %v5807_v52, 6  ;;  %v11148_v51 = vld [vmem:[#allocation24 + $0x4] sm:$0xf8]  }
 0x698   : > { %v5755_v27 = vrot.slane %v5753_v60, 6  ;;  %v5694_v57 = vsel %vm13009_vm6, %v5685_v50, %v5693_v39  ;;  %v5729_v63 = vor.u32 %v13671_v44, %v13657_v30  ;;  %v5775_v8 = vrot.slane %v5774_v29, 4 }
 0x699   : > { %v9616_v9 = vcombine.low %v5694_v57, %v5712_v20  ;;  %v5739_v34 = vrot.slane %v5738_v40, 4  ;;  %v5721_v59 = vrot.slane %v5720_v49, 4  ;;  %v5788_v22 = vrot.slane %v5786_v13, 5  ;;  %v11149_v49 = vld [vmem:[#allocation24 + $0xc] ss:$0 sps:$4 sm:$0x33]  }
 0x69a   : > { %v5756_v18 = vor.u32 %v5755_v27, %v5752_v6  ;;  %v5791_v39 = vrot.slane %v5789_v12, 6  ;;  %v5765_v35 = vor.u32 %v5764_v24, %v5761_v56  ;;  %v5810_v44 = vor.u32 %v5809_v47, %v5806_v0  ;;  %v11150_v57 = vld [vmem:[#allocation2 + $0x10] ss:$12 sps:$4 sm:$0xff]  }
 0x69b   : > { %v5748_v30 = vsel %vm13009_vm6, %v5739_v34, %v5747_v43  ;;  %v5815_v58 = vrot.slane %v5813_v55, 5  ;;  %v14580_v15 = vshll.u32 %v13664_v25, 16  ;;  %v5730_v10 = vsel %vm13009_vm6, %v5721_v59, %v5729_v63  ;;  %10359 = vmatprep.mubr.msk.bf16.mxu1 %vm2684_vm13, %v11150_v57 }
 0x69c   : > { %v5757_v61 = vrot.slane %v5756_v18, 4  ;;  %v5792_v53 = vor.u32 %v5791_v39, %v5788_v22  ;;  %v9617_v55 = vcombine.low %v5730_v10, %v5748_v30  ;;  %v5811_v6 = vrot.slane %v5810_v44, 4  ;;  %v11151_v18 = vld [vmem:[#allocation24] sm:$0x7f]  }
 0x69d   : > { %10340 = vmatmul.mubr.msk.bf16.vlgmr.msra.gmra.mrb[16].mxu0 %vm1406_vm14, %v9608_v41  ;;  %v5782_v41 = vrot.slane %v5780_v3, 6  ;;  %v5818_v3 = vrot.slane %v14580_v15, 6  ;;  %v6017_v13 = vrot.slane %v11149_v49, 3  ;;  %v11157_v10 = vld [vmem:[#allocation24 + $0x14] ss:$0 sps:$4 sm:$0x11]  }
 0x69e   : > { %10348 = vmatpush3.bf16.msra.mxu0 %v5853_v32  ;;  %10343 = vmatprep.mubr.msk.bf16.mxu0 %vm1406_vm14, %v9609_v16  ;;  %v5675_v32 = vld [vmem:[#allocation2 + $0x74] sm:$0x3]  ;;  %v5766_v25 = vsel %vm13009_vm6, %v5757_v61, %v5765_v35  ;;  %v5793_v42 = vrot.slane %v5792_v53, 4  ;;  %v11162_v49 = vld [vmem:[#allocation24 + $0x14] sm:$0xfe]  }
 0x69f   : > { %v5783_v26 = vor.u32 %v5782_v41, %v5779_v14  ;;  %v5795_v60 = vshrl.u32 %v5675_v32, 16  ;;  %v5798_v48 = vshll.u32 %v5675_v32, 16  ;;  %v5819_v27 = vor.u32 %v5818_v3, %v5815_v58  ;;  %v11156_v3 = vld [vmem:[#allocation24 + $0xc] sm:$0xfc]  }
 0x6a0   : > { %v6016_v32 = vrot.slane %v11148_v51, 3 }
 0x6a1   : > { %v5784_v36 = vsel %vm13009_vm6, %v5775_v8, %v5783_v26  ;;  %v5797_v43 = vrot.slane %v5795_v60, 5  ;;  %v5800_v17 = vrot.slane %v5798_v48, 6  ;;  %v5820_v52 = vsel %vm13009_vm6, %v5811_v6, %v5819_v27 }
 0x6a2   : > { %v9618_v50 = vcombine.low %v5766_v25, %v5784_v36  ;;  %v6018_v12 = vsel %vm2680_vm7, %v6016_v32, %v6017_v13  ;;  %v6243_v6 = vrot.slane %v11156_v3, 2  ;;  %v6369_v13 = vrot.slane %v11162_v49, 1  ;;  %v13833_v49 = vld [vmem:[#allocation2 + $0x30] sm:$0x8] }
 0x6a3   : > { %v5801_v40 = vor.u32 %v5800_v17, %v5797_v43  ;;  %10823 = vmatprep.subr.msk.bf16.mxu1 %vm2697_vm0, %v6018_v12 }
 0x6a5   : > { %10344 = vmatmul.mubr.msk.bf16.gmra.mrb[20].mxu0 %vm1406_vm14, %v9610_v33  ;;  %v5802_v29 = vsel %vm13009_vm6, %v5793_v42, %v5801_v40  ;;  %v6032_v33 = vsel %vm2697_vm0, %v6018_v12, 0  ;;  %v6244_v42 = vrot.slane %v11157_v10, 2 }
 0x6a6   : > { %v3573_v16 = vpop.permute.xlu1 %3572  ;;  %10349 = vmatprep.mubr.msk.bf16.mxu0 %vm1406_vm14, %v9616_v9  ;;  %v9619_v14 = vcombine.low %v5802_v29, %v5820_v52  ;;  %10358 = vmatpush3.bf16.msra.mxu1 %v6032_v33  ;;  %v9625_v9 = vld [vmem:[#allocation22] ss:$0 sm:$0xff]  ;;  %v6137_v52 = vsel %vm2697_vm0, %v11151_v18, 0 }
 0x6a7   : > { %3595 = vst.msk [vmem:[%s12463_s20 + $0x8] sm:$0xf] %vm3592_vm11, %v3573_v16  ;;  %10824 = vmatprep.subr.msk.bf16.mxu1 %vm2697_vm0, %v11151_v18 }
 0x6a8   : > { %v3575_v38 = vpop.permute.xlu0 %3574 }
 0x6a9   : > { %3596 = vst.msk [vmem:[%s12463_s20 + $0xc] sm:$0xf] %vm3592_vm11, %v3575_v38 }
 0x6aa   : > { %v3569_v46 = vpop.permute.xlu1 %3568 }
 0x6ab   : > { %3593 = vst.msk [vmem:[%s12463_s20] sm:$0xf] %vm3592_vm11, %v3569_v46 }
 0x6ac   : > { %v3571_v56 = vpop.permute.xlu0 %3570 }
 0x6ad   : > { %3594 = vst.msk [vmem:[%s12463_s20 + $0x4] sm:$0xf] %vm3592_vm11, %v3571_v56  ;;  %10350 = vmatmul.mubr.msk.bf16.vlgmr.msra.gmra.mrb[16].mxu0 %vm1406_vm14, %v9617_v55 }
 0x6ae   : > { %v3581_v24 = vpop.permute.xlu1 %3580  ;;  %10353 = vmatprep.mubr.msk.bf16.mxu0 %vm1406_vm14, %v9618_v50 }
 0x6af   : > { %3599 = vst.msk [vmem:[%s12463_s20 + $0x18] sm:$0xf] %vm3592_vm11, %v3581_v24 }
 0x6b0   : > { %v3583_v21 = vpop.permute.xlu0 %3582 }
 0x6b1   : > { %3600 = vst.msk [vmem:[%s12463_s20 + $0x1c] sm:$0xf] %vm3592_vm11, %v3583_v21 }
 0x6b2   : > { %v3577_v20 = vpop.permute.xlu1 %3576 }
 0x6b3   : > { %3597 = vst.msk [vmem:[%s12463_s20 + $0x10] sm:$0xf] %vm3592_vm11, %v3577_v20 }
 0x6b4   : > { %v3579_v41 = vpop.permute.xlu0 %3578 }
 0x6b5   : > { %3598 = vst.msk [vmem:[%s12463_s20 + $0x14] sm:$0xf] %vm3592_vm11, %v3579_v41  ;;  %10354 = vmatmul.mubr.msk.bf16.gmra.mrb[20].mxu0 %vm1406_vm14, %v9619_v14  ;;  %v6245_v14 = vsel %vm1419_vm10, %v6243_v6, %v6244_v42  ;;  %v11155_v41 = vld [vmem:[#allocation2 + $0x4] ss:$12 sps:$4 sm:$0xff]   ;;  %vm8411_vm14 = vcmask 125952  }
 0x6b6   : > { %v6259_v32 = vsel %vm2697_vm0, %v6245_v14, 0  ;;  %v11187_v42 = vld [vmem:[#allocation27 + $0x4] sm:$0xf8]  }
 0x780   : > { %v10351_v34 = vpop.f32.mrb[16].mxu0 }
 0x781   : > { %v5937_v0 = vadd.f32 %v10351_v34, %v9625_v9  ;;  %v5889_v47 = vpop.f32.mrb[17].mxu0  ;;  %v6383_v34 = vsel %vm2697_vm0, %v6369_v13, 0 }
 0x782   : > { %v5935_v63 = vadd.f32 %v9625_v9, %v5889_v47  ;;  %v10352_v8 = vpop.f32.mrb[18].mxu0 }
 0x783   : > { %v5945_v26 = vmax.f32 %v5937_v0, 0.0  ;;  %v5938_v60 = vadd.f32 %v10352_v8, %v9625_v9  ;;  %v5892_v16 = vpop.f32.mrb[19].mxu0  ;;  %v11167_v0 = vld [vmem:[#allocation24 + $0x1c] sm:$0x7f]   ;;  %v11172_v8 = vld [vmem:[#allocation24 + $0x20] sm:$0xf8]  }
 0x784   : > { %v5943_v59 = vmax.f32 %v5935_v63, 0.0  ;;  %v5936_v22 = vadd.f32 %v9625_v9, %v5892_v16  ;;  %v6620_v16 = vrot.slane %v11172_v8, 3  ;;  %v13843_v8 = vld [vmem:[#allocation2 + $0x60] sm:$0x8] }
 0x785   : > { %v5953_v39 = vpack.c.bf16 %v5945_v26, %v5945_v26  ;;  %v5946_v48 = vmax.f32 %v5938_v60, 0.0  ;;  %v11173_v60 = vld [vmem:[#allocation24 + $0x28] ss:$0 sps:$4 sm:$0x33]  }
 0x786   : > { %v5951_v61 = vpack.c.bf16 %v5943_v59, %v5943_v59  ;;  %v5944_v35 = vmax.f32 %v5936_v22, 0.0  ;;  %v6621_v59 = vrot.slane %v11173_v60, 3  ;;  %v13845_v60 = vld [vmem:[#allocation2 + $0x6c] sm:$0x8] }
 0x787   : > { %5961 = vst.msk [vmem:[#allocation2 + $0x40] sm:$0xf] %vm2621_vm3, %v5953_v39  ;;  %v5954_v38 = vpack.c.bf16 %v5946_v48, %v5946_v48  ;;  %v6506_v39 = vsel %vm2697_vm0, %v11167_v0, 0 }
 0x788   : > { %5959 = vst.msk [vmem:[#allocation2 + $0x28] sm:$0xf] %vm2621_vm3, %v5951_v61  ;;  %v5952_v30 = vpack.c.bf16 %v5944_v35, %v5944_v35  ;;  %v10355_v44 = vpop.f32.mrb[20].mxu0  ;;  %v6622_v61 = vsel %vm2680_vm7, %v6620_v16, %v6621_v59  ;;  %v13847_v16 = vld [vmem:[#allocation2 + $0x78] sm:$0x8] }
 0x789   : > { %5962 = vst.msk [vmem:[#allocation2 + $0x4c] sm:$0xf] %vm2621_vm3, %v5954_v38  ;;  %v5941_v58 = vadd.f32 %v10355_v44, %v9625_v9  ;;  %v5905_v15 = vpop.f32.mrb[21].mxu0  ;;  %v11178_v38 = vld [vmem:[#allocation24 + $0x28] sm:$0xfc]  }
 0x78a   : > { %5960 = vst.msk [vmem:[#allocation2 + $0x34] sm:$0xf] %vm2621_vm3, %v5952_v30  ;;  %v5939_v36 = vadd.f32 %v9625_v9, %v5905_v15  ;;  %v10356_v46 = vpop.f32.mrb[22].mxu0  ;;  %v11179_v44 = vld [vmem:[#allocation24 + $0x30] ss:$0 sps:$4 sm:$0x11]  }
 0x78b   : > { %v5949_v53 = vmax.f32 %v5941_v58, 0.0  ;;  %v5942_v43 = vadd.f32 %v10356_v46, %v9625_v9  ;;  %v5908_v17 = vpop.f32.mrb[23].mxu0  ;;  %v6750_v58 = vrot.slane %v11178_v38, 2  ;;  %v6751_v15 = vrot.slane %v11179_v44, 2 }
 0x78c   : > { %v5947_v55 = vmax.f32 %v5939_v36, 0.0  ;;  %v5940_v25 = vadd.f32 %v9625_v9, %v5908_v17  ;;  %v6636_v36 = vsel %vm2697_vm0, %v6622_v61, 0 }
 0x78d   : > { %v5957_v56 = vpack.c.bf16 %v5949_v53, %v5949_v53  ;;  %v5950_v50 = vmax.f32 %v5942_v43, 0.0  ;;  %v6752_v10 = vsel %vm1419_vm10, %v6750_v58, %v6751_v15  ;;  %v8547_v15 = vld [vmem:[#allocation3 + $0x30] sm:$0x8] }
 0x78e   : > { %v5955_v27 = vpack.c.bf16 %v5947_v55, %v5947_v55  ;;  %v5948_v24 = vmax.f32 %v5940_v25, 0.0  ;;  %v6766_v55 = vsel %vm2697_vm0, %v6752_v10, 0 }
 0x78f   : > { %5965 = vst.msk [vmem:[#allocation2 + $0x70] sm:$0xf] %vm2621_vm3, %v5957_v56  ;;  %v5958_v40 = vpack.c.bf16 %v5950_v50, %v5950_v50  ;;  %v11158_v12 = vld [vmem:[#allocation2 + $0x1c] ss:$12 sps:$4 sm:$0xff]  }
 0x790   : > { %5963 = vst.msk [vmem:[#allocation2 + $0x58] sm:$0xf] %vm2621_vm3, %v5955_v27  ;;  %v5956_v21 = vpack.c.bf16 %v5948_v24, %v5948_v24  ;;  %v11153_v29 = vld [vmem:[#allocation2 + $0x40] ss:$12 sps:$4 sm:$0xff]   ;;  %v11161_v18 = vld [vmem:[#allocation2 + $0x1c] ss:$12 sps:$4 sm:$0xff]  }
 0x791   : > { %5966 = vst.msk [vmem:[#allocation2 + $0x7c] sm:$0xf] %vm2621_vm3, %v5958_v40  ;;  %v11152_v20 = vld [vmem:[#allocation2 + $0x28] ss:$12 sps:$4 sm:$0xff]   ;;  %v11168_v22 = vld [vmem:[#allocation2 + $0x40] ss:$12 sps:$4 sm:$0xff]  }
 0x792   : > { %5964 = vst.msk [vmem:[#allocation2 + $0x64] sm:$0xf] %vm2621_vm3, %v5956_v21  ;;  %10360 = vmatmul.mubr.msk.bf16.vlgmr.msra.gmra.mrb[16].mxu1 %vm2684_vm13, %v11152_v20  ;;  %v11159_v33 = vld [vmem:[#allocation2 + $0x34] ss:$12 sps:$4 sm:$0xff]   ;;  %v7121_v21 = vrot.slane %v11187_v42, 3 }
 0x793   : > { %10368 = vmatpush3.bf16.msra.mxu1 %v6137_v52  ;;  %10363 = vmatprep.mubr.msk.bf16.mxu1 %vm2684_vm13, %v11153_v29  ;;  %v11163_v9 = vld [vmem:[#allocation2 + $0x34] ss:$12 sps:$4 sm:$0xff]   ;;  %v11188_v40 = vld [vmem:[#allocation27 + $0xc] ss:$0 sps:$4 sm:$0x33]  }
 0x794   : > { %10825 = vmatprep.subr.msk.bf16.mxu1 %vm2697_vm0, %v6245_v14  ;;  %v11166_v26 = vld [vmem:[#allocation2 + $0x28] ss:$12 sps:$4 sm:$0xff]   ;;  %v11177_v43 = vld [vmem:[#allocation2 + $0x40] ss:$12 sps:$4 sm:$0xff]   ;;  %v7122_v52 = vrot.slane %v11188_v40, 3 }
 0x795   : > { %v11171_v30 = vld [vmem:[#allocation2 + $0x34] ss:$12 sps:$4 sm:$0xff]  }
 0x796   : > { %v11182_v56 = vld [vmem:[#allocation2 + $0x88] ss:$12 sps:$4 sm:$0xff]   ;;  %v7123_v20 = vsel %vm2680_vm7, %v7121_v21, %v7122_v52  ;;  %v11189_v14 = vld [vmem:[#allocation27] sm:$0x7f]  }
 0x797   : > { %v11160_v57 = vld [vmem:[#allocation2 + $0x4c] ss:$12 sps:$4 sm:$0xff]   ;;  %v11186_v24 = vld [vmem:[#allocation2 + $0x94] ss:$12 sps:$4 sm:$0xff]   ;;  %10830 = vmatprep.subr.msk.bf16.mxu0 %vm2697_vm0, %v7123_v20  ;;  %v7137_v29 = vsel %vm2697_vm0, %v7123_v20, 0 }
 0x798   : > { %v11164_v47 = vld [vmem:[#allocation2 + $0x4c] ss:$12 sps:$4 sm:$0xff]   ;;  %v11170_v35 = vld [vmem:[#allocation2 + $0x70] ss:$12 sps:$4 sm:$0xff]   ;;  %10428 = vmatpush3.bf16.msra.mxu0 %v7137_v29  ;;  %v8402_v40 = vld [vmem:[%s12421_s21] sm:$0xf] }
 0x799   : > { %v11154_v51 = vld [vmem:[#allocation2 + $0x58] ss:$12 sps:$4 sm:$0xff]   ;;  %v11176_v53 = vld [vmem:[#allocation2 + $0x7c] ss:$12 sps:$4 sm:$0xff]   ;;  %10831 = vmatprep.subr.msk.bf16.mxu0 %vm2697_vm0, %v11189_v14  ;;  %8412 = vst.msk [vmem:[#allocation3 + $0x10] sm:$0xf] %vm8411_vm14, %v8402_v40 }
 0x79a   : > { %10364 = vmatmul.mubr.msk.bf16.gmra.mrb[20].mxu1 %vm2684_vm13, %v11154_v51  ;;  %v11165_v63 = vld [vmem:[#allocation2 + $0x64] ss:$12 sps:$4 sm:$0xff]   ;;  %v11174_v3 = vld [vmem:[#allocation2 + $0x4c] ss:$12 sps:$4 sm:$0xff]   ;;  %v11185_v27 = vld [vmem:[#allocation2 + $0x7c] ss:$12 sps:$4 sm:$0xff]  }
 0x79b   : > { %10369 = vmatprep.mubr.msk.bf16.mxu1 %vm2684_vm13, %v11155_v41  ;;  %v11169_v48 = vld [vmem:[#allocation2 + $0x58] ss:$12 sps:$4 sm:$0xff]   ;;  %v11181_v25 = vld [vmem:[#allocation2 + $0x70] ss:$12 sps:$4 sm:$0xff]   ;;  %v8404_v52 = vld [vmem:[%s12421_s21 + $0x8] sm:$0xf] }
 0x79c   : > { %v11175_v46 = vld [vmem:[#allocation2 + $0x64] ss:$12 sps:$4 sm:$0xff]   ;;  %v11183_v50 = vld [vmem:[#allocation2 + $0x4c] ss:$12 sps:$4 sm:$0xff]   ;;  %v8420_v20 = vld [vmem:[#allocation3] sm:$0x8] }
 0x79d   : > { %v11180_v17 = vld [vmem:[#allocation2 + $0x58] ss:$12 sps:$4 sm:$0xff]   ;;  %v8422_v29 = vld [vmem:[#allocation3 + $0x8] sm:$0x1]  ;;  %8414 = vst.msk [vmem:[#allocation3 + $0x28] sm:$0xf] %vm8411_vm14, %v8404_v52 }
 0x79e   : > { %v11184_v6 = vld [vmem:[#allocation2 + $0x64] ss:$12 sps:$4 sm:$0xff]   ;;  %v11200_v42 = vld [vmem:[#allocation30] sm:$0xff]   ;;  %v8544_v40 = vld [vmem:[#allocation3 + $0x24] sm:$0x8] }
 0x79f   : > { %v6880_v41 = vld [vmem:[#allocation2 + $0x24] sm:$0xc]  ;;  %v8546_v52 = vld [vmem:[#allocation3 + $0x2c] sm:$0x1] }
 0x7a0   : > { %v13831_v51 = vld [vmem:[#allocation2 + $0x24] sm:$0x8] }
 0x7a1   : > { %v8403_v21 = vld [vmem:[%s12421_s21 + $0x4] sm:$0xf] }
 0x7a2   : > { %10370 = vmatmul.mubr.msk.bf16.vlgmr.msra.gmra.mrb[16].mxu1 %vm2684_vm13, %v11158_v12  ;;  %8413 = vst.msk [vmem:[#allocation3 + $0x1c] sm:$0xf] %vm8411_vm14, %v8403_v21 }
 0x7a3   : > { %10378 = vmatpush3.bf16.msra.mxu1 %v6259_v32  ;;  %10373 = vmatprep.mubr.msk.bf16.mxu1 %vm2684_vm13, %v11159_v33  ;;  %v6897_v32 = vshrl.u32 %v6880_v41, 16 }
 0x7a4   : > { %10826 = vmatprep.subr.msk.bf16.mxu1 %vm2697_vm0, %v6369_v13  ;;  %v6900_v13 = vshll.u32 %v6880_v41, 16  ;;  %v8425_v41 = vld [vmem:[#allocation3 + $0x14] sm:$0x1] }
 0x7a9   : > { %v8469_v58 = vld [vmem:[#allocation3 + $0x10] ss:$12 sps:$4 sm:$0xff]  }
 0x7aa   : > { %10374 = vmatmul.mubr.msk.bf16.gmra.mrb[20].mxu1 %vm2684_vm13, %v11160_v57  ;;  %v6882_v57 = vld [vmem:[#allocation2 + $0x30] sm:$0xc] }
 0x7ab   : > { %10379 = vmatprep.mubr.msk.bf16.mxu1 %vm2684_vm13, %v11161_v18  ;;  %v13837_v18 = vld [vmem:[#allocation2 + $0x3c] sm:$0x8]  ;;  %v6915_v59 = vshrl.u32 %v6882_v57, 16  ;;  %v8542_v33 = vld [vmem:[#allocation3 + $0x1c] ss:$12 sps:$4 sm:$0xff]  }
 0x7b2   : > { %10380 = vmatmul.mubr.msk.bf16.vlgmr.msra.gmra.mrb[16].mxu1 %vm2684_vm13, %v11163_v9  ;;  %v13839_v9 = vld [vmem:[#allocation2 + $0x48] sm:$0x8] }
 0x7b3   : > { %10388 = vmatpush3.bf16.msra.mxu1 %v6383_v34  ;;  %10383 = vmatprep.mubr.msk.bf16.mxu1 %vm2684_vm13, %v11164_v47  ;;  %v6899_v34 = vrot.slane %v6897_v32, 6  ;;  %v6884_v47 = vld [vmem:[#allocation2 + $0x3c] sm:$0xc]  ;;  %v8444_v32 = vunpack.c.l.bf16 %v8420_v20 }
 0x7b4   : > { %10827 = vmatprep.subr.msk.bf16.mxu1 %vm2697_vm0, %v11167_v0  ;;  %v6902_v0 = vrot.slane %v6900_v13, 7  ;;  %v6936_v38 = vshll.u32 %v6884_v47, 16  ;;  %v8446_v13 = vunpack.c.l.bf16 %v8422_v29  ;;  %v8568_v29 = vunpack.c.l.bf16 %v8544_v40  ;;  %v8476_v40 = vld [vmem:[#allocation3 + $0x2c] sm:$0x1] }
 0x7ba   : > { %10384 = vmatmul.mubr.msk.bf16.gmra.mrb[20].mxu1 %vm2684_vm13, %v11165_v63  ;;  %v13841_v63 = vld [vmem:[#allocation2 + $0x54] sm:$0x8] }
 0x7bb   : > { %10389 = vmatprep.mubr.msk.bf16.mxu1 %vm2684_vm13, %v11166_v26  ;;  %v6886_v26 = vld [vmem:[#allocation2 + $0x48] sm:$0xc] }
 0x7bc   : > { %v6954_v44 = vshll.u32 %v6886_v26, 16 }
 0x7c2   : > { %10390 = vmatmul.mubr.msk.bf16.vlgmr.msra.gmra.mrb[16].mxu1 %vm2684_vm13, %v11168_v22  ;;  %v6918_v22 = vshll.u32 %v6882_v57, 16  ;;  %v8468_v57 = vld [vmem:[#allocation3 + $0xc] sm:$0x8] }
 0x7c3   : > { %10398 = vmatpush3.bf16.msra.mxu1 %v6506_v39  ;;  %10393 = vmatprep.mubr.msk.bf16.mxu1 %vm2684_vm13, %v11169_v48  ;;  %v11190_v39 = vld [vmem:[#allocation27 + $0xc] sm:$0xfc]   ;;  %v11191_v48 = vld [vmem:[#allocation27 + $0x14] ss:$0 sps:$4 sm:$0x11]  }
 0x7c4   : > { %10828 = vmatprep.subr.msk.bf16.mxu1 %vm2697_vm0, %v6622_v61  ;;  %v6933_v61 = vshrl.u32 %v6884_v47, 16  ;;  %v8449_v47 = vunpack.c.l.bf16 %v8425_v41  ;;  %v8406_v41 = vld [vmem:[%s12421_s21 + $0x10] sm:$0xf] }
 0x7c5   : > { %8416 = vst.msk [vmem:[#allocation3 + $0x40] sm:$0xf] %vm8411_vm14, %v8406_v41  ;;  %v8496_v41 = vunpack.c.h.bf16 %v8469_v58 }
 0x7ca   : > { %10394 = vmatmul.mubr.msk.bf16.gmra.mrb[20].mxu1 %vm2684_vm13, %v11170_v35  ;;  %v6903_v35 = vor.u32 %v6902_v0, %v6899_v34  ;;  %v8549_v34 = vld [vmem:[#allocation3 + $0x38] sm:$0x1] }
 0x7cb   : > { %10399 = vmatprep.mubr.msk.bf16.mxu1 %vm2684_vm13, %v11171_v30  ;;  %v6951_v30 = vshrl.u32 %v6886_v26, 16  ;;  %v8470_v26 = vld [vmem:[#allocation3 + $0x14] sm:$0x1] }
 0x7d2   : > { %10400 = vmatmul.mubr.msk.bf16.vlgmr.msra.gmra.mrb[16].mxu1 %vm2684_vm13, %v11174_v3  ;;  %v13852_v3 = vsel %vm2697_vm0, %v11189_v14, 0  ;;  %v8423_v14 = vld [vmem:[#allocation3 + $0xc] sm:$0x8] }
 0x7d3   : > { %10408 = vmatpush3.bf16.msra.mxu1 %v6636_v36  ;;  %10403 = vmatprep.mubr.msk.bf16.mxu1 %vm2684_vm13, %v11175_v46  ;;  %v8447_v0 = vunpack.c.l.bf16 %v8423_v14  ;;  %v8405_v14 = vld [vmem:[%s12421_s21 + $0xc] sm:$0xf] }
 0x7d4   : > { %10829 = vmatprep.subr.msk.bf16.mxu1 %vm2697_vm0, %v6752_v10  ;;  %8415 = vst.msk [vmem:[#allocation3 + $0x34] sm:$0xf] %vm8411_vm14, %v8405_v14  ;;  %v8493_v14 = vunpack.c.l.bf16 %v8469_v58  ;;  %v8408_v58 = vld [vmem:[%s12421_s21 + $0x18] sm:$0xf] }
 0x7d5   : > { %8418 = vst.msk [vmem:[#allocation3 + $0x58] sm:$0xf] %vm8411_vm14, %v8408_v58  ;;  %v8552_v58 = vld [vmem:[#allocation3 + $0x44] sm:$0x1] }
 0x7da   : > { %10404 = vmatmul.mubr.msk.bf16.gmra.mrb[20].mxu1 %vm2684_vm13, %v11176_v53  ;;  %v8421_v53 = vld [vmem:[#allocation3 + $0x4] ss:$12 sps:$4 sm:$0xff]  }
 0x7db   : > { %10409 = vmatprep.mubr.msk.bf16.mxu1 %vm2684_vm13, %v11177_v43  ;;  %v13858_v43 = vrot.slane %v6915_v59, 6  ;;  %v8471_v59 = vld [vmem:[#allocation3 + $0x18] sm:$0x8]  ;;  %v8475_v7 = vld [vmem:[#allocation3 + $0x28] ss:$12 sps:$4 sm:$0xff]  }
 0x7e2   : > { %10410 = vmatmul.mubr.msk.bf16.vlgmr.msra.gmra.mrb[16].mxu1 %vm2684_vm13, %v11180_v17  ;;  %v13860_v17 = vrot.slane %v6918_v22, 7  ;;  %v8473_v22 = vld [vmem:[#allocation3 + $0x20] sm:$0x1] }
 0x7e3   : > { %10418 = vmatpush3.bf16.msra.mxu1 %v6766_v55  ;;  %10413 = vmatprep.mubr.msk.bf16.mxu1 %vm2684_vm13, %v11181_v25  ;;  %v7436_v55 = vrot.slane %v11190_v39, 2  ;;  %v7437_v25 = vrot.slane %v11191_v48, 2  ;;  %v8492_v39 = vunpack.c.l.bf16 %v8468_v57  ;;  %v8570_v57 = vunpack.c.l.bf16 %v8546_v52 }
 0x7e4   : > { %10497 = vmatprep.subr.bf16.mxu1 %v11200_v42  ;;  %v8448_v52 = vunpack.c.h.bf16 %v8421_v53 }
 0x7e5   : > { %v13881_v48 = vsel %vm1419_vm10, %v7436_v55, %v7437_v25  ;;  %v8516_v21 = vadd.f32 %v8492_v39, %v8444_v32  ;;  %v8426_v55 = vld [vmem:[#allocation3 + $0x18] sm:$0x8]  ;;  %v8428_v25 = vld [vmem:[#allocation3 + $0x20] sm:$0x1] }
 0x7e6   : > { %v8450_v32 = vunpack.c.l.bf16 %v8426_v55  ;;  %v8452_v39 = vunpack.c.l.bf16 %v8428_v25  ;;  %v8566_v55 = vunpack.c.l.bf16 %v8542_v33  ;;  %v8569_v25 = vunpack.c.h.bf16 %v8542_v33 }
 0x7e7   : > { %v8571_v33 = vunpack.c.l.bf16 %v8547_v15 }
 0x7ea   : > { %10414 = vmatmul.mubr.msk.bf16.gmra.mrb[20].mxu1 %vm2684_vm13, %v11182_v56  ;;  %v13862_v56 = vrot.slane %v6933_v61, 6  ;;  %v8494_v61 = vunpack.c.l.bf16 %v8470_v26  ;;  %v8429_v26 = vld [vmem:[#allocation3 + $0x24] sm:$0x8] }
 0x7eb   : > { %10419 = vmatprep.mubr.msk.bf16.mxu1 %vm2684_vm13, %v11183_v50  ;;  %v13864_v50 = vrot.slane %v6903_v35, 4  ;;  %v8495_v35 = vunpack.c.l.bf16 %v8471_v59 }
 0x7ec   : > { %v8518_v10 = vadd.f32 %v8494_v61, %v8446_v13 }
 0x7ed   : > { %v8519_v46 = vadd.f32 %v8495_v35, %v8447_v0  ;;  %v8477_v35 = vld [vmem:[#allocation3 + $0x30] sm:$0x8] }
 0x7ef   : > { %v8592_v0 = vadd.f32 %v8568_v29, %v8519_v46  ;;  %v8520_v46 = vadd.f32 %v8496_v41, %v8448_v52  ;;  %v8407_v29 = vld [vmem:[%s12421_s21 + $0x14] sm:$0xf]  ;;  %v8550_v41 = vld [vmem:[#allocation3 + $0x3c] sm:$0x8] }
 0x7f0   : > { %8417 = vst.msk [vmem:[#allocation3 + $0x4c] sm:$0xf] %vm8411_vm14, %v8407_v29 }
 0x7f1   : > { %v8593_v5 = vadd.f32 %v8569_v25, %v8520_v46 }
 0x7f2   : > { %10420 = vmatmul.mubr.msk.bf16.vlgmr.msra.gmra.mrb[16].mxu1 %vm2684_vm13, %v11184_v6  ;;  %v13866_v6 = vrot.slane %v6936_v38, 7  ;;  %v8497_v38 = vunpack.c.l.bf16 %v8473_v22  ;;  %v8431_v22 = vld [vmem:[#allocation3 + $0x2c] sm:$0x1] }
 0x7f3   : > { %10423 = vmatprep.mubr.msk.bf16.mxu1 %vm2684_vm13, %v11185_v27  ;;  %v13868_v27 = vrot.slane %v6951_v30, 6  ;;  %10498 = vmatpush3.bf16.msra.mxu1 %v11200_v42  ;;  %v8541_v30 = vld [vmem:[#allocation3 + $0x18] sm:$0x8]  ;;  %v8455_v61 = vunpack.c.l.bf16 %v8431_v22  ;;  %v8501_v22 = vunpack.c.l.bf16 %v8477_v35  ;;  %v8664_v35 = vrot.slane %v8593_v5, 2 }
 0x7f4   : > { %v8565_v42 = vunpack.c.l.bf16 %v8541_v30  ;;  %v8521_v36 = vadd.f32 %v8497_v38, %v8449_v47  ;;  %v8453_v30 = vunpack.c.l.bf16 %v8429_v26  ;;  %v8445_v38 = vunpack.c.l.bf16 %v8421_v53 }
 0x7f5   : > { %v8500_v53 = vunpack.c.l.bf16 %v8476_v40 }
 0x7f6   : > { %v8589_v59 = vadd.f32 %v8565_v42, %v8516_v21  ;;  %v8594_v47 = vadd.f32 %v8570_v57, %v8521_v36  ;;  %v8427_v21 = vld [vmem:[#allocation3 + $0x1c] ss:$12 sps:$4 sm:$0xff]   ;;  %v8479_v42 = vld [vmem:[#allocation3 + $0x38] sm:$0x1]  ;;  %v8525_v29 = vadd.f32 %v8501_v22, %v8453_v30 }
 0x7f7   : > { %v8451_v36 = vunpack.c.l.bf16 %v8427_v21  ;;  %v8503_v4 = vunpack.c.l.bf16 %v8479_v42  ;;  %v8548_v42 = vld [vmem:[#allocation3 + $0x34] ss:$12 sps:$4 sm:$0xff]  }
 0x7f8   : > { %v8665_v12 = vrot.slane %v8594_v47, 2  ;;  %v8499_v47 = vunpack.c.l.bf16 %v8475_v7  ;;  %v8575_v30 = vunpack.c.h.bf16 %v8548_v42 }
 0x7f9   : > { %v8527_v25 = vadd.f32 %v8503_v4, %v8455_v61  ;;  %v8576_v4 = vunpack.c.l.bf16 %v8552_v58 }
 0x7fa   : > { %10424 = vmatmul.mubr.msk.bf16.gmra.mrb[20].mxu1 %vm2684_vm13, %v11186_v24  ;;  %v13870_v24 = vrot.slane %v6954_v44, 7  ;;  %v8543_v44 = vld [vmem:[#allocation3 + $0x20] sm:$0x1]  ;;  %v8523_v1 = vadd.f32 %v8499_v47, %v8451_v36  ;;  %v8432_v47 = vld [vmem:[#allocation3 + $0x30] sm:$0x8] }
 0x7fb   : > { %v8567_v20 = vunpack.c.l.bf16 %v8543_v44  ;;  %v8474_v44 = vld [vmem:[#allocation3 + $0x24] sm:$0x8]  ;;  %v8600_v22 = vadd.f32 %v8576_v4, %v8527_v25  ;;  %v8437_v25 = vld [vmem:[#allocation3 + $0x44] sm:$0x1] }
 0x7fc   : > { %v8498_v57 = vunpack.c.l.bf16 %v8474_v44  ;;  %v8622_v44 = vrot.slane %v8593_v5, 1 }
 0x7fd   : > { %v8591_v13 = vadd.f32 %v8567_v20, %v8518_v10  ;;  %v8517_v10 = vadd.f32 %v8493_v14, %v8445_v38  ;;  %v8454_v20 = vunpack.c.h.bf16 %v8427_v21  ;;  %v8502_v38 = vunpack.c.h.bf16 %v8475_v7 }
 0x7fe   : > { %v8522_v52 = vadd.f32 %v8498_v57, %v8450_v32  ;;  %v8524_v14 = vadd.f32 %v8500_v53, %v8452_v39  ;;  %v8640_v46 = vadd.f32 %v8622_v44, %v8593_v5  ;;  %v8666_v32 = vsel %vm1419_vm10, %v8664_v35, %v8665_v12  ;;  %v8409_v53 = vld [vmem:[%s12421_s21 + $0x1c] sm:$0xf] }
 0x7ff   : > { %v8662_v26 = vrot.slane %v8591_v13, 2  ;;  %v8590_v23 = vadd.f32 %v8566_v55, %v8517_v10  ;;  %v8573_v13 = vunpack.c.l.bf16 %v8549_v34  ;;  %v8526_v55 = vadd.f32 %v8502_v38, %v8454_v20  ;;  %8419 = vst.msk [vmem:[#allocation3 + $0x64] sm:$0xf] %vm8411_vm14, %v8409_v53 }
 0x800   : > { %v8639_v34 = vadd.f32 %v8622_v44, %v8592_v0  ;;  %v8572_v39 = vunpack.c.l.bf16 %v8548_v42  ;;  %v8574_v57 = vunpack.c.l.bf16 %v8550_v41  ;;  %v8704_v28 = vadd.f32 %v8666_v32, %v8640_v46  ;;  %v8481_v32 = vld [vmem:[#allocation3 + $0x40] ss:$12 sps:$4 sm:$0xff]  }
 0x801   : > { %v8621_v21 = vrot.slane %v8590_v23, 1  ;;  %v8661_v40 = vrot.slane %v8590_v23, 2  ;;  %v8599_v12 = vadd.f32 %v8575_v30, %v8526_v55 }
 0x802   : > { %v8703_v19 = vadd.f32 %v8664_v35, %v8639_v34  ;;  %v8738_v36 = vrot.slane %v8704_v28, 7  ;;  %v8598_v20 = vadd.f32 %v8574_v57, %v8525_v29  ;;  %v8671_v28 = vrot.slane %v8600_v22, 2 }
 0x803   : > { %v8637_v10 = vadd.f32 %v8621_v21, %v8589_v59  ;;  %v8638_v15 = vadd.f32 %v8621_v21, %v8590_v23  ;;  %v8663_v7 = vsel %vm1419_vm10, %v8661_v40, %v8662_v26  ;;  %v8595_v59 = vadd.f32 %v8571_v33, %v8522_v52 }
 0x804   : > { %v8596_v23 = vadd.f32 %v8572_v39, %v8523_v1  ;;  %v8737_v61 = vrot.slane %v8703_v19, 7  ;;  %v8597_v26 = vadd.f32 %v8573_v13, %v8524_v14  ;;  %v8624_v42 = vrot.slane %v8599_v12, 1  ;;  %v8435_v13 = vld [vmem:[#allocation3 + $0x3c] sm:$0x8]  ;;  %v8482_v39 = vld [vmem:[#allocation3 + $0x44] sm:$0x1] }
 0x805   : > { %v8701_v45 = vadd.f32 %v8661_v40, %v8637_v10  ;;  %v8702_v37 = vadd.f32 %v8663_v7, %v8638_v15  ;;  %v8433_v40 = vld [vmem:[#allocation3 + $0x34] ss:$12 sps:$4 sm:$0xff]   ;;  %v8670_v1 = vrot.slane %v8599_v12, 2  ;;  %v8456_v52 = vunpack.c.l.bf16 %v8432_v47  ;;  %v8480_v15 = vld [vmem:[#allocation3 + $0x3c] sm:$0x8] }
 0x806   : > { %v8739_v41 = vsel %vm1351_vm12, %v8737_v61, %v8738_v36  ;;  %v8623_v21 = vrot.slane %v8596_v23, 1  ;;  %v8667_v44 = vrot.slane %v8596_v23, 2  ;;  %v8668_v33 = vrot.slane %v8597_v26, 2  ;;  %v8553_v47 = vld [vmem:[#allocation3 + $0x48] sm:$0x8] }
 0x807   : > { %v8734_v0 = vrot.slane %v8701_v45, 7  ;;  %v8735_v5 = vrot.slane %v8702_v37, 7  ;;  %v8434_v45 = vld [vmem:[#allocation3 + $0x38] sm:$0x1]  ;;  %v8643_v14 = vadd.f32 %v8624_v42, %v8598_v20  ;;  %v8644_v29 = vadd.f32 %v8624_v42, %v8599_v12  ;;  %v8555_v42 = vld [vmem:[#allocation3 + $0x50] sm:$0x1] }
 0x808   : > { %v8641_v37 = vadd.f32 %v8623_v21, %v8595_v59  ;;  %v8642_v19 = vadd.f32 %v8623_v21, %v8596_v23  ;;  %v8669_v55 = vsel %vm1419_vm10, %v8667_v44, %v8668_v33  ;;  %v8457_v10 = vunpack.c.l.bf16 %v8433_v40  ;;  %v8483_v59 = vld [vmem:[#allocation3 + $0x48] sm:$0x8]  ;;  %v8485_v23 = vld [vmem:[#allocation3 + $0x50] sm:$0x1]  ;;  %v8556_v33 = vld [vmem:[#allocation3 + $0x54] sm:$0x8] }
 0x809   : > { %v8736_v38 = vsel %vm1351_vm12, %v8734_v0, %v8735_v5  ;;  %v8672_v34 = vsel %vm1419_vm10, %v8670_v1, %v8671_v28  ;;  %v8458_v7 = vunpack.c.l.bf16 %v8434_v45  ;;  %v8707_v57 = vadd.f32 %v8670_v1, %v8643_v14  ;;  %v8558_v28 = vld [vmem:[#allocation3 + $0x5c] sm:$0x1] }
 0x80a   : > { %v8766_v35 = vpack.c.bf16 %v8739_v41, %v8736_v38  ;;  %v8705_v46 = vadd.f32 %v8667_v44, %v8641_v37  ;;  %v8706_v58 = vadd.f32 %v8669_v55, %v8642_v19  ;;  %v8708_v53 = vadd.f32 %v8672_v34, %v8644_v29 }
 0x80b   : > { %v8459_v30 = vunpack.c.l.bf16 %v8435_v13  ;;  %v8460_v4 = vunpack.c.h.bf16 %v8433_v40  ;;  %v8461_v61 = vunpack.c.l.bf16 %v8437_v25  ;;  %v8504_v36 = vunpack.c.l.bf16 %v8480_v15  ;;  %v13901_v40 = vld [vmem:[#allocation2 + $0x54] sm:$0xc]  ;;  %v13904_v13 = vld [vmem:[#allocation2 + $0x60] sm:$0xc] }
 0x80c   : > { %10499 = vmatprep.mubr.msk.bf16.mxu1 %vm1001_vm8, %v8766_v35  ;;  %v8740_v0 = vrot.slane %v8705_v46, 7  ;;  %v8741_v5 = vrot.slane %v8706_v58, 7  ;;  %v8743_v26 = vrot.slane %v8707_v57, 7  ;;  %v8744_v20 = vrot.slane %v8708_v53, 7  ;;  %v8554_v35 = vld [vmem:[#allocation3 + $0x4c] ss:$12 sps:$4 sm:$0xff]  }
 0x80d   : > { %v8505_v12 = vunpack.c.l.bf16 %v8481_v32  ;;  %v8506_v22 = vunpack.c.l.bf16 %v8482_v39  ;;  %v8507_v41 = vunpack.c.l.bf16 %v8483_v59  ;;  %v8508_v21 = vunpack.c.h.bf16 %v8481_v32  ;;  %v13908_v57 = vld [vmem:[#allocation2 + $0x6c] sm:$0xc]  ;;  %v13912_v59 = vld [vmem:[#allocation25] ss:$0 sm:$0xff] }
 0x80e   : > { %v8742_v38 = vsel %vm1351_vm12, %v8740_v0, %v8741_v5  ;;  %v8509_v44 = vunpack.c.l.bf16 %v8485_v23  ;;  %v8745_v1 = vsel %vm1351_vm12, %v8743_v26, %v8744_v20  ;;  %v8528_v45 = vadd.f32 %v8504_v36, %v8456_v52 }
 0x80f   : > { %v8529_v37 = vadd.f32 %v8505_v12, %v8457_v10  ;;  %v8530_v19 = vadd.f32 %v8506_v22, %v8458_v7  ;;  %v8767_v14 = vpack.c.bf16 %v8745_v1, %v8742_v38  ;;  %v8531_v29 = vadd.f32 %v8507_v41, %v8459_v30 }
 0x810   : > { %v8532_v55 = vadd.f32 %v8508_v21, %v8460_v4  ;;  %v8533_v25 = vadd.f32 %v8509_v44, %v8461_v61  ;;  %v8577_v15 = vunpack.c.l.bf16 %v8553_v47  ;;  %v8578_v34 = vunpack.c.l.bf16 %v8554_v35 }
 0x811   : > { %v8579_v46 = vunpack.c.l.bf16 %v8555_v42  ;;  %v8580_v58 = vunpack.c.l.bf16 %v8556_v33  ;;  %v6969_v32 = vshrl.u32 %v13901_v40, 16  ;;  %v6972_v39 = vshll.u32 %v13901_v40, 16  ;;  %10500 = vmatmul.mubr.msk.bf16.vlgmr.msra.gmra.mrb[24].mxu1 %vm1001_vm8, %v8767_v14 }
 0x812   : > { %v8581_v52 = vunpack.c.h.bf16 %v8554_v35  ;;  %v8582_v10 = vunpack.c.l.bf16 %v8558_v28  ;;  %v6987_v7 = vshrl.u32 %v13904_v13, 16  ;;  %v8601_v53 = vadd.f32 %v8577_v15, %v8528_v45 }
 0x813   : > { %v8602_v30 = vadd.f32 %v8578_v34, %v8529_v37  ;;  %v8603_v4 = vadd.f32 %v8579_v46, %v8530_v19  ;;  %v6990_v23 = vshll.u32 %v13904_v13, 16  ;;  %v8604_v0 = vadd.f32 %v8580_v58, %v8531_v29 }
 0x814   : > { %v8605_v5 = vadd.f32 %v8581_v52, %v8532_v55  ;;  %v8606_v61 = vadd.f32 %v8582_v10, %v8533_v25  ;;  %v7005_v36 = vshrl.u32 %v13908_v57, 16  ;;  %v7008_v47 = vshll.u32 %v13908_v57, 16 }
 0x815   : > { %v8625_v26 = vrot.slane %v8602_v30, 1  ;;  %v8673_v20 = vrot.slane %v8602_v30, 2  ;;  %v8674_v12 = vrot.slane %v8603_v4, 2 }
 0x816   : > { %v8626_v38 = vrot.slane %v8605_v5, 1  ;;  %v8676_v41 = vrot.slane %v8605_v5, 2  ;;  %v8677_v21 = vrot.slane %v8606_v61, 2 }
 0x817   : > { %v8645_v42 = vadd.f32 %v8625_v26, %v8601_v53  ;;  %v8646_v33 = vadd.f32 %v8625_v26, %v8602_v30  ;;  %v8675_v40 = vsel %vm1419_vm10, %v8673_v20, %v8674_v12  ;;  %v6971_v12 = vrot.slane %v6969_v32, 6 }
 0x818   : > { %v8647_v37 = vadd.f32 %v8626_v38, %v8604_v0  ;;  %v8648_v19 = vadd.f32 %v8626_v38, %v8605_v5  ;;  %v8678_v28 = vsel %vm1419_vm10, %v8676_v41, %v8677_v21  ;;  %v6894_v0 = vld [vmem:[#allocation2 + $0x78] sm:$0xc]  ;;  %v6939_v21 = vor.u32 %v13866_v6, %v13862_v56 }
 0x819   : > { %v8709_v55 = vadd.f32 %v8673_v20, %v8645_v42  ;;  %v8710_v25 = vadd.f32 %v8675_v40, %v8646_v33  ;;  %v6974_v20 = vrot.slane %v6972_v39, 7  ;;  %v6992_v40 = vrot.slane %v6990_v23, 7 }
 0x81a   : > { %v8711_v46 = vadd.f32 %v8676_v41, %v8647_v37  ;;  %v8712_v58 = vadd.f32 %v8678_v28, %v8648_v19  ;;  %v7023_v32 = vshrl.u32 %v6894_v0, 16  ;;  %v7007_v37 = vrot.slane %v7005_v36, 6 }
 0x81b   : > { %v8746_v10 = vrot.slane %v8709_v55, 7  ;;  %v8747_v53 = vrot.slane %v8710_v25, 7  ;;  %v7010_v19 = vrot.slane %v7008_v47, 7  ;;  %v7026_v28 = vshll.u32 %v6894_v0, 16 }
 0x81c   : > { %v8749_v5 = vrot.slane %v8711_v46, 7  ;;  %v8750_v61 = vrot.slane %v8712_v58, 7  ;;  %v14581_v55 = vor.u32 %v13860_v17, %v13858_v43  ;;  %v13945_v36 = vsel %vm2697_vm0, %v13881_v48, 0 }
 0x81d   : > { %v7025_v46 = vrot.slane %v7023_v32, 6  ;;  %v13950_v17 = vrot.slane %v6939_v21, 4 }
 0x81e   : > { %v13941_v25 = vrot.slane %v14581_v55, 4 }
 0x8c5   : > { %v10421_v22 = vpop.f32.mrb[16].mxu1 }
 0x8c6   : > { %v6850_v44 = vadd.f32 %v10421_v22, %v13912_v59  ;;  %v6802_v35 = vpop.f32.mrb[17].mxu1  ;;  %v8748_v22 = vsel %vm1351_vm12, %v8746_v10, %v8747_v53 }
 0x8c7   : > { %v6848_v1 = vadd.f32 %v13912_v59, %v6802_v35  ;;  %v10422_v45 = vpop.f32.mrb[18].mxu1  ;;  %v8751_v35 = vsel %vm1351_vm12, %v8749_v5, %v8750_v61 }
 0x8c8   : > { %v6858_v13 = vmax.f32 %v6850_v44, 0.0  ;;  %v6851_v14 = vadd.f32 %v10422_v45, %v13912_v59  ;;  %v6805_v29 = vpop.f32.mrb[19].mxu1  ;;  %v6989_v44 = vrot.slane %v6987_v7, 6  ;;  %v8768_v39 = vpack.c.bf16 %v8751_v35, %v8748_v22 }
 0x8c9   : > { %v6856_v15 = vmax.f32 %v6848_v1, 0.0  ;;  %v6849_v34 = vadd.f32 %v13912_v59, %v6805_v29  ;;  %v7310_v22 = vshrl.u32 %v13831_v51, 16 }
 0x8ca   : > { %v6866_v57 = vpack.c.bf16 %v6858_v13, %v6858_v13  ;;  %v6859_v52 = vmax.f32 %v6851_v14, 0.0  ;;  %v6957_v13 = vor.u32 %v13870_v24, %v13868_v27  ;;  %v6975_v14 = vor.u32 %v6974_v20, %v6971_v12  ;;  %10503 = vmatprep.mubr.msk.bf16.mxu1 %vm1001_vm8, %v8768_v39 }
 0x8cb   : > { %v6864_v30 = vpack.c.bf16 %v6856_v15, %v6856_v15  ;;  %v6857_v4 = vmax.f32 %v6849_v34, 0.0  ;;  %v6993_v34 = vor.u32 %v6992_v40, %v6989_v44 }
 0x8cc   : > { %6874 = vst.msk [vmem:[#allocation2 + $0x40] sm:$0xf] %vm2621_vm3, %v6866_v57  ;;  %v6867_v26 = vpack.c.bf16 %v6859_v52, %v6859_v52  ;;  %v7011_v57 = vor.u32 %v7010_v19, %v7007_v37  ;;  %v7028_v52 = vrot.slane %v7026_v28, 7  ;;  %v13952_v10 = vrot.slane %v6957_v13, 4 }
 0x8cd   : > { %6872 = vst.msk [vmem:[#allocation2 + $0x28] sm:$0xf] %vm2621_vm3, %v6864_v30  ;;  %v6865_v38 = vpack.c.bf16 %v6857_v4, %v6857_v4  ;;  %v10425_v41 = vpop.f32.mrb[20].mxu1  ;;  %v13954_v53 = vrot.slane %v6975_v14, 4  ;;  %v13962_v21 = vrot.slane %v6993_v34, 4  ;;  %v14584_v37 = vrot.slane %v13833_v49, 11 }
 0x8ce   : > { %6875 = vst.msk [vmem:[#allocation2 + $0x4c] sm:$0xf] %vm2621_vm3, %v6867_v26  ;;  %v6854_v42 = vadd.f32 %v10425_v41, %v13912_v59  ;;  %v6818_v33 = vpop.f32.mrb[21].mxu1  ;;  %v13964_v44 = vrot.slane %v7011_v57, 4  ;;  %v7029_v35 = vor.u32 %v7028_v52, %v7025_v46  ;;  %v14585_v28 = vrot.slane %v13837_v18, 11 }
 0x8cf   : > { %6873 = vst.msk [vmem:[#allocation2 + $0x34] sm:$0xf] %vm2621_vm3, %v6865_v38  ;;  %v6852_v1 = vadd.f32 %v13912_v59, %v6818_v33  ;;  %v10426_v45 = vpop.f32.mrb[22].mxu1  ;;  %v7323_v38 = vshrl.u32 %v13833_v49, 16  ;;  %v7349_v57 = vshrl.u32 %v13839_v9, 16 }
 0x8d0   : > { %v6862_v56 = vmax.f32 %v6854_v42, 0.0  ;;  %v6855_v6 = vadd.f32 %v10426_v45, %v13912_v59  ;;  %v6821_v7 = vpop.f32.mrb[23].mxu1  ;;  %v14582_v42 = vrot.slane %v13839_v9, 11 }
 0x8d1   : > { %v6860_v23 = vmax.f32 %v6852_v1, 0.0  ;;  %v6853_v29 = vadd.f32 %v13912_v59, %v6821_v7  ;;  %v14583_v1 = vrot.slane %v13831_v51, 11  ;;  %v13983_v7 = vld [vmem:[#allocation27 + $0x14] sm:$0xfe]  }
 0x8d2   : > { %v6870_v47 = vpack.c.bf16 %v6862_v56, %v6862_v56  ;;  %v6863_v15 = vmax.f32 %v6855_v6, 0.0 }
 0x8d3   : > { %v6868_v27 = vpack.c.bf16 %v6860_v23, %v6860_v23  ;;  %v6861_v24 = vmax.f32 %v6853_v29, 0.0  ;;  %v13947_v58 = vld [vmem:[#allocation2 + $0x40] sm:$0x7] }
 0x8d4   : > { %6878 = vst.msk [vmem:[#allocation2 + $0x70] sm:$0xf] %vm2621_vm3, %v6870_v47  ;;  %v6871_v59 = vpack.c.bf16 %v6863_v15, %v6863_v15  ;;  %v6881_v43 = vld [vmem:[#allocation2 + $0x28] sm:$0x7]  ;;  %v7076_v5 = vrot.slane %v13947_v58, 7  ;;  %v6942_v39 = vshrl.u32 %v13947_v58, 16 }
 0x8d5   : > { %6876 = vst.msk [vmem:[#allocation2 + $0x58] sm:$0xf] %vm2621_vm3, %v6868_v27  ;;  %v6869_v30 = vpack.c.bf16 %v6861_v24, %v6861_v24  ;;  %v7068_v4 = vrot.slane %v6881_v43, 7  ;;  %v6887_v0 = vld [vmem:[#allocation2 + $0x4c] sm:$0x7]  ;;  %v6906_v61 = vshrl.u32 %v6881_v43, 16 }
 0x8d6   : > { %6879 = vst.msk [vmem:[#allocation2 + $0x7c] sm:$0xf] %vm2621_vm3, %v6871_v59  ;;  %v6883_v26 = vld [vmem:[#allocation2 + $0x34] sm:$0x7]  ;;  %v7080_v12 = vrot.slane %v6887_v0, 7  ;;  %v6909_v20 = vshll.u32 %v6881_v43, 16  ;;  %v7077_v56 = vsel %vm12667_vm15, %v14585_v28, %v7076_v5 }
 0x8d7   : > { %6877 = vst.msk [vmem:[#allocation2 + $0x64] sm:$0xf] %vm2621_vm3, %v6869_v30  ;;  %v7072_v41 = vrot.slane %v6883_v26, 7  ;;  %v6924_v40 = vshrl.u32 %v6883_v26, 16  ;;  %v6927_v32 = vshll.u32 %v6883_v26, 16  ;;  %v7069_v45 = vsel %vm12667_vm15, %v14583_v1, %v7068_v4 }
 0x8d8   : > { %v7081_v33 = vsel %vm12667_vm15, %v14582_v42, %v7080_v12  ;;  %v6908_v6 = vrot.slane %v6906_v61, 6  ;;  %v6911_v14 = vrot.slane %v6909_v20, 7  ;;  %v6945_v49 = vshll.u32 %v13947_v58, 16 }
 0x8d9   : > { %v7073_v19 = vsel %vm12667_vm15, %v14584_v37, %v7072_v41  ;;  %v6926_v23 = vrot.slane %v6924_v40, 6  ;;  %v6929_v51 = vrot.slane %v6927_v32, 7  ;;  %v9703_v29 = vcombine.low %v7077_v56, %v7081_v33  ;;  %v14025_v56 = vld [vmem:[#allocation2 + $0x34] sm:$0xf] }
 0x8da   : > { %v9702_v13 = vcombine.low %v7069_v45, %v7073_v19  ;;  %v13988_v47 = vrot.slane %v7310_v22, 11  ;;  %v7336_v15 = vshrl.u32 %v13837_v18, 16  ;;  %v6960_v46 = vshrl.u32 %v6887_v0, 16 }
 0x8db   : > { %v13985_v55 = vld [vmem:[#allocation2 + $0x70] sm:$0x7]  ;;  %v6963_v27 = vshll.u32 %v6887_v0, 16  ;;  %v13992_v24 = vrot.slane %v7323_v38, 11  ;;  %v6930_v43 = vor.u32 %v6929_v51, %v6926_v23  ;;  %v13996_v30 = vrot.slane %v7029_v35, 4 }
 0x8dc   : > { %10429 = vmatprep.mubr.msk.bf16.mxu0 %vm2684_vm13, %v9702_v13  ;;  %v6889_v34 = vld [vmem:[#allocation2 + $0x58] sm:$0x7]  ;;  %v7554_v58 = vrot.slane %v13983_v7, 1  ;;  %v7092_v4 = vrot.slane %v13985_v55, 7  ;;  %v6912_v0 = vor.u32 %v6911_v14, %v6908_v6  ;;  %v6944_v61 = vrot.slane %v6942_v39, 6 }
 0x8dd   : > { %10430 = vmatmul.mubr.msk.bf16.vlgmr.msra.gmra.mrb[24].mxu0 %vm2684_vm13, %v9703_v29  ;;  %v7084_v52 = vrot.slane %v6889_v34, 7  ;;  %v6895_v59 = vld [vmem:[#allocation2 + $0x7c] sm:$0x7]  ;;  %v6947_v9 = vrot.slane %v6945_v49, 7  ;;  %v6978_v12 = vshrl.u32 %v6889_v34, 16  ;;  %v6981_v20 = vshll.u32 %v6889_v34, 16 }
 0x8de   : > { %10438 = vmatpush3.bf16.msra.mxu0 %v13852_v3  ;;  %v6891_v18 = vld [vmem:[#allocation2 + $0x64] sm:$0x7]  ;;  %v7096_v5 = vrot.slane %v6895_v59, 7  ;;  %v14586_v22 = vrot.slane %v13847_v16, 11  ;;  %v6962_v41 = vrot.slane %v6960_v46, 6  ;;  %v6965_v3 = vrot.slane %v6963_v27, 7 }
 0x8df   : > { %v7088_v26 = vrot.slane %v6891_v18, 7  ;;  %10832 = vmatprep.subr.msk.bf16.mxu0 %vm2697_vm0, %v13881_v48  ;;  %v6996_v35 = vshrl.u32 %v6891_v18, 16  ;;  %v14587_v42 = vrot.slane %v13841_v63, 11  ;;  %v14588_v40 = vrot.slane %v13843_v8, 11  ;;  %v14027_v51 = vld [vmem:[#allocation2 + $0x28] sm:$0xf] }
 0x8e0   : > { %v7097_v38 = vsel %vm12667_vm15, %v14586_v22, %v7096_v5  ;;  %v6931_v32 = vsel %vm12726_vm2, %v13941_v25, %v6930_v43  ;;  %v6999_v39 = vshll.u32 %v6891_v18, 16  ;;  %v14589_v45 = vrot.slane %v13845_v60, 11  ;;  %v14106_v7 = vld [vmem:[#allocation2 + $0x7c] sm:$0xf] }
 0x8e1   : > { %v7085_v33 = vsel %vm12667_vm15, %v14587_v42, %v7084_v52  ;;  %v7089_v48 = vsel %vm12667_vm15, %v14588_v40, %v7088_v26  ;;  %v6913_v19 = vsel %vm12726_vm2, %v13864_v50, %v6912_v0  ;;  %v6998_v28 = vrot.slane %v6996_v35, 6  ;;  %v14068_v42 = vld [vmem:[#allocation2 + $0x40] sm:$0xf] }
 0x8e2   : > { %v9704_v1 = vcombine.low %v7085_v33, %v7089_v48  ;;  %v7093_v37 = vsel %vm12667_vm15, %v14589_v45, %v7092_v4  ;;  %v6980_v13 = vrot.slane %v6978_v12, 6  ;;  %v6983_v14 = vrot.slane %v6981_v20, 7  ;;  %v14054_v20 = vld [vmem:[#allocation2 + $0x4c] sm:$0xf]  ;;  %v14072_v33 = vld [vmem:[#allocation2 + $0x44] sm:$0x1] }
 0x8e3   : > { %v9705_v6 = vcombine.low %v7093_v37, %v7097_v38  ;;  %v7001_v23 = vrot.slane %v6999_v39, 7  ;;  %v9712_v25 = vcombine.low %v6913_v19, %v6931_v32  ;;  %v6966_v29 = vor.u32 %v6965_v3, %v6962_v41  ;;  %v14062_v3 = vld [vmem:[#allocation2 + $0x64] sm:$0xf]  ;;  %v14076_v39 = vld [vmem:[#allocation2 + $0x58] sm:$0xf] }
 0x8e4   : > { %10433 = vmatprep.mubr.msk.bf16.mxu0 %vm2684_vm13, %v9704_v1  ;;  %v7032_v49 = vshrl.u32 %v6895_v59, 16  ;;  %v7035_v31 = vshll.u32 %v6895_v59, 16  ;;  %v7328_v50 = vshrl.u32 %v14025_v56, 16  ;;  %v14032_v46 = vrot.slane %v7336_v15, 11  ;;  %v14078_v1 = vld [vmem:[#allocation2 + $0x38] sm:$0x1] }
 0x8e5   : > { %10434 = vmatmul.mubr.msk.bf16.gmra.mrb[28].mxu0 %vm2684_vm13, %v9705_v6  ;;  %v7002_v34 = vor.u32 %v7001_v23, %v6998_v28  ;;  %v14034_v27 = vrot.slane %v7349_v57, 11  ;;  %v6948_v52 = vor.u32 %v6947_v9, %v6944_v61  ;;  %v7014_v43 = vshrl.u32 %v13985_v55, 16 }
 0x8e6   : > { %10439 = vmatprep.mubr.msk.bf16.mxu0 %vm2684_vm13, %v9712_v25  ;;  %v7017_v18 = vshll.u32 %v13985_v55, 16  ;;  %v7315_v4 = vshrl.u32 %v14027_v51, 16  ;;  %v6984_v5 = vor.u32 %v6983_v14, %v6980_v13  ;;  %v14043_v59 = vsel %vm2697_vm0, %v7554_v58, 0 }
 0x8e7   : > { %v7362_v15 = vshrl.u32 %v13841_v63, 16  ;;  %v7375_v57 = vshrl.u32 %v13843_v8, 16  ;;  %v6967_v0 = vsel %vm12726_vm2, %v13952_v10, %v6966_v29  ;;  %v7034_v61 = vrot.slane %v7032_v49, 6  ;;  %v14057_v63 = vld [vmem:[#allocation27 + $0x1c] sm:$0x7f]  }
 0x8e8   : > { %v7037_v26 = vrot.slane %v7035_v31, 7  ;;  %v7388_v55 = vshrl.u32 %v13845_v60, 16  ;;  %v7003_v9 = vsel %vm12726_vm2, %v13962_v21, %v7002_v34  ;;  %v7330_v12 = vrot.slane %v7328_v50, 7  ;;  %v14109_v50 = vld [vmem:[#allocation27 + $0x20] sm:$0xf8]  }
 0x8e9   : > { %v7401_v22 = vshrl.u32 %v13847_v16, 16  ;;  %v6949_v8 = vsel %vm12726_vm2, %v13950_v17, %v6948_v52  ;;  %v7016_v10 = vrot.slane %v7014_v43, 6  ;;  %v7019_v38 = vrot.slane %v7017_v18, 7 }
 0x8ea   : > { %v7317_v41 = vrot.slane %v7315_v4, 7  ;;  %v9713_v60 = vcombine.low %v6949_v8, %v6967_v0  ;;  %v6985_v21 = vsel %vm12726_vm2, %v13954_v53, %v6984_v5  ;;  %v7331_v35 = vshll.u32 %v14025_v56, 16  ;;  %v8438_v4 = vld [vmem:[#allocation3 + $0x48] sm:$0x8]  ;;  %v14116_v5 = vld [vmem:[#allocation3 + $0x50] sm:$0x1] }
 0x8eb   : > { %v14070_v16 = vrot.slane %v7362_v15, 11  ;;  %v9714_v40 = vcombine.low %v6985_v21, %v7003_v9  ;;  %v7038_v17 = vor.u32 %v7037_v26, %v7034_v61  ;;  %v7318_v48 = vshll.u32 %v14027_v51, 16  ;;  %v14125_v61 = vld [vmem:[#allocation2 + $0x70] sm:$0xf] }
 0x8ec   : > { %v7354_v32 = vshrl.u32 %v14054_v20, 16  ;;  %v7333_v53 = vor.u32 %v7331_v35, %v7330_v12  ;;  %v14081_v45 = vrot.slane %v7375_v57, 11  ;;  %v7380_v37 = vshrl.u32 %v14062_v3, 16 }
 0x8ed   : > { %10440 = vmatmul.mubr.msk.bf16.vlgmr.msra.gmra.mrb[24].mxu0 %vm2684_vm13, %v9713_v60  ;;  %v7683_v19 = vshll.u32 %v14078_v1, 16  ;;  %v7020_v28 = vor.u32 %v7019_v38, %v7016_v10  ;;  %v7320_v6 = vor.u32 %v7318_v48, %v7317_v41  ;;  %v7341_v13 = vshrl.u32 %v14068_v42, 16  ;;  %v8488_v38 = vld [vmem:[#allocation3 + $0x5c] sm:$0x1] }
 0x8ee   : > { %10448 = vmatpush3.bf16.msra.mxu0 %v13945_v36  ;;  %10443 = vmatprep.mubr.msk.bf16.mxu0 %vm2684_vm13, %v9714_v40  ;;  %v14088_v14 = vrot.slane %v7388_v55, 11  ;;  %v7367_v23 = vshrl.u32 %v14076_v39, 16  ;;  %v14094_v25 = vrot.slane %v7401_v22, 11  ;;  %v14098_v29 = vsel %vm2697_vm0, %v14057_v63, 0  ;;  %v14100_v36 = vld [vmem:[#allocation2 + $0x2c] sm:$0x1] }
 0x8ef   : > { %10833 = vmatprep.subr.msk.bf16.mxu0 %vm2697_vm0, %v7554_v58  ;;  %v7912_v49 = vrot.slane %v14072_v33, 5  ;;  %v7039_v31 = vsel %vm12726_vm2, %v13996_v30, %v7038_v17  ;;  %v7356_v34 = vrot.slane %v7354_v32, 7  ;;  %v7669_v58 = vshll.u32 %v14100_v36, 16  ;;  %v8439_v22 = vld [vmem:[#allocation3 + $0x4c] ss:$12 sps:$4 sm:$0xff]  }
 0x8f0   : > { %v7334_v52 = vsel %vm12804_vm5, %v13992_v24, %v7333_v53  ;;  %v7382_v43 = vrot.slane %v7380_v37, 7  ;;  %v14114_v18 = vrot.slane %v7683_v19, 5  ;;  %v7021_v30 = vsel %vm12726_vm2, %v13964_v44, %v7020_v28  ;;  %v8441_v24 = vld [vmem:[#allocation3 + $0x54] sm:$0x8]  ;;  %v8487_v40 = vld [vmem:[#allocation3 + $0x58] ss:$12 sps:$4 sm:$0xff]  }
 0x8f1   : > { %v7321_v15 = vsel %vm12804_vm5, %v13988_v47, %v7320_v6  ;;  %v7343_v57 = vrot.slane %v7341_v13, 7  ;;  %v7357_v0 = vshll.u32 %v14054_v20, 16  ;;  %v9715_v26 = vcombine.low %v7021_v30, %v7039_v31  ;;  %v8486_v47 = vld [vmem:[#allocation3 + $0x54] sm:$0x8]  ;;  %v8489_v17 = vld [vmem:[#allocation3 + $0x60] sm:$0x8] }
 0x8f2   : > { %v7369_v55 = vrot.slane %v7367_v23, 7  ;;  %v7383_v9 = vshll.u32 %v14062_v3, 16  ;;  %v7406_v12 = vshrl.u32 %v14106_v7, 16  ;;  %v9729_v8 = vcombine.low %v7321_v15, %v7334_v52  ;;  %v11199_v32 = vld [vmem:[#allocation27 + $0x28] ss:$0 sps:$4 sm:$0x33]  }
 0x8f3   : > { %v7344_v2 = vshll.u32 %v14068_v42, 16  ;;  %v7359_v44 = vor.u32 %v7357_v0, %v7356_v34  ;;  %v7957_v10 = vrot.slane %v14109_v50, 3  ;;  %v7370_v41 = vshll.u32 %v14076_v39, 16  ;;  %v8443_v13 = vld [vmem:[#allocation3 + $0x5c] sm:$0x1] }
 0x8f4   : > { %v7385_v60 = vor.u32 %v7383_v9, %v7382_v43  ;;  %v7393_v21 = vshrl.u32 %v14125_v61, 16  ;;  %v8462_v35 = vunpack.c.l.bf16 %v8438_v4  ;;  %v8463_v53 = vunpack.c.l.bf16 %v8439_v22  ;;  %v8491_v31 = vld [vmem:[#allocation3 + $0x68] sm:$0x1] }
 0x8f5   : > { %10444 = vmatmul.mubr.msk.bf16.gmra.mrb[28].mxu0 %vm2684_vm13, %v9715_v26  ;;  %v7346_v48 = vor.u32 %v7344_v2, %v7343_v57  ;;  %v8464_v37 = vunpack.c.l.bf16 %v14116_v5  ;;  %v8465_v19 = vunpack.c.l.bf16 %v8441_v24  ;;  %v7372_v28 = vor.u32 %v7370_v41, %v7369_v55  ;;  %v8560_v24 = vld [vmem:[#allocation3 + $0x64] ss:$12 sps:$4 sm:$0xff]   ;;  %v7645_v41 = vld [vmem:[#allocation2 + $0x34] sm:$0xf] }
 0x8f6   : > { %10449 = vmatprep.mubr.msk.bf16.mxu0 %vm2684_vm13, %v9729_v8  ;;  %v7408_v6 = vrot.slane %v7406_v12, 7  ;;  %v8466_v23 = vunpack.c.h.bf16 %v8439_v22  ;;  %v8510_v34 = vunpack.c.l.bf16 %v8486_v47  ;;  %v7360_v52 = vsel %vm12804_vm5, %v14034_v27, %v7359_v44  ;;  %v8559_v27 = vld [vmem:[#allocation3 + $0x60] sm:$0x8]  ;;  %v8561_v47 = vld [vmem:[#allocation3 + $0x68] sm:$0x1] }
 0x8f7   : > { %v8511_v43 = vunpack.c.l.bf16 %v8487_v40  ;;  %v8512_v4 = vunpack.c.l.bf16 %v8488_v38  ;;  %v8513_v30 = vunpack.c.l.bf16 %v8489_v17  ;;  %v7386_v15 = vsel %vm12804_vm5, %v14081_v45, %v7385_v60  ;;  %v7643_v44 = vld [vmem:[#allocation2 + $0x28] sm:$0xf] }
 0x8f8   : > { %v7395_v57 = vrot.slane %v7393_v21, 7  ;;  %v7409_v5 = vshll.u32 %v14106_v7, 16  ;;  %v8514_v0 = vunpack.c.h.bf16 %v8487_v40  ;;  %v7347_v26 = vsel %vm12804_vm5, %v14032_v46, %v7346_v48  ;;  %v8562_v40 = vld [vmem:[#allocation3 + $0x6c] sm:$0x8] }
 0x8f9   : > { %v7958_v55 = vrot.slane %v11199_v32, 3  ;;  %v8467_v9 = vunpack.c.l.bf16 %v8443_v13  ;;  %v8515_v12 = vunpack.c.l.bf16 %v8491_v31  ;;  %v9730_v22 = vcombine.low %v7347_v26, %v7360_v52  ;;  %v8564_v31 = vld [vmem:[#allocation3 + $0x74] sm:$0x1] }
 0x8fa   : > { %v7373_v8 = vsel %vm12804_vm5, %v14070_v16, %v7372_v28  ;;  %v7396_v45 = vshll.u32 %v14125_v61, 16  ;;  %v7411_v2 = vor.u32 %v7409_v5, %v7408_v6  ;;  %v8534_v60 = vadd.f32 %v8510_v34, %v8462_v35 }
 0x8fb   : > { %v9731_v38 = vcombine.low %v7373_v8, %v7386_v15  ;;  %v8535_v21 = vadd.f32 %v8511_v43, %v8463_v53  ;;  %v8584_v46 = vunpack.c.l.bf16 %v8560_v24  ;;  %v8536_v48 = vadd.f32 %v8512_v4, %v8464_v37  ;;  %v7653_v8 = vld [vmem:[#allocation2 + $0x64] sm:$0xf] }
 0x8fc   : > { %v7398_v17 = vor.u32 %v7396_v45, %v7395_v57  ;;  %v8537_v32 = vadd.f32 %v8513_v30, %v8465_v19  ;;  %v8538_v13 = vadd.f32 %v8514_v0, %v8466_v23  ;;  %v7660_v16 = vshrl.u32 %v7643_v44, 16 }
 0x8fd   : > { %10450 = vmatmul.mubr.msk.bf16.vlgmr.msra.gmra.mrb[24].mxu0 %vm2684_vm13, %v9730_v22  ;;  %v8539_v28 = vadd.f32 %v8515_v12, %v8467_v9  ;;  %v8583_v6 = vunpack.c.l.bf16 %v8559_v27  ;;  %v8585_v52 = vunpack.c.l.bf16 %v8561_v47  ;;  %v7412_v35 = vsel %vm12804_vm5, %v14094_v25, %v7411_v2  ;;  %v7649_v12 = vld [vmem:[#allocation2 + $0x4c] sm:$0xf] }
 0x8fe   : > { %10458 = vmatpush3.bf16.msra.mxu0 %v14043_v59  ;;  %10453 = vmatprep.mubr.msk.bf16.mxu0 %vm2684_vm13, %v9731_v38  ;;  %v7674_v53 = vshrl.u32 %v7645_v41, 16  ;;  %v8586_v37 = vunpack.c.l.bf16 %v8562_v40  ;;  %v8587_v19 = vunpack.c.h.bf16 %v8560_v24  ;;  %v7677_v23 = vshll.u32 %v7645_v41, 16 }
 0x8ff   : > { %10834 = vmatprep.subr.msk.bf16.mxu0 %vm2697_vm0, %v14057_v63  ;;  %v14161_v59 = vsel %vm2680_vm7, %v7957_v10, %v7958_v55  ;;  %v8588_v34 = vunpack.c.l.bf16 %v8564_v31  ;;  %v8608_v43 = vadd.f32 %v8584_v46, %v8535_v21  ;;  %v7399_v4 = vsel %vm12804_vm5, %v14088_v14, %v7398_v17  ;;  %v7647_v10 = vld [vmem:[#allocation2 + $0x40] sm:$0xf]  ;;  %v7651_v46 = vld [vmem:[#allocation2 + $0x58] sm:$0xf] }
 0x900   : > { %v9739_v25 = vcombine.low %v14027_v51, %v14025_v56  ;;  %v9740_v63 = vcombine.low %v14068_v42, %v14054_v20  ;;  %v7663_v30 = vshll.u32 %v7643_v44, 16  ;;  %v9732_v15 = vcombine.low %v7399_v4, %v7412_v35 }
 0x901   : > { %v7662_v57 = vrot.slane %v7660_v16, 4  ;;  %v8607_v5 = vadd.f32 %v8583_v6, %v8534_v60  ;;  %v8609_v50 = vadd.f32 %v8585_v52, %v8536_v48  ;;  %v7676_v0 = vrot.slane %v7674_v53, 4 }
 0x902   : > { %v8610_v24 = vadd.f32 %v8586_v37, %v8537_v32  ;;  %v8611_v26 = vadd.f32 %v8587_v19, %v8538_v13  ;;  %v8612_v55 = vadd.f32 %v8588_v34, %v8539_v28  ;;  %v7679_v9 = vrot.slane %v7677_v23, 5 }
 0x903   : > { %v8627_v11 = vrot.slane %v8608_v43, 1  ;;  %v8679_v14 = vrot.slane %v8608_v43, 2  ;;  %v8680_v27 = vrot.slane %v8609_v50, 2  ;;  %v7665_v56 = vrot.slane %v7663_v30, 5  ;;  %v7657_v50 = vld [vmem:[#allocation2 + $0x7c] sm:$0xf] }
 0x904   : > { %v8628_v51 = vrot.slane %v8611_v26, 1  ;;  %v8682_v20 = vrot.slane %v8611_v26, 2  ;;  %v8683_v42 = vrot.slane %v8612_v55, 2  ;;  %v7688_v22 = vshrl.u32 %v7647_v10, 16 }
 0x905   : > { %10454 = vmatmul.mubr.msk.bf16.gmra.mrb[28].mxu0 %vm2684_vm13, %v9732_v15  ;;  %v8649_v45 = vadd.f32 %v8627_v11, %v8607_v5  ;;  %v8650_v2 = vadd.f32 %v8627_v11, %v8608_v43  ;;  %v8681_v44 = vsel %vm1419_vm10, %v8679_v14, %v8680_v27  ;;  %v7702_v47 = vshrl.u32 %v7649_v12, 16  ;;  %v14176_v43 = vld [vmem:[#allocation2 + $0x50] sm:$0x1] }
 0x906   : > { %10459 = vmatprep.mubr.msk.bf16.mxu0 %vm2684_vm13, %v9739_v25  ;;  %v8651_v38 = vadd.f32 %v8628_v51, %v8610_v24  ;;  %v8652_v41 = vadd.f32 %v8628_v51, %v8611_v26  ;;  %v8684_v60 = vsel %vm1419_vm10, %v8682_v20, %v8683_v42  ;;  %v7680_v21 = vor.u32 %v7679_v9, %v7676_v0 }
 0x907   : > { %v7705_v40 = vshll.u32 %v7649_v12, 16  ;;  %v8713_v17 = vadd.f32 %v8679_v14, %v8649_v45  ;;  %v8714_v48 = vadd.f32 %v8681_v44, %v8650_v2  ;;  %v7730_v32 = vshrl.u32 %v7653_v8, 16  ;;  %v7655_v12 = vld [vmem:[#allocation2 + $0x70] sm:$0xf]  ;;  %v14188_v14 = vld [vmem:[#allocation2 + $0x68] sm:$0x1] }
 0x908   : > { %v7733_v13 = vshll.u32 %v7653_v8, 16  ;;  %v8715_v31 = vadd.f32 %v8682_v20, %v8651_v38  ;;  %v8716_v16 = vadd.f32 %v8684_v60, %v8652_v41  ;;  %v7666_v28 = vor.u32 %v7665_v56, %v7662_v57  ;;  %v14197_v45 = vld [vmem:[#allocation2 + $0x5c] sm:$0x1]  ;;  %v11201_v60 = vld [vmem:[#allocation27 + $0x28] sm:$0xfc]  }
 0x909   : > { %v7691_v6 = vshll.u32 %v7647_v10, 16  ;;  %v8752_v52 = vrot.slane %v8713_v17, 7  ;;  %v8753_v35 = vrot.slane %v8714_v48, 7  ;;  %v7716_v53 = vshrl.u32 %v7651_v46, 16 }
 0x90a   : > { %v7719_v37 = vshll.u32 %v7651_v46, 16  ;;  %v8755_v19 = vrot.slane %v8715_v31, 7  ;;  %v8756_v23 = vrot.slane %v8716_v16, 7  ;;  %v9741_v34 = vcombine.low %v14076_v39, %v14062_v3 }
 0x90b   : > { %v7704_v4 = vrot.slane %v7702_v47, 4  ;;  %v7707_v25 = vrot.slane %v7705_v40, 5  ;;  %v8754_v30 = vsel %vm1351_vm12, %v8752_v52, %v8753_v35  ;;  %v7681_v15 = vrot.slane %v7680_v21, 4  ;;  %v8048_v21 = vld [vmem:[#allocation2 + $0x2c] sm:$0x3] }
 0x90c   : > { %v7732_v57 = vrot.slane %v7730_v32, 4  ;;  %v7735_v5 = vrot.slane %v7733_v13, 5  ;;  %v8757_v0 = vsel %vm1351_vm12, %v8755_v19, %v8756_v23  ;;  %v7690_v10 = vrot.slane %v7688_v22, 4  ;;  %v11202_v32 = vld [vmem:[#allocation27 + $0x30] ss:$0 sps:$4 sm:$0x11]  }
 0x90d   : > { %10460 = vmatmul.mubr.msk.bf16.vlgmr.msra.gmra.mrb[24].mxu0 %vm2684_vm13, %v9740_v63  ;;  %v7693_v3 = vrot.slane %v7691_v6, 5  ;;  %v7711_v39 = vshll.u32 %v14176_v43, 16  ;;  %v8769_v24 = vpack.c.bf16 %v8757_v0, %v8754_v30  ;;  %v7667_v26 = vrot.slane %v7666_v28, 4  ;;  %v14205_v28 = vld [vmem:[#allocation2 + $0x74] sm:$0x1] }
 0x90e   : > { %10468 = vmatpush3.bf16.msra.mxu0 %v14098_v29  ;;  %10463 = vmatprep.mubr.msk.bf16.mxu0 %vm2684_vm13, %v9741_v34  ;;  %v7671_v55 = vrot.slane %v7669_v58, 5  ;;  %v7718_v63 = vrot.slane %v7716_v53, 4  ;;  %v7721_v9 = vrot.slane %v7719_v37, 5  ;;  %v7708_v11 = vor.u32 %v7707_v25, %v7704_v4  ;;  %v14209_v6 = vld [vmem:[#allocation2 + $0x80] sm:$0x1] }
 0x90f   : > { %10835 = vmatprep.subr.msk.bf16.mxu0 %vm2697_vm0, %v14161_v59  ;;  %v7758_v29 = vshrl.u32 %v7657_v50, 16  ;;  %v7761_v27 = vshll.u32 %v7657_v50, 16  ;;  %v7904_v56 = vrot.slane %v14100_v36, 5  ;;  %10504 = vmatmul.mubr.msk.bf16.gmra.mrb[28].mxu1 %vm1001_vm8, %v8769_v24  ;;  %v7686_v51 = vsel %vm12884_vm9, %v7681_v15, %v14114_v18  ;;  %v7879_v24 = vld [vmem:[#allocation2 + $0x34] sm:$0xe] }
 0x910   : > { %v7697_v58 = vshll.u32 %v14072_v33, 16  ;;  %v7736_v20 = vor.u32 %v7735_v5, %v7732_v57  ;;  %v7739_v42 = vshll.u32 %v14188_v14, 16  ;;  %v7694_v22 = vor.u32 %v7693_v3, %v7690_v10  ;;  %v8049_v57 = vld [vmem:[#allocation2 + $0x38] sm:$0x3] }
 0x911   : > { %v7713_v8 = vrot.slane %v7711_v39, 5  ;;  %v7744_v2 = vshrl.u32 %v7655_v12, 16  ;;  %v7747_v44 = vshll.u32 %v7655_v12, 16  ;;  %v9742_v47 = vcombine.low %v14125_v61, %v14106_v7 }
 0x912   : > { %v7672_v38 = vsel %vm12884_vm9, %v7667_v26, %v7671_v55  ;;  %v7722_v41 = vor.u32 %v7721_v9, %v7718_v63  ;;  %v7725_v18 = vshll.u32 %v14197_v45, 16  ;;  %v7709_v46 = vrot.slane %v7708_v11, 4  ;;  %v8051_v55 = vld [vmem:[#allocation2 + $0x50] sm:$0x3] }
 0x913   : > { %v9748_v40 = vcombine.low %v7672_v38, %v7686_v51  ;;  %v7760_v17 = vrot.slane %v7758_v29, 4  ;;  %v7763_v48 = vrot.slane %v7761_v27, 5  ;;  %v7699_v13 = vrot.slane %v7697_v58, 5  ;;  %v7878_v58 = vld [vmem:[#allocation2 + $0x28] sm:$0xe] }
 0x914   : > { %v7737_v31 = vrot.slane %v7736_v20, 4  ;;  %v7741_v16 = vrot.slane %v7739_v42, 5  ;;  %v7916_v7 = vrot.slane %v14176_v43, 5  ;;  %v7695_v61 = vrot.slane %v7694_v22, 4  ;;  %v8050_v42 = vld [vmem:[#allocation2 + $0x44] sm:$0x3] }
 0x915   : > { %10464 = vmatmul.mubr.msk.bf16.gmra.mrb[28].mxu0 %vm2684_vm13, %v9742_v47  ;;  %v7746_v52 = vrot.slane %v7744_v2, 4  ;;  %v7749_v35 = vrot.slane %v7747_v44, 5  ;;  %v8066_v53 = vshrl.u32 %v8048_v21, 16  ;;  %v7723_v37 = vrot.slane %v7722_v41, 4  ;;  %v7881_v38 = vld [vmem:[#allocation2 + $0x4c] sm:$0xe] }
 0x916   : > { %10469 = vmatprep.mubr.msk.bf16.mxu0 %vm2684_vm13, %v9748_v40  ;;  %v7727_v19 = vrot.slane %v7725_v18, 5  ;;  %v7767_v23 = vshll.u32 %v14209_v6, 16  ;;  %v7908_v34 = vrot.slane %v14078_v1, 5  ;;  %v7714_v4 = vsel %vm12884_vm9, %v7709_v46, %v7713_v8 }
 0x917   : > { %v7764_v25 = vor.u32 %v7763_v48, %v7760_v17  ;;  %v8223_v30 = vrot.slane %v11201_v60, 2  ;;  %v8224_v15 = vrot.slane %v11202_v32, 2  ;;  %v7742_v5 = vsel %vm12884_vm9, %v7737_v31, %v7741_v16  ;;  %v14238_v48 = vld [vmem:[#allocation2 + $0x40] sm:$0xe] }
 0x918   : > { %v7920_v50 = vrot.slane %v14197_v45, 5  ;;  %v7928_v0 = vrot.slane %v14205_v28, 5  ;;  %v8069_v10 = vshll.u32 %v8048_v21, 16  ;;  %v7700_v3 = vsel %vm12884_vm9, %v7695_v61, %v7699_v13 }
 0x919   : > { %v7750_v39 = vor.u32 %v7749_v35, %v7746_v52  ;;  %v7753_v1 = vshll.u32 %v14205_v28, 16  ;;  %v14222_v26 = vrot.slane %v8066_v53, 5  ;;  %v9749_v63 = vcombine.low %v7700_v3, %v7714_v4  ;;  %v14250_v53 = vld [vmem:[#allocation2 + $0x58] sm:$0xe]  ;;  %v14267_v3 = vld [vmem:[#allocation2 + $0x7c] sm:$0xe] }
 0x91a   : > { %v7973_v9 = vsel %vm2697_vm0, %v14161_v59, 0  ;;  %v7728_v12 = vsel %vm12884_vm9, %v7723_v37, %v7727_v19  ;;  %v8084_v11 = vshrl.u32 %v8049_v57, 16  ;;  %v7765_v27 = vrot.slane %v7764_v25, 4  ;;  %v7883_v37 = vld [vmem:[#allocation2 + $0x64] sm:$0xe] }
 0x91b   : > { %v9750_v29 = vcombine.low %v7728_v12, %v7742_v5  ;;  %v7769_v51 = vrot.slane %v7767_v23, 5  ;;  %v8225_v20 = vsel %vm1419_vm10, %v8223_v30, %v8224_v15  ;;  %v9758_v22 = vrot.slane %v7879_v24, 9 }
 0x91c   : > { %v14230_v8 = vrot.slane %v8069_v10, 6  ;;  %v8087_v2 = vshll.u32 %v8049_v57, 16  ;;  %v8120_v44 = vshrl.u32 %v8051_v55, 16  ;;  %v7751_v59 = vrot.slane %v7750_v39, 4 }
 0x91d   : > { %10470 = vmatmul.mubr.msk.bf16.vlgmr.msra.gmra.mrb[24].mxu0 %vm2684_vm13, %v9749_v63  ;;  %v7755_v47 = vrot.slane %v7753_v1, 5  ;;  %v7924_v41 = vrot.slane %v14188_v14, 5  ;;  %v7932_v18 = vrot.slane %v14209_v6, 5  ;;  %v9757_v60 = vrot.slane %v7878_v58, 9 }
 0x91e   : > { %10478 = vmatpush3.bf16.msra.mxu0 %v7973_v9  ;;  %10473 = vmatprep.mubr.msk.bf16.mxu0 %vm2684_vm13, %v9750_v29  ;;  %v8102_v21 = vshrl.u32 %v8050_v42, 16  ;;  %v8105_v40 = vshll.u32 %v8050_v42, 16  ;;  %v8123_v46 = vshll.u32 %v8051_v55, 16  ;;  %v7770_v17 = vsel %vm12884_vm9, %v7765_v27, %v7769_v51  ;;  %v8052_v42 = vld [vmem:[#allocation2 + $0x5c] sm:$0x3] }
 0x91f   : > { %10836 = vmatprep.subr.msk.bf16.mxu0 %vm2697_vm0, %v8225_v20  ;;  %v8075_v32 = vshrl.u32 %v7879_v24, 16  ;;  %v8078_v13 = vshll.u32 %v7879_v24, 16  ;;  %v14240_v31 = vrot.slane %v8084_v11, 5  ;;  %v7909_v14 = vsel %vm12939_vm1, %v9758_v22, %v7908_v34 }
 0x920   : > { %v9760_v16 = vrot.slane %v7881_v38, 9  ;;  %v14244_v61 = vrot.slane %v8087_v2, 6  ;;  %v14246_v52 = vrot.slane %v8120_v44, 5  ;;  %v7756_v35 = vsel %vm12884_vm9, %v7751_v59, %v7755_v47 }
 0x921   : > { %v8057_v19 = vshrl.u32 %v7878_v58, 16  ;;  %v8060_v23 = vshll.u32 %v7878_v58, 16  ;;  %v9751_v4 = vcombine.low %v7756_v35, %v7770_v17  ;;  %v7905_v25 = vsel %vm12939_vm1, %v9757_v60, %v7904_v56 }
 0x922   : > { %v9759_v34 = vrot.slane %v14238_v48, 9  ;;  %v14257_v30 = vrot.slane %v8123_v46, 6  ;;  %v9765_v15 = vcombine.low %v7905_v25, %v7909_v14  ;;  %v8072_v54 = vor.u32 %v14230_v8, %v14222_v26 }
 0x923   : > { %v8077_v57 = vrot.slane %v8075_v32, 5  ;;  %v8080_v5 = vrot.slane %v8078_v13, 6  ;;  %v7917_v36 = vsel %vm12939_vm1, %v9760_v16, %v7916_v7  ;;  %v9761_v10 = vrot.slane %v14250_v53, 9  ;;  %v14280_v7 = vld [vmem:[#allocation2 + $0x70] sm:$0xe] }
 0x924   : > { %v9762_v56 = vrot.slane %v7883_v37, 9  ;;  %v14269_v39 = vrot.slane %v8102_v21, 5  ;;  %v8059_v1 = vrot.slane %v8057_v19, 5  ;;  %v8062_v24 = vrot.slane %v8060_v23, 6  ;;  %v14594_v23 = vld [vmem:[#allocation52_spill] sm:$0xff] }
 0x925   : > { %10474 = vmatmul.mubr.msk.bf16.gmra.mrb[28].mxu0 %vm2684_vm13, %v9751_v4  ;;  %v8090_v55 = vor.u32 %v14244_v61, %v14240_v31  ;;  %v14274_v63 = vrot.slane %v8105_v40, 6  ;;  %v7913_v43 = vsel %vm12939_vm1, %v9759_v34, %v7912_v49  ;;  %v8111_v9 = vshrl.u32 %v7881_v38, 16 }
 0x926   : > { %10479 = vmatprep.mubr.msk.bf16.mxu0 %vm2684_vm13, %v9765_v15  ;;  %v8114_v12 = vshll.u32 %v7881_v38, 16  ;;  %v8126_v11 = vor.u32 %v14257_v30, %v14246_v52  ;;  %v9766_v29 = vcombine.low %v7913_v43, %v7917_v36  ;;  %v8239_v27 = vsel %vm2697_vm0, %v8225_v20, 0  ;;  %v8053_v38 = vld [vmem:[#allocation2 + $0x68] sm:$0x3] }
 0x927   : > { %v9764_v51 = vrot.slane %v14267_v3, 9  ;;  %v8081_v58 = vor.u32 %v8080_v5, %v8077_v57  ;;  %v7921_v33 = vsel %vm12939_vm1, %v9761_v10, %v7920_v50  ;;  %v7925_v49 = vsel %vm12939_vm1, %v9762_v56, %v7924_v41  ;;  %v8055_v10 = vld [vmem:[#allocation2 + $0x80] sm:$0x3] }
 0x928   : > { %v8147_v22 = vshrl.u32 %v7883_v37, 16  ;;  %v8150_v2 = vshll.u32 %v7883_v37, 16  ;;  %v9763_v44 = vrot.slane %v14280_v7, 9  ;;  %v8063_v59 = vor.u32 %v8062_v24, %v8059_v1 }
 0x929   : > { %v8093_v47 = vshrl.u32 %v14238_v48, 16  ;;  %v8096_v20 = vshll.u32 %v14238_v48, 16  ;;  %v8113_v60 = vrot.slane %v8111_v9, 5  ;;  %v8116_v21 = vrot.slane %v8114_v12, 6 }
 0x92a   : > { %v8129_v45 = vshrl.u32 %v14250_v53, 16  ;;  %v8132_v50 = vshll.u32 %v14250_v53, 16  ;;  %v9767_v40 = vcombine.low %v7921_v33, %v7925_v49  ;;  %v7933_v41 = vsel %vm12939_vm1, %v9764_v51, %v7932_v18 }
 0x92b   : > { %v8082_v46 = vrot.slane %v8081_v58, 4  ;;  %v8138_v17 = vshrl.u32 %v8052_v42, 16  ;;  %v8149_v32 = vrot.slane %v8147_v22, 5  ;;  %v8152_v13 = vrot.slane %v8150_v2, 6 }
 0x92c   : > { %v8156_v48 = vshrl.u32 %v8053_v38, 16  ;;  %v8159_v31 = vshll.u32 %v8053_v38, 16  ;;  %v8064_v14 = vrot.slane %v8063_v59, 4  ;;  %v8095_v16 = vrot.slane %v8093_v47, 5 }
 0x92d   : > { %10480 = vmatmul.mubr.msk.bf16.vlgmr.msra.gmra.mrb[24].mxu0 %vm2684_vm13, %v9766_v29  ;;  %v8098_v61 = vrot.slane %v8096_v20, 6  ;;  %v8141_v35 = vshll.u32 %v8052_v42, 16  ;;  %v7929_v6 = vsel %vm12939_vm1, %v9763_v44, %v7928_v0  ;;  %v8117_v18 = vor.u32 %v8116_v21, %v8113_v60  ;;  %v8054_v0 = vld [vmem:[#allocation2 + $0x74] sm:$0x3] }
 0x92e   : > { %10488 = vmatpush3.bf16.msra.mxu0 %v8239_v27  ;;  %10483 = vmatprep.mubr.msk.bf16.mxu0 %vm2684_vm13, %v9767_v40  ;;  %v8131_v53 = vrot.slane %v8129_v45, 5  ;;  %v8134_v37 = vrot.slane %v8132_v50, 6  ;;  %v9768_v19 = vcombine.low %v7929_v6, %v7933_v41  ;;  %v8091_v4 = vsel %vm13009_vm6, %v8082_v46, %v8090_v55 }
 0x92f   : > { %v8183_v25 = vshrl.u32 %v14267_v3, 16  ;;  %v8186_v34 = vshll.u32 %v14267_v3, 16  ;;  %v8140_v15 = vrot.slane %v8138_v17, 5  ;;  %v8153_v57 = vor.u32 %v8152_v13, %v8149_v32  ;;  %v10501_v32 = vpop.f32.mrb[24].mxu1  ;;  %v14340_v13 = vld [vmem:[#allocation31] ss:$0 sm:$0xff] }
 0x930   : > { %v8158_v5 = vrot.slane %v8156_v48, 5  ;;  %v8161_v36 = vrot.slane %v8159_v31, 6  ;;  %v8073_v62 = vsel %vm13009_vm6, %v8064_v14, %v8072_v54  ;;  %v8099_v28 = vor.u32 %v8098_v61, %v8095_v16  ;;  %v14591_v48 = vld [vmem:[#allocation54_spill] sm:$0xff]  ;;  %v8824_v14 = vpop.f32.mrb[25].mxu1  ;;  %v14592_v16 = vld [vmem:[#allocation53_spill] sm:$0xff] }
 0x931   : > { %v8165_v56 = vshrl.u32 %v14280_v7, 16  ;;  %v8168_v1 = vshll.u32 %v14280_v7, 16  ;;  %v9775_v24 = vcombine.low %v8073_v62, %v8091_v4  ;;  %v8118_v55 = vrot.slane %v8117_v18, 4  ;;  %v14593_v18 = vld [vmem:[#allocation55_spill] sm:$0xff] }
 0x932   : > { %v8135_v3 = vor.u32 %v8134_v37, %v8131_v53  ;;  %v8143_v43 = vrot.slane %v8141_v35, 6  ;;  %v8185_v9 = vrot.slane %v8183_v25, 5  ;;  %v8188_v12 = vrot.slane %v8186_v34, 6  ;;  %v10502_v35 = vpop.f32.mrb[26].mxu1 }
 0x933   : > { %v8192_v29 = vshrl.u32 %v8055_v10, 16  ;;  %v8195_v27 = vshll.u32 %v8055_v10, 16  ;;  %v8108_v26 = vor.u32 %v14274_v63, %v14269_v39  ;;  %v8154_v8 = vrot.slane %v8153_v57, 4  ;;  %v8827_v37 = vpop.f32.mrb[27].mxu1 }
 0x934   : > { %v8162_v54 = vor.u32 %v8161_v36, %v8158_v5  ;;  %v8174_v51 = vshrl.u32 %v8054_v0, 16  ;;  %v8100_v58 = vrot.slane %v8099_v28, 4  ;;  %v8167_v7 = vrot.slane %v8165_v56, 5 }
 0x935   : > { %10484 = vmatmul.mubr.msk.bf16.gmra.mrb[28].mxu0 %vm2684_vm13, %v9768_v19  ;;  %v8170_v33 = vrot.slane %v8168_v1, 6  ;;  %v8177_v49 = vshll.u32 %v8054_v0, 16  ;;  %v8136_v42 = vrot.slane %v8135_v3, 4  ;;  %v8144_v22 = vor.u32 %v8143_v43, %v8140_v15 }
 0x936   : > { %10489 = vmatprep.mubr.msk.bf16.mxu0 %vm2684_vm13, %v9775_v24  ;;  %v8127_v2 = vsel %vm13009_vm6, %v8118_v55, %v8126_v11  ;;  %v8189_v44 = vor.u32 %v8188_v12, %v8185_v9  ;;  %v8194_v59 = vrot.slane %v8192_v29, 5  ;;  %v8197_v39 = vrot.slane %v8195_v27, 6  ;;  %v14595_v24 = vld [vmem:[#allocation56_spill] sm:$0xff]  ;;  %v14596_v12 = vld [vmem:[#allocation57_spill] sm:$0xff] }
 0x937   : > { %v8163_v63 = vsel %vm13009_vm6, %v8154_v8, %v8162_v54  ;;  %v8109_v47 = vsel %vm13009_vm6, %v8100_v58, %v8108_v26  ;;  %v8171_v20 = vor.u32 %v8170_v33, %v8167_v7  ;;  %v8176_v38 = vrot.slane %v8174_v51, 5  ;;  %v9785_v58 = vld [vmem:[#allocation28] ss:$0 sm:$0xff] }
 0x938   : > { %v8179_v60 = vrot.slane %v8177_v49, 6  ;;  %v9776_v21 = vcombine.low %v8109_v47, %v8127_v2  ;;  %v8145_v45 = vsel %vm13009_vm6, %v8136_v42, %v8144_v22  ;;  %v8190_v30 = vrot.slane %v8189_v44, 4 }
 0x939   : > { %v9777_v52 = vcombine.low %v8145_v45, %v8163_v63  ;;  %v8198_v50 = vor.u32 %v8197_v39, %v8194_v59  ;;  %v8172_v11 = vrot.slane %v8171_v20, 4  ;;  %v8905_v31 = vmul.f32 %v10501_v32, %v14591_v48  ;;  %v14597_v45 = vld [vmem:[#allocation58_spill] sm:$0xff] }
 0x93a   : > { %v8180_v40 = vor.u32 %v8179_v60, %v8176_v38  ;;  %v8903_v61 = vmul.f32 %v14592_v16, %v8824_v14  ;;  %v8906_v53 = vmul.f32 %v10502_v35, %v14593_v18  ;;  %v8904_v4 = vmul.f32 %v14594_v23, %v8827_v37 }
 0x93b   : > { %v8199_v41 = vsel %vm13009_vm6, %v8190_v30, %v8198_v50  ;;  %v8920_v6 = vadd.f32 %v14340_v13, %v8905_v31  ;;  %vm8393_vm8 = vcmask 453952   ;;  %vm8990_vm10 = vcmask 519616  }
 0x93c   : > { %v8181_v46 = vsel %vm13009_vm6, %v8172_v11, %v8180_v40  ;;  %v8918_v19 = vadd.f32 %v14340_v13, %v8903_v61  ;;  %v8921_v34 = vadd.f32 %v14340_v13, %v8906_v53  ;;  %v8919_v57 = vadd.f32 %v14340_v13, %v8904_v4 }
 0x93d   : > { %10490 = vmatmul.mubr.msk.bf16.vlgmr.msra.gmra.mrb[24].mxu0 %vm2684_vm13, %v9776_v21  ;;  %v9778_v17 = vcombine.low %v8181_v46, %v8199_v41  ;;  %v8928_v25 = vmax.f32 %v8920_v6, 0.0  ;;  %v14598_v46 = vld [vmem:[#allocation59_spill] sm:$0xff] }
 0x93e   : > { %10493 = vmatprep.mubr.msk.bf16.mxu0 %vm2684_vm13, %v9777_v52  ;;  %v8926_v15 = vmax.f32 %v8918_v19, 0.0  ;;  %v8929_v36 = vmax.f32 %v8921_v34, 0.0  ;;  %v8927_v10 = vmax.f32 %v8919_v57, 0.0 }
 0x93f   : > { %v9840_v5 = vpack.c.bf16 %v8928_v25, %v8928_v25 }
 0x940   : > { %v9838_v62 = vpack.c.bf16 %v8926_v15, %v8926_v15  ;;  %v9841_v28 = vpack.c.bf16 %v8929_v36, %v8929_v36  ;;  %v9839_v0 = vpack.c.bf16 %v8927_v10, %v8927_v10 }
 0x941   : > { %8970 = vrot.lane.b32.xlu1 %v9840_v5, %s11840_s0 }
 0x942   : > { %8972 = vrot.lane.b32.xlu0 %v9841_v28, %s11840_s0 }
 0x945   : > { %10494 = vmatmul.mubr.msk.bf16.gmra.mrb[28].mxu0 %vm2684_vm13, %v9778_v17  ;;  %8966 = vrot.lane.b32.xlu1 %v9838_v62, %s11840_s0 }
 0x946   : > { %8968 = vrot.lane.b32.xlu0 %v9839_v0, %s11840_s0 }
 0x9b4   : > { %v8973_v5 = vpop.permute.xlu0 %8972 }
 0x9b8   : > { %v8969_v10 = vpop.permute.xlu0 %8968 }
 0x9e2   : > { %v10505_v56 = vpop.f32.mrb[28].mxu1 }
 0x9e3   : > { %v8840_v1 = vpop.f32.mrb[29].mxu1  ;;  %v8909_v52 = vmul.f32 %v10505_v56, %v14597_v45 }
 0x9e4   : > { %v8907_v55 = vmul.f32 %v14595_v24, %v8840_v1  ;;  %v10506_v3 = vpop.f32.mrb[30].mxu1 }
 0x9e5   : > { %v8843_v43 = vpop.f32.mrb[31].mxu1  ;;  %v8910_v17 = vmul.f32 %v10506_v3, %v14598_v46  ;;  %v8924_v61 = vadd.f32 %v14340_v13, %v8909_v52 }
 0x9e6   : > { %v8922_v9 = vadd.f32 %v14340_v13, %v8907_v55  ;;  %v8908_v29 = vmul.f32 %v14596_v12, %v8843_v43 }
 0x9e7   : > { %v8925_v53 = vadd.f32 %v14340_v13, %v8910_v17  ;;  %v8932_v23 = vmax.f32 %v8924_v61, 0.0 }
 0x9e8   : > { %v8930_v27 = vmax.f32 %v8922_v9, 0.0  ;;  %v8923_v26 = vadd.f32 %v14340_v13, %v8908_v29  ;;  %v8971_v13 = vpop.permute.xlu1 %8970 }
 0x9e9   : > { %v8933_v25 = vmax.f32 %v8925_v53, 0.0  ;;  %v9844_v15 = vpack.c.bf16 %v8932_v23, %v8932_v23 }
 0x9ea   : > { %v9842_v8 = vpack.c.bf16 %v8930_v27, %v8930_v27  ;;  %v8931_v54 = vmax.f32 %v8923_v26, 0.0 }
 0x9eb   : > { %v9845_v57 = vpack.c.bf16 %v8933_v25, %v8933_v25 }
 0x9ec   : > { %v9843_v51 = vpack.c.bf16 %v8931_v54, %v8931_v54  ;;  %8974 = vrot.lane.b32.xlu1 %v9842_v8, %s11840_s0  ;;  %v8967_v36 = vpop.permute.xlu1 %8966 }
 0x9ee   : > { %8976 = vrot.lane.b32.xlu0 %v9843_v51, %s11840_s0 }
 0xa10   : > { %v10491_v7 = vpop.f32.mrb[24].mxu0 }
 0xa11   : > { %v8323_v33 = vadd.f32 %v10491_v7, %v9785_v58  ;;  %v8275_v49 = vpop.f32.mrb[25].mxu0 }
 0xa12   : > { %v8321_v42 = vadd.f32 %v9785_v58, %v8275_v49  ;;  %v10492_v22 = vpop.f32.mrb[26].mxu0 }
 0xa13   : > { %v8331_v2 = vmax.f32 %v8323_v33, 0.0  ;;  %v8324_v44 = vadd.f32 %v10492_v22, %v9785_v58  ;;  %v8278_v59 = vpop.f32.mrb[27].mxu0 }
 0xa14   : > { %v8322_v39 = vadd.f32 %v9785_v58, %v8278_v59  ;;  %v8329_v47 = vmax.f32 %v8321_v42, 0.0 }
 0xa15   : > { %v9832_v63 = vpack.c.bf16 %v8331_v2, %v8331_v2  ;;  %v8332_v20 = vmax.f32 %v8324_v44, 0.0 }
 0xa16   : > { %v8330_v60 = vmax.f32 %v8322_v39, 0.0  ;;  %v9830_v30 = vpack.c.bf16 %v8329_v47, %v8329_v47 }
 0xa17   : > { %v9833_v38 = vpack.c.bf16 %v8332_v20, %v8332_v20  ;;  %8373 = vrot.lane.b32.xlu1 %v9832_v63, %s11841_s17 }
 0xa18   : > { %v10495_v21 = vpop.f32.mrb[28].mxu0  ;;  %v9831_v32 = vpack.c.bf16 %v8330_v60, %v8330_v60 }
 0xa19   : > { %v8327_v50 = vadd.f32 %v10495_v21, %v9785_v58  ;;  %v8291_v11 = vpop.f32.mrb[29].mxu0  ;;  %8375 = vrot.lane.b32.xlu0 %v9833_v38, %s11841_s17 }
 0xa1a   : > { %v8325_v40 = vadd.f32 %v9785_v58, %v8291_v11  ;;  %v10496_v41 = vpop.f32.mrb[30].mxu0 }
 0xa1b   : > { %v8335_v48 = vmax.f32 %v8327_v50, 0.0  ;;  %v8328_v31 = vadd.f32 %v10496_v41, %v9785_v58  ;;  %v8294_v14 = vpop.f32.mrb[31].mxu0  ;;  %8369 = vrot.lane.b32.xlu1 %v9830_v30, %s11841_s17 }
 0xa1c   : > { %v8326_v16 = vadd.f32 %v9785_v58, %v8294_v14  ;;  %v8333_v6 = vmax.f32 %v8325_v40, 0.0 }
 0xa1d   : > { %v9836_v35 = vpack.c.bf16 %v8335_v48, %v8335_v48  ;;  %v8336_v18 = vmax.f32 %v8328_v31, 0.0  ;;  %8371 = vrot.lane.b32.xlu0 %v9831_v32, %s11841_s17 }
 0xa1e   : > { %v8334_v19 = vmax.f32 %v8326_v16, 0.0  ;;  %v9834_v4 = vpack.c.bf16 %v8333_v6, %v8333_v6 }
 0xa1f   : > { %v9837_v37 = vpack.c.bf16 %v8336_v18, %v8336_v18  ;;  %8381 = vrot.lane.b32.xlu1 %v9836_v35, %s11841_s17 }
 0xa20   : > { %v9835_v34 = vpack.c.bf16 %v8334_v19, %v8334_v19 }
 0xa21   : > { %8383 = vrot.lane.b32.xlu0 %v9837_v37, %s11841_s17 }
 0xa23   : > { %8377 = vrot.lane.b32.xlu1 %v9834_v4, %s11841_s17 }
 0xa25   : > { %8379 = vrot.lane.b32.xlu0 %v9835_v34, %s11841_s17 }
 0xa27   : > { %8978 = vrot.lane.b32.xlu1 %v9844_v15, %s11840_s0 }
 0xa29   : > { %8980 = vrot.lane.b32.xlu0 %v9845_v57, %s11840_s0  ;;  %s11842_s0 = smov [#allocation33]  }
 0xa2a   : > { %s11713_s17 = sshll.u32 %s11842_s0, 4  ;;  %s11714_s17 = int_to_ptr.vmem [resolvable:$false] %s11713_s17 }
 0xa2b   : > { %s11715_s2 = scalar_lea.vmem %s11714_s17, 1024  ;;  %p11716_p13 = scmp.lt.s32.totalorder %s14409_s3, %s11714_s17 }
 0xa2c   : > { %p11717_p1 = scmp.lt.s32.totalorder %s11715_s2, %s11709_s28 }
 0xa2e   : > { %p11718_p4 = por %p11717_p1, %p11716_p13 }
 0xa30   : > { %p11719_p2 = pnand %p11718_p4, %p11712_p12 }
 0xa5e   : > { %v8975_v62 = vpop.permute.xlu1 %8974 }
 0xa60   : > { %v8977_v28 = vpop.permute.xlu0 %8976 }
 0xa89   : > { %v8374_v0 = vpop.permute.xlu1 %8373 }
 0xa8a   : > { %8396 = vst.msk [vmem:[%s12463_s20 + $0x8] sm:$0xf] %vm8393_vm8, %v8374_v0 }
 0xa8b   : > { %8993 = vst.msk [vmem:[%s12463_s20 + $0x8] sm:$0xf] %vm8990_vm10, %v8971_v13  ;;  %v8376_v56 = vpop.permute.xlu0 %8375 }
 0xa8c   : > { %8397 = vst.msk [vmem:[%s12463_s20 + $0xc] sm:$0xf] %vm8393_vm8, %v8376_v56 }
 0xa8d   : > { %8994 = vst.msk [vmem:[%s12463_s20 + $0xc] sm:$0xf] %vm8990_vm10, %v8973_v5  ;;  %v8370_v1 = vpop.permute.xlu1 %8369 }
 0xa8e   : > { %8394 = vst.msk [vmem:[%s12463_s20] sm:$0xf] %vm8393_vm8, %v8370_v1 }
 0xa8f   : > { %8991 = vst.msk [vmem:[%s12463_s20] sm:$0xf] %vm8990_vm10, %v8967_v36  ;;  %v8372_v24 = vpop.permute.xlu0 %8371 }
 0xa90   : > { %8395 = vst.msk [vmem:[%s12463_s20 + $0x4] sm:$0xf] %vm8393_vm8, %v8372_v24 }
 0xa91   : > { %8992 = vst.msk [vmem:[%s12463_s20 + $0x4] sm:$0xf] %vm8990_vm10, %v8969_v10  ;;  %v8382_v55 = vpop.permute.xlu1 %8381 }
 0xa92   : > { %8400 = vst.msk [vmem:[%s12463_s20 + $0x18] sm:$0xf] %vm8393_vm8, %v8382_v55 }
 0xa93   : > { %v8384_v3 = vpop.permute.xlu0 %8383 }
 0xa94   : > { %8401 = vst.msk [vmem:[%s12463_s20 + $0x1c] sm:$0xf] %vm8393_vm8, %v8384_v3 }
 0xa95   : > { %v8378_v43 = vpop.permute.xlu1 %8377 }
 0xa96   : > { %8398 = vst.msk [vmem:[%s12463_s20 + $0x10] sm:$0xf] %vm8393_vm8, %v8378_v43 }
 0xa97   : > { %8995 = vst.msk [vmem:[%s12463_s20 + $0x10] sm:$0xf] %vm8990_vm10, %v8975_v62  ;;  %v8380_v9 = vpop.permute.xlu0 %8379 }
 0xa98   : > { %8399 = vst.msk [vmem:[%s12463_s20 + $0x14] sm:$0xf] %vm8393_vm8, %v8380_v9 }
 0xa99   : > { %8996 = vst.msk [vmem:[%s12463_s20 + $0x14] sm:$0xf] %vm8990_vm10, %v8977_v28  ;;  %v8979_v12 = vpop.permute.xlu1 %8978 }
 0xa9a   : > { %8997 = vst.msk [vmem:[%s12463_s20 + $0x18] sm:$0xf] %vm8990_vm10, %v8979_v12 }
 0xa9b   : > { %v8981_v29 = vpop.permute.xlu0 %8980 }
 0xa9c   : > { %8998 = vst.msk [vmem:[%s12463_s20 + $0x1c] sm:$0xf] %vm8990_vm10, %v8981_v29 }
 0xa9d   : > { %11722 = shalt.err (!%p11719_p2)
}
 0xa9e   : > { %s11723_s20 = scalar_lea.hbm %s14407_s27, 512  ;;  %s11727_s21 = scalar_lea.hbm %s14600_s24, 1024 }
 0xa9f   : > { %p11724_p9 = scmp.ne.s32.totalorder %s14407_s27, %s11723_s20  ;;  %p11728_p11 = scmp.lt.u32.totalorder %s14407_s27, %s14600_s24 }
 0xaa0   : > { %p11729_p0 = scmp.lt.u32.totalorder %s11727_s21, %s11723_s20  ;;  %p11731_p10 = scmp.lt.u32.totalorder %s11723_s20, %s14407_s27 }
 0xaa1   : > { %p11725_p7 = pnand %p11724_p9, %p14601_p8 }
 0xaa2   : > { %p11730_p6 = por %p11729_p0, %p11728_p11 }
 0xaa3   : > { %p11726_p5 = pneg %p11725_p7 }
 0xaa4   : > { %p11732_p3 = por %p11731_p10, %p11730_p6 }
 0xaa6   : > { %p11733_p12 = pnand %p11732_p3, %p11726_p5 }
 0xaa8   : > { %11736 = shalt.err (!%p11733_p12)
}
 0xaa9   : > { %s11843_s28 = smov 64   ;;  %s11844_s2 = smov 4  }
 0xaaa   : > { %10907 = dma.vmem_to_hbm [thread:$0]  (%p14601_p8), %s14409_s3, 512, %s14407_s27, %s9000_s19, %s11843_s28, %s11843_s28, %s11844_s2  }
 0xaab PF: > { %s14602_s25 = sld [smem:[#allocation45_spill]]  ;;  %s14603_s29 = sld [smem:[#allocation48_spill]] }
 0xaac   : > { %p14604_p13 = scmp.ne.s32.totalorder %s14528_s1, 0 }
 0xab1   : > { %s9028_s0 = sand.u32 1, %s14602_s25   ;;  %p14605_p1 = scmp.ge.s32.totalorder %s14603_s29, 2 }
 0xab2   : > { %s9029_s20 = scalar_lea.sflag [#allocation6], %s9028_s0 }
 0xab3   : > { %p10966_p4 = pnand %p14605_p1, %p14604_p13 }
 0xab5   : > { %11794 = dma.done.wait (!%p10966_p4), %s9029_s20, 512  }
 0xab6   : > { %11796 = vsyncadd (!%p10966_p4), %s9029_s20, 4294966784  ;;  %s14606_s27 = sld [smem:[#allocation46_spill]]  ;;  %s14607_s28 = sld [smem:[#allocation47_spill]] }
 0xab7   : > { %p40_p2 = scmp.ge.s32.totalorder %s12341_s30, 4   ;;  %s14608_s29 = smov %s12353_s23 }
 0xab9   :  { %42 = sbr.rel (!%p40_p2) target bundleno = 23 (0x17), region = 217 }
 0xac0   :  { %9034 = vsyncpa [#allocation5], 1 }
 0xac1   :  { %9036 = vsyncpa [#allocation5 + $0x1], 1 }
 0xac2   :  { %9037 = vsyncpa [#allocation8], 1 }
 0xac3   :  { %9038 = vsyncpa [#allocation11], 1 }
 0xac4   :  { %9039 = vsyncpa [#allocation14], 1 }
 0xac5   :  { %9040 = vsyncpa [#allocation17], 1 }
 0xac6   :  { %9041 = vsyncpa [#allocation20], 1 }
 0xac7   :  { %9042 = vsyncpa [#allocation23], 1 }
 0xac8   :  { %9043 = vsyncpa [#allocation26], 1 }
 0xac9   :  { %9044 = vsyncpa [#allocation29], 1 }
 0xaca   :  { %9045 = vsyncpa [#allocation32], 1 }
 0xacb   :  { %9046 = vsyncpa [#allocation6], 1 }
 0xacc   :  { %9048 = vsyncpa [#allocation6 + $0x1], 1 }

</bundles_post_ra>
